<compile_context>
chip_gen: v7x
topology: tpu7x:2x2x1
jax: 0.10.0
libtpu: 0.0.40
codegen_flags: <defaults>
</compile_context>

<pallas_src>
import functools

import jax
import jax.numpy as jnp
import numpy as np
from jax.experimental import pallas as pl
from jax.experimental.pallas import tpu as pltpu

_TM_MAX = 512          # max rows per M tile (review: fatter tiles amortize grid overhead)
_TK_MAX = 1024         # K tile when K is large (keeps weight blocks VMEM-safe)
_COMPUTE_DTYPE = jnp.bfloat16   # MXU-native on v5e/v6e/v7x; accumulation stays f32
_VMEM_LIMIT = 48 * 1024 * 1024  # explicit scoped-VMEM budget (< 64 MiB v7x physical)


def _round_up(x, m):
    return ((x + m - 1) // m) * m


# ----------------------------------------------------------------------------
# Pallas kernel 1: tiled (M, K) @ (K, N) + bias (+ ReLU), K-grid accumulator
# ----------------------------------------------------------------------------
def _matmul_bias_kernel(x_ref, w_ref, b_ref, o_ref, acc_ref, *, relu, n_k):
    k = pl.program_id(1)

    @pl.when(k == 0)
    def _():
        # bias is folded into the accumulator init (keeps epilogue off the
        # per-K-step critical path)
        acc_ref[...] = jnp.broadcast_to(b_ref[...], acc_ref.shape).astype(jnp.float32)

    acc_ref[...] += jnp.dot(x_ref[...], w_ref[...],
                            preferred_element_type=jnp.float32)

    @pl.when(k == n_k - 1)
    def _():
        acc = acc_ref[...]
        if relu:
            acc = jnp.maximum(acc, 0.0)
        o_ref[...] = acc.astype(o_ref.dtype)


def pallas_matmul_bias(x, w, b, relu=False, out_dtype=jnp.float32,
                       compute_dtype=_COMPUTE_DTYPE):
    """x: (M, K), w: (K, N), b: (N,) -> (M, N) in out_dtype."""
    M, K = x.shape
    K2, N = w.shape
    assert K == K2, (K, K2)

    TM = min(_round_up(M, 8), _TM_MAX)
    M_pad = _round_up(M, TM)
    if K <= _TK_MAX:
        TK, K_pad = K, K
    else:
        TK = _TK_MAX
        K_pad = _round_up(K, TK)

    if M_pad != M or K_pad != K:
        x = jnp.pad(x, ((0, M_pad - M), (0, K_pad - K)))
    if K_pad != K:
        w = jnp.pad(w, ((0, K_pad - K), (0, 0)))

    x = x.astype(compute_dtype)
    w = w.astype(compute_dtype)
    b2 = b.reshape(1, N).astype(jnp.float32)

    m_tiles = M_pad // TM
    k_tiles = K_pad // TK

    out = pl.pallas_call(
        functools.partial(_matmul_bias_kernel, relu=relu, n_k=k_tiles),
        out_shape=jax.ShapeDtypeStruct((M_pad, N), out_dtype),
        grid_spec=pltpu.PrefetchScalarGridSpec(
            num_scalar_prefetch=0,
            grid=(m_tiles, k_tiles),
            in_specs=[
                pl.BlockSpec((TM, TK), lambda i, k: (i, k)),
                pl.BlockSpec((TK, N), lambda i, k: (k, 0)),
                pl.BlockSpec((1, N), lambda i, k: (0, 0)),
            ],
            out_specs=pl.BlockSpec((TM, N), lambda i, k: (i, 0)),
            scratch_shapes=[pltpu.VMEM((TM, N), jnp.float32)],
        ),
        compiler_params=pltpu.CompilerParams(
            dimension_semantics=("parallel", "arbitrary"),
            vmem_limit_bytes=_VMEM_LIMIT),
    )(x, w, b2)
    if M_pad != M:
        out = out[:M]
    return out


# ----------------------------------------------------------------------------
# Pallas kernel 2: fused multi-operand matmul  sum_i (X_i @ W_i) + bias (+ReLU)
# Used for ASPP "concat + 1x1 projection" without materializing the concat.
# ----------------------------------------------------------------------------
def _multi_matmul_bias_kernel(*refs, relu, n_pairs):
    x_refs = refs[:n_pairs]
    w_refs = refs[n_pairs:2 * n_pairs]
    b_ref = refs[2 * n_pairs]
    o_ref = refs[2 * n_pairs + 1]

    acc = jnp.broadcast_to(b_ref[...], o_ref.shape).astype(jnp.float32)
    for xr, wr in zip(x_refs, w_refs):
        acc = acc + jnp.dot(xr[...], wr[...], preferred_element_type=jnp.float32)
    if relu:
        acc = jnp.maximum(acc, 0.0)
    o_ref[...] = acc.astype(o_ref.dtype)


def pallas_multi_matmul_bias(xs, ws, b, relu=False, out_dtype=jnp.float32,
                             compute_dtype=_COMPUTE_DTYPE):
    """sum_i xs[i] @ ws[i] + b.  xs[i]: (M, K_i), ws[i]: (K_i, N)."""
    M = xs[0].shape[0]
    N = ws[0].shape[1]
    for x_, w_ in zip(xs, ws):
        assert x_.shape[0] == M and w_.shape[1] == N and x_.shape[1] == w_.shape[0]

    TM = min(_round_up(M, 8), _TM_MAX)
    M_pad = _round_up(M, TM)

    xs_c = []
    for x_ in xs:
        if M_pad != M:
            x_ = jnp.pad(x_, ((0, M_pad - M), (0, 0)))
        xs_c.append(x_.astype(compute_dtype))
    ws_c = [w_.astype(compute_dtype) for w_ in ws]
    b2 = b.reshape(1, N).astype(jnp.float32)

    n_pairs = len(xs_c)
    in_specs = ([pl.BlockSpec((TM, x_.shape[1]), lambda i: (i, 0)) for x_ in xs_c]
                + [pl.BlockSpec((w_.shape[0], N), lambda i: (0, 0)) for w_ in ws_c]
                + [pl.BlockSpec((1, N), lambda i: (0, 0))])

    out = pl.pallas_call(
        functools.partial(_multi_matmul_bias_kernel, relu=relu, n_pairs=n_pairs),
        out_shape=jax.ShapeDtypeStruct((M_pad, N), out_dtype),
        grid_spec=pltpu.PrefetchScalarGridSpec(
            num_scalar_prefetch=0,
            grid=(M_pad // TM,),
            in_specs=in_specs,
            out_specs=pl.BlockSpec((TM, N), lambda i: (i, 0)),
        ),
        compiler_params=pltpu.CompilerParams(
            dimension_semantics=("parallel",),
            vmem_limit_bytes=_VMEM_LIMIT),
    )(*xs_c, *ws_c, b2)
    if M_pad != M:
        out = out[:M]
    return out


# ----------------------------------------------------------------------------
# Pallas kernel 3: fused separable bilinear upsample (align_corners=False)
#   out[c] = Wh @ x[c] @ Ww^T   for a block of channels per grid step.
# Both matmuls run inside one pallas_call; the final (Ho, Wo) tile is written
# with Wo on the lane axis (lane-dense for real output sizes).
# ----------------------------------------------------------------------------
def _bilinear_kernel(x_ref, wh_ref, wwt_ref, o_ref, *, tb):
    wh = wh_ref[...]
    wwt = wwt_ref[...]
    for c in range(tb):
        xc = x_ref[c].astype(jnp.float32)                                  # (H, W)
        t = jnp.dot(wh, xc, preferred_element_type=jnp.float32)            # (Ho, W)
        o_ref[c] = jnp.dot(t, wwt, preferred_element_type=jnp.float32)     # (Ho, Wo)


def _bilinear_matrix(out_size, in_size):
    scale = in_size / out_size
    dst = np.arange(out_size)
    src = np.clip((dst + 0.5) * scale - 0.5, 0.0, in_size - 1)
    lo = np.floor(src).astype(np.int32)
    hi = np.minimum(lo + 1, in_size - 1)
    frac = (src - lo).astype(np.float32)
    M = np.zeros((out_size, in_size), dtype=np.float32)
    M[np.arange(out_size), lo] += 1.0 - frac
    M[np.arange(out_size), hi] += frac
    return jnp.asarray(M)


def bilinear_upsample_flat(x_bc_hw, out_hw):
    """x: (B*C, H, W) -> (B*C, Ho, Wo) f32, bilinear, align_corners=False."""
    BC, H, W = x_bc_hw.shape
    Ho, Wo = out_hw
    Wh = _bilinear_matrix(Ho, H)          # (Ho, H)
    WwT = _bilinear_matrix(Wo, W).T       # (W, Wo)
    tb = max(d for d in (16, 8, 4, 2, 1) if BC % d == 0)

    return pl.pallas_call(
        functools.partial(_bilinear_kernel, tb=tb),
        out_shape=jax.ShapeDtypeStruct((BC, Ho, Wo), jnp.float32),
        grid_spec=pltpu.PrefetchScalarGridSpec(
            num_scalar_prefetch=0,
            grid=(BC // tb,),
            in_specs=[
                pl.BlockSpec((tb, H, W), lambda i: (i, 0, 0)),
                pl.BlockSpec((Ho, H), lambda i: (0, 0)),
                pl.BlockSpec((W, Wo), lambda i: (0, 0)),
            ],
            out_specs=pl.BlockSpec((tb, Ho, Wo), lambda i: (i, 0, 0)),
        ),
        compiler_params=pltpu.CompilerParams(
            dimension_semantics=("parallel",),
            vmem_limit_bytes=_VMEM_LIMIT),
    )(x_bc_hw, Wh, WwT)


# ----------------------------------------------------------------------------
# Conv via im2col (NHWC, no layout transposes) + Pallas matmul
# ----------------------------------------------------------------------------
def _im2col_nhwc(x, kh, kw, stride, dilation):
    # TODO(synk): replace im2col (kh*kw HBM read amplification for 3x3 convs)
    #             with in-kernel tap accumulation from a resident padded tile.
    N, H, W, C = x.shape
    if kh == 1 and kw == 1 and stride == 1:
        return x.reshape(N * H * W, C), (N, H, W)
    pad_h = (dilation * (kh - 1)) // 2
    pad_w = (dilation * (kw - 1)) // 2
    Ho = (H + 2 * pad_h - dilation * (kh - 1) - 1) // stride + 1
    Wo = (W + 2 * pad_w - dilation * (kw - 1) - 1) // stride + 1
    xp = jnp.pad(x, ((0, 0), (pad_h, pad_h), (pad_w, pad_w), (0, 0)))
    patches = []
    for i in range(kh):
        for j in range(kw):
            h0, w0 = i * dilation, j * dilation
            sl = xp[:, h0:h0 + stride * (Ho - 1) + 1:stride,
                       w0:w0 + stride * (Wo - 1) + 1:stride, :]
            patches.append(sl)
    cols = jnp.concatenate(patches, axis=-1).reshape(N * Ho * Wo, kh * kw * C)
    return cols, (N, Ho, Wo)


def conv2d_nhwc(x, w_mat, b, kh, kw, stride=1, dilation=1, relu=False,
                out_dtype=jnp.bfloat16):
    """x: (N, H, W, C_in) ; w_mat: (kh*kw*C_in, C_out) in (i, j, c) patch order."""
    cols, (N, Ho, Wo) = _im2col_nhwc(x, kh, kw, stride, dilation)
    y = pallas_matmul_bias(cols, w_mat, b, relu=relu, out_dtype=out_dtype)
    return y.reshape(N, Ho, Wo, w_mat.shape[1])


# ----------------------------------------------------------------------------
# MultitaskLearner
# ----------------------------------------------------------------------------
class MultitaskLearnerPallas:
    def __init__(self, num_classes, enabled_tasks, loss_uncertainties,
                 aspp_dilations, output_size, key, dropout=None):
        self.num_classes = num_classes
        self.enabled_tasks = enabled_tasks
        self.aspp_dilations = aspp_dilations
        self.output_size = output_size
        # loss log-variance parameters (not used in forward, kept for fidelity)
        self.sem_log_var = jnp.float32(loss_uncertainties[0])
        self.inst_log_var = jnp.float32(loss_uncertainties[1])
        self.depth_log_var = jnp.float32(loss_uncertainties[2])
        # dropout inactive at inference; ignored.

        def init_conv(k, cout, cin, kh, kw):
            k1, k2 = jax.random.split(k)
            scale = 1.0 / np.sqrt(cin * kh * kw)
            w = jax.random.normal(k1, (cout, cin, kh, kw), jnp.float32) * scale
            b = jax.random.normal(k2, (cout,), jnp.float32) * scale
            # (C_out, C_in, kh, kw) -> (kh*kw*C_in, C_out) matching im2col order
            w_mat = jnp.transpose(w, (2, 3, 1, 0)).reshape(kh * kw * cin, cout)
            return w_mat, b

        keys = jax.random.split(key, 10)
        # Encoder (simplified stand-in, see TODO at top of file)
        self.stem_mat, self.stem_b = init_conv(keys[0], 32, 3, 3, 3)
        self.conv2_mat, self.conv2_b = init_conv(keys[1], 64, 32, 3, 3)
        self.aspp1_mat, self.aspp1_b = init_conv(keys[2], 64, 64, 1, 1)
        self.asppA_mat, self.asppA_b = init_conv(keys[3], 64, 64, 3, 3)
        self.asppB_mat, self.asppB_b = init_conv(keys[4], 64, 64, 3, 3)
        self.asppC_mat, self.asppC_b = init_conv(keys[5], 64, 64, 3, 3)
        self.proj_mat, self.proj_b = init_conv(keys[6], 128, 256, 1, 1)
        # Decoders: per-task 1x1 conv heads (fused along C_out for enabled tasks)
        self.sem_mat, self.sem_b = init_conv(keys[7], num_classes, 128, 1, 1)
        self.inst_mat, self.inst_b = init_conv(keys[8], 2, 128, 1, 1)
        self.depth_mat, self.depth_b = init_conv(keys[9], 1, 128, 1, 1)

        head_mats, head_bs = [], []
        sem_en, inst_en, depth_en = enabled_tasks
        if sem_en:
            head_mats.append(self.sem_mat); head_bs.append(self.sem_b)
        if inst_en:
            head_mats.append(self.inst_mat); head_bs.append(self.inst_b)
        if depth_en:
            head_mats.append(self.depth_mat); head_bs.append(self.depth_b)
        if head_mats:
            self.heads_mat = jnp.concatenate(head_mats, axis=1)
            self.heads_b = jnp.concatenate(head_bs, axis=0)
        else:
            self.heads_mat = None
            self.heads_b = None

    def get_loss_params(self):
        return self.sem_log_var, self.inst_log_var, self.depth_log_var

    def set_output_size(self, size):
        self.output_size = size

    # ---- encoder: NHWC throughout -------------------------------------------
    def _encoder(self, x_nhwc):
        d1, d2, d3 = self.aspp_dilations
        h = conv2d_nhwc(x_nhwc, self.stem_mat, self.stem_b, 3, 3, stride=2, relu=True)
        h = conv2d_nhwc(h, self.conv2_mat, self.conv2_b, 3, 3, stride=2, relu=True)
        b0 = conv2d_nhwc(h, self.aspp1_mat, self.aspp1_b, 1, 1, relu=True)
        bA = conv2d_nhwc(h, self.asppA_mat, self.asppA_b, 3, 3, dilation=d1, relu=True)
        bB = conv2d_nhwc(h, self.asppB_mat, self.asppB_b, 3, 3, dilation=d2, relu=True)
        bC = conv2d_nhwc(h, self.asppC_mat, self.asppC_b, 3, 3, dilation=d3, relu=True)
        # Fused concat + 1x1 projection: proj(concat[b0,bA,bB,bC]) = sum_i b_i @ W_i
        B, Hf, Wf, Cb = b0.shape
        M = B * Hf * Wf
        xs = [t.reshape(M, Cb) for t in (b0, bA, bB, bC)]
        ws = [self.proj_mat[i * Cb:(i + 1) * Cb] for i in range(4)]
        feat = pallas_multi_matmul_bias(xs, ws, self.proj_b, relu=True,
                                        out_dtype=jnp.bfloat16)
        return feat.reshape(B, Hf, Wf, self.proj_mat.shape[1])

    # ---- decoders: fused heads + fused bilinear upsample ---------------------
    def _decoders(self, feat_nhwc):
        sem_en, inst_en, depth_en = self.enabled_tasks
        if self.heads_mat is None:
            return None, None, None

        heads = conv2d_nhwc(feat_nhwc, self.heads_mat, self.heads_b, 1, 1,
                            relu=False, out_dtype=jnp.bfloat16)
        B, Hf, Wf, Ctot = heads.shape
        # -> NCHW (also the public output layout), then one fused upsample pass
        heads_nchw = jnp.transpose(heads, (0, 3, 1, 2))
        up = bilinear_upsample_flat(heads_nchw.reshape(B * Ctot, Hf, Wf),
                                    self.output_size)
        up = up.reshape(B, Ctot, self.output_size[0], self.output_size[1])

        sem = inst = depth = None
        idx = 0
        if sem_en:
            sem = up[:, idx:idx + self.num_classes]
            idx += self.num_classes
        if inst_en:
            inst = up[:, idx:idx + 2]
            idx += 2
        if depth_en:
            depth = up[:, idx:idx + 1]
            idx += 1
        return sem, inst, depth

    def forward(self, x_nchw):
        """Returns sem_seg_output, instance_seg_output, depth_output (NCHW)."""
        x = jnp.transpose(x_nchw, (0, 2, 3, 1)).astype(jnp.float32)  # -> NHWC once
        return self._decoders(self._encoder(x))


# ----------------------------------------------------------------------------
if __name__ == "__main__":
    key = jax.random.PRNGKey(0)
    k_x, k_p = jax.random.split(key)

    # small NCHW input (PyTorch convention), Cityscapes-like 1:2 aspect ratio
    x = jax.random.normal(k_x, (2, 3, 32, 64), dtype=jnp.float32)

    model = MultitaskLearnerPallas(
        num_classes=5,
        enabled_tasks=(True, True, True),
        loss_uncertainties=(0.0, 0.0, 0.0),
        aspp_dilations=(1, 2, 3),
        output_size=(16, 32),
        key=k_p,
    )

    fwd = jax.jit(model.forward)
    sem, inst, depth = fwd(x)
    (sem, inst, depth) = jax.block_until_ready((sem, inst, depth))

    assert sem.shape == (2, 5, 16, 32), sem.shape
    assert inst.shape == (2, 2, 16, 32), inst.shape
    assert depth.shape == (2, 1, 16, 32), depth.shape
    assert sem.dtype == inst.dtype == depth.dtype == jnp.float32
    assert np.all(np.isfinite(np.asarray(sem)))
    assert np.all(np.isfinite(np.asarray(inst)))
    assert np.all(np.isfinite(np.asarray(depth)))

    print("KERNEL_OK")
</pallas_src>

<mosaic_0001>
module attributes {stable_mosaic.version = 11 : i64} {
  func.func @_matmul_bias_kernel(%arg0: i32, %arg1: i32, %arg2: memref<512x27xbf16, #tpu.memory_space<vmem>>, %arg3: memref<27x32xbf16, #tpu.memory_space<vmem>>, %arg4: memref<1x32xf32, #tpu.memory_space<vmem>>, %arg5: memref<512x32xbf16, #tpu.memory_space<vmem>>, %arg6: memref<512x32xf32, #tpu.memory_space<vmem>>) attributes {dimension_semantics = [#tpu.dimension_semantics<parallel>, #tpu.dimension_semantics<arbitrary>], iteration_bounds = array<i64: 2, 1>, scalar_prefetch = 0 : i64, scratch_operands = 1 : i64, tpu.core_type = #tpu.core_type<tc>, window_params = [{transform_indices = @transform_0, window_bounds = array<i64: 512, 27>}, {transform_indices = @transform_1, window_bounds = array<i64: 27, 32>}, {pipeline_mode = #tpu.pipeline_mode<synchronous>, transform_indices = @transform_2, window_bounds = array<i64: 1, 32>}, {transform_indices = @transform_3, window_bounds = array<i64: 512, 32>}]} {
    %c0_i32 = arith.constant 0 : i32
    %0 = arith.cmpi eq, %arg1, %c0_i32 : i32
    %1 = arith.extui %0 : i1 to i32
    %c0_i32_0 = arith.constant 0 : i32
    %2 = arith.cmpi ne, %1, %c0_i32_0 : i32
    scf.if %2 {
      %c0_10 = arith.constant 0 : index
      %c0_11 = arith.constant 0 : index
      %12 = vector.load %arg4[%c0_10, %c0_11] : memref<1x32xf32, #tpu.memory_space<vmem>>, vector<1x32xf32>
      %13 = vector.shape_cast %12 : vector<1x32xf32> to vector<1x32xf32>
      %14 = vector.broadcast %13 : vector<1x32xf32> to vector<512x32xf32>
      %c0_12 = arith.constant 0 : index
      %c0_13 = arith.constant 0 : index
      %15 = vector.load %arg6[%c0_12, %c0_13] : memref<512x32xf32, #tpu.memory_space<vmem>>, vector<512x32xf32>
      tpu.vector_store %arg6[%c0_12, %c0_13], %14 {strides = array<i32>} : memref<512x32xf32, #tpu.memory_space<vmem>>, vector<512x32xf32>,
    } else {
    }
    %c0 = arith.constant 0 : index
    %c0_1 = arith.constant 0 : index
    %3 = vector.load %arg6[%c0, %c0_1] : memref<512x32xf32, #tpu.memory_space<vmem>>, vector<512x32xf32>
    %c0_2 = arith.constant 0 : index
    %c0_3 = arith.constant 0 : index
    %4 = vector.load %arg2[%c0_2, %c0_3] : memref<512x27xbf16, #tpu.memory_space<vmem>>, vector<512x27xbf16>
    %c0_4 = arith.constant 0 : index
    %c0_5 = arith.constant 0 : index
    %5 = vector.load %arg3[%c0_4, %c0_5] : memref<27x32xbf16, #tpu.memory_space<vmem>>, vector<27x32xbf16>
    %cst = arith.constant dense<0.000000e+00> : vector<512x32xf32>
    %6 = tpu.matmul %4, %5, %cst {dimension_numbers = #tpu.dot_dimension_numbers<[1], [0], [0], [1], [0, 0, 1, 1], [], []>} : vector<512x27xbf16>, vector<27x32xbf16>, vector<512x32xf32> -> vector<512x32xf32>
    %7 = arith.addf %3, %6 : vector<512x32xf32>
    %c0_6 = arith.constant 0 : index
    %c0_7 = arith.constant 0 : index
    %8 = vector.load %arg6[%c0_6, %c0_7] : memref<512x32xf32, #tpu.memory_space<vmem>>, vector<512x32xf32>
    tpu.vector_store %arg6[%c0_6, %c0_7], %7 {strides = array<i32>} : memref<512x32xf32, #tpu.memory_space<vmem>>, vector<512x32xf32>,
    %c0_i32_8 = arith.constant 0 : i32
    %9 = arith.cmpi eq, %arg1, %c0_i32_8 : i32
    %10 = arith.extui %9 : i1 to i32
    %c0_i32_9 = arith.constant 0 : i32
    %11 = arith.cmpi ne, %10, %c0_i32_9 : i32
    scf.if %11 {
      %c0_10 = arith.constant 0 : index
      %c0_11 = arith.constant 0 : index
      %12 = vector.load %arg6[%c0_10, %c0_11] : memref<512x32xf32, #tpu.memory_space<vmem>>, vector<512x32xf32>
      %cst_12 = arith.constant 0.000000e+00 : f32
      %13 = vector.broadcast %cst_12 : f32 to vector<512x32xf32>
      %14 = arith.maximumf %12, %13 : vector<512x32xf32>
      %15 = arith.truncf %14 : vector<512x32xf32> to vector<512x32xbf16>
      %c0_13 = arith.constant 0 : index
      %c0_14 = arith.constant 0 : index
      %16 = vector.load %arg5[%c0_13, %c0_14] : memref<512x32xbf16, #tpu.memory_space<vmem>>, vector<512x32xbf16>
      tpu.vector_store %arg5[%c0_13, %c0_14], %15 {strides = array<i32>} : memref<512x32xbf16, #tpu.memory_space<vmem>>, vector<512x32xbf16>,
    } else {
    }
    return
  }
  func.func @transform_0(%arg0: i32, %arg1: i32) -> (i32, i32) {
    %c0_i32 = arith.constant 0 : i32
    return %arg0, %arg1 : i32, i32
  }
  func.func @transform_1(%arg0: i32, %arg1: i32) -> (i32, i32) {
    %c0_i32 = arith.constant 0 : i32
    %c0_i32_0 = arith.constant 0 : i32
    return %arg1, %c0_i32 : i32, i32
  }
  func.func @transform_2(%arg0: i32, %arg1: i32) -> (i32, i32) {
    %c0_i32 = arith.constant 0 : i32
    %c0_i32_0 = arith.constant 0 : i32
    %c0_i32_1 = arith.constant 0 : i32
    return %c0_i32, %c0_i32_0 : i32, i32
  }
  func.func @transform_3(%arg0: i32, %arg1: i32) -> (i32, i32) {
    %c0_i32 = arith.constant 0 : i32
    %c0_i32_0 = arith.constant 0 : i32
    return %arg0, %c0_i32 : i32, i32
  }
}

module attributes {stable_mosaic.version = 11 : i64} {
  func.func @_matmul_bias_kernel(%arg0: i32, %arg1: i32, %arg2: memref<256x288xbf16, #tpu.memory_space<vmem>>, %arg3: memref<288x64xbf16, #tpu.memory_space<vmem>>, %arg4: memref<1x64xf32, #tpu.memory_space<vmem>>, %arg5: memref<256x64xbf16, #tpu.memory_space<vmem>>, %arg6: memref<256x64xf32, #tpu.memory_space<vmem>>) attributes {dimension_semantics = [#tpu.dimension_semantics<parallel>, #tpu.dimension_semantics<arbitrary>], iteration_bounds = array<i64: 1, 1>, scalar_prefetch = 0 : i64, scratch_operands = 1 : i64, tpu.core_type = #tpu.core_type<tc>, window_params = [{transform_indices = @transform_0, window_bounds = array<i64: 256, 288>}, {transform_indices = @transform_1, window_bounds = array<i64: 288, 64>}, {pipeline_mode = #tpu.pipeline_mode<synchronous>, transform_indices = @transform_2, window_bounds = array<i64: 1, 64>}, {transform_indices = @transform_3, window_bounds = array<i64: 256, 64>}]} {
    %c0_i32 = arith.constant 0 : i32
    %0 = arith.cmpi eq, %arg1, %c0_i32 : i32
    %1 = arith.extui %0 : i1 to i32
    %c0_i32_0 = arith.constant 0 : i32
    %2 = arith.cmpi ne, %1, %c0_i32_0 : i32
    scf.if %2 {
      %c0_10 = arith.constant 0 : index
      %c0_11 = arith.constant 0 : index
      %12 = vector.load %arg4[%c0_10, %c0_11] : memref<1x64xf32, #tpu.memory_space<vmem>>, vector<1x64xf32>
      %13 = vector.shape_cast %12 : vector<1x64xf32> to vector<1x64xf32>
      %14 = vector.broadcast %13 : vector<1x64xf32> to vector<256x64xf32>
      %c0_12 = arith.constant 0 : index
      %c0_13 = arith.constant 0 : index
      %15 = vector.load %arg6[%c0_12, %c0_13] : memref<256x64xf32, #tpu.memory_space<vmem>>, vector<256x64xf32>
      tpu.vector_store %arg6[%c0_12, %c0_13], %14 {strides = array<i32>} : memref<256x64xf32, #tpu.memory_space<vmem>>, vector<256x64xf32>,
    } else {
    }
    %c0 = arith.constant 0 : index
    %c0_1 = arith.constant 0 : index
    %3 = vector.load %arg6[%c0, %c0_1] : memref<256x64xf32, #tpu.memory_space<vmem>>, vector<256x64xf32>
    %c0_2 = arith.constant 0 : index
    %c0_3 = arith.constant 0 : index
    %4 = vector.load %arg2[%c0_2, %c0_3] : memref<256x288xbf16, #tpu.memory_space<vmem>>, vector<256x288xbf16>
    %c0_4 = arith.constant 0 : index
    %c0_5 = arith.constant 0 : index
    %5 = vector.load %arg3[%c0_4, %c0_5] : memref<288x64xbf16, #tpu.memory_space<vmem>>, vector<288x64xbf16>
    %cst = arith.constant dense<0.000000e+00> : vector<256x64xf32>
    %6 = tpu.matmul %4, %5, %cst {dimension_numbers = #tpu.dot_dimension_numbers<[1], [0], [0], [1], [0, 0, 1, 1], [], []>} : vector<256x288xbf16>, vector<288x64xbf16>, vector<256x64xf32> -> vector<256x64xf32>
    %7 = arith.addf %3, %6 : vector<256x64xf32>
    %c0_6 = arith.constant 0 : index
    %c0_7 = arith.constant 0 : index
    %8 = vector.load %arg6[%c0_6, %c0_7] : memref<256x64xf32, #tpu.memory_space<vmem>>, vector<256x64xf32>
    tpu.vector_store %arg6[%c0_6, %c0_7], %7 {strides = array<i32>} : memref<256x64xf32, #tpu.memory_space<vmem>>, vector<256x64xf32>,
    %c0_i32_8 = arith.constant 0 : i32
    %9 = arith.cmpi eq, %arg1, %c0_i32_8 : i32
    %10 = arith.extui %9 : i1 to i32
    %c0_i32_9 = arith.constant 0 : i32
    %11 = arith.cmpi ne, %10, %c0_i32_9 : i32
    scf.if %11 {
      %c0_10 = arith.constant 0 : index
      %c0_11 = arith.constant 0 : index
      %12 = vector.load %arg6[%c0_10, %c0_11] : memref<256x64xf32, #tpu.memory_space<vmem>>, vector<256x64xf32>
      %cst_12 = arith.constant 0.000000e+00 : f32
      %13 = vector.broadcast %cst_12 : f32 to vector<256x64xf32>
      %14 = arith.maximumf %12, %13 : vector<256x64xf32>
      %15 = arith.truncf %14 : vector<256x64xf32> to vector<256x64xbf16>
      %c0_13 = arith.constant 0 : index
      %c0_14 = arith.constant 0 : index
      %16 = vector.load %arg5[%c0_13, %c0_14] : memref<256x64xbf16, #tpu.memory_space<vmem>>, vector<256x64xbf16>
      tpu.vector_store %arg5[%c0_13, %c0_14], %15 {strides = array<i32>} : memref<256x64xbf16, #tpu.memory_space<vmem>>, vector<256x64xbf16>,
    } else {
    }
    return
  }
  func.func @transform_0(%arg0: i32, %arg1: i32) -> (i32, i32) {
    %c0_i32 = arith.constant 0 : i32
    return %arg0, %arg1 : i32, i32
  }
  func.func @transform_1(%arg0: i32, %arg1: i32) -> (i32, i32) {
    %c0_i32 = arith.constant 0 : i32
    %c0_i32_0 = arith.constant 0 : i32
    return %arg1, %c0_i32 : i32, i32
  }
  func.func @transform_2(%arg0: i32, %arg1: i32) -> (i32, i32) {
    %c0_i32 = arith.constant 0 : i32
    %c0_i32_0 = arith.constant 0 : i32
    %c0_i32_1 = arith.constant 0 : i32
    return %c0_i32, %c0_i32_0 : i32, i32
  }
  func.func @transform_3(%arg0: i32, %arg1: i32) -> (i32, i32) {
    %c0_i32 = arith.constant 0 : i32
    %c0_i32_0 = arith.constant 0 : i32
    return %arg0, %c0_i32 : i32, i32
  }
}

module attributes {stable_mosaic.version = 11 : i64} {
  func.func @_matmul_bias_kernel(%arg0: i32, %arg1: i32, %arg2: memref<256x576xbf16, #tpu.memory_space<vmem>>, %arg3: memref<576x64xbf16, #tpu.memory_space<vmem>>, %arg4: memref<1x64xf32, #tpu.memory_space<vmem>>, %arg5: memref<256x64xbf16, #tpu.memory_space<vmem>>, %arg6: memref<256x64xf32, #tpu.memory_space<vmem>>) attributes {dimension_semantics = [#tpu.dimension_semantics<parallel>, #tpu.dimension_semantics<arbitrary>], iteration_bounds = array<i64: 1, 1>, scalar_prefetch = 0 : i64, scratch_operands = 1 : i64, tpu.core_type = #tpu.core_type<tc>, window_params = [{transform_indices = @transform_0, window_bounds = array<i64: 256, 576>}, {transform_indices = @transform_1, window_bounds = array<i64: 576, 64>}, {pipeline_mode = #tpu.pipeline_mode<synchronous>, transform_indices = @transform_2, window_bounds = array<i64: 1, 64>}, {transform_indices = @transform_3, window_bounds = array<i64: 256, 64>}]} {
    %c0_i32 = arith.constant 0 : i32
    %0 = arith.cmpi eq, %arg1, %c0_i32 : i32
    %1 = arith.extui %0 : i1 to i32
    %c0_i32_0 = arith.constant 0 : i32
    %2 = arith.cmpi ne, %1, %c0_i32_0 : i32
    scf.if %2 {
      %c0_10 = arith.constant 0 : index
      %c0_11 = arith.constant 0 : index
      %12 = vector.load %arg4[%c0_10, %c0_11] : memref<1x64xf32, #tpu.memory_space<vmem>>, vector<1x64xf32>
      %13 = vector.shape_cast %12 : vector<1x64xf32> to vector<1x64xf32>
      %14 = vector.broadcast %13 : vector<1x64xf32> to vector<256x64xf32>
      %c0_12 = arith.constant 0 : index
      %c0_13 = arith.constant 0 : index
      %15 = vector.load %arg6[%c0_12, %c0_13] : memref<256x64xf32, #tpu.memory_space<vmem>>, vector<256x64xf32>
      tpu.vector_store %arg6[%c0_12, %c0_13], %14 {strides = array<i32>} : memref<256x64xf32, #tpu.memory_space<vmem>>, vector<256x64xf32>,
    } else {
    }
    %c0 = arith.constant 0 : index
    %c0_1 = arith.constant 0 : index
    %3 = vector.load %arg6[%c0, %c0_1] : memref<256x64xf32, #tpu.memory_space<vmem>>, vector<256x64xf32>
    %c0_2 = arith.constant 0 : index
    %c0_3 = arith.constant 0 : index
    %4 = vector.load %arg2[%c0_2, %c0_3] : memref<256x576xbf16, #tpu.memory_space<vmem>>, vector<256x576xbf16>
    %c0_4 = arith.constant 0 : index
    %c0_5 = arith.constant 0 : index
    %5 = vector.load %arg3[%c0_4, %c0_5] : memref<576x64xbf16, #tpu.memory_space<vmem>>, vector<576x64xbf16>
    %cst = arith.constant dense<0.000000e+00> : vector<256x64xf32>
    %6 = tpu.matmul %4, %5, %cst {dimension_numbers = #tpu.dot_dimension_numbers<[1], [0], [0], [1], [0, 0, 1, 1], [], []>} : vector<256x576xbf16>, vector<576x64xbf16>, vector<256x64xf32> -> vector<256x64xf32>
    %7 = arith.addf %3, %6 : vector<256x64xf32>
    %c0_6 = arith.constant 0 : index
    %c0_7 = arith.constant 0 : index
    %8 = vector.load %arg6[%c0_6, %c0_7] : memref<256x64xf32, #tpu.memory_space<vmem>>, vector<256x64xf32>
    tpu.vector_store %arg6[%c0_6, %c0_7], %7 {strides = array<i32>} : memref<256x64xf32, #tpu.memory_space<vmem>>, vector<256x64xf32>,
    %c0_i32_8 = arith.constant 0 : i32
    %9 = arith.cmpi eq, %arg1, %c0_i32_8 : i32
    %10 = arith.extui %9 : i1 to i32
    %c0_i32_9 = arith.constant 0 : i32
    %11 = arith.cmpi ne, %10, %c0_i32_9 : i32
    scf.if %11 {
      %c0_10 = arith.constant 0 : index
      %c0_11 = arith.constant 0 : index
      %12 = vector.load %arg6[%c0_10, %c0_11] : memref<256x64xf32, #tpu.memory_space<vmem>>, vector<256x64xf32>
      %cst_12 = arith.constant 0.000000e+00 : f32
      %13 = vector.broadcast %cst_12 : f32 to vector<256x64xf32>
      %14 = arith.maximumf %12, %13 : vector<256x64xf32>
      %15 = arith.truncf %14 : vector<256x64xf32> to vector<256x64xbf16>
      %c0_13 = arith.constant 0 : index
      %c0_14 = arith.constant 0 : index
      %16 = vector.load %arg5[%c0_13, %c0_14] : memref<256x64xbf16, #tpu.memory_space<vmem>>, vector<256x64xbf16>
      tpu.vector_store %arg5[%c0_13, %c0_14], %15 {strides = array<i32>} : memref<256x64xbf16, #tpu.memory_space<vmem>>, vector<256x64xbf16>,
    } else {
    }
    return
  }
  func.func @transform_0(%arg0: i32, %arg1: i32) -> (i32, i32) {
    %c0_i32 = arith.constant 0 : i32
    return %arg0, %arg1 : i32, i32
  }
  func.func @transform_1(%arg0: i32, %arg1: i32) -> (i32, i32) {
    %c0_i32 = arith.constant 0 : i32
    %c0_i32_0 = arith.constant 0 : i32
    return %arg1, %c0_i32 : i32, i32
  }
  func.func @transform_2(%arg0: i32, %arg1: i32) -> (i32, i32) {
    %c0_i32 = arith.constant 0 : i32
    %c0_i32_0 = arith.constant 0 : i32
    %c0_i32_1 = arith.constant 0 : i32
    return %c0_i32, %c0_i32_0 : i32, i32
  }
  func.func @transform_3(%arg0: i32, %arg1: i32) -> (i32, i32) {
    %c0_i32 = arith.constant 0 : i32
    %c0_i32_0 = arith.constant 0 : i32
    return %arg0, %c0_i32 : i32, i32
  }
}

module attributes {stable_mosaic.version = 11 : i64} {
  func.func @_matmul_bias_kernel(%arg0: i32, %arg1: i32, %arg2: memref<256x64xbf16, #tpu.memory_space<vmem>>, %arg3: memref<64x64xbf16, #tpu.memory_space<vmem>>, %arg4: memref<1x64xf32, #tpu.memory_space<vmem>>, %arg5: memref<256x64xbf16, #tpu.memory_space<vmem>>, %arg6: memref<256x64xf32, #tpu.memory_space<vmem>>) attributes {dimension_semantics = [#tpu.dimension_semantics<parallel>, #tpu.dimension_semantics<arbitrary>], iteration_bounds = array<i64: 1, 1>, scalar_prefetch = 0 : i64, scratch_operands = 1 : i64, tpu.core_type = #tpu.core_type<tc>, window_params = [{transform_indices = @transform_0, window_bounds = array<i64: 256, 64>}, {transform_indices = @transform_1, window_bounds = array<i64: 64, 64>}, {pipeline_mode = #tpu.pipeline_mode<synchronous>, transform_indices = @transform_2, window_bounds = array<i64: 1, 64>}, {transform_indices = @transform_3, window_bounds = array<i64: 256, 64>}]} {
    %c0_i32 = arith.constant 0 : i32
    %0 = arith.cmpi eq, %arg1, %c0_i32 : i32
    %1 = arith.extui %0 : i1 to i32
    %c0_i32_0 = arith.constant 0 : i32
    %2 = arith.cmpi ne, %1, %c0_i32_0 : i32
    scf.if %2 {
      %c0_10 = arith.constant 0 : index
      %c0_11 = arith.constant 0 : index
      %12 = vector.load %arg4[%c0_10, %c0_11] : memref<1x64xf32, #tpu.memory_space<vmem>>, vector<1x64xf32>
      %13 = vector.shape_cast %12 : vector<1x64xf32> to vector<1x64xf32>
      %14 = vector.broadcast %13 : vector<1x64xf32> to vector<256x64xf32>
      %c0_12 = arith.constant 0 : index
      %c0_13 = arith.constant 0 : index
      %15 = vector.load %arg6[%c0_12, %c0_13] : memref<256x64xf32, #tpu.memory_space<vmem>>, vector<256x64xf32>
      tpu.vector_store %arg6[%c0_12, %c0_13], %14 {strides = array<i32>} : memref<256x64xf32, #tpu.memory_space<vmem>>, vector<256x64xf32>,
    } else {
    }
    %c0 = arith.constant 0 : index
    %c0_1 = arith.constant 0 : index
    %3 = vector.load %arg6[%c0, %c0_1] : memref<256x64xf32, #tpu.memory_space<vmem>>, vector<256x64xf32>
    %c0_2 = arith.constant 0 : index
    %c0_3 = arith.constant 0 : index
    %4 = vector.load %arg2[%c0_2, %c0_3] : memref<256x64xbf16, #tpu.memory_space<vmem>>, vector<256x64xbf16>
    %c0_4 = arith.constant 0 : index
    %c0_5 = arith.constant 0 : index
    %5 = vector.load %arg3[%c0_4, %c0_5] : memref<64x64xbf16, #tpu.memory_space<vmem>>, vector<64x64xbf16>
    %cst = arith.constant dense<0.000000e+00> : vector<256x64xf32>
    %6 = tpu.matmul %4, %5, %cst {dimension_numbers = #tpu.dot_dimension_numbers<[1], [0], [0], [1], [0, 0, 1, 1], [], []>} : vector<256x64xbf16>, vector<64x64xbf16>, vector<256x64xf32> -> vector<256x64xf32>
    %7 = arith.addf %3, %6 : vector<256x64xf32>
    %c0_6 = arith.constant 0 : index
    %c0_7 = arith.constant 0 : index
    %8 = vector.load %arg6[%c0_6, %c0_7] : memref<256x64xf32, #tpu.memory_space<vmem>>, vector<256x64xf32>
    tpu.vector_store %arg6[%c0_6, %c0_7], %7 {strides = array<i32>} : memref<256x64xf32, #tpu.memory_space<vmem>>, vector<256x64xf32>,
    %c0_i32_8 = arith.constant 0 : i32
    %9 = arith.cmpi eq, %arg1, %c0_i32_8 : i32
    %10 = arith.extui %9 : i1 to i32
    %c0_i32_9 = arith.constant 0 : i32
    %11 = arith.cmpi ne, %10, %c0_i32_9 : i32
    scf.if %11 {
      %c0_10 = arith.constant 0 : index
      %c0_11 = arith.constant 0 : index
      %12 = vector.load %arg6[%c0_10, %c0_11] : memref<256x64xf32, #tpu.memory_space<vmem>>, vector<256x64xf32>
      %cst_12 = arith.constant 0.000000e+00 : f32
      %13 = vector.broadcast %cst_12 : f32 to vector<256x64xf32>
      %14 = arith.maximumf %12, %13 : vector<256x64xf32>
      %15 = arith.truncf %14 : vector<256x64xf32> to vector<256x64xbf16>
      %c0_13 = arith.constant 0 : index
      %c0_14 = arith.constant 0 : index
      %16 = vector.load %arg5[%c0_13, %c0_14] : memref<256x64xbf16, #tpu.memory_space<vmem>>, vector<256x64xbf16>
      tpu.vector_store %arg5[%c0_13, %c0_14], %15 {strides = array<i32>} : memref<256x64xbf16, #tpu.memory_space<vmem>>, vector<256x64xbf16>,
    } else {
    }
    return
  }
  func.func @transform_0(%arg0: i32, %arg1: i32) -> (i32, i32) {
    %c0_i32 = arith.constant 0 : i32
    return %arg0, %arg1 : i32, i32
  }
  func.func @transform_1(%arg0: i32, %arg1: i32) -> (i32, i32) {
    %c0_i32 = arith.constant 0 : i32
    %c0_i32_0 = arith.constant 0 : i32
    return %arg1, %c0_i32 : i32, i32
  }
  func.func @transform_2(%arg0: i32, %arg1: i32) -> (i32, i32) {
    %c0_i32 = arith.constant 0 : i32
    %c0_i32_0 = arith.constant 0 : i32
    %c0_i32_1 = arith.constant 0 : i32
    return %c0_i32, %c0_i32_0 : i32, i32
  }
  func.func @transform_3(%arg0: i32, %arg1: i32) -> (i32, i32) {
    %c0_i32 = arith.constant 0 : i32
    %c0_i32_0 = arith.constant 0 : i32
    return %arg0, %c0_i32 : i32, i32
  }
}

module attributes {stable_mosaic.version = 11 : i64} {
  func.func @_multi_matmul_bias_kernel(%arg0: i32, %arg1: memref<256x64xbf16, #tpu.memory_space<vmem>>, %arg2: memref<256x64xbf16, #tpu.memory_space<vmem>>, %arg3: memref<256x64xbf16, #tpu.memory_space<vmem>>, %arg4: memref<256x64xbf16, #tpu.memory_space<vmem>>, %arg5: memref<64x128xbf16, #tpu.memory_space<vmem>>, %arg6: memref<64x128xbf16, #tpu.memory_space<vmem>>, %arg7: memref<64x128xbf16, #tpu.memory_space<vmem>>, %arg8: memref<64x128xbf16, #tpu.memory_space<vmem>>, %arg9: memref<1x128xf32, #tpu.memory_space<vmem>>, %arg10: memref<256x128xbf16, #tpu.memory_space<vmem>>) attributes {dimension_semantics = [#tpu.dimension_semantics<parallel>], iteration_bounds = array<i64: 1>, scalar_prefetch = 0 : i64, scratch_operands = 0 : i64, tpu.core_type = #tpu.core_type<tc>, window_params = [{transform_indices = @transform_0, window_bounds = array<i64: 256, 64>}, {transform_indices = @transform_1, window_bounds = array<i64: 256, 64>}, {transform_indices = @transform_2, window_bounds = array<i64: 256, 64>}, {transform_indices = @transform_3, window_bounds = array<i64: 256, 64>}, {pipeline_mode = #tpu.pipeline_mode<synchronous>, transform_indices = @transform_4, window_bounds = array<i64: 64, 128>}, {pipeline_mode = #tpu.pipeline_mode<synchronous>, transform_indices = @transform_5, window_bounds = array<i64: 64, 128>}, {pipeline_mode = #tpu.pipeline_mode<synchronous>, transform_indices = @transform_6, window_bounds = array<i64: 64, 128>}, {pipeline_mode = #tpu.pipeline_mode<synchronous>, transform_indices = @transform_7, window_bounds = array<i64: 64, 128>}, {pipeline_mode = #tpu.pipeline_mode<synchronous>, transform_indices = @transform_8, window_bounds = array<i64: 1, 128>}, {transform_indices = @transform_9, window_bounds = array<i64: 256, 128>}]} {
    %c0 = arith.constant 0 : index
    %c0_0 = arith.constant 0 : index
    %0 = vector.load %arg9[%c0, %c0_0] : memref<1x128xf32, #tpu.memory_space<vmem>>, vector<1x128xf32>
    %1 = vector.shape_cast %0 : vector<1x128xf32> to vector<1x128xf32>
    %2 = vector.broadcast %1 : vector<1x128xf32> to vector<256x128xf32>
    %c0_1 = arith.constant 0 : index
    %c0_2 = arith.constant 0 : index
    %3 = vector.load %arg1[%c0_1, %c0_2] : memref<256x64xbf16, #tpu.memory_space<vmem>>, vector<256x64xbf16>
    %c0_3 = arith.constant 0 : index
    %c0_4 = arith.constant 0 : index
    %4 = vector.load %arg5[%c0_3, %c0_4] : memref<64x128xbf16, #tpu.memory_space<vmem>>, vector<64x128xbf16>
    %cst = arith.constant dense<0.000000e+00> : vector<256x128xf32>
    %5 = tpu.matmul %3, %4, %cst {dimension_numbers = #tpu.dot_dimension_numbers<[1], [0], [0], [1], [0, 0, 1, 1], [], []>} : vector<256x64xbf16>, vector<64x128xbf16>, vector<256x128xf32> -> vector<256x128xf32>
    %6 = arith.addf %2, %5 : vector<256x128xf32>
    %c0_5 = arith.constant 0 : index
    %c0_6 = arith.constant 0 : index
    %7 = vector.load %arg2[%c0_5, %c0_6] : memref<256x64xbf16, #tpu.memory_space<vmem>>, vector<256x64xbf16>
    %c0_7 = arith.constant 0 : index
    %c0_8 = arith.constant 0 : index
    %8 = vector.load %arg6[%c0_7, %c0_8] : memref<64x128xbf16, #tpu.memory_space<vmem>>, vector<64x128xbf16>
    %cst_9 = arith.constant dense<0.000000e+00> : vector<256x128xf32>
    %9 = tpu.matmul %7, %8, %cst_9 {dimension_numbers = #tpu.dot_dimension_numbers<[1], [0], [0], [1], [0, 0, 1, 1], [], []>} : vector<256x64xbf16>, vector<64x128xbf16>, vector<256x128xf32> -> vector<256x128xf32>
    %10 = arith.addf %6, %9 : vector<256x128xf32>
    %c0_10 = arith.constant 0 : index
    %c0_11 = arith.constant 0 : index
    %11 = vector.load %arg3[%c0_10, %c0_11] : memref<256x64xbf16, #tpu.memory_space<vmem>>, vector<256x64xbf16>
    %c0_12 = arith.constant 0 : index
    %c0_13 = arith.constant 0 : index
    %12 = vector.load %arg7[%c0_12, %c0_13] : memref<64x128xbf16, #tpu.memory_space<vmem>>, vector<64x128xbf16>
    %cst_14 = arith.constant dense<0.000000e+00> : vector<256x128xf32>
    %13 = tpu.matmul %11, %12, %cst_14 {dimension_numbers = #tpu.dot_dimension_numbers<[1], [0], [0], [1], [0, 0, 1, 1], [], []>} : vector<256x64xbf16>, vector<64x128xbf16>, vector<256x128xf32> -> vector<256x128xf32>
    %14 = arith.addf %10, %13 : vector<256x128xf32>
    %c0_15 = arith.constant 0 : index
    %c0_16 = arith.constant 0 : index
    %15 = vector.load %arg4[%c0_15, %c0_16] : memref<256x64xbf16, #tpu.memory_space<vmem>>, vector<256x64xbf16>
    %c0_17 = arith.constant 0 : index
    %c0_18 = arith.constant 0 : index
    %16 = vector.load %arg8[%c0_17, %c0_18] : memref<64x128xbf16, #tpu.memory_space<vmem>>, vector<64x128xbf16>
    %cst_19 = arith.constant dense<0.000000e+00> : vector<256x128xf32>
    %17 = tpu.matmul %15, %16, %cst_19 {dimension_numbers = #tpu.dot_dimension_numbers<[1], [0], [0], [1], [0, 0, 1, 1], [], []>} : vector<256x64xbf16>, vector<64x128xbf16>, vector<256x128xf32> -> vector<256x128xf32>
    %18 = arith.addf %14, %17 : vector<256x128xf32>
    %cst_20 = arith.constant 0.000000e+00 : f32
    %19 = vector.broadcast %cst_20 : f32 to vector<256x128xf32>
    %20 = arith.maximumf %18, %19 : vector<256x128xf32>
    %21 = arith.truncf %20 : vector<256x128xf32> to vector<256x128xbf16>
    %c0_21 = arith.constant 0 : index
    %c0_22 = arith.constant 0 : index
    %22 = vector.load %arg10[%c0_21, %c0_22] : memref<256x128xbf16, #tpu.memory_space<vmem>>, vector<256x128xbf16>
    tpu.vector_store %arg10[%c0_21, %c0_22], %21 {strides = array<i32>} : memref<256x128xbf16, #tpu.memory_space<vmem>>, vector<256x128xbf16>,
    return
  }
  func.func @transform_0(%arg0: i32) -> (i32, i32) {
    %c0_i32 = arith.constant 0 : i32
    %c0_i32_0 = arith.constant 0 : i32
    return %arg0, %c0_i32 : i32, i32
  }
  func.func @transform_1(%arg0: i32) -> (i32, i32) {
    %c0_i32 = arith.constant 0 : i32
    %c0_i32_0 = arith.constant 0 : i32
    return %arg0, %c0_i32 : i32, i32
  }
  func.func @transform_2(%arg0: i32) -> (i32, i32) {
    %c0_i32 = arith.constant 0 : i32
    %c0_i32_0 = arith.constant 0 : i32
    return %arg0, %c0_i32 : i32, i32
  }
  func.func @transform_3(%arg0: i32) -> (i32, i32) {
    %c0_i32 = arith.constant 0 : i32
    %c0_i32_0 = arith.constant 0 : i32
    return %arg0, %c0_i32 : i32, i32
  }
  func.func @transform_4(%arg0: i32) -> (i32, i32) {
    %c0_i32 = arith.constant 0 : i32
    %c0_i32_0 = arith.constant 0 : i32
    %c0_i32_1 = arith.constant 0 : i32
    return %c0_i32, %c0_i32_0 : i32, i32
  }
  func.func @transform_5(%arg0: i32) -> (i32, i32) {
    %c0_i32 = arith.constant 0 : i32
    %c0_i32_0 = arith.constant 0 : i32
    %c0_i32_1 = arith.constant 0 : i32
    return %c0_i32, %c0_i32_0 : i32, i32
  }
  func.func @transform_6(%arg0: i32) -> (i32, i32) {
    %c0_i32 = arith.constant 0 : i32
    %c0_i32_0 = arith.constant 0 : i32
    %c0_i32_1 = arith.constant 0 : i32
    return %c0_i32, %c0_i32_0 : i32, i32
  }
  func.func @transform_7(%arg0: i32) -> (i32, i32) {
    %c0_i32 = arith.constant 0 : i32
    %c0_i32_0 = arith.constant 0 : i32
    %c0_i32_1 = arith.constant 0 : i32
    return %c0_i32, %c0_i32_0 : i32, i32
  }
  func.func @transform_8(%arg0: i32) -> (i32, i32) {
    %c0_i32 = arith.constant 0 : i32
    %c0_i32_0 = arith.constant 0 : i32
    %c0_i32_1 = arith.constant 0 : i32
    return %c0_i32, %c0_i32_0 : i32, i32
  }
  func.func @transform_9(%arg0: i32) -> (i32, i32) {
    %c0_i32 = arith.constant 0 : i32
    %c0_i32_0 = arith.constant 0 : i32
    return %arg0, %c0_i32 : i32, i32
  }
}

module attributes {stable_mosaic.version = 11 : i64} {
  func.func @_matmul_bias_kernel(%arg0: i32, %arg1: i32, %arg2: memref<256x128xbf16, #tpu.memory_space<vmem>>, %arg3: memref<128x8xbf16, #tpu.memory_space<vmem>>, %arg4: memref<1x8xf32, #tpu.memory_space<vmem>>, %arg5: memref<256x8xbf16, #tpu.memory_space<vmem>>, %arg6: memref<256x8xf32, #tpu.memory_space<vmem>>) attributes {dimension_semantics = [#tpu.dimension_semantics<parallel>, #tpu.dimension_semantics<arbitrary>], iteration_bounds = array<i64: 1, 1>, scalar_prefetch = 0 : i64, scratch_operands = 1 : i64, tpu.core_type = #tpu.core_type<tc>, window_params = [{transform_indices = @transform_0, window_bounds = array<i64: 256, 128>}, {transform_indices = @transform_1, window_bounds = array<i64: 128, 8>}, {pipeline_mode = #tpu.pipeline_mode<synchronous>, transform_indices = @transform_2, window_bounds = array<i64: 1, 8>}, {transform_indices = @transform_3, window_bounds = array<i64: 256, 8>}]} {
    %c0_i32 = arith.constant 0 : i32
    %0 = arith.cmpi eq, %arg1, %c0_i32 : i32
    %1 = arith.extui %0 : i1 to i32
    %c0_i32_0 = arith.constant 0 : i32
    %2 = arith.cmpi ne, %1, %c0_i32_0 : i32
    scf.if %2 {
      %c0_10 = arith.constant 0 : index
      %c0_11 = arith.constant 0 : index
      %12 = vector.load %arg4[%c0_10, %c0_11] : memref<1x8xf32, #tpu.memory_space<vmem>>, vector<1x8xf32>
      %13 = vector.shape_cast %12 : vector<1x8xf32> to vector<1x8xf32>
      %14 = vector.broadcast %13 : vector<1x8xf32> to vector<256x8xf32>
      %c0_12 = arith.constant 0 : index
      %c0_13 = arith.constant 0 : index
      %15 = vector.load %arg6[%c0_12, %c0_13] : memref<256x8xf32, #tpu.memory_space<vmem>>, vector<256x8xf32>
      tpu.vector_store %arg6[%c0_12, %c0_13], %14 {strides = array<i32>} : memref<256x8xf32, #tpu.memory_space<vmem>>, vector<256x8xf32>,
    } else {
    }
    %c0 = arith.constant 0 : index
    %c0_1 = arith.constant 0 : index
    %3 = vector.load %arg6[%c0, %c0_1] : memref<256x8xf32, #tpu.memory_space<vmem>>, vector<256x8xf32>
    %c0_2 = arith.constant 0 : index
    %c0_3 = arith.constant 0 : index
    %4 = vector.load %arg2[%c0_2, %c0_3] : memref<256x128xbf16, #tpu.memory_space<vmem>>, vector<256x128xbf16>
    %c0_4 = arith.constant 0 : index
    %c0_5 = arith.constant 0 : index
    %5 = vector.load %arg3[%c0_4, %c0_5] : memref<128x8xbf16, #tpu.memory_space<vmem>>, vector<128x8xbf16>
    %cst = arith.constant dense<0.000000e+00> : vector<256x8xf32>
    %6 = tpu.matmul %4, %5, %cst {dimension_numbers = #tpu.dot_dimension_numbers<[1], [0], [0], [1], [0, 0, 1, 1], [], []>} : vector<256x128xbf16>, vector<128x8xbf16>, vector<256x8xf32> -> vector<256x8xf32>
    %7 = arith.addf %3, %6 : vector<256x8xf32>
    %c0_6 = arith.constant 0 : index
    %c0_7 = arith.constant 0 : index
    %8 = vector.load %arg6[%c0_6, %c0_7] : memref<256x8xf32, #tpu.memory_space<vmem>>, vector<256x8xf32>
    tpu.vector_store %arg6[%c0_6, %c0_7], %7 {strides = array<i32>} : memref<256x8xf32, #tpu.memory_space<vmem>>, vector<256x8xf32>,
    %c0_i32_8 = arith.constant 0 : i32
    %9 = arith.cmpi eq, %arg1, %c0_i32_8 : i32
    %10 = arith.extui %9 : i1 to i32
    %c0_i32_9 = arith.constant 0 : i32
    %11 = arith.cmpi ne, %10, %c0_i32_9 : i32
    scf.if %11 {
      %c0_10 = arith.constant 0 : index
      %c0_11 = arith.constant 0 : index
      %12 = vector.load %arg6[%c0_10, %c0_11] : memref<256x8xf32, #tpu.memory_space<vmem>>, vector<256x8xf32>
      %13 = arith.truncf %12 : vector<256x8xf32> to vector<256x8xbf16>
      %c0_12 = arith.constant 0 : index
      %c0_13 = arith.constant 0 : index
      %14 = vector.load %arg5[%c0_12, %c0_13] : memref<256x8xbf16, #tpu.memory_space<vmem>>, vector<256x8xbf16>
      tpu.vector_store %arg5[%c0_12, %c0_13], %13 {strides = array<i32>} : memref<256x8xbf16, #tpu.memory_space<vmem>>, vector<256x8xbf16>,
    } else {
    }
    return
  }
  func.func @transform_0(%arg0: i32, %arg1: i32) -> (i32, i32) {
    %c0_i32 = arith.constant 0 : i32
    return %arg0, %arg1 : i32, i32
  }
  func.func @transform_1(%arg0: i32, %arg1: i32) -> (i32, i32) {
    %c0_i32 = arith.constant 0 : i32
    %c0_i32_0 = arith.constant 0 : i32
    return %arg1, %c0_i32 : i32, i32
  }
  func.func @transform_2(%arg0: i32, %arg1: i32) -> (i32, i32) {
    %c0_i32 = arith.constant 0 : i32
    %c0_i32_0 = arith.constant 0 : i32
    %c0_i32_1 = arith.constant 0 : i32
    return %c0_i32, %c0_i32_0 : i32, i32
  }
  func.func @transform_3(%arg0: i32, %arg1: i32) -> (i32, i32) {
    %c0_i32 = arith.constant 0 : i32
    %c0_i32_0 = arith.constant 0 : i32
    return %arg0, %c0_i32 : i32, i32
  }
}

module attributes {stable_mosaic.version = 11 : i64} {
  func.func @_bilinear_kernel(%arg0: i32, %arg1: memref<16x8x16xbf16, #tpu.memory_space<vmem>>, %arg2: memref<16x8xf32, #tpu.memory_space<vmem>>, %arg3: memref<16x32xf32, #tpu.memory_space<vmem>>, %arg4: memref<16x16x32xf32, #tpu.memory_space<vmem>>) attributes {dimension_semantics = [#tpu.dimension_semantics<parallel>], iteration_bounds = array<i64: 1>, scalar_prefetch = 0 : i64, scratch_operands = 0 : i64, tpu.core_type = #tpu.core_type<tc>, window_params = [{transform_indices = @transform_0, window_bounds = array<i64: 16, 8, 16>}, {pipeline_mode = #tpu.pipeline_mode<synchronous>, transform_indices = @transform_1, window_bounds = array<i64: 16, 8>}, {pipeline_mode = #tpu.pipeline_mode<synchronous>, transform_indices = @transform_2, window_bounds = array<i64: 16, 32>}, {transform_indices = @transform_3, window_bounds = array<i64: 16, 16, 32>}]} {
    %c0 = arith.constant 0 : index
    %c0_0 = arith.constant 0 : index
    %0 = vector.load %arg2[%c0, %c0_0] : memref<16x8xf32, #tpu.memory_space<vmem>>, vector<16x8xf32>
    %c0_1 = arith.constant 0 : index
    %c0_2 = arith.constant 0 : index
    %1 = vector.load %arg3[%c0_1, %c0_2] : memref<16x32xf32, #tpu.memory_space<vmem>>, vector<16x32xf32>
    %c0_3 = arith.constant 0 : index
    %c0_4 = arith.constant 0 : index
    %c0_5 = arith.constant 0 : index
    %2 = vector.load %arg1[%c0_3, %c0_4, %c0_5] : memref<16x8x16xbf16, #tpu.memory_space<vmem>>, vector<1x8x16xbf16>
    %3 = vector.shape_cast %2 : vector<1x8x16xbf16> to vector<8x16xbf16>
    %4 = arith.extf %3 : vector<8x16xbf16> to vector<8x16xf32>
    %cst = arith.constant dense<0.000000e+00> : vector<16x16xf32>
    %5 = tpu.matmul %0, %4, %cst {dimension_numbers = #tpu.dot_dimension_numbers<[1], [0], [0], [1], [0, 0, 1, 1], [], []>} : vector<16x8xf32>, vector<8x16xf32>, vector<16x16xf32> -> vector<16x16xf32>
    %cst_6 = arith.constant dense<0.000000e+00> : vector<16x32xf32>
    %6 = tpu.matmul %5, %1, %cst_6 {dimension_numbers = #tpu.dot_dimension_numbers<[1], [0], [0], [1], [0, 0, 1, 1], [], []>} : vector<16x16xf32>, vector<16x32xf32>, vector<16x32xf32> -> vector<16x32xf32>
    %c0_7 = arith.constant 0 : index
    %c0_8 = arith.constant 0 : index
    %c0_9 = arith.constant 0 : index
    %7 = vector.load %arg4[%c0_7, %c0_8, %c0_9] : memref<16x16x32xf32, #tpu.memory_space<vmem>>, vector<1x16x32xf32>
    %8 = vector.shape_cast %7 : vector<1x16x32xf32> to vector<16x32xf32>
    %9 = vector.shape_cast %6 : vector<16x32xf32> to vector<1x16x32xf32>
    tpu.vector_store %arg4[%c0_7, %c0_8, %c0_9], %9 {strides = array<i32>} : memref<16x16x32xf32, #tpu.memory_space<vmem>>, vector<1x16x32xf32>,
    %c1 = arith.constant 1 : index
    %c0_10 = arith.constant 0 : index
    %c0_11 = arith.constant 0 : index
    %10 = vector.load %arg1[%c1, %c0_10, %c0_11] : memref<16x8x16xbf16, #tpu.memory_space<vmem>>, vector<1x8x16xbf16>
    %11 = vector.shape_cast %10 : vector<1x8x16xbf16> to vector<8x16xbf16>
    %12 = arith.extf %11 : vector<8x16xbf16> to vector<8x16xf32>
    %cst_12 = arith.constant dense<0.000000e+00> : vector<16x16xf32>
    %13 = tpu.matmul %0, %12, %cst_12 {dimension_numbers = #tpu.dot_dimension_numbers<[1], [0], [0], [1], [0, 0, 1, 1], [], []>} : vector<16x8xf32>, vector<8x16xf32>, vector<16x16xf32> -> vector<16x16xf32>
    %cst_13 = arith.constant dense<0.000000e+00> : vector<16x32xf32>
    %14 = tpu.matmul %13, %1, %cst_13 {dimension_numbers = #tpu.dot_dimension_numbers<[1], [0], [0], [1], [0, 0, 1, 1], [], []>} : vector<16x16xf32>, vector<16x32xf32>, vector<16x32xf32> -> vector<16x32xf32>
    %c1_14 = arith.constant 1 : index
    %c0_15 = arith.constant 0 : index
    %c0_16 = arith.constant 0 : index
    %15 = vector.load %arg4[%c1_14, %c0_15, %c0_16] : memref<16x16x32xf32, #tpu.memory_space<vmem>>, vector<1x16x32xf32>
    %16 = vector.shape_cast %15 : vector<1x16x32xf32> to vector<16x32xf32>
    %17 = vector.shape_cast %14 : vector<16x32xf32> to vector<1x16x32xf32>
    tpu.vector_store %arg4[%c1_14, %c0_15, %c0_16], %17 {strides = array<i32>} : memref<16x16x32xf32, #tpu.memory_space<vmem>>, vector<1x16x32xf32>,
    %c2 = arith.constant 2 : index
    %c0_17 = arith.constant 0 : index
    %c0_18 = arith.constant 0 : index
    %18 = vector.load %arg1[%c2, %c0_17, %c0_18] : memref<16x8x16xbf16, #tpu.memory_space<vmem>>, vector<1x8x16xbf16>
    %19 = vector.shape_cast %18 : vector<1x8x16xbf16> to vector<8x16xbf16>
    %20 = arith.extf %19 : vector<8x16xbf16> to vector<8x16xf32>
    %cst_19 = arith.constant dense<0.000000e+00> : vector<16x16xf32>
    %21 = tpu.matmul %0, %20, %cst_19 {dimension_numbers = #tpu.dot_dimension_numbers<[1], [0], [0], [1], [0, 0, 1, 1], [], []>} : vector<16x8xf32>, vector<8x16xf32>, vector<16x16xf32> -> vector<16x16xf32>
    %cst_20 = arith.constant dense<0.000000e+00> : vector<16x32xf32>
    %22 = tpu.matmul %21, %1, %cst_20 {dimension_numbers = #tpu.dot_dimension_numbers<[1], [0], [0], [1], [0, 0, 1, 1], [], []>} : vector<16x16xf32>, vector<16x32xf32>, vector<16x32xf32> -> vector<16x32xf32>
    %c2_21 = arith.constant 2 : index
    %c0_22 = arith.constant 0 : index
    %c0_23 = arith.constant 0 : index
    %23 = vector.load %arg4[%c2_21, %c0_22, %c0_23] : memref<16x16x32xf32, #tpu.memory_space<vmem>>, vector<1x16x32xf32>
    %24 = vector.shape_cast %23 : vector<1x16x32xf32> to vector<16x32xf32>
    %25 = vector.shape_cast %22 : vector<16x32xf32> to vector<1x16x32xf32>
    tpu.vector_store %arg4[%c2_21, %c0_22, %c0_23], %25 {strides = array<i32>} : memref<16x16x32xf32, #tpu.memory_space<vmem>>, vector<1x16x32xf32>,
    %c3 = arith.constant 3 : index
    %c0_24 = arith.constant 0 : index
    %c0_25 = arith.constant 0 : index
    %26 = vector.load %arg1[%c3, %c0_24, %c0_25] : memref<16x8x16xbf16, #tpu.memory_space<vmem>>, vector<1x8x16xbf16>
    %27 = vector.shape_cast %26 : vector<1x8x16xbf16> to vector<8x16xbf16>
    %28 = arith.extf %27 : vector<8x16xbf16> to vector<8x16xf32>
    %cst_26 = arith.constant dense<0.000000e+00> : vector<16x16xf32>
    %29 = tpu.matmul %0, %28, %cst_26 {dimension_numbers = #tpu.dot_dimension_numbers<[1], [0], [0], [1], [0, 0, 1, 1], [], []>} : vector<16x8xf32>, vector<8x16xf32>, vector<16x16xf32> -> vector<16x16xf32>
    %cst_27 = arith.constant dense<0.000000e+00> : vector<16x32xf32>
    %30 = tpu.matmul %29, %1, %cst_27 {dimension_numbers = #tpu.dot_dimension_numbers<[1], [0], [0], [1], [0, 0, 1, 1], [], []>} : vector<16x16xf32>, vector<16x32xf32>, vector<16x32xf32> -> vector<16x32xf32>
    %c3_28 = arith.constant 3 : index
    %c0_29 = arith.constant 0 : index
    %c0_30 = arith.constant 0 : index
    %31 = vector.load %arg4[%c3_28, %c0_29, %c0_30] : memref<16x16x32xf32, #tpu.memory_space<vmem>>, vector<1x16x32xf32>
    %32 = vector.shape_cast %31 : vector<1x16x32xf32> to vector<16x32xf32>
    %33 = vector.shape_cast %30 : vector<16x32xf32> to vector<1x16x32xf32>
    tpu.vector_store %arg4[%c3_28, %c0_29, %c0_30], %33 {strides = array<i32>} : memref<16x16x32xf32, #tpu.memory_space<vmem>>, vector<1x16x32xf32>,
    %c4 = arith.constant 4 : index
    %c0_31 = arith.constant 0 : index
    %c0_32 = arith.constant 0 : index
    %34 = vector.load %arg1[%c4, %c0_31, %c0_32] : memref<16x8x16xbf16, #tpu.memory_space<vmem>>, vector<1x8x16xbf16>
    %35 = vector.shape_cast %34 : vector<1x8x16xbf16> to vector<8x16xbf16>
    %36 = arith.extf %35 : vector<8x16xbf16> to vector<8x16xf32>
    %cst_33 = arith.constant dense<0.000000e+00> : vector<16x16xf32>
    %37 = tpu.matmul %0, %36, %cst_33 {dimension_numbers = #tpu.dot_dimension_numbers<[1], [0], [0], [1], [0, 0, 1, 1], [], []>} : vector<16x8xf32>, vector<8x16xf32>, vector<16x16xf32> -> vector<16x16xf32>
    %cst_34 = arith.constant dense<0.000000e+00> : vector<16x32xf32>
    %38 = tpu.matmul %37, %1, %cst_34 {dimension_numbers = #tpu.dot_dimension_numbers<[1], [0], [0], [1], [0, 0, 1, 1], [], []>} : vector<16x16xf32>, vector<16x32xf32>, vector<16x32xf32> -> vector<16x32xf32>
    %c4_35 = arith.constant 4 : index
    %c0_36 = arith.constant 0 : index
    %c0_37 = arith.constant 0 : index
    %39 = vector.load %arg4[%c4_35, %c0_36, %c0_37] : memref<16x16x32xf32, #tpu.memory_space<vmem>>, vector<1x16x32xf32>
    %40 = vector.shape_cast %39 : vector<1x16x32xf32> to vector<16x32xf32>
    %41 = vector.shape_cast %38 : vector<16x32xf32> to vector<1x16x32xf32>
    tpu.vector_store %arg4[%c4_35, %c0_36, %c0_37], %41 {strides = array<i32>} : memref<16x16x32xf32, #tpu.memory_space<vmem>>, vector<1x16x32xf32>,
    %c5 = arith.constant 5 : index
    %c0_38 = arith.constant 0 : index
    %c0_39 = arith.constant 0 : index
    %42 = vector.load %arg1[%c5, %c0_38, %c0_39] : memref<16x8x16xbf16, #tpu.memory_space<vmem>>, vector<1x8x16xbf16>
    %43 = vector.shape_cast %42 : vector<1x8x16xbf16> to vector<8x16xbf16>
    %44 = arith.extf %43 : vector<8x16xbf16> to vector<8x16xf32>
    %cst_40 = arith.constant dense<0.000000e+00> : vector<16x16xf32>
    %45 = tpu.matmul %0, %44, %cst_40 {dimension_numbers = #tpu.dot_dimension_numbers<[1], [0], [0], [1], [0, 0, 1, 1], [], []>} : vector<16x8xf32>, vector<8x16xf32>, vector<16x16xf32> -> vector<16x16xf32>
    %cst_41 = arith.constant dense<0.000000e+00> : vector<16x32xf32>
    %46 = tpu.matmul %45, %1, %cst_41 {dimension_numbers = #tpu.dot_dimension_numbers<[1], [0], [0], [1], [0, 0, 1, 1], [], []>} : vector<16x16xf32>, vector<16x32xf32>, vector<16x32xf32> -> vector<16x32xf32>
    %c5_42 = arith.constant 5 : index
    %c0_43 = arith.constant 0 : index
    %c0_44 = arith.constant 0 : index
    %47 = vector.load %arg4[%c5_42, %c0_43, %c0_44] : memref<16x16x32xf32, #tpu.memory_space<vmem>>, vector<1x16x32xf32>
    %48 = vector.shape_cast %47 : vector<1x16x32xf32> to vector<16x32xf32>
    %49 = vector.shape_cast %46 : vector<16x32xf32> to vector<1x16x32xf32>
    tpu.vector_store %arg4[%c5_42, %c0_43, %c0_44], %49 {strides = array<i32>} : memref<16x16x32xf32, #tpu.memory_space<vmem>>, vector<1x16x32xf32>,
    %c6 = arith.constant 6 : index
    %c0_45 = arith.constant 0 : index
    %c0_46 = arith.constant 0 : index
    %50 = vector.load %arg1[%c6, %c0_45, %c0_46] : memref<16x8x16xbf16, #tpu.memory_space<vmem>>, vector<1x8x16xbf16>
    %51 = vector.shape_cast %50 : vector<1x8x16xbf16> to vector<8x16xbf16>
    %52 = arith.extf %51 : vector<8x16xbf16> to vector<8x16xf32>
    %cst_47 = arith.constant dense<0.000000e+00> : vector<16x16xf32>
    %53 = tpu.matmul %0, %52, %cst_47 {dimension_numbers = #tpu.dot_dimension_numbers<[1], [0], [0], [1], [0, 0, 1, 1], [], []>} : vector<16x8xf32>, vector<8x16xf32>, vector<16x16xf32> -> vector<16x16xf32>
    %cst_48 = arith.constant dense<0.000000e+00> : vector<16x32xf32>
    %54 = tpu.matmul %53, %1, %cst_48 {dimension_numbers = #tpu.dot_dimension_numbers<[1], [0], [0], [1], [0, 0, 1, 1], [], []>} : vector<16x16xf32>, vector<16x32xf32>, vector<16x32xf32> -> vector<16x32xf32>
    %c6_49 = arith.constant 6 : index
    %c0_50 = arith.constant 0 : index
    %c0_51 = arith.constant 0 : index
    %55 = vector.load %arg4[%c6_49, %c0_50, %c0_51] : memref<16x16x32xf32, #tpu.memory_space<vmem>>, vector<1x16x32xf32>
    %56 = vector.shape_cast %55 : vector<1x16x32xf32> to vector<16x32xf32>
    %57 = vector.shape_cast %54 : vector<16x32xf32> to vector<1x16x32xf32>
    tpu.vector_store %arg4[%c6_49, %c0_50, %c0_51], %57 {strides = array<i32>} : memref<16x16x32xf32, #tpu.memory_space<vmem>>, vector<1x16x32xf32>,
    %c7 = arith.constant 7 : index
    %c0_52 = arith.constant 0 : index
    %c0_53 = arith.constant 0 : index
    %58 = vector.load %arg1[%c7, %c0_52, %c0_53] : memref<16x8x16xbf16, #tpu.memory_space<vmem>>, vector<1x8x16xbf16>
    %59 = vector.shape_cast %58 : vector<1x8x16xbf16> to vector<8x16xbf16>
    %60 = arith.extf %59 : vector<8x16xbf16> to vector<8x16xf32>
    %cst_54 = arith.constant dense<0.000000e+00> : vector<16x16xf32>
    %61 = tpu.matmul %0, %60, %cst_54 {dimension_numbers = #tpu.dot_dimension_numbers<[1], [0], [0], [1], [0, 0, 1, 1], [], []>} : vector<16x8xf32>, vector<8x16xf32>, vector<16x16xf32> -> vector<16x16xf32>
    %cst_55 = arith.constant dense<0.000000e+00> : vector<16x32xf32>
    %62 = tpu.matmul %61, %1, %cst_55 {dimension_numbers = #tpu.dot_dimension_numbers<[1], [0], [0], [1], [0, 0, 1, 1], [], []>} : vector<16x16xf32>, vector<16x32xf32>, vector<16x32xf32> -> vector<16x32xf32>
    %c7_56 = arith.constant 7 : index
    %c0_57 = arith.constant 0 : index
    %c0_58 = arith.constant 0 : index
    %63 = vector.load %arg4[%c7_56, %c0_57, %c0_58] : memref<16x16x32xf32, #tpu.memory_space<vmem>>, vector<1x16x32xf32>
    %64 = vector.shape_cast %63 : vector<1x16x32xf32> to vector<16x32xf32>
    %65 = vector.shape_cast %62 : vector<16x32xf32> to vector<1x16x32xf32>
    tpu.vector_store %arg4[%c7_56, %c0_57, %c0_58], %65 {strides = array<i32>} : memref<16x16x32xf32, #tpu.memory_space<vmem>>, vector<1x16x32xf32>,
    %c8 = arith.constant 8 : index
    %c0_59 = arith.constant 0 : index
    %c0_60 = arith.constant 0 : index
    %66 = vector.load %arg1[%c8, %c0_59, %c0_60] : memref<16x8x16xbf16, #tpu.memory_space<vmem>>, vector<1x8x16xbf16>
    %67 = vector.shape_cast %66 : vector<1x8x16xbf16> to vector<8x16xbf16>
    %68 = arith.extf %67 : vector<8x16xbf16> to vector<8x16xf32>
    %cst_61 = arith.constant dense<0.000000e+00> : vector<16x16xf32>
    %69 = tpu.matmul %0, %68, %cst_61 {dimension_numbers = #tpu.dot_dimension_numbers<[1], [0], [0], [1], [0, 0, 1, 1], [], []>} : vector<16x8xf32>, vector<8x16xf32>, vector<16x16xf32> -> vector<16x16xf32>
    %cst_62 = arith.constant dense<0.000000e+00> : vector<16x32xf32>
    %70 = tpu.matmul %69, %1, %cst_62 {dimension_numbers = #tpu.dot_dimension_numbers<[1], [0], [0], [1], [0, 0, 1, 1], [], []>} : vector<16x16xf32>, vector<16x32xf32>, vector<16x32xf32> -> vector<16x32xf32>
    %c8_63 = arith.constant 8 : index
    %c0_64 = arith.constant 0 : index
    %c0_65 = arith.constant 0 : index
    %71 = vector.load %arg4[%c8_63, %c0_64, %c0_65] : memref<16x16x32xf32, #tpu.memory_space<vmem>>, vector<1x16x32xf32>
    %72 = vector.shape_cast %71 : vector<1x16x32xf32> to vector<16x32xf32>
    %73 = vector.shape_cast %70 : vector<16x32xf32> to vector<1x16x32xf32>
    tpu.vector_store %arg4[%c8_63, %c0_64, %c0_65], %73 {strides = array<i32>} : memref<16x16x32xf32, #tpu.memory_space<vmem>>, vector<1x16x32xf32>,
    %c9 = arith.constant 9 : index
    %c0_66 = arith.constant 0 : index
    %c0_67 = arith.constant 0 : index
    %74 = vector.load %arg1[%c9, %c0_66, %c0_67] : memref<16x8x16xbf16, #tpu.memory_space<vmem>>, vector<1x8x16xbf16>
    %75 = vector.shape_cast %74 : vector<1x8x16xbf16> to vector<8x16xbf16>
    %76 = arith.extf %75 : vector<8x16xbf16> to vector<8x16xf32>
    %cst_68 = arith.constant dense<0.000000e+00> : vector<16x16xf32>
    %77 = tpu.matmul %0, %76, %cst_68 {dimension_numbers = #tpu.dot_dimension_numbers<[1], [0], [0], [1], [0, 0, 1, 1], [], []>} : vector<16x8xf32>, vector<8x16xf32>, vector<16x16xf32> -> vector<16x16xf32>
    %cst_69 = arith.constant dense<0.000000e+00> : vector<16x32xf32>
    %78 = tpu.matmul %77, %1, %cst_69 {dimension_numbers = #tpu.dot_dimension_numbers<[1], [0], [0], [1], [0, 0, 1, 1], [], []>} : vector<16x16xf32>, vector<16x32xf32>, vector<16x32xf32> -> vector<16x32xf32>
    %c9_70 = arith.constant 9 : index
    %c0_71 = arith.constant 0 : index
    %c0_72 = arith.constant 0 : index
    %79 = vector.load %arg4[%c9_70, %c0_71, %c0_72] : memref<16x16x32xf32, #tpu.memory_space<vmem>>, vector<1x16x32xf32>
    %80 = vector.shape_cast %79 : vector<1x16x32xf32> to vector<16x32xf32>
    %81 = vector.shape_cast %78 : vector<16x32xf32> to vector<1x16x32xf32>
    tpu.vector_store %arg4[%c9_70, %c0_71, %c0_72], %81 {strides = array<i32>} : memref<16x16x32xf32, #tpu.memory_space<vmem>>, vector<1x16x32xf32>,
    %c10 = arith.constant 10 : index
    %c0_73 = arith.constant 0 : index
    %c0_74 = arith.constant 0 : index
    %82 = vector.load %arg1[%c10, %c0_73, %c0_74] : memref<16x8x16xbf16, #tpu.memory_space<vmem>>, vector<1x8x16xbf16>
    %83 = vector.shape_cast %82 : vector<1x8x16xbf16> to vector<8x16xbf16>
    %84 = arith.extf %83 : vector<8x16xbf16> to vector<8x16xf32>
    %cst_75 = arith.constant dense<0.000000e+00> : vector<16x16xf32>
    %85 = tpu.matmul %0, %84, %cst_75 {dimension_numbers = #tpu.dot_dimension_numbers<[1], [0], [0], [1], [0, 0, 1, 1], [], []>} : vector<16x8xf32>, vector<8x16xf32>, vector<16x16xf32> -> vector<16x16xf32>
    %cst_76 = arith.constant dense<0.000000e+00> : vector<16x32xf32>
    %86 = tpu.matmul %85, %1, %cst_76 {dimension_numbers = #tpu.dot_dimension_numbers<[1], [0], [0], [1], [0, 0, 1, 1], [], []>} : vector<16x16xf32>, vector<16x32xf32>, vector<16x32xf32> -> vector<16x32xf32>
    %c10_77 = arith.constant 10 : index
    %c0_78 = arith.constant 0 : index
    %c0_79 = arith.constant 0 : index
    %87 = vector.load %arg4[%c10_77, %c0_78, %c0_79] : memref<16x16x32xf32, #tpu.memory_space<vmem>>, vector<1x16x32xf32>
    %88 = vector.shape_cast %87 : vector<1x16x32xf32> to vector<16x32xf32>
    %89 = vector.shape_cast %86 : vector<16x32xf32> to vector<1x16x32xf32>
    tpu.vector_store %arg4[%c10_77, %c0_78, %c0_79], %89 {strides = array<i32>} : memref<16x16x32xf32, #tpu.memory_space<vmem>>, vector<1x16x32xf32>,
    %c11 = arith.constant 11 : index
    %c0_80 = arith.constant 0 : index
    %c0_81 = arith.constant 0 : index
    %90 = vector.load %arg1[%c11, %c0_80, %c0_81] : memref<16x8x16xbf16, #tpu.memory_space<vmem>>, vector<1x8x16xbf16>
    %91 = vector.shape_cast %90 : vector<1x8x16xbf16> to vector<8x16xbf16>
    %92 = arith.extf %91 : vector<8x16xbf16> to vector<8x16xf32>
    %cst_82 = arith.constant dense<0.000000e+00> : vector<16x16xf32>
    %93 = tpu.matmul %0, %92, %cst_82 {dimension_numbers = #tpu.dot_dimension_numbers<[1], [0], [0], [1], [0, 0, 1, 1], [], []>} : vector<16x8xf32>, vector<8x16xf32>, vector<16x16xf32> -> vector<16x16xf32>
    %cst_83 = arith.constant dense<0.000000e+00> : vector<16x32xf32>
    %94 = tpu.matmul %93, %1, %cst_83 {dimension_numbers = #tpu.dot_dimension_numbers<[1], [0], [0], [1], [0, 0, 1, 1], [], []>} : vector<16x16xf32>, vector<16x32xf32>, vector<16x32xf32> -> vector<16x32xf32>
    %c11_84 = arith.constant 11 : index
    %c0_85 = arith.constant 0 : index
    %c0_86 = arith.constant 0 : index
    %95 = vector.load %arg4[%c11_84, %c0_85, %c0_86] : memref<16x16x32xf32, #tpu.memory_space<vmem>>, vector<1x16x32xf32>
    %96 = vector.shape_cast %95 : vector<1x16x32xf32> to vector<16x32xf32>
    %97 = vector.shape_cast %94 : vector<16x32xf32> to vector<1x16x32xf32>
    tpu.vector_store %arg4[%c11_84, %c0_85, %c0_86], %97 {strides = array<i32>} : memref<16x16x32xf32, #tpu.memory_space<vmem>>, vector<1x16x32xf32>,
    %c12 = arith.constant 12 : index
    %c0_87 = arith.constant 0 : index
    %c0_88 = arith.constant 0 : index
    %98 = vector.load %arg1[%c12, %c0_87, %c0_88] : memref<16x8x16xbf16, #tpu.memory_space<vmem>>, vector<1x8x16xbf16>
    %99 = vector.shape_cast %98 : vector<1x8x16xbf16> to vector<8x16xbf16>
    %100 = arith.extf %99 : vector<8x16xbf16> to vector<8x16xf32>
    %cst_89 = arith.constant dense<0.000000e+00> : vector<16x16xf32>
    %101 = tpu.matmul %0, %100, %cst_89 {dimension_numbers = #tpu.dot_dimension_numbers<[1], [0], [0], [1], [0, 0, 1, 1], [], []>} : vector<16x8xf32>, vector<8x16xf32>, vector<16x16xf32> -> vector<16x16xf32>
    %cst_90 = arith.constant dense<0.000000e+00> : vector<16x32xf32>
    %102 = tpu.matmul %101, %1, %cst_90 {dimension_numbers = #tpu.dot_dimension_numbers<[1], [0], [0], [1], [0, 0, 1, 1], [], []>} : vector<16x16xf32>, vector<16x32xf32>, vector<16x32xf32> -> vector<16x32xf32>
    %c12_91 = arith.constant 12 : index
    %c0_92 = arith.constant 0 : index
    %c0_93 = arith.constant 0 : index
    %103 = vector.load %arg4[%c12_91, %c0_92, %c0_93] : memref<16x16x32xf32, #tpu.memory_space<vmem>>, vector<1x16x32xf32>
    %104 = vector.shape_cast %103 : vector<1x16x32xf32> to vector<16x32xf32>
    %105 = vector.shape_cast %102 : vector<16x32xf32> to vector<1x16x32xf32>
    tpu.vector_store %arg4[%c12_91, %c0_92, %c0_93], %105 {strides = array<i32>} : memref<16x16x32xf32, #tpu.memory_space<vmem>>, vector<1x16x32xf32>,
    %c13 = arith.constant 13 : index
    %c0_94 = arith.constant 0 : index
    %c0_95 = arith.constant 0 : index
    %106 = vector.load %arg1[%c13, %c0_94, %c0_95] : memref<16x8x16xbf16, #tpu.memory_space<vmem>>, vector<1x8x16xbf16>
    %107 = vector.shape_cast %106 : vector<1x8x16xbf16> to vector<8x16xbf16>
    %108 = arith.extf %107 : vector<8x16xbf16> to vector<8x16xf32>
    %cst_96 = arith.constant dense<0.000000e+00> : vector<16x16xf32>
    %109 = tpu.matmul %0, %108, %cst_96 {dimension_numbers = #tpu.dot_dimension_numbers<[1], [0], [0], [1], [0, 0, 1, 1], [], []>} : vector<16x8xf32>, vector<8x16xf32>, vector<16x16xf32> -> vector<16x16xf32>
    %cst_97 = arith.constant dense<0.000000e+00> : vector<16x32xf32>
    %110 = tpu.matmul %109, %1, %cst_97 {dimension_numbers = #tpu.dot_dimension_numbers<[1], [0], [0], [1], [0, 0, 1, 1], [], []>} : vector<16x16xf32>, vector<16x32xf32>, vector<16x32xf32> -> vector<16x32xf32>
    %c13_98 = arith.constant 13 : index
    %c0_99 = arith.constant 0 : index
    %c0_100 = arith.constant 0 : index
    %111 = vector.load %arg4[%c13_98, %c0_99, %c0_100] : memref<16x16x32xf32, #tpu.memory_space<vmem>>, vector<1x16x32xf32>
    %112 = vector.shape_cast %111 : vector<1x16x32xf32> to vector<16x32xf32>
    %113 = vector.shape_cast %110 : vector<16x32xf32> to vector<1x16x32xf32>
    tpu.vector_store %arg4[%c13_98, %c0_99, %c0_100], %113 {strides = array<i32>} : memref<16x16x32xf32, #tpu.memory_space<vmem>>, vector<1x16x32xf32>,
    %c14 = arith.constant 14 : index
    %c0_101 = arith.constant 0 : index
    %c0_102 = arith.constant 0 : index
    %114 = vector.load %arg1[%c14, %c0_101, %c0_102] : memref<16x8x16xbf16, #tpu.memory_space<vmem>>, vector<1x8x16xbf16>
    %115 = vector.shape_cast %114 : vector<1x8x16xbf16> to vector<8x16xbf16>
    %116 = arith.extf %115 : vector<8x16xbf16> to vector<8x16xf32>
    %cst_103 = arith.constant dense<0.000000e+00> : vector<16x16xf32>
    %117 = tpu.matmul %0, %116, %cst_103 {dimension_numbers = #tpu.dot_dimension_numbers<[1], [0], [0], [1], [0, 0, 1, 1], [], []>} : vector<16x8xf32>, vector<8x16xf32>, vector<16x16xf32> -> vector<16x16xf32>
    %cst_104 = arith.constant dense<0.000000e+00> : vector<16x32xf32>
    %118 = tpu.matmul %117, %1, %cst_104 {dimension_numbers = #tpu.dot_dimension_numbers<[1], [0], [0], [1], [0, 0, 1, 1], [], []>} : vector<16x16xf32>, vector<16x32xf32>, vector<16x32xf32> -> vector<16x32xf32>
    %c14_105 = arith.constant 14 : index
    %c0_106 = arith.constant 0 : index
    %c0_107 = arith.constant 0 : index
    %119 = vector.load %arg4[%c14_105, %c0_106, %c0_107] : memref<16x16x32xf32, #tpu.memory_space<vmem>>, vector<1x16x32xf32>
    %120 = vector.shape_cast %119 : vector<1x16x32xf32> to vector<16x32xf32>
    %121 = vector.shape_cast %118 : vector<16x32xf32> to vector<1x16x32xf32>
    tpu.vector_store %arg4[%c14_105, %c0_106, %c0_107], %121 {strides = array<i32>} : memref<16x16x32xf32, #tpu.memory_space<vmem>>, vector<1x16x32xf32>,
    %c15 = arith.constant 15 : index
    %c0_108 = arith.constant 0 : index
    %c0_109 = arith.constant 0 : index
    %122 = vector.load %arg1[%c15, %c0_108, %c0_109] : memref<16x8x16xbf16, #tpu.memory_space<vmem>>, vector<1x8x16xbf16>
    %123 = vector.shape_cast %122 : vector<1x8x16xbf16> to vector<8x16xbf16>
    %124 = arith.extf %123 : vector<8x16xbf16> to vector<8x16xf32>
    %cst_110 = arith.constant dense<0.000000e+00> : vector<16x16xf32>
    %125 = tpu.matmul %0, %124, %cst_110 {dimension_numbers = #tpu.dot_dimension_numbers<[1], [0], [0], [1], [0, 0, 1, 1], [], []>} : vector<16x8xf32>, vector<8x16xf32>, vector<16x16xf32> -> vector<16x16xf32>
    %cst_111 = arith.constant dense<0.000000e+00> : vector<16x32xf32>
    %126 = tpu.matmul %125, %1, %cst_111 {dimension_numbers = #tpu.dot_dimension_numbers<[1], [0], [0], [1], [0, 0, 1, 1], [], []>} : vector<16x16xf32>, vector<16x32xf32>, vector<16x32xf32> -> vector<16x32xf32>
    %c15_112 = arith.constant 15 : index
    %c0_113 = arith.constant 0 : index
    %c0_114 = arith.constant 0 : index
    %127 = vector.load %arg4[%c15_112, %c0_113, %c0_114] : memref<16x16x32xf32, #tpu.memory_space<vmem>>, vector<1x16x32xf32>
    %128 = vector.shape_cast %127 : vector<1x16x32xf32> to vector<16x32xf32>
    %129 = vector.shape_cast %126 : vector<16x32xf32> to vector<1x16x32xf32>
    tpu.vector_store %arg4[%c15_112, %c0_113, %c0_114], %129 {strides = array<i32>} : memref<16x16x32xf32, #tpu.memory_space<vmem>>, vector<1x16x32xf32>,
    return
  }
  func.func @transform_0(%arg0: i32) -> (i32, i32, i32) {
    %c0_i32 = arith.constant 0 : i32
    %c0_i32_0 = arith.constant 0 : i32
    %c0_i32_1 = arith.constant 0 : i32
    return %arg0, %c0_i32, %c0_i32_0 : i32, i32, i32
  }
  func.func @transform_1(%arg0: i32) -> (i32, i32) {
    %c0_i32 = arith.constant 0 : i32
    %c0_i32_0 = arith.constant 0 : i32
    %c0_i32_1 = arith.constant 0 : i32
    return %c0_i32, %c0_i32_0 : i32, i32
  }
  func.func @transform_2(%arg0: i32) -> (i32, i32) {
    %c0_i32 = arith.constant 0 : i32
    %c0_i32_0 = arith.constant 0 : i32
    %c0_i32_1 = arith.constant 0 : i32
    return %c0_i32, %c0_i32_0 : i32, i32
  }
  func.func @transform_3(%arg0: i32) -> (i32, i32, i32) {
    %c0_i32 = arith.constant 0 : i32
    %c0_i32_0 = arith.constant 0 : i32
    %c0_i32_1 = arith.constant 0 : i32
    return %arg0, %c0_i32, %c0_i32_0 : i32, i32, i32
  }
}

</mosaic_0001>

<bundles_post_ra>
// kernel: forward.9
= control target key start
LH: loop header
LB: loop body
LE: loop exit
PB: predicated region body
PF: predicated region fallthrough
CT: control target
= control target key end

     0   :  { %s2073_s12 = smov 0   ;;  %s2075_s13 = smov 0   ;;  %s2531_s0 = inlined_call_operand.vmem [shape: bf16[1024,27], index: 0, kind: input, shape index: {}]   ;;  %s2532_s1 = inlined_call_operand.vmem [shape: bf16[27,32], index: 1, kind: input, shape index: {}]   ;;  %s2533_s2 = inlined_call_operand.vmem [shape: f32[1,32], index: 2, kind: input, shape index: {}]   ;;  %s2534_s3 = inlined_call_operand.vmem [shape: bf16[1024,32], index: 3, kind: output, shape index: {}]  }
   0x1   :  { %s2077_s14 = smov 0  }
   0x2 LB: > { %s25_s15 = sadd.s32 1, %s2046_s13  ;;  %p1661_p0 = scmp.ge.s32.totalorder %s2050_s14, 1  ;;  %s2050_s14 = sphi %s2077_s14, %s13_s14   ;;  %s2046_s13 = sphi %s2075_s13, %s2537_s13   ;;  %s2042_s12 = sphi %s2073_s12, %s2536_s12  }
   0x3   : > { %p27_p1 = scmp.ge.s32.totalorder %s25_s15, 2  ;;  %p166_p2 = scmp.lt.s32.totalorder %s2050_s14, 3 }
   0x5   : > { %s2539_s15 = smov (%p27_p1, %s25_s15), 0  ;;  %p167_p3 = pnand %p1661_p0, %p166_p2 }
   0x6   : > { %v1994_v0 = vld [vmem:[%s2532_s1] sm:$0xff] (!%p167_p3)   ;;  %vm696_vm0 = vcmask (!%p167_p3), 1044480   ;;  %v2099_v1 = vld [vmem:[%s2532_s1 + $0x8] sm:$0x3f] (!%p167_p3)   ;;  %vm697_vm1 = vcmask (!%p167_p3), 1045504   ;;  %s1662_s20 = sshll.u32 (!%p167_p3), %s2042_s12, 6 }
   0x7   : > { %170 = sbr.rel (%p167_p3) target bundleno = 315 (0x13b), region = 32  ;;  %1897 = vmatprep.subr.bf16.mxu0 (!%p167_p3), %v1994_v0  ;;  %1965 = vmatprep.subr.bf16.mxu1 (!%p167_p3), %v1994_v0  ;;  %v2105_v2 = vld [vmem:[%s2533_s2] ss:$0 sm:$0xff] (!%p167_p3)  ;;  %v2052_v3 = vmov (!%p167_p3), 65535   ;;  %p2109_p4 = scmp.lt.s32.totalorder (!%p167_p3), %s1662_s20, 127  ;;  %vm231_vm2 = vcmask (!%p167_p3), 261120  }
   0x8   : > { %1898 = vmatpush3.bf16.msra.mxu0 (!%p167_p3), %v1994_v0  ;;  %1967 = vmatpush3.bf16.msra.mxu1 (!%p167_p3), %v1994_v0  ;;  %v698_v4 = vsel (!%p167_p3), %vm696_vm0, 4294967295, %v2052_v3  ;;  %234 = vst.msk [vmem:[#allocation2 + $0x10] sm:$0xff] (!%p167_p3), %vm231_vm2, %v2105_v2  ;;  %232 = vst.msk [vmem:[#allocation2] sm:$0xff] (!%p167_p3), %vm231_vm2, %v2105_v2  ;;  %vm599_vm3 = vcmask (!%p167_p3), 220160   ;;  %vm1508_vm4 = vcmask (!%p167_p3), 257024  }
   0x9   : > { %v2113_v5 = vsel (!%p167_p3), %vm697_vm1, %v698_v4, 0  ;;  %233 = vst.msk [vmem:[#allocation2 + $0x8] sm:$0xff] (!%p167_p3), %vm231_vm2, %v2105_v2  ;;  %235 = vst.msk [vmem:[#allocation2 + $0x18] sm:$0xff] (!%p167_p3), %vm231_vm2, %v2105_v2 }
   0xa   : > { %236 = vst.msk [vmem:[#allocation2 + $0x20] sm:$0xff] (!%p167_p3), %vm231_vm2, %v2105_v2  ;;  %237 = vst.msk [vmem:[#allocation2 + $0x28] sm:$0xff] (!%p167_p3), %vm231_vm2, %v2105_v2  ;;  %v701_v6 = vand.u32 (!%p167_p3), %v2099_v1, %v2113_v5 }
   0xb   : > { %238 = vst.msk [vmem:[#allocation2 + $0x30] sm:$0xff] (!%p167_p3), %vm231_vm2, %v2105_v2  ;;  %239 = vst.msk [vmem:[#allocation2 + $0x38] sm:$0xff] (!%p167_p3), %vm231_vm2, %v2105_v2 }
   0xc   : > { %240 = vst.msk [vmem:[#allocation2 + $0x40] sm:$0xff] (!%p167_p3), %vm231_vm2, %v2105_v2  ;;  %241 = vst.msk [vmem:[#allocation2 + $0x48] sm:$0xff] (!%p167_p3), %vm231_vm2, %v2105_v2  ;;  %1899 = vmatprep.subr.bf16.mxu0 (!%p167_p3), %v701_v6  ;;  %1966 = vmatprep.subr.bf16.mxu1 (!%p167_p3), %v701_v6 }
   0xd   : > { %242 = vst.msk [vmem:[#allocation2 + $0x50] sm:$0xff] (!%p167_p3), %vm231_vm2, %v2105_v2  ;;  %243 = vst.msk [vmem:[#allocation2 + $0x58] sm:$0xff] (!%p167_p3), %vm231_vm2, %v2105_v2  ;;  %1900 = vmatpush3.bf16.msra.mxu0 (!%p167_p3), %v701_v6  ;;  %1968 = vmatpush3.bf16.msra.mxu1 (!%p167_p3), %v701_v6 }
   0xe   : > { %244 = vst.msk [vmem:[#allocation2 + $0x60] sm:$0xff] %vm231_vm2, %v2105_v2  ;;  %245 = vst.msk [vmem:[#allocation2 + $0x68] sm:$0xff] %vm231_vm2, %v2105_v2  ;;  %s2541_s20 = smov (!%p2109_p4, %s1662_s20), 127 }
   0xf   : > { %246 = vst.msk [vmem:[#allocation2 + $0x70] sm:$0xff] %vm231_vm2, %v2105_v2  ;;  %247 = vst.msk [vmem:[#allocation2 + $0x78] sm:$0xff] %vm231_vm2, %v2105_v2  ;;  %s1663_s24 = sshll.u32 %s2541_s20, 2  ;;  %v298_v39 = vld [vmem:[#allocation2 + $0x10] sm:$0xff]  ;;  %v296_v41 = vld [vmem:[#allocation2] sm:$0xff] }
  0x10   : > { %248 = vst.msk [vmem:[#allocation2 + $0x80] sm:$0xff] %vm231_vm2, %v2105_v2  ;;  %249 = vst.msk [vmem:[#allocation2 + $0x88] sm:$0xff] %vm231_vm2, %v2105_v2  ;;  %s2257_s27 = scalar_lea.vmem %s2531_s0, %s1663_s24  ;;  %v299_v44 = vld [vmem:[#allocation2 + $0x18] sm:$0xff]  ;;  %v297_v49 = vld [vmem:[#allocation2 + $0x8] sm:$0xff]  ;;  %s2337_s30 = scalar_lea.vmem %s2534_s3, %s1663_s24 }
  0x11   : > { %250 = vst.msk [vmem:[#allocation2 + $0x90] sm:$0xff] %vm231_vm2, %v2105_v2  ;;  %251 = vst.msk [vmem:[#allocation2 + $0x98] sm:$0xff] %vm231_vm2, %v2105_v2  ;;  %v1996_v7 = vld [vmem:[%s2257_s27] sm:$0xff]   ;;  %v1998_v9 = vld [vmem:[%s2257_s27 + $0x8] sm:$0xff]  }
  0x12   : > { %252 = vst.msk [vmem:[#allocation2 + $0xa0] sm:$0xff] %vm231_vm2, %v2105_v2  ;;  %253 = vst.msk [vmem:[#allocation2 + $0xa8] sm:$0xff] %vm231_vm2, %v2105_v2  ;;  %v1997_v8 = vld [vmem:[%s2257_s27 + $0x80] sm:$0xff]   ;;  %1901 = vmatprep.mubr.msk.bf16.mxu0 %vm599_vm3, %v1996_v7  ;;  %v1999_v10 = vld [vmem:[%s2257_s27 + $0x88] sm:$0xff]  }
  0x13   : > { %254 = vst.msk [vmem:[#allocation2 + $0xb0] sm:$0xff] %vm231_vm2, %v2105_v2  ;;  %255 = vst.msk [vmem:[#allocation2 + $0xb8] sm:$0xff] %vm231_vm2, %v2105_v2  ;;  %1933 = vmatprep.mubr.msk.bf16.mxu1 %vm599_vm3, %v1997_v8  ;;  %1902 = vmatmul.mubr.msk.bf16.vlgmr.msra.gmra.mrb[0].mxu0 %vm599_vm3, %v1998_v9  ;;  %v2000_v11 = vld [vmem:[%s2257_s27 + $0x10] sm:$0xff]   ;;  %v2002_v13 = vld [vmem:[%s2257_s27 + $0x18] sm:$0xff]  }
  0x14   : > { %256 = vst.msk [vmem:[#allocation2 + $0xc0] sm:$0xff] %vm231_vm2, %v2105_v2  ;;  %257 = vst.msk [vmem:[#allocation2 + $0xc8] sm:$0xff] %vm231_vm2, %v2105_v2  ;;  %1934 = vmatmul.mubr.msk.bf16.vlgmr.msra.gmra.mrb[0].mxu1 %vm599_vm3, %v1999_v10  ;;  %v2001_v12 = vld [vmem:[%s2257_s27 + $0x90] sm:$0xff]   ;;  %1905 = vmatprep.mubr.msk.bf16.mxu0 %vm599_vm3, %v2000_v11  ;;  %v2003_v14 = vld [vmem:[%s2257_s27 + $0x98] sm:$0xff]  }
  0x15   : > { %258 = vst.msk [vmem:[#allocation2 + $0xd0] sm:$0xff] %vm231_vm2, %v2105_v2  ;;  %259 = vst.msk [vmem:[#allocation2 + $0xd8] sm:$0xff] %vm231_vm2, %v2105_v2  ;;  %1937 = vmatprep.mubr.msk.bf16.mxu1 %vm599_vm3, %v2001_v12  ;;  %v2004_v15 = vld [vmem:[%s2257_s27 + $0x20] sm:$0xff]   ;;  %v2006_v17 = vld [vmem:[%s2257_s27 + $0x28] sm:$0xff]  }
  0x16   : > { %260 = vst.msk [vmem:[#allocation2 + $0xe0] sm:$0xff] %vm231_vm2, %v2105_v2  ;;  %261 = vst.msk [vmem:[#allocation2 + $0xe8] sm:$0xff] %vm231_vm2, %v2105_v2  ;;  %v2005_v16 = vld [vmem:[%s2257_s27 + $0xa0] sm:$0xff]   ;;  %v2007_v18 = vld [vmem:[%s2257_s27 + $0xa8] sm:$0xff]  }
  0x17   : > { %262 = vst.msk [vmem:[#allocation2 + $0xf0] sm:$0xff] %vm231_vm2, %v2105_v2  ;;  %263 = vst.msk [vmem:[#allocation2 + $0xf8] sm:$0xff] %vm231_vm2, %v2105_v2  ;;  %v2008_v19 = vld [vmem:[%s2257_s27 + $0x30] sm:$0xff]   ;;  %v2010_v21 = vld [vmem:[%s2257_s27 + $0x38] sm:$0xff]  }
  0x18   : > { %264 = vst.msk [vmem:[#allocation2 + $0x100] sm:$0xff] %vm231_vm2, %v2105_v2  ;;  %265 = vst.msk [vmem:[#allocation2 + $0x108] sm:$0xff] %vm231_vm2, %v2105_v2  ;;  %v2009_v20 = vld [vmem:[%s2257_s27 + $0xb0] sm:$0xff]   ;;  %v2011_v22 = vld [vmem:[%s2257_s27 + $0xb8] sm:$0xff]  }
  0x19   : > { %266 = vst.msk [vmem:[#allocation2 + $0x110] sm:$0xff] %vm231_vm2, %v2105_v2  ;;  %267 = vst.msk [vmem:[#allocation2 + $0x118] sm:$0xff] %vm231_vm2, %v2105_v2  ;;  %v2012_v23 = vld [vmem:[%s2257_s27 + $0x40] sm:$0xff]   ;;  %v2014_v25 = vld [vmem:[%s2257_s27 + $0x48] sm:$0xff]  }
  0x1a   : > { %268 = vst.msk [vmem:[#allocation2 + $0x120] sm:$0xff] %vm231_vm2, %v2105_v2  ;;  %269 = vst.msk [vmem:[#allocation2 + $0x128] sm:$0xff] %vm231_vm2, %v2105_v2  ;;  %v2013_v24 = vld [vmem:[%s2257_s27 + $0xc0] sm:$0xff]   ;;  %v2015_v26 = vld [vmem:[%s2257_s27 + $0xc8] sm:$0xff]  }
  0x1b   : > { %270 = vst.msk [vmem:[#allocation2 + $0x130] sm:$0xff] %vm231_vm2, %v2105_v2  ;;  %271 = vst.msk [vmem:[#allocation2 + $0x138] sm:$0xff] %vm231_vm2, %v2105_v2  ;;  %1906 = vmatmul.mubr.msk.bf16.gmra.mrb[4].mxu0 %vm599_vm3, %v2002_v13  ;;  %v2016_v27 = vld [vmem:[%s2257_s27 + $0x50] sm:$0xff]   ;;  %v2018_v29 = vld [vmem:[%s2257_s27 + $0x58] sm:$0xff]  }
  0x1c   : > { %272 = vst.msk [vmem:[#allocation2 + $0x140] sm:$0xff] %vm231_vm2, %v2105_v2  ;;  %273 = vst.msk [vmem:[#allocation2 + $0x148] sm:$0xff] %vm231_vm2, %v2105_v2  ;;  %1938 = vmatmul.mubr.msk.bf16.gmra.mrb[4].mxu1 %vm599_vm3, %v2003_v14  ;;  %1909 = vmatprep.mubr.msk.bf16.mxu0 %vm599_vm3, %v2004_v15  ;;  %v2017_v28 = vld [vmem:[%s2257_s27 + $0xd0] sm:$0xff]   ;;  %v2019_v30 = vld [vmem:[%s2257_s27 + $0xd8] sm:$0xff]  }
  0x1d   : > { %274 = vst.msk [vmem:[#allocation2 + $0x150] sm:$0xff] %vm231_vm2, %v2105_v2  ;;  %275 = vst.msk [vmem:[#allocation2 + $0x158] sm:$0xff] %vm231_vm2, %v2105_v2  ;;  %1941 = vmatprep.mubr.msk.bf16.mxu1 %vm599_vm3, %v2005_v16  ;;  %v2020_v31 = vld [vmem:[%s2257_s27 + $0x60] sm:$0xff]   ;;  %v2022_v33 = vld [vmem:[%s2257_s27 + $0x68] sm:$0xff]  }
  0x1e   : > { %276 = vst.msk [vmem:[#allocation2 + $0x160] sm:$0xff] %vm231_vm2, %v2105_v2  ;;  %277 = vst.msk [vmem:[#allocation2 + $0x168] sm:$0xff] %vm231_vm2, %v2105_v2  ;;  %v2021_v32 = vld [vmem:[%s2257_s27 + $0xe0] sm:$0xff]   ;;  %v2023_v34 = vld [vmem:[%s2257_s27 + $0xe8] sm:$0xff]  }
  0x1f   : > { %278 = vst.msk [vmem:[#allocation2 + $0x170] sm:$0xff] %vm231_vm2, %v2105_v2  ;;  %279 = vst.msk [vmem:[#allocation2 + $0x178] sm:$0xff] %vm231_vm2, %v2105_v2  ;;  %v2024_v35 = vld [vmem:[%s2257_s27 + $0x70] sm:$0xff]   ;;  %v2026_v37 = vld [vmem:[%s2257_s27 + $0x78] sm:$0xff]  }
  0x20   : > { %280 = vst.msk [vmem:[#allocation2 + $0x180] sm:$0xff] %vm231_vm2, %v2105_v2  ;;  %281 = vst.msk [vmem:[#allocation2 + $0x188] sm:$0xff] %vm231_vm2, %v2105_v2  ;;  %v2025_v36 = vld [vmem:[%s2257_s27 + $0xf0] sm:$0xff]   ;;  %v2027_v38 = vld [vmem:[%s2257_s27 + $0xf8] sm:$0xff]  }
  0x21   : > { %282 = vst.msk [vmem:[#allocation2 + $0x190] sm:$0xff] %vm231_vm2, %v2105_v2  ;;  %283 = vst.msk [vmem:[#allocation2 + $0x198] sm:$0xff] %vm231_vm2, %v2105_v2  ;;  %v330_v40 = vld [vmem:[#allocation2 + $0x110] sm:$0xff]  ;;  %v328_v43 = vld [vmem:[#allocation2 + $0x100] sm:$0xff] }
  0x22   : > { %284 = vst.msk [vmem:[#allocation2 + $0x1a0] sm:$0xff] %vm231_vm2, %v2105_v2  ;;  %285 = vst.msk [vmem:[#allocation2 + $0x1a8] sm:$0xff] %vm231_vm2, %v2105_v2  ;;  %v331_v48 = vld [vmem:[#allocation2 + $0x118] sm:$0xff]  ;;  %v329_v54 = vld [vmem:[#allocation2 + $0x108] sm:$0xff] }
  0x23   : > { %286 = vst.msk [vmem:[#allocation2 + $0x1b0] sm:$0xff] %vm231_vm2, %v2105_v2  ;;  %287 = vst.msk [vmem:[#allocation2 + $0x1b8] sm:$0xff] %vm231_vm2, %v2105_v2  ;;  %1910 = vmatmul.mubr.msk.bf16.gmra.mrb[8].mxu0 %vm599_vm3, %v2006_v17  ;;  %v302_v63 = vld [vmem:[#allocation2 + $0x30] sm:$0xff]  ;;  %v300_v1 = vld [vmem:[#allocation2 + $0x20] sm:$0xff] }
  0x24   : > { %288 = vst.msk [vmem:[#allocation2 + $0x1c0] sm:$0xff] %vm231_vm2, %v2105_v2  ;;  %289 = vst.msk [vmem:[#allocation2 + $0x1c8] sm:$0xff] %vm231_vm2, %v2105_v2  ;;  %1942 = vmatmul.mubr.msk.bf16.gmra.mrb[8].mxu1 %vm599_vm3, %v2007_v18  ;;  %1913 = vmatprep.mubr.msk.bf16.mxu0 %vm599_vm3, %v2008_v19  ;;  %v334_v0 = vld [vmem:[#allocation2 + $0x130] sm:$0xff]  ;;  %v332_v3 = vld [vmem:[#allocation2 + $0x120] sm:$0xff] }
  0x25   : > { %290 = vst.msk [vmem:[#allocation2 + $0x1d0] sm:$0xff] %vm231_vm2, %v2105_v2  ;;  %291 = vst.msk [vmem:[#allocation2 + $0x1d8] sm:$0xff] %vm231_vm2, %v2105_v2  ;;  %1945 = vmatprep.mubr.msk.bf16.mxu1 %vm599_vm3, %v2009_v20  ;;  %v303_v4 = vld [vmem:[#allocation2 + $0x38] sm:$0xff]  ;;  %v301_v9 = vld [vmem:[#allocation2 + $0x28] sm:$0xff] }
  0x26   : > { %292 = vst.msk [vmem:[#allocation2 + $0x1e0] sm:$0xff] %vm231_vm2, %v2105_v2  ;;  %293 = vst.msk [vmem:[#allocation2 + $0x1e8] sm:$0xff] %vm231_vm2, %v2105_v2  ;;  %v335_v8 = vld [vmem:[#allocation2 + $0x138] sm:$0xff]  ;;  %v333_v15 = vld [vmem:[#allocation2 + $0x128] sm:$0xff] }
  0x27   : > { %294 = vst.msk [vmem:[#allocation2 + $0x1f0] sm:$0xff] %vm231_vm2, %v2105_v2  ;;  %295 = vst.msk [vmem:[#allocation2 + $0x1f8] sm:$0xff] %vm231_vm2, %v2105_v2 }
  0x2b   : > { %1914 = vmatmul.mubr.msk.bf16.gmra.mrb[12].mxu0 %vm599_vm3, %v2010_v21 }
  0x2c   : > { %1946 = vmatmul.mubr.msk.bf16.gmra.mrb[12].mxu1 %vm599_vm3, %v2011_v22  ;;  %1917 = vmatprep.mubr.msk.bf16.mxu0 %vm599_vm3, %v2012_v23 }
  0x2d   : > { %1949 = vmatprep.mubr.msk.bf16.mxu1 %vm599_vm3, %v2013_v24 }
  0x33   : > { %1918 = vmatmul.mubr.msk.bf16.gmra.mrb[16].mxu0 %vm599_vm3, %v2014_v25 }
  0x34   : > { %1950 = vmatmul.mubr.msk.bf16.gmra.mrb[16].mxu1 %vm599_vm3, %v2015_v26  ;;  %1921 = vmatprep.mubr.msk.bf16.mxu0 %vm599_vm3, %v2016_v27 }
  0x35   : > { %1953 = vmatprep.mubr.msk.bf16.mxu1 %vm599_vm3, %v2017_v28 }
  0x3b   : > { %1922 = vmatmul.mubr.msk.bf16.gmra.mrb[20].mxu0 %vm599_vm3, %v2018_v29 }
  0x3c   : > { %1954 = vmatmul.mubr.msk.bf16.gmra.mrb[20].mxu1 %vm599_vm3, %v2019_v30  ;;  %1925 = vmatprep.mubr.msk.bf16.mxu0 %vm599_vm3, %v2020_v31 }
  0x3d   : > { %1957 = vmatprep.mubr.msk.bf16.mxu1 %vm599_vm3, %v2021_v32 }
  0x43   : > { %1926 = vmatmul.mubr.msk.bf16.gmra.mrb[24].mxu0 %vm599_vm3, %v2022_v33 }
  0x44   : > { %1958 = vmatmul.mubr.msk.bf16.gmra.mrb[24].mxu1 %vm599_vm3, %v2023_v34  ;;  %1929 = vmatprep.mubr.msk.bf16.mxu0 %vm599_vm3, %v2024_v35 }
  0x45   : > { %1961 = vmatprep.mubr.msk.bf16.mxu1 %vm599_vm3, %v2025_v36 }
  0x4b   : > { %1930 = vmatmul.mubr.msk.bf16.gmra.mrb[28].mxu0 %vm599_vm3, %v2026_v37 }
  0x4c   : > { %1962 = vmatmul.mubr.msk.bf16.gmra.mrb[28].mxu1 %vm599_vm3, %v2027_v38 }
  0xe6   : > { %v1903_v42 = vpop.f32.mrb[0].mxu0 }
  0xe7   : > { %v994_v45 = vadd.f32 %v1903_v42, %v298_v39  ;;  %v1935_v46 = vpop.f32.mrb[0].mxu1  ;;  %v737_v47 = vpop.f32.mrb[1].mxu0 }
  0xe8   : > { %v1026_v50 = vadd.f32 %v1935_v46, %v330_v40  ;;  %v992_v51 = vadd.f32 %v737_v47, %v296_v41  ;;  %v865_v52 = vpop.f32.mrb[1].mxu1  ;;  %v1904_v53 = vpop.f32.mrb[2].mxu0  ;;  %v306_v41 = vld [vmem:[#allocation2 + $0x50] sm:$0xff]  ;;  %v304_v46 = vld [vmem:[#allocation2 + $0x40] sm:$0xff] }
  0xe9   : > { %1059 = vst.msk [vmem:[#allocation2 + $0x10] sm:$0xff] %vm231_vm2, %v994_v45  ;;  %v1024_v55 = vadd.f32 %v865_v52, %v328_v43  ;;  %v995_v56 = vadd.f32 %v1904_v53, %v299_v44  ;;  %v1936_v57 = vpop.f32.mrb[2].mxu1  ;;  %v740_v58 = vpop.f32.mrb[3].mxu0  ;;  %v338_v45 = vld [vmem:[#allocation2 + $0x150] sm:$0xff] }
  0xea   : > { %1091 = vst.msk [vmem:[#allocation2 + $0x110] sm:$0xff] %vm231_vm2, %v1026_v50  ;;  %1057 = vst.msk [vmem:[#allocation2] sm:$0xff] %vm231_vm2, %v992_v51  ;;  %v1027_v59 = vadd.f32 %v1936_v57, %v331_v48  ;;  %v993_v60 = vadd.f32 %v740_v58, %v297_v49  ;;  %v868_v61 = vpop.f32.mrb[3].mxu1  ;;  %v336_v50 = vld [vmem:[#allocation2 + $0x140] sm:$0xff]  ;;  %v307_v51 = vld [vmem:[#allocation2 + $0x58] sm:$0xff] }
  0xeb   : > { %1089 = vst.msk [vmem:[#allocation2 + $0x100] sm:$0xff] %vm231_vm2, %v1024_v55  ;;  %1060 = vst.msk [vmem:[#allocation2 + $0x18] sm:$0xff] %vm231_vm2, %v995_v56  ;;  %v1025_v62 = vadd.f32 %v868_v61, %v329_v54  ;;  %v339_v56 = vld [vmem:[#allocation2 + $0x158] sm:$0xff]  ;;  %v305_v57 = vld [vmem:[#allocation2 + $0x48] sm:$0xff] }
  0xec   : > { %1092 = vst.msk [vmem:[#allocation2 + $0x118] sm:$0xff] %vm231_vm2, %v1027_v59  ;;  %1058 = vst.msk [vmem:[#allocation2 + $0x8] sm:$0xff] %vm231_vm2, %v993_v60 }
  0xed   : > { %1090 = vst.msk [vmem:[#allocation2 + $0x108] sm:$0xff] %vm231_vm2, %v1025_v62 }
  0xee   : > { %v1907_v2 = vpop.f32.mrb[4].mxu0 }
  0xef   : > { %v998_v5 = vadd.f32 %v1907_v2, %v302_v63  ;;  %v1939_v6 = vpop.f32.mrb[4].mxu1  ;;  %v753_v7 = vpop.f32.mrb[5].mxu0  ;;  %v337_v63 = vld [vmem:[#allocation2 + $0x148] sm:$0xff] }
  0xf0   : > { %v1126_v10 = vld [vmem:[#allocation2 + $0x10] sm:$0xff]  ;;  %v1030_v11 = vadd.f32 %v1939_v6, %v334_v0  ;;  %v996_v12 = vadd.f32 %v753_v7, %v300_v1  ;;  %v881_v13 = vpop.f32.mrb[5].mxu1  ;;  %v1908_v14 = vpop.f32.mrb[6].mxu0 }
  0xf1   : > { %v1190_v16 = vmax.f32 %v1126_v10, 0.0  ;;  %v1158_v17 = vld [vmem:[#allocation2 + $0x110] sm:$0xff]  ;;  %v1124_v18 = vld [vmem:[#allocation2] sm:$0xff]  ;;  %1063 = vst.msk [vmem:[#allocation2 + $0x30] sm:$0xff] %vm231_vm2, %v998_v5  ;;  %v1028_v19 = vadd.f32 %v881_v13, %v332_v3  ;;  %v999_v20 = vadd.f32 %v1908_v14, %v303_v4  ;;  %v1940_v21 = vpop.f32.mrb[6].mxu1  ;;  %v756_v22 = vpop.f32.mrb[7].mxu0 }
  0xf2   : > { %v1222_v23 = vmax.f32 %v1158_v17, 0.0  ;;  %v1188_v24 = vmax.f32 %v1124_v18, 0.0  ;;  %v1156_v25 = vld [vmem:[#allocation2 + $0x100] sm:$0xff]  ;;  %v1127_v26 = vld [vmem:[#allocation2 + $0x18] sm:$0xff]  ;;  %1095 = vst.msk [vmem:[#allocation2 + $0x130] sm:$0xff] %vm231_vm2, %v1030_v11  ;;  %1061 = vst.msk [vmem:[#allocation2 + $0x20] sm:$0xff] %vm231_vm2, %v996_v12  ;;  %v1031_v27 = vadd.f32 %v1940_v21, %v335_v8  ;;  %v997_v28 = vadd.f32 %v756_v22, %v301_v9 }
  0xf3   : > { %v884_v29 = vpop.f32.mrb[7].mxu1  ;;  %v1801_v30 = vpack.c.bf16 %v1190_v16, %v1190_v16  ;;  %v1220_v31 = vmax.f32 %v1156_v25, 0.0  ;;  %v1191_v32 = vmax.f32 %v1127_v26, 0.0  ;;  %v1159_v33 = vld [vmem:[#allocation2 + $0x118] sm:$0xff]  ;;  %v1125_v34 = vld [vmem:[#allocation2 + $0x8] sm:$0xff]  ;;  %1093 = vst.msk [vmem:[#allocation2 + $0x120] sm:$0xff] %vm231_vm2, %v1028_v19 }
  0xf4   : > { %1064 = vst.msk [vmem:[#allocation2 + $0x38] sm:$0xff] %vm231_vm2, %v999_v20  ;;  %v1029_v35 = vadd.f32 %v884_v29, %v333_v15  ;;  %v1833_v36 = vpack.c.bf16 %v1222_v23, %v1222_v23  ;;  %v1799_v37 = vpack.c.bf16 %v1188_v24, %v1188_v24  ;;  %v1223_v38 = vmax.f32 %v1159_v33, 0.0  ;;  %v1157_v40 = vld [vmem:[#allocation2 + $0x108] sm:$0xff]  ;;  %1096 = vst.msk [vmem:[#allocation2 + $0x138] sm:$0xff] %vm231_vm2, %v1031_v27  ;;  %v310_v25 = vld [vmem:[#allocation2 + $0x70] sm:$0xff] }
  0xf5   : > { %v1189_v39 = vmax.f32 %v1125_v34, 0.0  ;;  %1062 = vst.msk [vmem:[#allocation2 + $0x28] sm:$0xff] %vm231_vm2, %v997_v28  ;;  %v1831_v42 = vpack.c.bf16 %v1220_v31, %v1220_v31  ;;  %v1802_v43 = vpack.c.bf16 %v1191_v32, %v1191_v32  ;;  %v1221_v44 = vmax.f32 %v1157_v40, 0.0  ;;  %v342_v29 = vld [vmem:[#allocation2 + $0x170] sm:$0xff]  ;;  %v340_v34 = vld [vmem:[#allocation2 + $0x160] sm:$0xff]  ;;  %v343_v40 = vld [vmem:[#allocation2 + $0x178] sm:$0xff] }
  0xf6   : > { %1511 = vst.msk [vmem:[%s2337_s30 + $0x8] sm:$0xf] %vm1508_vm4, %v1801_v30  ;;  %1543 = vst.msk [vmem:[%s2337_s30 + $0x88] sm:$0xf] %vm1508_vm4, %v1833_v36  ;;  %v1834_v47 = vpack.c.bf16 %v1223_v38, %v1223_v38  ;;  %v1911_v49 = vpop.f32.mrb[8].mxu0  ;;  %v308_v30 = vld [vmem:[#allocation2 + $0x60] sm:$0xff] }
  0xf7   : > { %1094 = vst.msk [vmem:[#allocation2 + $0x128] sm:$0xff] %vm231_vm2, %v1029_v35  ;;  %v1800_v48 = vpack.c.bf16 %v1189_v39, %v1189_v39  ;;  %v1832_v52 = vpack.c.bf16 %v1221_v44, %v1221_v44  ;;  %v1002_v53 = vadd.f32 %v1911_v49, %v306_v41  ;;  %v1943_v54 = vpop.f32.mrb[8].mxu1  ;;  %v769_v55 = vpop.f32.mrb[9].mxu0  ;;  %v311_v35 = vld [vmem:[#allocation2 + $0x78] sm:$0xff]  ;;  %v309_v41 = vld [vmem:[#allocation2 + $0x68] sm:$0xff] }
  0xf8   : > { %1509 = vst.msk [vmem:[%s2337_s30] sm:$0xf] %vm1508_vm4, %v1799_v37  ;;  %1541 = vst.msk [vmem:[%s2337_s30 + $0x80] sm:$0xf] %vm1508_vm4, %v1831_v42  ;;  %v1130_v58 = vld [vmem:[#allocation2 + $0x30] sm:$0xff]  ;;  %v1034_v59 = vadd.f32 %v1943_v54, %v338_v45  ;;  %v1000_v60 = vadd.f32 %v769_v55, %v304_v46  ;;  %v897_v61 = vpop.f32.mrb[9].mxu1 }
  0xf9   : > { %1512 = vst.msk [vmem:[%s2337_s30 + $0xc] sm:$0xf] %vm1508_vm4, %v1802_v43  ;;  %1544 = vst.msk [vmem:[%s2337_s30 + $0x8c] sm:$0xf] %vm1508_vm4, %v1834_v47  ;;  %v1912_v62 = vpop.f32.mrb[10].mxu0  ;;  %v1194_v0 = vmax.f32 %v1130_v58, 0.0  ;;  %v1032_v3 = vadd.f32 %v897_v61, %v336_v50 }
  0xfa   : > { %1510 = vst.msk [vmem:[%s2337_s30 + $0x4] sm:$0xf] %vm1508_vm4, %v1800_v48  ;;  %1542 = vst.msk [vmem:[%s2337_s30 + $0x84] sm:$0xf] %vm1508_vm4, %v1832_v52  ;;  %v1162_v1 = vld [vmem:[#allocation2 + $0x130] sm:$0xff]  ;;  %v1128_v2 = vld [vmem:[#allocation2 + $0x20] sm:$0xff]  ;;  %v1003_v4 = vadd.f32 %v1912_v62, %v307_v51 }
  0xfb   : > { %1067 = vst.msk [vmem:[#allocation2 + $0x50] sm:$0xff] %vm231_vm2, %v1002_v53  ;;  %v1944_v5 = vpop.f32.mrb[10].mxu1  ;;  %v772_v6 = vpop.f32.mrb[11].mxu0  ;;  %v1226_v7 = vmax.f32 %v1162_v1, 0.0  ;;  %v1192_v8 = vmax.f32 %v1128_v2, 0.0  ;;  %v1160_v9 = vld [vmem:[#allocation2 + $0x120] sm:$0xff]  ;;  %v1805_v14 = vpack.c.bf16 %v1194_v0, %v1194_v0 }
  0xfc   : > { %v1131_v10 = vld [vmem:[#allocation2 + $0x38] sm:$0xff]  ;;  %1099 = vst.msk [vmem:[#allocation2 + $0x150] sm:$0xff] %vm231_vm2, %v1034_v59  ;;  %1065 = vst.msk [vmem:[#allocation2 + $0x40] sm:$0xff] %vm231_vm2, %v1000_v60  ;;  %v1035_v11 = vadd.f32 %v1944_v5, %v339_v56  ;;  %v1001_v12 = vadd.f32 %v772_v6, %v305_v57  ;;  %v900_v13 = vpop.f32.mrb[11].mxu1  ;;  %v1224_v15 = vmax.f32 %v1160_v9, 0.0  ;;  %v1129_v18 = vld [vmem:[#allocation2 + $0x28] sm:$0xff] }
  0xfd   : > { %v1195_v16 = vmax.f32 %v1131_v10, 0.0  ;;  %v1163_v17 = vld [vmem:[#allocation2 + $0x138] sm:$0xff]  ;;  %1097 = vst.msk [vmem:[#allocation2 + $0x140] sm:$0xff] %vm231_vm2, %v1032_v3  ;;  %1068 = vst.msk [vmem:[#allocation2 + $0x58] sm:$0xff] %vm231_vm2, %v1003_v4  ;;  %v1033_v19 = vadd.f32 %v900_v13, %v337_v63  ;;  %v1837_v20 = vpack.c.bf16 %v1226_v7, %v1226_v7  ;;  %v1803_v21 = vpack.c.bf16 %v1192_v8, %v1192_v8  ;;  %v341_v47 = vld [vmem:[#allocation2 + $0x168] sm:$0xff] }
  0xfe   : > { %v1227_v22 = vmax.f32 %v1163_v17, 0.0  ;;  %v1193_v23 = vmax.f32 %v1129_v18, 0.0  ;;  %v1161_v24 = vld [vmem:[#allocation2 + $0x128] sm:$0xff]  ;;  %1100 = vst.msk [vmem:[#allocation2 + $0x158] sm:$0xff] %vm231_vm2, %v1035_v11  ;;  %1066 = vst.msk [vmem:[#allocation2 + $0x48] sm:$0xff] %vm231_vm2, %v1001_v12  ;;  %v1835_v26 = vpack.c.bf16 %v1224_v15, %v1224_v15  ;;  %v1915_v33 = vpop.f32.mrb[12].mxu0 }
  0xff   : > { %1515 = vst.msk [vmem:[%s2337_s30 + $0x18] sm:$0xf] %vm1508_vm4, %v1805_v14  ;;  %v1806_v27 = vpack.c.bf16 %v1195_v16, %v1195_v16  ;;  %v1225_v28 = vmax.f32 %v1161_v24, 0.0  ;;  %1547 = vst.msk [vmem:[%s2337_s30 + $0x98] sm:$0xf] %vm1508_vm4, %v1837_v20  ;;  %v1006_v37 = vadd.f32 %v1915_v33, %v310_v25  ;;  %v1947_v38 = vpop.f32.mrb[12].mxu1 }
 0x100   : > { %1098 = vst.msk [vmem:[#allocation2 + $0x148] sm:$0xff] %vm231_vm2, %v1033_v19  ;;  %v1838_v31 = vpack.c.bf16 %v1227_v22, %v1227_v22  ;;  %v1804_v32 = vpack.c.bf16 %v1193_v23, %v1193_v23  ;;  %v785_v39 = vpop.f32.mrb[13].mxu0  ;;  %v1038_v43 = vadd.f32 %v1947_v38, %v342_v29  ;;  %v913_v45 = vpop.f32.mrb[13].mxu1  ;;  %v314_v9 = vld [vmem:[#allocation2 + $0x90] sm:$0xff]  ;;  %v312_v14 = vld [vmem:[#allocation2 + $0x80] sm:$0xff]  ;;  %v315_v19 = vld [vmem:[#allocation2 + $0x98] sm:$0xff] }
 0x101   : > { %1513 = vst.msk [vmem:[%s2337_s30 + $0x10] sm:$0xf] %vm1508_vm4, %v1803_v21  ;;  %1545 = vst.msk [vmem:[%s2337_s30 + $0x90] sm:$0xf] %vm1508_vm4, %v1835_v26  ;;  %v1836_v36 = vpack.c.bf16 %v1225_v28, %v1225_v28  ;;  %v1004_v44 = vadd.f32 %v785_v39, %v308_v30  ;;  %v1916_v46 = vpop.f32.mrb[14].mxu0  ;;  %v1036_v51 = vadd.f32 %v913_v45, %v340_v34  ;;  %v1948_v53 = vpop.f32.mrb[14].mxu1 }
 0x102   : > { %1516 = vst.msk [vmem:[%s2337_s30 + $0x1c] sm:$0xf] %vm1508_vm4, %v1806_v27  ;;  %1548 = vst.msk [vmem:[%s2337_s30 + $0x9c] sm:$0xf] %vm1508_vm4, %v1838_v31  ;;  %v1134_v42 = vld [vmem:[#allocation2 + $0x50] sm:$0xff]  ;;  %v1007_v52 = vadd.f32 %v1916_v46, %v311_v35  ;;  %v788_v54 = vpop.f32.mrb[15].mxu0  ;;  %v1039_v59 = vadd.f32 %v1948_v53, %v343_v40 }
 0x103   : > { %1514 = vst.msk [vmem:[%s2337_s30 + $0x14] sm:$0xf] %vm1508_vm4, %v1804_v32  ;;  %1546 = vst.msk [vmem:[%s2337_s30 + $0x94] sm:$0xf] %vm1508_vm4, %v1836_v36  ;;  %v1198_v48 = vmax.f32 %v1134_v42, 0.0  ;;  %v1166_v49 = vld [vmem:[#allocation2 + $0x150] sm:$0xff]  ;;  %v1005_v60 = vadd.f32 %v788_v54, %v309_v41 }
 0x104   : > { %v1132_v50 = vld [vmem:[#allocation2 + $0x40] sm:$0xff]  ;;  %1071 = vst.msk [vmem:[#allocation2 + $0x70] sm:$0xff] %vm231_vm2, %v1006_v37  ;;  %v1230_v55 = vmax.f32 %v1166_v49, 0.0  ;;  %v1135_v58 = vld [vmem:[#allocation2 + $0x58] sm:$0xff]  ;;  %1103 = vst.msk [vmem:[#allocation2 + $0x170] sm:$0xff] %vm231_vm2, %v1038_v43  ;;  %v916_v61 = vpop.f32.mrb[15].mxu1 }
 0x105   : > { %v1196_v56 = vmax.f32 %v1132_v50, 0.0  ;;  %v1164_v57 = vld [vmem:[#allocation2 + $0x140] sm:$0xff]  ;;  %1069 = vst.msk [vmem:[#allocation2 + $0x60] sm:$0xff] %vm231_vm2, %v1004_v44  ;;  %v1809_v62 = vpack.c.bf16 %v1198_v48, %v1198_v48  ;;  %v1199_v0 = vmax.f32 %v1135_v58, 0.0  ;;  %v1167_v1 = vld [vmem:[#allocation2 + $0x158] sm:$0xff]  ;;  %v1133_v2 = vld [vmem:[#allocation2 + $0x48] sm:$0xff]  ;;  %v1037_v3 = vadd.f32 %v916_v61, %v341_v47 }
 0x106   : > { %v1228_v63 = vmax.f32 %v1164_v57, 0.0  ;;  %1101 = vst.msk [vmem:[#allocation2 + $0x160] sm:$0xff] %vm231_vm2, %v1036_v51  ;;  %1072 = vst.msk [vmem:[#allocation2 + $0x78] sm:$0xff] %vm231_vm2, %v1007_v52  ;;  %v1841_v4 = vpack.c.bf16 %v1230_v55, %v1230_v55  ;;  %v1231_v6 = vmax.f32 %v1167_v1, 0.0  ;;  %v1197_v7 = vmax.f32 %v1133_v2, 0.0  ;;  %v346_v13 = vld [vmem:[#allocation2 + $0x190] sm:$0xff] }
 0x107   : > { %v1807_v5 = vpack.c.bf16 %v1196_v56, %v1196_v56  ;;  %v1165_v8 = vld [vmem:[#allocation2 + $0x148] sm:$0xff]  ;;  %1104 = vst.msk [vmem:[#allocation2 + $0x178] sm:$0xff] %vm231_vm2, %v1039_v59  ;;  %1070 = vst.msk [vmem:[#allocation2 + $0x68] sm:$0xff] %vm231_vm2, %v1005_v60  ;;  %v1810_v11 = vpack.c.bf16 %v1199_v0, %v1199_v0  ;;  %v1919_v17 = vpop.f32.mrb[16].mxu0  ;;  %v344_v18 = vld [vmem:[#allocation2 + $0x180] sm:$0xff]  ;;  %v1951_v22 = vpop.f32.mrb[16].mxu1 }
 0x108   : > { %1519 = vst.msk [vmem:[%s2337_s30 + $0x28] sm:$0xf] %vm1508_vm4, %v1809_v62  ;;  %v1839_v10 = vpack.c.bf16 %v1228_v63, %v1228_v63  ;;  %v1229_v12 = vmax.f32 %v1165_v8, 0.0  ;;  %1551 = vst.msk [vmem:[%s2337_s30 + $0xa8] sm:$0xf] %vm1508_vm4, %v1841_v4  ;;  %v1842_v15 = vpack.c.bf16 %v1231_v6, %v1231_v6  ;;  %v1808_v16 = vpack.c.bf16 %v1197_v7, %v1197_v7  ;;  %v801_v23 = vpop.f32.mrb[17].mxu0 }
 0x109   : > { %1102 = vst.msk [vmem:[#allocation2 + $0x168] sm:$0xff] %vm231_vm2, %v1037_v3  ;;  %v1010_v21 = vadd.f32 %v1919_v17, %v314_v9  ;;  %v347_v24 = vld [vmem:[#allocation2 + $0x198] sm:$0xff]  ;;  %v313_v25 = vld [vmem:[#allocation2 + $0x88] sm:$0xff]  ;;  %v1042_v27 = vadd.f32 %v1951_v22, %v346_v13  ;;  %v1008_v28 = vadd.f32 %v801_v23, %v312_v14  ;;  %v929_v29 = vpop.f32.mrb[17].mxu1  ;;  %v1920_v30 = vpop.f32.mrb[18].mxu0  ;;  %v318_v57 = vld [vmem:[#allocation2 + $0xb0] sm:$0xff] }
 0x10a   : > { %1517 = vst.msk [vmem:[%s2337_s30 + $0x20] sm:$0xf] %vm1508_vm4, %v1807_v5  ;;  %1549 = vst.msk [vmem:[%s2337_s30 + $0xa0] sm:$0xf] %vm1508_vm4, %v1839_v10  ;;  %v1840_v20 = vpack.c.bf16 %v1229_v12, %v1229_v12  ;;  %v345_v31 = vld [vmem:[#allocation2 + $0x188] sm:$0xff]  ;;  %v1040_v35 = vadd.f32 %v929_v29, %v344_v18  ;;  %v1011_v36 = vadd.f32 %v1920_v30, %v315_v19  ;;  %v1952_v37 = vpop.f32.mrb[18].mxu1 }
 0x10b   : > { %1520 = vst.msk [vmem:[%s2337_s30 + $0x2c] sm:$0xf] %vm1508_vm4, %v1810_v11  ;;  %1552 = vst.msk [vmem:[%s2337_s30 + $0xac] sm:$0xf] %vm1508_vm4, %v1842_v15  ;;  %v1138_v26 = vld [vmem:[#allocation2 + $0x70] sm:$0xff]  ;;  %v804_v38 = vpop.f32.mrb[19].mxu0  ;;  %v1043_v43 = vadd.f32 %v1952_v37, %v347_v24 }
 0x10c   : > { %1518 = vst.msk [vmem:[%s2337_s30 + $0x24] sm:$0xf] %vm1508_vm4, %v1808_v16  ;;  %1550 = vst.msk [vmem:[%s2337_s30 + $0xa4] sm:$0xf] %vm1508_vm4, %v1840_v20  ;;  %v1202_v32 = vmax.f32 %v1138_v26, 0.0  ;;  %v1170_v33 = vld [vmem:[#allocation2 + $0x170] sm:$0xff]  ;;  %v1009_v44 = vadd.f32 %v804_v38, %v313_v25 }
 0x10d   : > { %v1136_v34 = vld [vmem:[#allocation2 + $0x60] sm:$0xff]  ;;  %1075 = vst.msk [vmem:[#allocation2 + $0x90] sm:$0xff] %vm231_vm2, %v1010_v21  ;;  %v1234_v39 = vmax.f32 %v1170_v33, 0.0  ;;  %v1139_v42 = vld [vmem:[#allocation2 + $0x78] sm:$0xff]  ;;  %1107 = vst.msk [vmem:[#allocation2 + $0x190] sm:$0xff] %vm231_vm2, %v1042_v27  ;;  %v932_v45 = vpop.f32.mrb[19].mxu1 }
 0x10e   : > { %v1200_v40 = vmax.f32 %v1136_v34, 0.0  ;;  %v1168_v41 = vld [vmem:[#allocation2 + $0x160] sm:$0xff]  ;;  %1073 = vst.msk [vmem:[#allocation2 + $0x80] sm:$0xff] %vm231_vm2, %v1008_v28  ;;  %v1813_v46 = vpack.c.bf16 %v1202_v32, %v1202_v32  ;;  %v1203_v48 = vmax.f32 %v1139_v42, 0.0  ;;  %v1171_v49 = vld [vmem:[#allocation2 + $0x178] sm:$0xff]  ;;  %v1137_v50 = vld [vmem:[#allocation2 + $0x68] sm:$0xff]  ;;  %v1041_v51 = vadd.f32 %v932_v45, %v345_v31 }
 0x10f   : > { %v1232_v47 = vmax.f32 %v1168_v41, 0.0  ;;  %1105 = vst.msk [vmem:[#allocation2 + $0x180] sm:$0xff] %vm231_vm2, %v1040_v35  ;;  %1076 = vst.msk [vmem:[#allocation2 + $0x98] sm:$0xff] %vm231_vm2, %v1011_v36  ;;  %v1845_v52 = vpack.c.bf16 %v1234_v39, %v1234_v39  ;;  %v1235_v54 = vmax.f32 %v1171_v49, 0.0  ;;  %v1201_v55 = vmax.f32 %v1137_v50, 0.0  ;;  %v350_v61 = vld [vmem:[#allocation2 + $0x1b0] sm:$0xff] }
 0x110   : > { %v1811_v53 = vpack.c.bf16 %v1200_v40, %v1200_v40  ;;  %v1169_v56 = vld [vmem:[#allocation2 + $0x168] sm:$0xff]  ;;  %1108 = vst.msk [vmem:[#allocation2 + $0x198] sm:$0xff] %vm231_vm2, %v1043_v43  ;;  %1074 = vst.msk [vmem:[#allocation2 + $0x88] sm:$0xff] %vm231_vm2, %v1009_v44  ;;  %v1814_v59 = vpack.c.bf16 %v1203_v48, %v1203_v48  ;;  %v316_v62 = vld [vmem:[#allocation2 + $0xa0] sm:$0xff]  ;;  %v1923_v1 = vpop.f32.mrb[20].mxu0  ;;  %v1955_v6 = vpop.f32.mrb[20].mxu1 }
 0x111   : > { %1523 = vst.msk [vmem:[%s2337_s30 + $0x38] sm:$0xf] %vm1508_vm4, %v1813_v46  ;;  %v1843_v58 = vpack.c.bf16 %v1232_v47, %v1232_v47  ;;  %v1233_v60 = vmax.f32 %v1169_v56, 0.0  ;;  %1555 = vst.msk [vmem:[%s2337_s30 + $0xb8] sm:$0xf] %vm1508_vm4, %v1845_v52  ;;  %v1846_v63 = vpack.c.bf16 %v1235_v54, %v1235_v54  ;;  %v1812_v0 = vpack.c.bf16 %v1201_v55, %v1201_v55  ;;  %v348_v2 = vld [vmem:[#allocation2 + $0x1a0] sm:$0xff] }
 0x112   : > { %1106 = vst.msk [vmem:[#allocation2 + $0x188] sm:$0xff] %vm231_vm2, %v1041_v51  ;;  %v319_v3 = vld [vmem:[#allocation2 + $0xb8] sm:$0xff]  ;;  %v1014_v5 = vadd.f32 %v1923_v1, %v318_v57  ;;  %v817_v7 = vpop.f32.mrb[21].mxu0  ;;  %v317_v9 = vld [vmem:[#allocation2 + $0xa8] sm:$0xff]  ;;  %v1046_v11 = vadd.f32 %v1955_v6, %v350_v61  ;;  %v945_v13 = vpop.f32.mrb[21].mxu1  ;;  %v322_v41 = vld [vmem:[#allocation2 + $0xd0] sm:$0xff] }
 0x113   : > { %1521 = vst.msk [vmem:[%s2337_s30 + $0x30] sm:$0xf] %vm1508_vm4, %v1811_v53  ;;  %1553 = vst.msk [vmem:[%s2337_s30 + $0xb0] sm:$0xf] %vm1508_vm4, %v1843_v58  ;;  %v1844_v4 = vpack.c.bf16 %v1233_v60, %v1233_v60  ;;  %v351_v8 = vld [vmem:[#allocation2 + $0x1b8] sm:$0xff]  ;;  %v1012_v12 = vadd.f32 %v817_v7, %v316_v62  ;;  %v1924_v14 = vpop.f32.mrb[22].mxu0  ;;  %v1044_v19 = vadd.f32 %v945_v13, %v348_v2 }
 0x114   : > { %1524 = vst.msk [vmem:[%s2337_s30 + $0x3c] sm:$0xf] %vm1508_vm4, %v1814_v59  ;;  %1556 = vst.msk [vmem:[%s2337_s30 + $0xbc] sm:$0xf] %vm1508_vm4, %v1846_v63  ;;  %v1142_v10 = vld [vmem:[#allocation2 + $0x90] sm:$0xff]  ;;  %v349_v15 = vld [vmem:[#allocation2 + $0x1a8] sm:$0xff]  ;;  %v1015_v20 = vadd.f32 %v1924_v14, %v319_v3 }
 0x115   : > { %1522 = vst.msk [vmem:[%s2337_s30 + $0x34] sm:$0xf] %vm1508_vm4, %v1812_v0  ;;  %1554 = vst.msk [vmem:[%s2337_s30 + $0xb4] sm:$0xf] %vm1508_vm4, %v1844_v4  ;;  %v1206_v16 = vmax.f32 %v1142_v10, 0.0  ;;  %v1174_v17 = vld [vmem:[#allocation2 + $0x190] sm:$0xff] }
 0x116   : > { %v1140_v18 = vld [vmem:[#allocation2 + $0x80] sm:$0xff]  ;;  %1079 = vst.msk [vmem:[#allocation2 + $0xb0] sm:$0xff] %vm231_vm2, %v1014_v5  ;;  %v1956_v21 = vpop.f32.mrb[22].mxu1  ;;  %v820_v22 = vpop.f32.mrb[23].mxu0  ;;  %v1238_v23 = vmax.f32 %v1174_v17, 0.0  ;;  %v1143_v26 = vld [vmem:[#allocation2 + $0x98] sm:$0xff] }
 0x117   : > { %v1204_v24 = vmax.f32 %v1140_v18, 0.0  ;;  %v1172_v25 = vld [vmem:[#allocation2 + $0x180] sm:$0xff]  ;;  %1111 = vst.msk [vmem:[#allocation2 + $0x1b0] sm:$0xff] %vm231_vm2, %v1046_v11  ;;  %1077 = vst.msk [vmem:[#allocation2 + $0xa0] sm:$0xff] %vm231_vm2, %v1012_v12  ;;  %v1047_v27 = vadd.f32 %v1956_v21, %v351_v8  ;;  %v1013_v28 = vadd.f32 %v820_v22, %v317_v9  ;;  %v948_v29 = vpop.f32.mrb[23].mxu1  ;;  %v1817_v30 = vpack.c.bf16 %v1206_v16, %v1206_v16  ;;  %v1175_v33 = vld [vmem:[#allocation2 + $0x198] sm:$0xff] }
 0x118   : > { %v1236_v31 = vmax.f32 %v1172_v25, 0.0  ;;  %v1207_v32 = vmax.f32 %v1143_v26, 0.0  ;;  %v1141_v34 = vld [vmem:[#allocation2 + $0x88] sm:$0xff]  ;;  %1109 = vst.msk [vmem:[#allocation2 + $0x1a0] sm:$0xff] %vm231_vm2, %v1044_v19  ;;  %1080 = vst.msk [vmem:[#allocation2 + $0xb8] sm:$0xff] %vm231_vm2, %v1015_v20  ;;  %v1045_v35 = vadd.f32 %v948_v29, %v349_v15  ;;  %v1849_v36 = vpack.c.bf16 %v1238_v23, %v1238_v23  ;;  %v354_v45 = vld [vmem:[#allocation2 + $0x1d0] sm:$0xff] }
 0x119   : > { %v1815_v37 = vpack.c.bf16 %v1204_v24, %v1204_v24  ;;  %v1239_v38 = vmax.f32 %v1175_v33, 0.0  ;;  %v1205_v39 = vmax.f32 %v1141_v34, 0.0  ;;  %v1173_v40 = vld [vmem:[#allocation2 + $0x188] sm:$0xff]  ;;  %1112 = vst.msk [vmem:[#allocation2 + $0x1b8] sm:$0xff] %vm231_vm2, %v1047_v27  ;;  %1078 = vst.msk [vmem:[#allocation2 + $0xa8] sm:$0xff] %vm231_vm2, %v1013_v28  ;;  %v320_v46 = vld [vmem:[#allocation2 + $0xc0] sm:$0xff] }
 0x11a   : > { %1527 = vst.msk [vmem:[%s2337_s30 + $0x48] sm:$0xf] %vm1508_vm4, %v1817_v30  ;;  %v1847_v42 = vpack.c.bf16 %v1236_v31, %v1236_v31  ;;  %v1818_v43 = vpack.c.bf16 %v1207_v32, %v1207_v32  ;;  %v1237_v44 = vmax.f32 %v1173_v40, 0.0  ;;  %1559 = vst.msk [vmem:[%s2337_s30 + $0xc8] sm:$0xf] %vm1508_vm4, %v1849_v36  ;;  %v1927_v49 = vpop.f32.mrb[24].mxu0 }
 0x11b   : > { %1110 = vst.msk [vmem:[#allocation2 + $0x1a8] sm:$0xff] %vm231_vm2, %v1045_v35  ;;  %v1850_v47 = vpack.c.bf16 %v1239_v38, %v1239_v38  ;;  %v1816_v48 = vpack.c.bf16 %v1205_v39, %v1205_v39  ;;  %v352_v50 = vld [vmem:[#allocation2 + $0x1c0] sm:$0xff]  ;;  %v323_v51 = vld [vmem:[#allocation2 + $0xd8] sm:$0xff]  ;;  %v1018_v53 = vadd.f32 %v1927_v49, %v322_v41  ;;  %v1959_v54 = vpop.f32.mrb[24].mxu1  ;;  %v833_v55 = vpop.f32.mrb[25].mxu0  ;;  %v321_v57 = vld [vmem:[#allocation2 + $0xc8] sm:$0xff] }
 0x11c   : > { %1525 = vst.msk [vmem:[%s2337_s30 + $0x40] sm:$0xf] %vm1508_vm4, %v1815_v37  ;;  %1557 = vst.msk [vmem:[%s2337_s30 + $0xc0] sm:$0xf] %vm1508_vm4, %v1847_v42  ;;  %v1848_v52 = vpack.c.bf16 %v1237_v44, %v1237_v44  ;;  %v355_v56 = vld [vmem:[#allocation2 + $0x1d8] sm:$0xff]  ;;  %v1050_v59 = vadd.f32 %v1959_v54, %v354_v45  ;;  %v1016_v60 = vadd.f32 %v833_v55, %v320_v46  ;;  %v961_v61 = vpop.f32.mrb[25].mxu1 }
 0x11d   : > { %1528 = vst.msk [vmem:[%s2337_s30 + $0x4c] sm:$0xf] %vm1508_vm4, %v1818_v43  ;;  %1560 = vst.msk [vmem:[%s2337_s30 + $0xcc] sm:$0xf] %vm1508_vm4, %v1850_v47  ;;  %v1146_v58 = vld [vmem:[#allocation2 + $0xb0] sm:$0xff]  ;;  %v1928_v62 = vpop.f32.mrb[26].mxu0  ;;  %v1048_v3 = vadd.f32 %v961_v61, %v352_v50 }
 0x11e   : > { %1526 = vst.msk [vmem:[%s2337_s30 + $0x44] sm:$0xf] %vm1508_vm4, %v1816_v48  ;;  %v353_v63 = vld [vmem:[#allocation2 + $0x1c8] sm:$0xff]  ;;  %1558 = vst.msk [vmem:[%s2337_s30 + $0xc4] sm:$0xf] %vm1508_vm4, %v1848_v52  ;;  %v1210_v0 = vmax.f32 %v1146_v58, 0.0  ;;  %v1019_v4 = vadd.f32 %v1928_v62, %v323_v51 }
 0x11f   : > { %v1178_v1 = vld [vmem:[#allocation2 + $0x1b0] sm:$0xff]  ;;  %v1144_v2 = vld [vmem:[#allocation2 + $0xa0] sm:$0xff]  ;;  %1083 = vst.msk [vmem:[#allocation2 + $0xd0] sm:$0xff] %vm231_vm2, %v1018_v53  ;;  %v1960_v5 = vpop.f32.mrb[26].mxu1  ;;  %v836_v6 = vpop.f32.mrb[27].mxu0  ;;  %v1147_v10 = vld [vmem:[#allocation2 + $0xb8] sm:$0xff] }
 0x120   : > { %v1242_v7 = vmax.f32 %v1178_v1, 0.0  ;;  %v1208_v8 = vmax.f32 %v1144_v2, 0.0  ;;  %v1176_v9 = vld [vmem:[#allocation2 + $0x1a0] sm:$0xff]  ;;  %1115 = vst.msk [vmem:[#allocation2 + $0x1d0] sm:$0xff] %vm231_vm2, %v1050_v59  ;;  %1081 = vst.msk [vmem:[#allocation2 + $0xc0] sm:$0xff] %vm231_vm2, %v1016_v60  ;;  %v1051_v11 = vadd.f32 %v1960_v5, %v355_v56  ;;  %v1017_v12 = vadd.f32 %v836_v6, %v321_v57  ;;  %v964_v13 = vpop.f32.mrb[27].mxu1 }
 0x121   : > { %v1821_v14 = vpack.c.bf16 %v1210_v0, %v1210_v0  ;;  %v1240_v15 = vmax.f32 %v1176_v9, 0.0  ;;  %v1211_v16 = vmax.f32 %v1147_v10, 0.0  ;;  %v1179_v17 = vld [vmem:[#allocation2 + $0x1b8] sm:$0xff]  ;;  %v1145_v18 = vld [vmem:[#allocation2 + $0xa8] sm:$0xff]  ;;  %1113 = vst.msk [vmem:[#allocation2 + $0x1c0] sm:$0xff] %vm231_vm2, %v1048_v3  ;;  %1084 = vst.msk [vmem:[#allocation2 + $0xd8] sm:$0xff] %vm231_vm2, %v1019_v4  ;;  %v1049_v19 = vadd.f32 %v964_v13, %v353_v63 }
 0x122   : > { %v1853_v20 = vpack.c.bf16 %v1242_v7, %v1242_v7  ;;  %v1819_v21 = vpack.c.bf16 %v1208_v8, %v1208_v8  ;;  %v1243_v22 = vmax.f32 %v1179_v17, 0.0  ;;  %v1209_v23 = vmax.f32 %v1145_v18, 0.0  ;;  %v1177_v24 = vld [vmem:[#allocation2 + $0x1a8] sm:$0xff]  ;;  %1116 = vst.msk [vmem:[#allocation2 + $0x1d8] sm:$0xff] %vm231_vm2, %v1051_v11  ;;  %1082 = vst.msk [vmem:[#allocation2 + $0xc8] sm:$0xff] %vm231_vm2, %v1017_v12  ;;  %v326_v25 = vld [vmem:[#allocation2 + $0xf0] sm:$0xff] }
 0x123   : > { %1531 = vst.msk [vmem:[%s2337_s30 + $0x58] sm:$0xf] %vm1508_vm4, %v1821_v14  ;;  %v1851_v26 = vpack.c.bf16 %v1240_v15, %v1240_v15  ;;  %v1822_v27 = vpack.c.bf16 %v1211_v16, %v1211_v16  ;;  %v1241_v28 = vmax.f32 %v1177_v24, 0.0  ;;  %v358_v29 = vld [vmem:[#allocation2 + $0x1f0] sm:$0xff]  ;;  %v324_v30 = vld [vmem:[#allocation2 + $0xe0] sm:$0xff]  ;;  %v1931_v33 = vpop.f32.mrb[28].mxu0 }
 0x124   : > { %1114 = vst.msk [vmem:[#allocation2 + $0x1c8] sm:$0xff] %vm231_vm2, %v1049_v19  ;;  %v1854_v31 = vpack.c.bf16 %v1243_v22, %v1243_v22  ;;  %v1820_v32 = vpack.c.bf16 %v1209_v23, %v1209_v23  ;;  %v356_v34 = vld [vmem:[#allocation2 + $0x1e0] sm:$0xff]  ;;  %v327_v35 = vld [vmem:[#allocation2 + $0xf8] sm:$0xff]  ;;  %v1022_v37 = vadd.f32 %v1931_v33, %v326_v25  ;;  %v1963_v38 = vpop.f32.mrb[28].mxu1  ;;  %v849_v39 = vpop.f32.mrb[29].mxu0  ;;  %v325_v41 = vld [vmem:[#allocation2 + $0xe8] sm:$0xff] }
 0x125   : > { %1563 = vst.msk [vmem:[%s2337_s30 + $0xd8] sm:$0xf] %vm1508_vm4, %v1853_v20  ;;  %1529 = vst.msk [vmem:[%s2337_s30 + $0x50] sm:$0xf] %vm1508_vm4, %v1819_v21  ;;  %v1852_v36 = vpack.c.bf16 %v1241_v28, %v1241_v28  ;;  %v359_v40 = vld [vmem:[#allocation2 + $0x1f8] sm:$0xff]  ;;  %v1054_v43 = vadd.f32 %v1963_v38, %v358_v29  ;;  %v1020_v44 = vadd.f32 %v849_v39, %v324_v30  ;;  %v977_v45 = vpop.f32.mrb[29].mxu1 }
 0x126   : > { %1561 = vst.msk [vmem:[%s2337_s30 + $0xd0] sm:$0xf] %vm1508_vm4, %v1851_v26  ;;  %1532 = vst.msk [vmem:[%s2337_s30 + $0x5c] sm:$0xf] %vm1508_vm4, %v1822_v27  ;;  %v1150_v42 = vld [vmem:[#allocation2 + $0xd0] sm:$0xff]  ;;  %v1932_v46 = vpop.f32.mrb[30].mxu0  ;;  %v1052_v51 = vadd.f32 %v977_v45, %v356_v34 }
 0x127   : > { %1564 = vst.msk [vmem:[%s2337_s30 + $0xdc] sm:$0xf] %vm1508_vm4, %v1854_v31  ;;  %1530 = vst.msk [vmem:[%s2337_s30 + $0x54] sm:$0xf] %vm1508_vm4, %v1820_v32  ;;  %v357_v47 = vld [vmem:[#allocation2 + $0x1e8] sm:$0xff]  ;;  %v1214_v48 = vmax.f32 %v1150_v42, 0.0  ;;  %v1023_v52 = vadd.f32 %v1932_v46, %v327_v35 }
 0x128   : > { %1562 = vst.msk [vmem:[%s2337_s30 + $0xd4] sm:$0xf] %vm1508_vm4, %v1852_v36  ;;  %v1182_v49 = vld [vmem:[#allocation2 + $0x1d0] sm:$0xff]  ;;  %v1148_v50 = vld [vmem:[#allocation2 + $0xc0] sm:$0xff]  ;;  %v1964_v53 = vpop.f32.mrb[30].mxu1  ;;  %v852_v54 = vpop.f32.mrb[31].mxu0 }
 0x129   : > { %1087 = vst.msk [vmem:[#allocation2 + $0xf0] sm:$0xff] %vm231_vm2, %v1022_v37  ;;  %v1246_v55 = vmax.f32 %v1182_v49, 0.0  ;;  %v1212_v56 = vmax.f32 %v1148_v50, 0.0  ;;  %v1180_v57 = vld [vmem:[#allocation2 + $0x1c0] sm:$0xff]  ;;  %v1151_v58 = vld [vmem:[#allocation2 + $0xd8] sm:$0xff]  ;;  %1119 = vst.msk [vmem:[#allocation2 + $0x1f0] sm:$0xff] %vm231_vm2, %v1054_v43  ;;  %v1055_v59 = vadd.f32 %v1964_v53, %v359_v40  ;;  %v1021_v60 = vadd.f32 %v852_v54, %v325_v41 }
 0x12a   : > { %1085 = vst.msk [vmem:[#allocation2 + $0xe0] sm:$0xff] %vm231_vm2, %v1020_v44  ;;  %v980_v61 = vpop.f32.mrb[31].mxu1  ;;  %v1825_v62 = vpack.c.bf16 %v1214_v48, %v1214_v48  ;;  %v1244_v63 = vmax.f32 %v1180_v57, 0.0  ;;  %v1215_v0 = vmax.f32 %v1151_v58, 0.0  ;;  %v1183_v1 = vld [vmem:[#allocation2 + $0x1d8] sm:$0xff]  ;;  %v1149_v2 = vld [vmem:[#allocation2 + $0xc8] sm:$0xff] }
 0x12b   : > { %1117 = vst.msk [vmem:[#allocation2 + $0x1e0] sm:$0xff] %vm231_vm2, %v1052_v51  ;;  %1088 = vst.msk [vmem:[#allocation2 + $0xf8] sm:$0xff] %vm231_vm2, %v1023_v52  ;;  %v1053_v3 = vadd.f32 %v980_v61, %v357_v47  ;;  %v1857_v4 = vpack.c.bf16 %v1246_v55, %v1246_v55  ;;  %v1823_v5 = vpack.c.bf16 %v1212_v56, %v1212_v56  ;;  %v1247_v6 = vmax.f32 %v1183_v1, 0.0  ;;  %v1181_v8 = vld [vmem:[#allocation2 + $0x1c8] sm:$0xff] }
 0x12c   : > { %v1213_v7 = vmax.f32 %v1149_v2, 0.0  ;;  %1120 = vst.msk [vmem:[#allocation2 + $0x1f8] sm:$0xff] %vm231_vm2, %v1055_v59  ;;  %1086 = vst.msk [vmem:[#allocation2 + $0xe8] sm:$0xff] %vm231_vm2, %v1021_v60  ;;  %v1855_v9 = vpack.c.bf16 %v1244_v63, %v1244_v63  ;;  %v1826_v10 = vpack.c.bf16 %v1215_v0, %v1215_v0  ;;  %v1245_v11 = vmax.f32 %v1181_v8, 0.0 }
 0x12d   : > { %1535 = vst.msk [vmem:[%s2337_s30 + $0x68] sm:$0xf] %vm1508_vm4, %v1825_v62  ;;  %1567 = vst.msk [vmem:[%s2337_s30 + $0xe8] sm:$0xf] %vm1508_vm4, %v1857_v4  ;;  %v1858_v12 = vpack.c.bf16 %v1247_v6, %v1247_v6 }
 0x12e   : > { %1118 = vst.msk [vmem:[#allocation2 + $0x1e8] sm:$0xff] %vm231_vm2, %v1053_v3  ;;  %v1824_v13 = vpack.c.bf16 %v1213_v7, %v1213_v7  ;;  %v1856_v14 = vpack.c.bf16 %v1245_v11, %v1245_v11 }
 0x12f   : > { %1533 = vst.msk [vmem:[%s2337_s30 + $0x60] sm:$0xf] %vm1508_vm4, %v1823_v5  ;;  %1565 = vst.msk [vmem:[%s2337_s30 + $0xe0] sm:$0xf] %vm1508_vm4, %v1855_v9 }
 0x130   : > { %1536 = vst.msk [vmem:[%s2337_s30 + $0x6c] sm:$0xf] %vm1508_vm4, %v1826_v10  ;;  %1568 = vst.msk [vmem:[%s2337_s30 + $0xec] sm:$0xf] %vm1508_vm4, %v1858_v12  ;;  %v1154_v15 = vld [vmem:[#allocation2 + $0xf0] sm:$0xff] }
 0x131   : > { %1534 = vst.msk [vmem:[%s2337_s30 + $0x64] sm:$0xf] %vm1508_vm4, %v1824_v13  ;;  %1566 = vst.msk [vmem:[%s2337_s30 + $0xe4] sm:$0xf] %vm1508_vm4, %v1856_v14  ;;  %v1218_v16 = vmax.f32 %v1154_v15, 0.0  ;;  %v1186_v17 = vld [vmem:[#allocation2 + $0x1f0] sm:$0xff] }
 0x132   : > { %v1152_v18 = vld [vmem:[#allocation2 + $0xe0] sm:$0xff]  ;;  %v1250_v19 = vmax.f32 %v1186_v17, 0.0  ;;  %v1155_v22 = vld [vmem:[#allocation2 + $0xf8] sm:$0xff] }
 0x133   : > { %v1216_v20 = vmax.f32 %v1152_v18, 0.0  ;;  %v1184_v21 = vld [vmem:[#allocation2 + $0x1e0] sm:$0xff]  ;;  %v1829_v23 = vpack.c.bf16 %v1218_v16, %v1218_v16  ;;  %v1219_v25 = vmax.f32 %v1155_v22, 0.0  ;;  %v1187_v26 = vld [vmem:[#allocation2 + $0x1f8] sm:$0xff]  ;;  %v1153_v27 = vld [vmem:[#allocation2 + $0xe8] sm:$0xff] }
 0x134   : > { %v1248_v24 = vmax.f32 %v1184_v21, 0.0  ;;  %v1861_v28 = vpack.c.bf16 %v1250_v19, %v1250_v19  ;;  %v1251_v30 = vmax.f32 %v1187_v26, 0.0  ;;  %v1217_v31 = vmax.f32 %v1153_v27, 0.0 }
 0x135   : > { %v1827_v29 = vpack.c.bf16 %v1216_v20, %v1216_v20  ;;  %v1185_v32 = vld [vmem:[#allocation2 + $0x1e8] sm:$0xff]  ;;  %1539 = vst.msk [vmem:[%s2337_s30 + $0x78] sm:$0xf] %vm1508_vm4, %v1829_v23  ;;  %v1830_v34 = vpack.c.bf16 %v1219_v25, %v1219_v25 }
 0x136   : > { %v1859_v33 = vpack.c.bf16 %v1248_v24, %v1248_v24  ;;  %v1249_v35 = vmax.f32 %v1185_v32, 0.0  ;;  %1571 = vst.msk [vmem:[%s2337_s30 + $0xf8] sm:$0xf] %vm1508_vm4, %v1861_v28  ;;  %v1862_v36 = vpack.c.bf16 %v1251_v30, %v1251_v30  ;;  %v1828_v37 = vpack.c.bf16 %v1217_v31, %v1217_v31 }
 0x137   : > { %1537 = vst.msk [vmem:[%s2337_s30 + $0x70] sm:$0xf] %vm1508_vm4, %v1827_v29  ;;  %1540 = vst.msk [vmem:[%s2337_s30 + $0x7c] sm:$0xf] %vm1508_vm4, %v1830_v34 }
 0x138   : > { %1569 = vst.msk [vmem:[%s2337_s30 + $0xf0] sm:$0xf] %vm1508_vm4, %v1859_v33  ;;  %v1860_v38 = vpack.c.bf16 %v1249_v35, %v1249_v35  ;;  %1572 = vst.msk [vmem:[%s2337_s30 + $0xfc] sm:$0xf] %vm1508_vm4, %v1862_v36 }
 0x139   : > { %1538 = vst.msk [vmem:[%s2337_s30 + $0x74] sm:$0xf] %vm1508_vm4, %v1828_v37 }
 0x13a   : > { %1570 = vst.msk [vmem:[%s2337_s30 + $0xf4] sm:$0xf] %vm1508_vm4, %v1860_v38 }
 0x13b PF: > { %s13_s14 = sadd.s32 1, %s2050_s14   ;;  %s2536_s12 = smov %s2046_s13 }
 0x13c   : > { %p10_p5 = scmp.ge.s32.totalorder %s13_s14, 4   ;;  %s2537_s13 = smov %s2539_s15 }
 0x13e   :  { %12 = sbr.rel (!%p10_p5) target bundleno = 2 (0x2), region = 73 }

// kernel: forward.10
= control target key start
LH: loop header
LB: loop body
LE: loop exit
PB: predicated region body
PF: predicated region fallthrough
CT: control target
= control target key end

     0   :  { %vm539_vm0 = vcmask 261120   ;;  %vm26_vm1 = vcmask 523264   ;;  %vm1170_vm2 = vcmask 519168   ;;  %s2083_s1 = inlined_call_operand.vmem [shape: bf16[288,64], index: 1, kind: input, shape index: {}]   ;;  %s2084_s0 = inlined_call_operand.vmem [shape: bf16[256,288], index: 0, kind: input, shape index: {}]   ;;  %s2085_s2 = inlined_call_operand.vmem [shape: f32[1,64], index: 2, kind: input, shape index: {}]   ;;  %s2086_s3 = inlined_call_operand.vmem [shape: bf16[256,64], index: 3, kind: output, shape index: {}]  }
   0x1   :  { %v1536_v0 = vld [vmem:[%s2083_s1 + $0x40] sm:$0xff]   ;;  %v1538_v2 = vld [vmem:[%s2083_s1 + $0x48] sm:$0xff]   ;;  %v1540_v4 = vld [vmem:[%s2083_s1 + $0x50] sm:$0xff]  }
   0x2   :  { %v1537_v1 = vld [vmem:[%s2083_s1] sm:$0xff]   ;;  %1354 = vmatprep.subr.bf16.mxu0 %v1536_v0  ;;  %1520 = vmatprep.subr.bf16.mxu1 %v1536_v0  ;;  %v1539_v3 = vld [vmem:[%s2083_s1 + $0x8] sm:$0xff]   ;;  %v1541_v5 = vld [vmem:[%s2083_s1 + $0x10] sm:$0xff]  }
   0x3   :  { %1355 = vmatpush3.bf16.msra.mxu0 %v1537_v1  ;;  %1528 = vmatpush3.bf16.msra.mxu1 %v1537_v1  ;;  %v1542_v6 = vld [vmem:[%s2083_s1 + $0x58] sm:$0xff]   ;;  %v1544_v8 = vld [vmem:[%s2083_s1 + $0x60] sm:$0xff]   ;;  %v1546_v10 = vld [vmem:[%s2083_s1 + $0x68] sm:$0xff]  }
   0x4   :  { %1356 = vmatprep.subr.bf16.mxu0 %v1538_v2  ;;  %1521 = vmatprep.subr.bf16.mxu1 %v1538_v2  ;;  %v1543_v7 = vld [vmem:[%s2083_s1 + $0x18] sm:$0xff]   ;;  %v1545_v9 = vld [vmem:[%s2083_s1 + $0x20] sm:$0xff]   ;;  %v1547_v13 = vld [vmem:[%s2083_s1 + $0x28] sm:$0xff]  }
   0x5   :  { %v1554_v11 = vld [vmem:[%s2084_s0 + $0x4] ss:$12 sps:$4 sm:$0xff]   ;;  %v1550_v16 = vld [vmem:[%s2083_s1 + $0x78] sm:$0xff]   ;;  %v1552_v19 = vld [vmem:[%s2084_s0] ss:$12 sps:$4 sm:$0xff]  }
   0x6   :  { %v1557_v12 = vld [vmem:[%s2084_s0 + $0x124] ss:$12 sps:$4 sm:$0xff]   ;;  %620 = vmatprep.mubr.bf16.mxu0 %v1554_v11  ;;  %v1551_v17 = vld [vmem:[%s2083_s1 + $0x38] sm:$0xff]   ;;  %v1555_v20 = vld [vmem:[%s2084_s0 + $0x120] ss:$12 sps:$4 sm:$0xff]  }
   0x7   :  { %1357 = vmatpush3.bf16.msra.mxu0 %v1539_v3  ;;  %1529 = vmatpush3.bf16.msra.mxu1 %v1539_v3  ;;  %v1548_v14 = vld [vmem:[%s2083_s1 + $0x70] sm:$0xff]   ;;  %v1558_v18 = vld [vmem:[%s2083_s1 + $0x80] sm:$0xff]   ;;  %v1559_v21 = vld [vmem:[%s2084_s0 + $0x1c] ss:$12 sps:$4 sm:$0xff]  }
   0x8   :  { %1358 = vmatprep.subr.bf16.mxu0 %v1540_v4  ;;  %1522 = vmatprep.subr.bf16.mxu1 %v1540_v4  ;;  %v1549_v15 = vld [vmem:[%s2083_s1 + $0x30] sm:$0xff]   ;;  %v1561_v22 = vld [vmem:[%s2084_s0 + $0x13c] ss:$12 sps:$4 sm:$0xff]   ;;  %v1563_v24 = vld [vmem:[%s2084_s0 + $0x18] ss:$12 sps:$4 sm:$0xff]  }
   0x9   :  { %716 = vmatprep.mubr.bf16.mxu1 %v1557_v12  ;;  %v1571_v23 = vld [vmem:[%s2083_s1 + $0x88] sm:$0xff]   ;;  %v1564_v25 = vld [vmem:[%s2084_s0 + $0x138] ss:$12 sps:$4 sm:$0xff]   ;;  %v1565_v26 = vld [vmem:[%s2084_s0 + $0x34] ss:$12 sps:$4 sm:$0xff]  }
   0xa   :  { %v1567_v27 = vld [vmem:[%s2084_s0 + $0x154] ss:$12 sps:$4 sm:$0xff]   ;;  %v1569_v28 = vld [vmem:[%s2084_s0 + $0x30] ss:$12 sps:$4 sm:$0xff]   ;;  %v1572_v30 = vld [vmem:[%s2084_s0 + $0x4c] ss:$12 sps:$4 sm:$0xff]  }
   0xb   :  { %1359 = vmatpush3.bf16.msra.mxu0 %v1541_v5  ;;  %1530 = vmatpush3.bf16.msra.mxu1 %v1541_v5  ;;  %v1570_v29 = vld [vmem:[%s2084_s0 + $0x150] ss:$12 sps:$4 sm:$0xff]   ;;  %v1574_v31 = vld [vmem:[%s2084_s0 + $0x16c] ss:$12 sps:$4 sm:$0xff]   ;;  %v1576_v32 = vld [vmem:[%s2084_s0 + $0x48] ss:$12 sps:$4 sm:$0xff]  }
   0xc   :  { %1360 = vmatprep.subr.bf16.mxu0 %v1542_v6  ;;  %1523 = vmatprep.subr.bf16.mxu1 %v1542_v6  ;;  %v1577_v33 = vld [vmem:[%s2084_s0 + $0x168] ss:$12 sps:$4 sm:$0xff]   ;;  %v1578_v34 = vld [vmem:[%s2084_s0 + $0x64] ss:$12 sps:$4 sm:$0xff]   ;;  %v1581_v36 = vld [vmem:[%s2084_s0 + $0x60] ss:$12 sps:$4 sm:$0xff]  }
   0xd   :  { %v1580_v35 = vld [vmem:[%s2084_s0 + $0x8] ss:$12 sps:$4 sm:$0xff]   ;;  %v1582_v37 = vld [vmem:[%s2084_s0 + $0x20] ss:$12 sps:$4 sm:$0xff]   ;;  %v1585_v39 = vld [vmem:[%s2084_s0 + $0x38] ss:$12 sps:$4 sm:$0xff]  }
   0xe   :  { %v1583_v38 = vld [vmem:[%s2084_s0 + $0x7c] ss:$12 sps:$4 sm:$0xff]   ;;  %v1586_v40 = vld [vmem:[%s2084_s0 + $0x78] ss:$12 sps:$4 sm:$0xff]   ;;  %v1588_v42 = vld [vmem:[%s2084_s0 + $0x94] ss:$12 sps:$4 sm:$0xff]  }
   0xf   :  { %1361 = vmatpush3.bf16.msra.mxu0 %v1543_v7  ;;  %1531 = vmatpush3.bf16.msra.mxu1 %v1543_v7  ;;  %v1587_v41 = vld [vmem:[%s2084_s0 + $0x50] ss:$12 sps:$4 sm:$0xff]   ;;  %v1590_v43 = vld [vmem:[%s2084_s0 + $0x68] ss:$12 sps:$4 sm:$0xff]   ;;  %v1592_v45 = vld [vmem:[%s2084_s0 + $0x80] ss:$12 sps:$4 sm:$0xff]  }
  0x10   :  { %1362 = vmatprep.subr.bf16.mxu0 %v1544_v8  ;;  %1524 = vmatprep.subr.bf16.mxu1 %v1544_v8  ;;  %v1591_v44 = vld [vmem:[%s2084_s0 + $0x90] ss:$12 sps:$4 sm:$0xff]   ;;  %v1593_v46 = vld [vmem:[%s2084_s0 + $0xac] ss:$12 sps:$4 sm:$0xff]   ;;  %v1596_v48 = vld [vmem:[%s2084_s0 + $0xa8] ss:$12 sps:$4 sm:$0xff]  }
  0x11   :  { %v1595_v47 = vld [vmem:[%s2084_s0 + $0x98] ss:$12 sps:$4 sm:$0xff]   ;;  %v1597_v49 = vld [vmem:[%s2084_s0 + $0xb0] ss:$12 sps:$4 sm:$0xff]   ;;  %v1600_v51 = vld [vmem:[%s2084_s0 + $0xc8] ss:$12 sps:$4 sm:$0xff]  }
  0x12   :  { %v1598_v50 = vld [vmem:[%s2084_s0 + $0xc4] ss:$12 sps:$4 sm:$0xff]   ;;  %v1601_v52 = vld [vmem:[%s2084_s0 + $0xc0] ss:$12 sps:$4 sm:$0xff]   ;;  %v1603_v54 = vld [vmem:[%s2084_s0 + $0xdc] ss:$12 sps:$4 sm:$0xff]  }
  0x13   :  { %1363 = vmatpush3.bf16.msra.mxu0 %v1545_v9  ;;  %1532 = vmatpush3.bf16.msra.mxu1 %v1545_v9  ;;  %v1602_v53 = vld [vmem:[%s2084_s0 + $0xe0] ss:$12 sps:$4 sm:$0xff]   ;;  %v1605_v55 = vld [vmem:[%s2084_s0 + $0xf8] ss:$12 sps:$4 sm:$0xff]   ;;  %v1607_v57 = vld [vmem:[%s2084_s0 + $0x110] ss:$12 sps:$4 sm:$0xff]  }
  0x14   :  { %1364 = vmatprep.subr.bf16.mxu0 %v1546_v10  ;;  %1525 = vmatprep.subr.bf16.mxu1 %v1546_v10  ;;  %v1606_v56 = vld [vmem:[%s2084_s0 + $0xd8] ss:$12 sps:$4 sm:$0xff]   ;;  %v1608_v58 = vld [vmem:[%s2084_s0 + $0xf4] ss:$12 sps:$4 sm:$0xff]   ;;  %v1611_v60 = vld [vmem:[%s2084_s0 + $0xf0] ss:$12 sps:$4 sm:$0xff]  }
  0x15   :  { %v1610_v59 = vld [vmem:[%s2084_s0 + $0x128] ss:$12 sps:$4 sm:$0xff]   ;;  %v1612_v61 = vld [vmem:[%s2084_s0 + $0x140] ss:$12 sps:$4 sm:$0xff]   ;;  %v1615_v63 = vld [vmem:[%s2084_s0 + $0x158] ss:$12 sps:$4 sm:$0xff]  }
  0x16   :  { %v1613_v62 = vld [vmem:[%s2084_s0 + $0x10c] ss:$12 sps:$4 sm:$0xff]   ;;  %v1616_v0 = vld [vmem:[%s2084_s0 + $0x108] ss:$12 sps:$4 sm:$0xff]   ;;  %v1617_v1 = vld [vmem:[%s2084_s0 + $0x170] ss:$12 sps:$4 sm:$0xff]  }
  0x17   :  { %1365 = vmatpush3.bf16.msra.mxu0 %v1547_v13  ;;  %1533 = vmatpush3.bf16.msra.mxu1 %v1547_v13  ;;  %v1207_v2 = vld [vmem:[%s2085_s2] ss:$0 sm:$0xff] }
  0x18   :  { %1366 = vmatprep.subr.bf16.mxu0 %v1548_v14  ;;  %1526 = vmatprep.subr.bf16.mxu1 %v1548_v14  ;;  %29 = vst.msk [vmem:[#allocation2 + $0x10] sm:$0xff] %vm26_vm1, %v1207_v2  ;;  %27 = vst.msk [vmem:[#allocation2] sm:$0xff] %vm26_vm1, %v1207_v2 }
  0x19   :  { %28 = vst.msk [vmem:[#allocation2 + $0x8] sm:$0xff] %vm26_vm1, %v1207_v2  ;;  %30 = vst.msk [vmem:[#allocation2 + $0x18] sm:$0xff] %vm26_vm1, %v1207_v2 }
  0x1a   :  { %31 = vst.msk [vmem:[#allocation2 + $0x20] sm:$0xff] %vm26_vm1, %v1207_v2  ;;  %32 = vst.msk [vmem:[#allocation2 + $0x28] sm:$0xff] %vm26_vm1, %v1207_v2 }
  0x1b   :  { %1367 = vmatpush3.bf16.msra.mxu0 %v1549_v15  ;;  %1534 = vmatpush3.bf16.msra.mxu1 %v1549_v15  ;;  %33 = vst.msk [vmem:[#allocation2 + $0x30] sm:$0xff] %vm26_vm1, %v1207_v2  ;;  %34 = vst.msk [vmem:[#allocation2 + $0x38] sm:$0xff] %vm26_vm1, %v1207_v2 }
  0x1c   :  { %1368 = vmatprep.subr.bf16.mxu0 %v1550_v16  ;;  %1527 = vmatprep.subr.bf16.mxu1 %v1550_v16  ;;  %35 = vst.msk [vmem:[#allocation2 + $0x40] sm:$0xff] %vm26_vm1, %v1207_v2  ;;  %36 = vst.msk [vmem:[#allocation2 + $0x48] sm:$0xff] %vm26_vm1, %v1207_v2 }
  0x1d   :  { %37 = vst.msk [vmem:[#allocation2 + $0x50] sm:$0xff] %vm26_vm1, %v1207_v2  ;;  %38 = vst.msk [vmem:[#allocation2 + $0x58] sm:$0xff] %vm26_vm1, %v1207_v2 }
  0x1e   :  { %39 = vst.msk [vmem:[#allocation2 + $0x60] sm:$0xff] %vm26_vm1, %v1207_v2  ;;  %40 = vst.msk [vmem:[#allocation2 + $0x68] sm:$0xff] %vm26_vm1, %v1207_v2 }
  0x1f   :  { %1369 = vmatpush3.bf16.msra.mxu0 %v1551_v17  ;;  %1535 = vmatpush3.bf16.msra.mxu1 %v1551_v17  ;;  %41 = vst.msk [vmem:[#allocation2 + $0x70] sm:$0xff] %vm26_vm1, %v1207_v2  ;;  %42 = vst.msk [vmem:[#allocation2 + $0x78] sm:$0xff] %vm26_vm1, %v1207_v2 }
  0x20   :  { %1484 = vmatprep.subr.bf16.mxu1 %v1558_v18  ;;  %43 = vst.msk [vmem:[#allocation2 + $0x80] sm:$0xff] %vm26_vm1, %v1207_v2  ;;  %44 = vst.msk [vmem:[#allocation2 + $0x88] sm:$0xff] %vm26_vm1, %v1207_v2 }
  0x21   :  { %45 = vst.msk [vmem:[#allocation2 + $0x90] sm:$0xff] %vm26_vm1, %v1207_v2  ;;  %46 = vst.msk [vmem:[#allocation2 + $0x98] sm:$0xff] %vm26_vm1, %v1207_v2 }
  0x22   :  { %621 = vmatmul.mubr.bf16.vlgmr.msra.gmra.mrb[0].mxu0 %v1552_v19  ;;  %717 = vmatmul.mubr.bf16.vlgmr.msra.gmra.mrb[0].mxu1 %v1555_v20  ;;  %47 = vst.msk [vmem:[#allocation2 + $0xa0] sm:$0xff] %vm26_vm1, %v1207_v2  ;;  %48 = vst.msk [vmem:[#allocation2 + $0xa8] sm:$0xff] %vm26_vm1, %v1207_v2 }
  0x23   :  { %1485 = vmatpush3.bf16.msra.mxu1 %v1558_v18  ;;  %628 = vmatprep.mubr.bf16.mxu0 %v1559_v21  ;;  %49 = vst.msk [vmem:[#allocation2 + $0xb0] sm:$0xff] %vm26_vm1, %v1207_v2  ;;  %50 = vst.msk [vmem:[#allocation2 + $0xb8] sm:$0xff] %vm26_vm1, %v1207_v2 }
  0x24   :  { %724 = vmatprep.mubr.bf16.mxu1 %v1561_v22  ;;  %1486 = vmatprep.subr.bf16.mxu1 %v1571_v23  ;;  %51 = vst.msk [vmem:[#allocation2 + $0xc0] sm:$0xff] %vm26_vm1, %v1207_v2  ;;  %52 = vst.msk [vmem:[#allocation2 + $0xc8] sm:$0xff] %vm26_vm1, %v1207_v2 }
  0x25   :  { %53 = vst.msk [vmem:[#allocation2 + $0xd0] sm:$0xff] %vm26_vm1, %v1207_v2  ;;  %54 = vst.msk [vmem:[#allocation2 + $0xd8] sm:$0xff] %vm26_vm1, %v1207_v2 }
  0x26   :  { %55 = vst.msk [vmem:[#allocation2 + $0xe0] sm:$0xff] %vm26_vm1, %v1207_v2  ;;  %56 = vst.msk [vmem:[#allocation2 + $0xe8] sm:$0xff] %vm26_vm1, %v1207_v2 }
  0x27   :  { %1487 = vmatpush3.bf16.msra.mxu1 %v1571_v23  ;;  %57 = vst.msk [vmem:[#allocation2 + $0xf0] sm:$0xff] %vm26_vm1, %v1207_v2  ;;  %58 = vst.msk [vmem:[#allocation2 + $0xf8] sm:$0xff] %vm26_vm1, %v1207_v2  ;;  %v60_v2 = vld [vmem:[#allocation2 + $0x8] sm:$0xff] }
  0x2a   :  { %629 = vmatmul.mubr.bf16.gmra.mrb[4].mxu0 %v1563_v24  ;;  %725 = vmatmul.mubr.bf16.gmra.mrb[4].mxu1 %v1564_v25 }
  0x2b   :  { %636 = vmatprep.mubr.bf16.mxu0 %v1565_v26  ;;  %732 = vmatprep.mubr.bf16.mxu1 %v1567_v27 }
  0x32   :  { %637 = vmatmul.mubr.bf16.gmra.mrb[8].mxu0 %v1569_v28  ;;  %733 = vmatmul.mubr.bf16.gmra.mrb[8].mxu1 %v1570_v29 }
  0x33   :  { %644 = vmatprep.mubr.bf16.mxu0 %v1572_v30  ;;  %740 = vmatprep.mubr.bf16.mxu1 %v1574_v31 }
  0x3a   :  { %645 = vmatmul.mubr.bf16.gmra.mrb[12].mxu0 %v1576_v32  ;;  %741 = vmatmul.mubr.bf16.gmra.mrb[12].mxu1 %v1577_v33 }
  0x3b   :  { %652 = vmatprep.mubr.bf16.mxu0 %v1578_v34  ;;  %1488 = vmatprep.mubr.msk.bf16.mxu1 %vm539_vm0, %v1580_v35 }
  0x42   :  { %653 = vmatmul.mubr.bf16.gmra.mrb[16].mxu0 %v1581_v36  ;;  %1489 = vmatmul.mubr.msk.bf16.vlgmr.msra.gmra.mrb[16].mxu1 %vm539_vm0, %v1582_v37 }
  0x43   :  { %660 = vmatprep.mubr.bf16.mxu0 %v1583_v38  ;;  %1492 = vmatprep.mubr.msk.bf16.mxu1 %vm539_vm0, %v1585_v39 }
  0x4a   :  { %661 = vmatmul.mubr.bf16.gmra.mrb[20].mxu0 %v1586_v40  ;;  %1493 = vmatmul.mubr.msk.bf16.gmra.mrb[20].mxu1 %vm539_vm0, %v1587_v41 }
  0x4b   :  { %668 = vmatprep.mubr.bf16.mxu0 %v1588_v42  ;;  %1496 = vmatprep.mubr.msk.bf16.mxu1 %vm539_vm0, %v1590_v43 }
  0x52   :  { %669 = vmatmul.mubr.bf16.gmra.mrb[24].mxu0 %v1591_v44  ;;  %1497 = vmatmul.mubr.msk.bf16.gmra.mrb[24].mxu1 %vm539_vm0, %v1592_v45 }
  0x53   :  { %676 = vmatprep.mubr.bf16.mxu0 %v1593_v46  ;;  %1500 = vmatprep.mubr.msk.bf16.mxu1 %vm539_vm0, %v1595_v47 }
  0x5a   :  { %677 = vmatmul.mubr.bf16.gmra.mrb[28].mxu0 %v1596_v48  ;;  %1501 = vmatmul.mubr.msk.bf16.gmra.mrb[28].mxu1 %vm539_vm0, %v1597_v49 }
  0x5b   :  { %684 = vmatprep.mubr.bf16.mxu0 %v1598_v50  ;;  %1504 = vmatprep.mubr.msk.bf16.mxu1 %vm539_vm0, %v1600_v51 }
  0x62   :  { %685 = vmatmul.mubr.bf16.gmra.mrb[32].mxu0 %v1601_v52  ;;  %1505 = vmatmul.mubr.msk.bf16.gmra.mrb[32].mxu1 %vm539_vm0, %v1602_v53  ;;  %v61_v52 = vld [vmem:[#allocation2 + $0x10] sm:$0xff] }
  0x63   :  { %692 = vmatprep.mubr.bf16.mxu0 %v1603_v54  ;;  %1508 = vmatprep.mubr.msk.bf16.mxu1 %vm539_vm0, %v1605_v55 }
  0x6a   :  { %693 = vmatmul.mubr.bf16.gmra.mrb[36].mxu0 %v1606_v56  ;;  %1509 = vmatmul.mubr.msk.bf16.gmra.mrb[36].mxu1 %vm539_vm0, %v1607_v57  ;;  %v59_v56 = vld [vmem:[#allocation2] sm:$0xff] }
  0x6b   :  { %700 = vmatprep.mubr.bf16.mxu0 %v1608_v58  ;;  %1512 = vmatprep.mubr.msk.bf16.mxu1 %vm539_vm0, %v1610_v59 }
  0x72   :  { %701 = vmatmul.mubr.bf16.gmra.mrb[40].mxu0 %v1611_v60  ;;  %1513 = vmatmul.mubr.msk.bf16.gmra.mrb[40].mxu1 %vm539_vm0, %v1612_v61  ;;  %v62_v61 = vld [vmem:[#allocation2 + $0x18] sm:$0xff] }
  0x73   :  { %708 = vmatprep.mubr.bf16.mxu0 %v1613_v62  ;;  %1516 = vmatprep.mubr.msk.bf16.mxu1 %vm539_vm0, %v1615_v63 }
  0x7a   :  { %709 = vmatmul.mubr.bf16.gmra.mrb[44].mxu0 %v1616_v0  ;;  %1517 = vmatmul.mubr.msk.bf16.gmra.mrb[44].mxu1 %vm539_vm0, %v1617_v1 }
  0xf5   :  { %v1370_v3 = vpop.f32.mrb[0].mxu0  ;;  %v1442_v4 = vpop.f32.mrb[0].mxu1 }
  0xf6   :  { %v1371_v5 = vpop.f32.mrb[1].mxu0  ;;  %v1443_v6 = vpop.f32.mrb[1].mxu1 }
  0xf7   :  { %v1372_v7 = vadd.f32 %v1371_v5, %v1370_v3  ;;  %v1887_v8 = vadd.f32 %v1443_v6, %v1442_v4  ;;  %v1373_v9 = vpop.f32.mrb[2].mxu0  ;;  %v1445_v10 = vpop.f32.mrb[2].mxu1 }
  0xf8   :  { %v1374_v11 = vpop.f32.mrb[3].mxu0  ;;  %v1446_v12 = vpop.f32.mrb[3].mxu1 }
  0xf9   :  { %v1375_v13 = vadd.f32 %v1374_v11, %v1373_v9  ;;  %v1889_v14 = vadd.f32 %v1446_v12, %v1445_v10  ;;  %v65_v11 = vld [vmem:[#allocation2 + $0x30] sm:$0xff] }
  0xfd   :  { %v1376_v15 = vpop.f32.mrb[4].mxu0  ;;  %v1448_v16 = vpop.f32.mrb[4].mxu1 }
  0xfe   :  { %v1377_v17 = vpop.f32.mrb[5].mxu0  ;;  %v1449_v18 = vpop.f32.mrb[5].mxu1 }
  0xff   :  { %v1378_v19 = vadd.f32 %v1377_v17, %v1376_v15  ;;  %v1891_v20 = vadd.f32 %v1449_v18, %v1448_v16  ;;  %v1379_v21 = vpop.f32.mrb[6].mxu0  ;;  %v1451_v22 = vpop.f32.mrb[6].mxu1  ;;  %v63_v17 = vld [vmem:[#allocation2 + $0x20] sm:$0xff] }
 0x100   :  { %v1380_v23 = vpop.f32.mrb[7].mxu0  ;;  %v1452_v24 = vpop.f32.mrb[7].mxu1 }
 0x101   :  { %v1381_v25 = vadd.f32 %v1380_v23, %v1379_v21  ;;  %v1893_v26 = vadd.f32 %v1452_v24, %v1451_v22  ;;  %v66_v22 = vld [vmem:[#allocation2 + $0x38] sm:$0xff] }
 0x105   :  { %v1382_v27 = vpop.f32.mrb[8].mxu0  ;;  %v1454_v28 = vpop.f32.mrb[8].mxu1 }
 0x106   :  { %v1383_v29 = vpop.f32.mrb[9].mxu0  ;;  %v1455_v30 = vpop.f32.mrb[9].mxu1 }
 0x107   :  { %v1384_v31 = vadd.f32 %v1383_v29, %v1382_v27  ;;  %v1895_v32 = vadd.f32 %v1455_v30, %v1454_v28  ;;  %v1385_v33 = vpop.f32.mrb[10].mxu0  ;;  %v1457_v34 = vpop.f32.mrb[10].mxu1  ;;  %v64_v28 = vld [vmem:[#allocation2 + $0x28] sm:$0xff] }
 0x108   :  { %v1386_v35 = vpop.f32.mrb[11].mxu0  ;;  %v1458_v36 = vpop.f32.mrb[11].mxu1 }
 0x109   :  { %v1387_v37 = vadd.f32 %v1386_v35, %v1385_v33  ;;  %v1897_v38 = vadd.f32 %v1458_v36, %v1457_v34 }
 0x10d   :  { %v1388_v39 = vpop.f32.mrb[12].mxu0  ;;  %v1460_v40 = vpop.f32.mrb[12].mxu1 }
 0x10e   :  { %v1389_v41 = vpop.f32.mrb[13].mxu0  ;;  %v1461_v42 = vpop.f32.mrb[13].mxu1 }
 0x10f   :  { %v1390_v43 = vadd.f32 %v1389_v41, %v1388_v39  ;;  %v1899_v44 = vadd.f32 %v1461_v42, %v1460_v40  ;;  %v1391_v45 = vpop.f32.mrb[14].mxu0  ;;  %v1463_v46 = vpop.f32.mrb[14].mxu1 }
 0x110   :  { %v1392_v47 = vpop.f32.mrb[15].mxu0  ;;  %v1464_v48 = vpop.f32.mrb[15].mxu1 }
 0x111   :  { %v1393_v49 = vadd.f32 %v1392_v47, %v1391_v45  ;;  %v1901_v50 = vadd.f32 %v1464_v48, %v1463_v46 }
 0x115   :  { %v1394_v51 = vpop.f32.mrb[16].mxu0  ;;  %v1490_v53 = vpop.f32.mrb[16].mxu1 }
 0x116   :  { %v792_v54 = vadd.f32 %v1490_v53, %v1378_v19  ;;  %v1395_v55 = vpop.f32.mrb[17].mxu0  ;;  %v783_v57 = vpop.f32.mrb[17].mxu1 }
 0x117   :  { %v1903_v58 = vadd.f32 %v1395_v55, %v1394_v51  ;;  %v784_v59 = vadd.f32 %v1372_v7, %v783_v57  ;;  %v1397_v60 = vpop.f32.mrb[18].mxu0  ;;  %v1491_v62 = vpop.f32.mrb[18].mxu1  ;;  %v67_v55 = vld [vmem:[#allocation2 + $0x40] sm:$0xff] }
 0x118   :  { %v912_v63 = vadd.f32 %v792_v54, %v61_v52  ;;  %v795_v0 = vadd.f32 %v1491_v62, %v1381_v25  ;;  %v1398_v1 = vpop.f32.mrb[19].mxu0  ;;  %v786_v3 = vpop.f32.mrb[19].mxu1  ;;  %v70_v62 = vld [vmem:[#allocation2 + $0x58] sm:$0xff] }
 0x119   :  { %v910_v4 = vadd.f32 %v784_v59, %v59_v56  ;;  %v1905_v5 = vadd.f32 %v1398_v1, %v1397_v60  ;;  %v787_v6 = vadd.f32 %v1375_v13, %v786_v3  ;;  %v68_v3 = vld [vmem:[#allocation2 + $0x48] sm:$0xff] }
 0x11a   :  { %945 = vst.msk [vmem:[#allocation2 + $0x10] sm:$0xff] %vm26_vm1, %v912_v63  ;;  %v913_v9 = vadd.f32 %v795_v0, %v62_v61 }
 0x11b   :  { %943 = vst.msk [vmem:[#allocation2] sm:$0xff] %vm26_vm1, %v910_v4  ;;  %v911_v10 = vadd.f32 %v787_v6, %v60_v2 }
 0x11c   :  { %946 = vst.msk [vmem:[#allocation2 + $0x18] sm:$0xff] %vm26_vm1, %v913_v9 }
 0x11d   :  { %944 = vst.msk [vmem:[#allocation2 + $0x8] sm:$0xff] %vm26_vm1, %v911_v10  ;;  %v1400_v7 = vpop.f32.mrb[20].mxu0  ;;  %v1494_v12 = vpop.f32.mrb[20].mxu1 }
 0x11e   :  { %v808_v15 = vadd.f32 %v1494_v12, %v1390_v43  ;;  %v1401_v16 = vpop.f32.mrb[21].mxu0  ;;  %v799_v18 = vpop.f32.mrb[21].mxu1 }
 0x11f   :  { %v1402_v19 = vadd.f32 %v1401_v16, %v1400_v7  ;;  %v800_v21 = vadd.f32 %v1384_v31, %v799_v18  ;;  %v1403_v13 = vpop.f32.mrb[22].mxu0  ;;  %v1495_v23 = vpop.f32.mrb[22].mxu1 }
 0x120   :  { %v916_v24 = vadd.f32 %v808_v15, %v65_v11  ;;  %v811_v25 = vadd.f32 %v1495_v23, %v1393_v49  ;;  %v1404_v27 = vpop.f32.mrb[23].mxu0  ;;  %v802_v29 = vpop.f32.mrb[23].mxu1  ;;  %v69_v49 = vld [vmem:[#allocation2 + $0x50] sm:$0xff] }
 0x121   :  { %v980_v30 = vld [vmem:[#allocation2 + $0x10] sm:$0xff]  ;;  %v914_v33 = vadd.f32 %v800_v21, %v63_v17  ;;  %v1405_v34 = vadd.f32 %v1404_v27, %v1403_v13  ;;  %v803_v35 = vadd.f32 %v1387_v37, %v802_v29  ;;  %v71_v27 = vld [vmem:[#allocation2 + $0x60] sm:$0xff] }
 0x122   :  { %v1012_v36 = vmax.f32 %v980_v30, 0.0  ;;  %v978_v39 = vld [vmem:[#allocation2] sm:$0xff]  ;;  %949 = vst.msk [vmem:[#allocation2 + $0x30] sm:$0xff] %vm26_vm1, %v916_v24  ;;  %v917_v40 = vadd.f32 %v811_v25, %v66_v22 }
 0x123   :  { %v1010_v41 = vmax.f32 %v978_v39, 0.0  ;;  %v981_v31 = vld [vmem:[#allocation2 + $0x18] sm:$0xff]  ;;  %947 = vst.msk [vmem:[#allocation2 + $0x20] sm:$0xff] %vm26_vm1, %v914_v33  ;;  %v915_v42 = vadd.f32 %v803_v35, %v64_v28 }
 0x124   :  { %v1324_v43 = vpack.c.bf16 %v1012_v36, %v1012_v36  ;;  %v1013_v45 = vmax.f32 %v981_v31, 0.0  ;;  %v979_v46 = vld [vmem:[#allocation2 + $0x8] sm:$0xff]  ;;  %950 = vst.msk [vmem:[#allocation2 + $0x38] sm:$0xff] %vm26_vm1, %v917_v40  ;;  %v73_v36 = vld [vmem:[#allocation2 + $0x70] sm:$0xff] }
 0x125   :  { %v1322_v47 = vpack.c.bf16 %v1010_v41, %v1010_v41  ;;  %v1011_v48 = vmax.f32 %v979_v46, 0.0  ;;  %948 = vst.msk [vmem:[#allocation2 + $0x28] sm:$0xff] %vm26_vm1, %v915_v42  ;;  %v1406_v37 = vpop.f32.mrb[24].mxu0  ;;  %v1498_v51 = vpop.f32.mrb[24].mxu1  ;;  %v72_v40 = vld [vmem:[#allocation2 + $0x68] sm:$0xff] }
 0x126   :  { %1173 = vst.msk [vmem:[%s2086_s3 + $0x8] sm:$0xf] %vm1170_vm2, %v1324_v43  ;;  %v1325_v52 = vpack.c.bf16 %v1013_v45, %v1013_v45  ;;  %v824_v53 = vadd.f32 %v1498_v51, %v1402_v19  ;;  %v1407_v54 = vpop.f32.mrb[25].mxu0  ;;  %v815_v56 = vpop.f32.mrb[25].mxu1 }
 0x127   :  { %1171 = vst.msk [vmem:[%s2086_s3] sm:$0xf] %vm1170_vm2, %v1322_v47  ;;  %v1323_v57 = vpack.c.bf16 %v1011_v48, %v1011_v48  ;;  %v1408_v59 = vadd.f32 %v1407_v54, %v1406_v37  ;;  %v816_v60 = vadd.f32 %v1903_v58, %v815_v56  ;;  %v1409_v61 = vpop.f32.mrb[26].mxu0  ;;  %v1499_v63 = vpop.f32.mrb[26].mxu1  ;;  %v74_v37 = vld [vmem:[#allocation2 + $0x78] sm:$0xff] }
 0x128   :  { %1174 = vst.msk [vmem:[%s2086_s3 + $0xc] sm:$0xf] %vm1170_vm2, %v1325_v52  ;;  %v920_v0 = vadd.f32 %v824_v53, %v69_v49  ;;  %v827_v1 = vadd.f32 %v1499_v63, %v1405_v34  ;;  %v1410_v2 = vpop.f32.mrb[27].mxu0  ;;  %v818_v4 = vpop.f32.mrb[27].mxu1 }
 0x129   :  { %1172 = vst.msk [vmem:[%s2086_s3 + $0x4] sm:$0xf] %vm1170_vm2, %v1323_v57  ;;  %v984_v6 = vld [vmem:[#allocation2 + $0x30] sm:$0xff]  ;;  %v918_v58 = vadd.f32 %v816_v60, %v67_v55  ;;  %v1411_v9 = vadd.f32 %v1410_v2, %v1409_v61  ;;  %v819_v10 = vadd.f32 %v1905_v5, %v818_v4 }
 0x12a   :  { %v1016_v7 = vmax.f32 %v984_v6, 0.0  ;;  %v982_v11 = vld [vmem:[#allocation2 + $0x20] sm:$0xff]  ;;  %953 = vst.msk [vmem:[#allocation2 + $0x50] sm:$0xff] %vm26_vm1, %v920_v0  ;;  %v921_v12 = vadd.f32 %v827_v1, %v70_v62 }
 0x12b   :  { %v1014_v15 = vmax.f32 %v982_v11, 0.0  ;;  %v985_v16 = vld [vmem:[#allocation2 + $0x38] sm:$0xff]  ;;  %951 = vst.msk [vmem:[#allocation2 + $0x40] sm:$0xff] %vm26_vm1, %v918_v58  ;;  %v919_v17 = vadd.f32 %v819_v10, %v68_v3 }
 0x12c   :  { %v1328_v18 = vpack.c.bf16 %v1016_v7, %v1016_v7  ;;  %v1017_v19 = vmax.f32 %v985_v16, 0.0  ;;  %v983_v21 = vld [vmem:[#allocation2 + $0x28] sm:$0xff]  ;;  %954 = vst.msk [vmem:[#allocation2 + $0x58] sm:$0xff] %vm26_vm1, %v921_v12 }
 0x12d   :  { %v1326_v13 = vpack.c.bf16 %v1014_v15, %v1014_v15  ;;  %v1015_v22 = vmax.f32 %v983_v21, 0.0  ;;  %952 = vst.msk [vmem:[#allocation2 + $0x48] sm:$0xff] %vm26_vm1, %v919_v17  ;;  %v1412_v5 = vpop.f32.mrb[28].mxu0  ;;  %v1502_v23 = vpop.f32.mrb[28].mxu1  ;;  %v76_v16 = vld [vmem:[#allocation2 + $0x88] sm:$0xff] }
 0x12e   :  { %1177 = vst.msk [vmem:[%s2086_s3 + $0x18] sm:$0xf] %vm1170_vm2, %v1328_v18  ;;  %v1329_v24 = vpack.c.bf16 %v1017_v19, %v1017_v19  ;;  %v1413_v25 = vpop.f32.mrb[29].mxu0  ;;  %v831_v28 = vpop.f32.mrb[29].mxu1 }
 0x12f   :  { %1175 = vst.msk [vmem:[%s2086_s3 + $0x10] sm:$0xf] %vm1170_vm2, %v1326_v13  ;;  %v1327_v29 = vpack.c.bf16 %v1015_v22, %v1015_v22  ;;  %v1414_v30 = vadd.f32 %v1413_v25, %v1412_v5  ;;  %v832_v33 = vadd.f32 %v1408_v59, %v831_v28  ;;  %v1415_v34 = vpop.f32.mrb[30].mxu0  ;;  %v1503_v35 = vpop.f32.mrb[30].mxu1 }
 0x130   :  { %1178 = vst.msk [vmem:[%s2086_s3 + $0x1c] sm:$0xf] %vm1170_vm2, %v1329_v24  ;;  %v1416_v39 = vpop.f32.mrb[31].mxu0  ;;  %v834_v41 = vpop.f32.mrb[31].mxu1 }
 0x131   :  { %1176 = vst.msk [vmem:[%s2086_s3 + $0x14] sm:$0xf] %vm1170_vm2, %v1327_v29  ;;  %v988_v31 = vld [vmem:[#allocation2 + $0x50] sm:$0xff]  ;;  %v840_v42 = vadd.f32 %v1502_v23, %v1414_v30  ;;  %v922_v43 = vadd.f32 %v832_v33, %v71_v27  ;;  %v1417_v45 = vadd.f32 %v1416_v39, %v1415_v34  ;;  %v835_v46 = vadd.f32 %v1411_v9, %v834_v41  ;;  %v75_v9 = vld [vmem:[#allocation2 + $0x80] sm:$0xff] }
 0x132   :  { %v1020_v47 = vmax.f32 %v988_v31, 0.0  ;;  %v986_v48 = vld [vmem:[#allocation2 + $0x40] sm:$0xff]  ;;  %v77_v41 = vld [vmem:[#allocation2 + $0x90] sm:$0xff] }
 0x133   :  { %v1018_v49 = vmax.f32 %v986_v48, 0.0  ;;  %v989_v51 = vld [vmem:[#allocation2 + $0x58] sm:$0xff]  ;;  %v924_v52 = vadd.f32 %v840_v42, %v73_v36  ;;  %955 = vst.msk [vmem:[#allocation2 + $0x60] sm:$0xff] %vm26_vm1, %v922_v43  ;;  %v843_v53 = vadd.f32 %v1503_v35, %v1417_v45  ;;  %v923_v54 = vadd.f32 %v835_v46, %v72_v40 }
 0x134   :  { %v1332_v55 = vpack.c.bf16 %v1020_v47, %v1020_v47  ;;  %v1021_v56 = vmax.f32 %v989_v51, 0.0  ;;  %v987_v57 = vld [vmem:[#allocation2 + $0x48] sm:$0xff]  ;;  %v78_v47 = vld [vmem:[#allocation2 + $0x98] sm:$0xff] }
 0x135   :  { %v1330_v59 = vpack.c.bf16 %v1018_v49, %v1018_v49  ;;  %v1019_v60 = vmax.f32 %v987_v57, 0.0  ;;  %957 = vst.msk [vmem:[#allocation2 + $0x70] sm:$0xff] %vm26_vm1, %v924_v52  ;;  %v925_v61 = vadd.f32 %v843_v53, %v74_v37  ;;  %956 = vst.msk [vmem:[#allocation2 + $0x68] sm:$0xff] %vm26_vm1, %v923_v54  ;;  %v1418_v62 = vpop.f32.mrb[32].mxu0  ;;  %v1506_v63 = vpop.f32.mrb[32].mxu1  ;;  %v85_v54 = vld [vmem:[#allocation2 + $0xd0] sm:$0xff] }
 0x136   :  { %1181 = vst.msk [vmem:[%s2086_s3 + $0x28] sm:$0xf] %vm1170_vm2, %v1332_v55  ;;  %v1333_v0 = vpack.c.bf16 %v1021_v56, %v1021_v56  ;;  %v1419_v1 = vpop.f32.mrb[33].mxu0  ;;  %v847_v2 = vpop.f32.mrb[33].mxu1 }
 0x137   :  { %1179 = vst.msk [vmem:[%s2086_s3 + $0x20] sm:$0xf] %vm1170_vm2, %v1330_v59  ;;  %v1331_v3 = vpack.c.bf16 %v1019_v60, %v1019_v60  ;;  %v1420_v4 = vadd.f32 %v1419_v1, %v1418_v62  ;;  %v1421_v6 = vpop.f32.mrb[34].mxu0  ;;  %v1507_v58 = vpop.f32.mrb[34].mxu1  ;;  %v83_v60 = vld [vmem:[#allocation2 + $0xc0] sm:$0xff] }
 0x138   :  { %958 = vst.msk [vmem:[#allocation2 + $0x78] sm:$0xff] %vm26_vm1, %v925_v61  ;;  %v1422_v10 = vpop.f32.mrb[35].mxu0  ;;  %v850_v7 = vpop.f32.mrb[35].mxu1 }
 0x139   :  { %1182 = vst.msk [vmem:[%s2086_s3 + $0x2c] sm:$0xf] %vm1170_vm2, %v1333_v0  ;;  %1180 = vst.msk [vmem:[%s2086_s3 + $0x24] sm:$0xf] %vm1170_vm2, %v1331_v3  ;;  %v848_v11 = vadd.f32 %v1420_v4, %v847_v2  ;;  %v1423_v12 = vadd.f32 %v1422_v10, %v1421_v6  ;;  %v86_v3 = vld [vmem:[#allocation2 + $0xd8] sm:$0xff] }
 0x13a   :  { %v990_v15 = vld [vmem:[#allocation2 + $0x60] sm:$0xff] }
 0x13b   :  { %v1022_v17 = vmax.f32 %v990_v15, 0.0  ;;  %v926_v18 = vadd.f32 %v848_v11, %v75_v9  ;;  %v851_v19 = vadd.f32 %v1423_v12, %v850_v7 }
 0x13c   :  { %v992_v21 = vld [vmem:[#allocation2 + $0x70] sm:$0xff]  ;;  %v991_v13 = vld [vmem:[#allocation2 + $0x68] sm:$0xff] }
 0x13d   :  { %v1024_v22 = vmax.f32 %v992_v21, 0.0  ;;  %v1334_v5 = vpack.c.bf16 %v1022_v17, %v1022_v17  ;;  %v1023_v23 = vmax.f32 %v991_v13, 0.0  ;;  %959 = vst.msk [vmem:[#allocation2 + $0x80] sm:$0xff] %vm26_vm1, %v926_v18  ;;  %v927_v24 = vadd.f32 %v851_v19, %v76_v16  ;;  %v1424_v25 = vpop.f32.mrb[36].mxu0  ;;  %v1974_v27 = vpop.f32.mrb[36].mxu1  ;;  %v84_v16 = vld [vmem:[#allocation2 + $0xc8] sm:$0xff] }
 0x13e   :  { %v1425_v29 = vpop.f32.mrb[37].mxu0  ;;  %v863_v30 = vpop.f32.mrb[37].mxu1  ;;  %v80_v17 = vld [vmem:[#allocation2 + $0xa8] sm:$0xff] }
 0x13f   :  { %v993_v28 = vld [vmem:[#allocation2 + $0x78] sm:$0xff]  ;;  %v1336_v33 = vpack.c.bf16 %v1024_v22, %v1024_v22  ;;  %1183 = vst.msk [vmem:[%s2086_s3 + $0x30] sm:$0xf] %vm1170_vm2, %v1334_v5  ;;  %v1335_v35 = vpack.c.bf16 %v1023_v23, %v1023_v23  ;;  %v1426_v36 = vadd.f32 %v1425_v29, %v1424_v25  ;;  %v1427_v39 = vpop.f32.mrb[38].mxu0  ;;  %v1981_v40 = vpop.f32.mrb[38].mxu1 }
 0x140   :  { %v1025_v34 = vmax.f32 %v993_v28, 0.0  ;;  %960 = vst.msk [vmem:[#allocation2 + $0x88] sm:$0xff] %vm26_vm1, %v927_v24  ;;  %v1428_v31 = vpop.f32.mrb[39].mxu0  ;;  %v866_v42 = vpop.f32.mrb[39].mxu1  ;;  %v89_v24 = vld [vmem:[#allocation2 + $0xf0] sm:$0xff] }
 0x141   :  { %1185 = vst.msk [vmem:[%s2086_s3 + $0x38] sm:$0xf] %vm1170_vm2, %v1336_v33  ;;  %1184 = vst.msk [vmem:[%s2086_s3 + $0x34] sm:$0xf] %vm1170_vm2, %v1335_v35  ;;  %v856_v45 = vadd.f32 %v1506_v63, %v1426_v36  ;;  %v1429_v46 = vadd.f32 %v1428_v31, %v1427_v39  ;;  %v90_v31 = vld [vmem:[#allocation2 + $0xf8] sm:$0xff] }
 0x142   :  { %v1337_v43 = vpack.c.bf16 %v1025_v34, %v1025_v34 }
 0x143   :  { %v928_v48 = vadd.f32 %v856_v45, %v77_v41  ;;  %v859_v37 = vadd.f32 %v1507_v58, %v1429_v46  ;;  %v79_v58 = vld [vmem:[#allocation2 + $0xa0] sm:$0xff]  ;;  %v81_v45 = vld [vmem:[#allocation2 + $0xb0] sm:$0xff] }
 0x144   :  { %1186 = vst.msk [vmem:[%s2086_s3 + $0x3c] sm:$0xf] %vm1170_vm2, %v1337_v43  ;;  %v994_v49 = vld [vmem:[#allocation2 + $0x80] sm:$0xff] }
 0x145   :  { %v1026_v51 = vmax.f32 %v994_v49, 0.0  ;;  %961 = vst.msk [vmem:[#allocation2 + $0x90] sm:$0xff] %vm26_vm1, %v928_v48  ;;  %v929_v52 = vadd.f32 %v859_v37, %v78_v47  ;;  %v1430_v53 = vpop.f32.mrb[40].mxu0  ;;  %v1514_v55 = vpop.f32.mrb[40].mxu1 }
 0x146   :  { %v888_v57 = vadd.f32 %v1514_v55, %v1891_v20  ;;  %v1431_v59 = vpop.f32.mrb[41].mxu0  ;;  %v879_v61 = vpop.f32.mrb[41].mxu1 }
 0x147   :  { %v995_v56 = vld [vmem:[#allocation2 + $0x88] sm:$0xff]  ;;  %v1338_v62 = vpack.c.bf16 %v1026_v51, %v1026_v51  ;;  %962 = vst.msk [vmem:[#allocation2 + $0x98] sm:$0xff] %vm26_vm1, %v929_v52  ;;  %v1432_v0 = vadd.f32 %v1431_v59, %v1430_v53  ;;  %v880_v1 = vadd.f32 %v1887_v8, %v879_v61  ;;  %v1433_v2 = vpop.f32.mrb[42].mxu0  ;;  %v1515_v4 = vpop.f32.mrb[42].mxu1 }
 0x148   :  { %v1027_v63 = vmax.f32 %v995_v56, 0.0  ;;  %v936_v6 = vadd.f32 %v888_v57, %v85_v54  ;;  %v891_v9 = vadd.f32 %v1515_v4, %v1893_v26  ;;  %v1434_v10 = vpop.f32.mrb[43].mxu0  ;;  %v882_v7 = vpop.f32.mrb[43].mxu1  ;;  %v88_v52 = vld [vmem:[#allocation2 + $0xe8] sm:$0xff] }
 0x149   :  { %1187 = vst.msk [vmem:[%s2086_s3 + $0x40] sm:$0xf] %vm1170_vm2, %v1338_v62  ;;  %v864_v11 = vadd.f32 %v1432_v0, %v863_v30  ;;  %v934_v12 = vadd.f32 %v880_v1, %v83_v60  ;;  %v1435_v15 = vadd.f32 %v1434_v10, %v1433_v2  ;;  %v883_v18 = vadd.f32 %v1889_v14, %v882_v7  ;;  %v87_v30 = vld [vmem:[#allocation2 + $0xe0] sm:$0xff] }
 0x14a   :  { %v1339_v20 = vpack.c.bf16 %v1027_v63, %v1027_v63  ;;  %969 = vst.msk [vmem:[#allocation2 + $0xd0] sm:$0xff] %vm26_vm1, %v936_v6  ;;  %v937_v8 = vadd.f32 %v891_v9, %v86_v3 }
 0x14b   :  { %v930_v26 = vadd.f32 %v864_v11, %v79_v58  ;;  %967 = vst.msk [vmem:[#allocation2 + $0xc0] sm:$0xff] %vm26_vm1, %v934_v12  ;;  %v867_v19 = vadd.f32 %v1435_v15, %v866_v42  ;;  %v935_v13 = vadd.f32 %v883_v18, %v84_v16 }
 0x14c   :  { %1188 = vst.msk [vmem:[%s2086_s3 + $0x44] sm:$0xf] %vm1170_vm2, %v1339_v20  ;;  %v996_v21 = vld [vmem:[#allocation2 + $0x90] sm:$0xff] }
 0x14d   :  { %970 = vst.msk [vmem:[#allocation2 + $0xd8] sm:$0xff] %vm26_vm1, %v937_v8  ;;  %v1028_v22 = vmax.f32 %v996_v21, 0.0  ;;  %963 = vst.msk [vmem:[#allocation2 + $0xa0] sm:$0xff] %vm26_vm1, %v930_v26  ;;  %v931_v5 = vadd.f32 %v867_v19, %v80_v17  ;;  %v1436_v23 = vpop.f32.mrb[44].mxu0  ;;  %v1518_v14 = vpop.f32.mrb[44].mxu1 }
 0x14e   :  { %v997_v25 = vld [vmem:[#allocation2 + $0x98] sm:$0xff]  ;;  %968 = vst.msk [vmem:[#allocation2 + $0xc8] sm:$0xff] %vm26_vm1, %v935_v13  ;;  %v904_v28 = vadd.f32 %v1518_v14, %v1899_v44  ;;  %v1437_v29 = vpop.f32.mrb[45].mxu0  ;;  %v895_v33 = vpop.f32.mrb[45].mxu1 }
 0x14f   :  { %v1340_v34 = vpack.c.bf16 %v1028_v22, %v1028_v22  ;;  %v1029_v35 = vmax.f32 %v997_v25, 0.0  ;;  %964 = vst.msk [vmem:[#allocation2 + $0xa8] sm:$0xff] %vm26_vm1, %v931_v5  ;;  %v1438_v36 = vadd.f32 %v1437_v29, %v1436_v23  ;;  %v896_v39 = vadd.f32 %v1895_v32, %v895_v33  ;;  %v1439_v41 = vpop.f32.mrb[46].mxu0  ;;  %v1519_v42 = vpop.f32.mrb[46].mxu1 }
 0x150   :  { %v940_v43 = vadd.f32 %v904_v28, %v89_v24  ;;  %v907_v46 = vadd.f32 %v1519_v42, %v1901_v50  ;;  %v1440_v47 = vpop.f32.mrb[47].mxu0  ;;  %v898_v48 = vpop.f32.mrb[47].mxu1  ;;  %v82_v50 = vld [vmem:[#allocation2 + $0xb8] sm:$0xff] }
 0x151   :  { %1189 = vst.msk [vmem:[%s2086_s3 + $0x48] sm:$0xf] %vm1170_vm2, %v1340_v34  ;;  %v1341_v44 = vpack.c.bf16 %v1029_v35, %v1029_v35  ;;  %v1004_v37 = vld [vmem:[#allocation2 + $0xd0] sm:$0xff]  ;;  %v872_v49 = vadd.f32 %v1974_v27, %v1438_v36  ;;  %v938_v51 = vadd.f32 %v896_v39, %v87_v30  ;;  %v1441_v32 = vadd.f32 %v1440_v47, %v1439_v41 }
 0x152   :  { %v1036_v53 = vmax.f32 %v1004_v37, 0.0  ;;  %v1002_v54 = vld [vmem:[#allocation2 + $0xc0] sm:$0xff]  ;;  %973 = vst.msk [vmem:[#allocation2 + $0xf0] sm:$0xff] %vm26_vm1, %v940_v43  ;;  %v941_v55 = vadd.f32 %v907_v46, %v90_v31  ;;  %v899_v56 = vadd.f32 %v1897_v38, %v898_v48 }
 0x153   :  { %1190 = vst.msk [vmem:[%s2086_s3 + $0x4c] sm:$0xf] %vm1170_vm2, %v1341_v44  ;;  %v1034_v57 = vmax.f32 %v1002_v54, 0.0  ;;  %v932_v60 = vadd.f32 %v872_v49, %v81_v45  ;;  %v875_v27 = vadd.f32 %v1981_v40, %v1441_v32 }
 0x154   :  { %v1005_v59 = vld [vmem:[#allocation2 + $0xd8] sm:$0xff]  ;;  %971 = vst.msk [vmem:[#allocation2 + $0xe0] sm:$0xff] %vm26_vm1, %v938_v51  ;;  %v1348_v61 = vpack.c.bf16 %v1036_v53, %v1036_v53  ;;  %v998_v62 = vld [vmem:[#allocation2 + $0xa0] sm:$0xff]  ;;  %974 = vst.msk [vmem:[#allocation2 + $0xf8] sm:$0xff] %vm26_vm1, %v941_v55  ;;  %v939_v0 = vadd.f32 %v899_v56, %v88_v52 }
 0x155   :  { %v1037_v63 = vmax.f32 %v1005_v59, 0.0  ;;  %v1030_v1 = vmax.f32 %v998_v62, 0.0  ;;  %v1346_v38 = vpack.c.bf16 %v1034_v57, %v1034_v57  ;;  %v1003_v2 = vld [vmem:[#allocation2 + $0xc8] sm:$0xff]  ;;  %965 = vst.msk [vmem:[#allocation2 + $0xb0] sm:$0xff] %vm26_vm1, %v932_v60  ;;  %v933_v3 = vadd.f32 %v875_v27, %v82_v50 }
 0x156   :  { %1197 = vst.msk [vmem:[%s2086_s3 + $0x68] sm:$0xf] %vm1170_vm2, %v1348_v61  ;;  %v999_v6 = vld [vmem:[#allocation2 + $0xa8] sm:$0xff]  ;;  %v1035_v40 = vmax.f32 %v1003_v2, 0.0 }
 0x157   :  { %v1349_v4 = vpack.c.bf16 %v1037_v63, %v1037_v63  ;;  %972 = vst.msk [vmem:[#allocation2 + $0xe8] sm:$0xff] %vm26_vm1, %v939_v0  ;;  %v1342_v58 = vpack.c.bf16 %v1030_v1, %v1030_v1  ;;  %v1031_v9 = vmax.f32 %v999_v6, 0.0  ;;  %966 = vst.msk [vmem:[#allocation2 + $0xb8] sm:$0xff] %vm26_vm1, %v933_v3 }
 0x158   :  { %1195 = vst.msk [vmem:[%s2086_s3 + $0x60] sm:$0xf] %vm1170_vm2, %v1346_v38  ;;  %v1347_v10 = vpack.c.bf16 %v1035_v40, %v1035_v40 }
 0x159   :  { %1198 = vst.msk [vmem:[%s2086_s3 + $0x6c] sm:$0xf] %vm1170_vm2, %v1349_v4  ;;  %1191 = vst.msk [vmem:[%s2086_s3 + $0x50] sm:$0xf] %vm1170_vm2, %v1342_v58  ;;  %v1343_v7 = vpack.c.bf16 %v1031_v9, %v1031_v9  ;;  %v1008_v20 = vld [vmem:[#allocation2 + $0xf0] sm:$0xff] }
 0x15a   :  { %1196 = vst.msk [vmem:[%s2086_s3 + $0x64] sm:$0xf] %vm1170_vm2, %v1347_v10  ;;  %v1040_v11 = vmax.f32 %v1008_v20, 0.0 }
 0x15b   :  { %v1006_v12 = vld [vmem:[#allocation2 + $0xe0] sm:$0xff]  ;;  %1192 = vst.msk [vmem:[%s2086_s3 + $0x54] sm:$0xf] %vm1170_vm2, %v1343_v7  ;;  %v1009_v16 = vld [vmem:[#allocation2 + $0xf8] sm:$0xff] }
 0x15c   :  { %v1038_v15 = vmax.f32 %v1006_v12, 0.0  ;;  %v1352_v8 = vpack.c.bf16 %v1040_v11, %v1040_v11  ;;  %v1000_v17 = vld [vmem:[#allocation2 + $0xb0] sm:$0xff]  ;;  %v1041_v18 = vmax.f32 %v1009_v16, 0.0 }
 0x15d   :  { %v1032_v26 = vmax.f32 %v1000_v17, 0.0 }
 0x15e   :  { %v1350_v19 = vpack.c.bf16 %v1038_v15, %v1038_v15  ;;  %v1007_v21 = vld [vmem:[#allocation2 + $0xe8] sm:$0xff]  ;;  %1201 = vst.msk [vmem:[%s2086_s3 + $0x78] sm:$0xf] %vm1170_vm2, %v1352_v8  ;;  %v1353_v13 = vpack.c.bf16 %v1041_v18, %v1041_v18  ;;  %v1001_v22 = vld [vmem:[#allocation2 + $0xb8] sm:$0xff] }
 0x15f   :  { %v1039_v5 = vmax.f32 %v1007_v21, 0.0  ;;  %v1344_v23 = vpack.c.bf16 %v1032_v26, %v1032_v26  ;;  %v1033_v24 = vmax.f32 %v1001_v22, 0.0 }
 0x160   :  { %1199 = vst.msk [vmem:[%s2086_s3 + $0x70] sm:$0xf] %vm1170_vm2, %v1350_v19  ;;  %1202 = vst.msk [vmem:[%s2086_s3 + $0x7c] sm:$0xf] %vm1170_vm2, %v1353_v13 }
 0x161   :  { %v1351_v14 = vpack.c.bf16 %v1039_v5, %v1039_v5  ;;  %1193 = vst.msk [vmem:[%s2086_s3 + $0x58] sm:$0xf] %vm1170_vm2, %v1344_v23  ;;  %v1345_v25 = vpack.c.bf16 %v1033_v24, %v1033_v24 }
 0x163   :  { %1200 = vst.msk [vmem:[%s2086_s3 + $0x74] sm:$0xf] %vm1170_vm2, %v1351_v14  ;;  %1194 = vst.msk [vmem:[%s2086_s3 + $0x5c] sm:$0xf] %vm1170_vm2, %v1345_v25 }

// kernel: forward.14
= control target key start
LH: loop header
LB: loop body
LE: loop exit
PB: predicated region body
PF: predicated region fallthrough
CT: control target
= control target key end

     0   :  { %vm26_vm0 = vcmask 523264   ;;  %vm1666_vm1 = vcmask 519168   ;;  %s3053_s1 = inlined_call_operand.vmem [shape: bf16[576,64], index: 1, kind: input, shape index: {}]   ;;  %s3054_s0 = inlined_call_operand.vmem [shape: bf16[256,576], index: 0, kind: input, shape index: {}]   ;;  %s3055_s2 = inlined_call_operand.vmem [shape: f32[1,64], index: 2, kind: input, shape index: {}]   ;;  %s3056_s3 = inlined_call_operand.vmem [shape: bf16[256,64], index: 3, kind: output, shape index: {}]  }
   0x1   :  { %v2200_v0 = vld [vmem:[%s3053_s1 + $0x40] sm:$0xff]   ;;  %v2202_v2 = vld [vmem:[%s3053_s1 + $0x48] sm:$0xff]   ;;  %v2204_v4 = vld [vmem:[%s3053_s1 + $0x50] sm:$0xff]  }
   0x2   :  { %v2201_v1 = vld [vmem:[%s3053_s1] sm:$0xff]   ;;  %1900 = vmatprep.subr.bf16.mxu0 %v2200_v0  ;;  %2184 = vmatprep.subr.bf16.mxu1 %v2200_v0  ;;  %v2203_v3 = vld [vmem:[%s3053_s1 + $0x8] sm:$0xff]   ;;  %v2205_v5 = vld [vmem:[%s3053_s1 + $0x10] sm:$0xff]  }
   0x3   :  { %1901 = vmatpush3.bf16.msra.mxu0 %v2201_v1  ;;  %2192 = vmatpush3.bf16.msra.mxu1 %v2201_v1  ;;  %v2206_v6 = vld [vmem:[%s3053_s1 + $0x58] sm:$0xff]   ;;  %v2208_v8 = vld [vmem:[%s3053_s1 + $0x60] sm:$0xff]   ;;  %v2210_v10 = vld [vmem:[%s3053_s1 + $0x68] sm:$0xff]  }
   0x4   :  { %1902 = vmatprep.subr.bf16.mxu0 %v2202_v2  ;;  %2185 = vmatprep.subr.bf16.mxu1 %v2202_v2  ;;  %v2207_v7 = vld [vmem:[%s3053_s1 + $0x18] sm:$0xff]   ;;  %v2209_v9 = vld [vmem:[%s3053_s1 + $0x20] sm:$0xff]   ;;  %v2211_v13 = vld [vmem:[%s3053_s1 + $0x28] sm:$0xff]  }
   0x5   :  { %v2218_v11 = vld [vmem:[%s3054_s0 + $0x4] ss:$20 sps:$4 sm:$0xff]   ;;  %v2212_v14 = vld [vmem:[%s3053_s1 + $0x70] sm:$0xff]   ;;  %v2224_v23 = vld [vmem:[%s3053_s1 + $0xc8] sm:$0xff]  }
   0x6   :  { %v2221_v12 = vld [vmem:[%s3054_s0 + $0x1e4] ss:$20 sps:$4 sm:$0xff]   ;;  %956 = vmatprep.mubr.bf16.mxu0 %v2218_v11  ;;  %v2213_v15 = vld [vmem:[%s3053_s1 + $0x30] sm:$0xff]   ;;  %v2227_v24 = vld [vmem:[%s3054_s0 + $0x2c] ss:$20 sps:$4 sm:$0xff]  }
   0x7   :  { %1903 = vmatpush3.bf16.msra.mxu0 %v2203_v3  ;;  %2193 = vmatpush3.bf16.msra.mxu1 %v2203_v3  ;;  %v2214_v16 = vld [vmem:[%s3053_s1 + $0x78] sm:$0xff]   ;;  %v2222_v18 = vld [vmem:[%s3053_s1 + $0xc0] sm:$0xff]   ;;  %v2226_v26 = vld [vmem:[%s3053_s1 + $0x88] sm:$0xff]  }
   0x8   :  { %1904 = vmatprep.subr.bf16.mxu0 %v2204_v4  ;;  %2186 = vmatprep.subr.bf16.mxu1 %v2204_v4  ;;  %v2215_v17 = vld [vmem:[%s3053_s1 + $0x38] sm:$0xff]   ;;  %v2225_v19 = vld [vmem:[%s3053_s1 + $0x100] sm:$0xff]   ;;  %v2233_v28 = vld [vmem:[%s3053_s1 + $0xd0] sm:$0xff]  }
   0x9   :  { %1052 = vmatprep.mubr.bf16.mxu1 %v2221_v12  ;;  %v2216_v20 = vld [vmem:[%s3054_s0] ss:$20 sps:$4 sm:$0xff]   ;;  %v2231_v27 = vld [vmem:[%s3054_s0 + $0x28] ss:$20 sps:$4 sm:$0xff]   ;;  %v2241_v36 = vld [vmem:[%s3054_s0 + $0x50] ss:$20 sps:$4 sm:$0xff]  }
   0xa   :  { %v2219_v21 = vld [vmem:[%s3054_s0 + $0x1e0] ss:$20 sps:$4 sm:$0xff]   ;;  %v2232_v29 = vld [vmem:[%s3054_s0 + $0x208] ss:$20 sps:$4 sm:$0xff]   ;;  %v2242_v38 = vld [vmem:[%s3054_s0 + $0x230] ss:$20 sps:$4 sm:$0xff]  }
   0xb   :  { %1905 = vmatpush3.bf16.msra.mxu0 %v2205_v5  ;;  %2194 = vmatpush3.bf16.msra.mxu1 %v2205_v5  ;;  %v2223_v22 = vld [vmem:[%s3053_s1 + $0x80] sm:$0xff]   ;;  %v2234_v30 = vld [vmem:[%s3053_s1 + $0x90] sm:$0xff]   ;;  %v2235_v31 = vld [vmem:[%s3053_s1 + $0xd8] sm:$0xff]  }
   0xc   :  { %1906 = vmatprep.subr.bf16.mxu0 %v2206_v6  ;;  %2187 = vmatprep.subr.bf16.mxu1 %v2206_v6  ;;  %v2229_v25 = vld [vmem:[%s3054_s0 + $0x20c] ss:$20 sps:$4 sm:$0xff]   ;;  %v2237_v32 = vld [vmem:[%s3054_s0 + $0x54] ss:$20 sps:$4 sm:$0xff]   ;;  %v2236_v34 = vld [vmem:[%s3053_s1 + $0x98] sm:$0xff]  }
   0xd   :  { %v2239_v33 = vld [vmem:[%s3054_s0 + $0x234] ss:$20 sps:$4 sm:$0xff]   ;;  %v2243_v37 = vld [vmem:[%s3053_s1 + $0xe0] sm:$0xff]   ;;  %v2247_v41 = vld [vmem:[%s3054_s0 + $0x7c] ss:$20 sps:$4 sm:$0xff]  }
   0xe   :  { %v2256_v35 = vld [vmem:[%s3053_s1 + $0x108] sm:$0xff]   ;;  %v2244_v39 = vld [vmem:[%s3053_s1 + $0xa0] sm:$0xff]   ;;  %v2249_v42 = vld [vmem:[%s3054_s0 + $0x25c] ss:$20 sps:$4 sm:$0xff]  }
   0xf   :  { %1907 = vmatpush3.bf16.msra.mxu0 %v2207_v7  ;;  %2195 = vmatpush3.bf16.msra.mxu1 %v2207_v7  ;;  %v2245_v40 = vld [vmem:[%s3053_s1 + $0xe8] sm:$0xff]   ;;  %v2253_v46 = vld [vmem:[%s3053_s1 + $0xf0] sm:$0xff]   ;;  %v2255_v49 = vld [vmem:[%s3053_s1 + $0xf8] sm:$0xff]  }
  0x10   :  { %1908 = vmatprep.subr.bf16.mxu0 %v2208_v8  ;;  %2188 = vmatprep.subr.bf16.mxu1 %v2208_v8  ;;  %v2246_v43 = vld [vmem:[%s3053_s1 + $0xa8] sm:$0xff]   ;;  %v2276_v47 = vld [vmem:[%s3053_s1 + $0x110] sm:$0xff]   ;;  %v2258_v50 = vld [vmem:[%s3054_s0 + $0xa4] ss:$20 sps:$4 sm:$0xff]  }
  0x11   :  { %v2251_v44 = vld [vmem:[%s3054_s0 + $0x78] ss:$20 sps:$4 sm:$0xff]   ;;  %v2254_v48 = vld [vmem:[%s3053_s1 + $0xb0] sm:$0xff]   ;;  %v2260_v53 = vld [vmem:[%s3054_s0 + $0x8] ss:$20 sps:$4 sm:$0xff]  }
  0x12   :  { %v2252_v45 = vld [vmem:[%s3054_s0 + $0x258] ss:$20 sps:$4 sm:$0xff]   ;;  %v2263_v54 = vld [vmem:[%s3054_s0 + $0xa0] ss:$20 sps:$4 sm:$0xff]   ;;  %v2268_v58 = vld [vmem:[%s3054_s0 + $0xc8] ss:$20 sps:$4 sm:$0xff]  }
  0x13   :  { %1909 = vmatpush3.bf16.msra.mxu0 %v2209_v9  ;;  %2196 = vmatpush3.bf16.msra.mxu1 %v2209_v9  ;;  %v2262_v51 = vld [vmem:[%s3054_s0 + $0xc] ss:$20 sps:$4 sm:$0xff]   ;;  %v2257_v52 = vld [vmem:[%s3053_s1 + $0xb8] sm:$0xff]   ;;  %v2266_v57 = vld [vmem:[%s3054_s0 + $0x34] ss:$20 sps:$4 sm:$0xff]  }
  0x14   :  { %1910 = vmatprep.subr.bf16.mxu0 %v2210_v10  ;;  %2189 = vmatprep.subr.bf16.mxu1 %v2210_v10  ;;  %v2264_v55 = vld [vmem:[%s3054_s0 + $0xcc] ss:$20 sps:$4 sm:$0xff]   ;;  %v2295_v56 = vld [vmem:[%s3053_s1 + $0x118] sm:$0xff]   ;;  %v2269_v59 = vld [vmem:[%s3054_s0 + $0x30] ss:$20 sps:$4 sm:$0xff]  }
  0x15   :  { %v2270_v60 = vld [vmem:[%s3054_s0 + $0xf4] ss:$20 sps:$4 sm:$0xff]   ;;  %v2272_v61 = vld [vmem:[%s3054_s0 + $0x5c] ss:$20 sps:$4 sm:$0xff]   ;;  %v2275_v63 = vld [vmem:[%s3054_s0 + $0x58] ss:$20 sps:$4 sm:$0xff]  }
  0x16   :  { %v2274_v62 = vld [vmem:[%s3054_s0 + $0xf0] ss:$20 sps:$4 sm:$0xff]   ;;  %v2281_v2 = vld [vmem:[%s3054_s0 + $0x118] ss:$20 sps:$4 sm:$0xff]   ;;  %v2282_v3 = vld [vmem:[%s3054_s0 + $0x80] ss:$20 sps:$4 sm:$0xff]  }
  0x17   :  { %1911 = vmatpush3.bf16.msra.mxu0 %v2211_v13  ;;  %2197 = vmatpush3.bf16.msra.mxu1 %v2211_v13  ;;  %v2277_v0 = vld [vmem:[%s3054_s0 + $0x11c] ss:$20 sps:$4 sm:$0xff]   ;;  %v2279_v1 = vld [vmem:[%s3054_s0 + $0x84] ss:$20 sps:$4 sm:$0xff]   ;;  %v2285_v5 = vld [vmem:[%s3054_s0 + $0xac] ss:$20 sps:$4 sm:$0xff]  }
  0x18   :  { %1912 = vmatprep.subr.bf16.mxu0 %v2212_v14  ;;  %2190 = vmatprep.subr.bf16.mxu1 %v2212_v14  ;;  %v2283_v4 = vld [vmem:[%s3054_s0 + $0x144] ss:$20 sps:$4 sm:$0xff]   ;;  %v2287_v6 = vld [vmem:[%s3054_s0 + $0x140] ss:$20 sps:$4 sm:$0xff]   ;;  %v2288_v7 = vld [vmem:[%s3054_s0 + $0xa8] ss:$20 sps:$4 sm:$0xff]  }
  0x19   :  { %v2289_v8 = vld [vmem:[%s3054_s0 + $0x16c] ss:$20 sps:$4 sm:$0xff]   ;;  %v2291_v9 = vld [vmem:[%s3054_s0 + $0xd4] ss:$20 sps:$4 sm:$0xff]   ;;  %v2294_v11 = vld [vmem:[%s3054_s0 + $0xd0] ss:$20 sps:$4 sm:$0xff]  }
  0x1a   :  { %v2293_v10 = vld [vmem:[%s3054_s0 + $0x168] ss:$20 sps:$4 sm:$0xff]   ;;  %v2300_v14 = vld [vmem:[%s3054_s0 + $0x190] ss:$20 sps:$4 sm:$0xff]  }
  0x1b   :  { %1913 = vmatpush3.bf16.msra.mxu0 %v2213_v15  ;;  %2198 = vmatpush3.bf16.msra.mxu1 %v2213_v15  ;;  %v2296_v12 = vld [vmem:[%s3054_s0 + $0x194] ss:$20 sps:$4 sm:$0xff]   ;;  %v2298_v13 = vld [vmem:[%s3054_s0 + $0xfc] ss:$20 sps:$4 sm:$0xff]   ;;  %v2301_v15 = vld [vmem:[%s3054_s0 + $0xf8] ss:$20 sps:$4 sm:$0xff]  }
  0x1c   :  { %1914 = vmatprep.subr.bf16.mxu0 %v2214_v16  ;;  %2191 = vmatprep.subr.bf16.mxu1 %v2214_v16  ;;  %v2302_v16 = vld [vmem:[%s3054_s0 + $0x1bc] ss:$20 sps:$4 sm:$0xff]  }
  0x1f   :  { %1915 = vmatpush3.bf16.msra.mxu0 %v2215_v17  ;;  %2199 = vmatpush3.bf16.msra.mxu1 %v2215_v17  ;;  %v2304_v17 = vld [vmem:[%s3054_s0 + $0x124] ss:$20 sps:$4 sm:$0xff]  }
  0x20   :  { %2012 = vmatprep.subr.bf16.mxu1 %v2222_v18  ;;  %2144 = vmatprep.subr.bf16.mxu0 %v2225_v19  ;;  %v2306_v18 = vld [vmem:[%s3054_s0 + $0x1b8] ss:$20 sps:$4 sm:$0xff]  }
  0x22   :  { %957 = vmatmul.mubr.bf16.vlgmr.msra.gmra.mrb[0].mxu0 %v2216_v20  ;;  %1053 = vmatmul.mubr.bf16.vlgmr.msra.gmra.mrb[0].mxu1 %v2219_v21  ;;  %v2308_v20 = vld [vmem:[%s3054_s0 + $0x14c] ss:$20 sps:$4 sm:$0xff]   ;;  %v2310_v21 = vld [vmem:[%s3054_s0 + $0x10] ss:$20 sps:$4 sm:$0xff]  }
  0x23   :  { %2013 = vmatpush3.bf16.msra.mxu1 %v2223_v22  ;;  %2145 = vmatpush3.bf16.msra.mxu0 %v2225_v19  ;;  %v2307_v19 = vld [vmem:[%s3054_s0 + $0x120] ss:$20 sps:$4 sm:$0xff]   ;;  %v2311_v22 = vld [vmem:[%s3054_s0 + $0x148] ss:$20 sps:$4 sm:$0xff]  }
  0x24   :  { %2014 = vmatprep.subr.bf16.mxu1 %v2224_v23  ;;  %964 = vmatprep.mubr.bf16.mxu0 %v2227_v24  ;;  %v2312_v23 = vld [vmem:[%s3054_s0 + $0x38] ss:$20 sps:$4 sm:$0xff]   ;;  %v2313_v24 = vld [vmem:[%s3054_s0 + $0x174] ss:$20 sps:$4 sm:$0xff]  }
  0x25   :  { %1060 = vmatprep.mubr.bf16.mxu1 %v2229_v25  ;;  %2146 = vmatprep.subr.bf16.mxu0 %v2256_v35  ;;  %v2315_v25 = vld [vmem:[%s3054_s0 + $0x60] ss:$20 sps:$4 sm:$0xff]  }
  0x27   :  { %2015 = vmatpush3.bf16.msra.mxu1 %v2226_v26  ;;  %2147 = vmatpush3.bf16.msra.mxu0 %v2256_v35  ;;  %v2316_v26 = vld [vmem:[%s3054_s0 + $0x170] ss:$20 sps:$4 sm:$0xff]   ;;  %v2327_v35 = vld [vmem:[%s3054_s0 + $0x128] ss:$20 sps:$4 sm:$0xff]  }
  0x28   :  { %2016 = vmatprep.subr.bf16.mxu1 %v2233_v28  ;;  %2148 = vmatprep.subr.bf16.mxu0 %v2276_v47  ;;  %v2318_v28 = vld [vmem:[%s3054_s0 + $0x19c] ss:$20 sps:$4 sm:$0xff]  }
  0x2a   :  { %965 = vmatmul.mubr.bf16.gmra.mrb[4].mxu0 %v2231_v27  ;;  %1061 = vmatmul.mubr.bf16.gmra.mrb[4].mxu1 %v2232_v29  ;;  %v2317_v27 = vld [vmem:[%s3054_s0 + $0x88] ss:$20 sps:$4 sm:$0xff]   ;;  %v2320_v29 = vld [vmem:[%s3054_s0 + $0xb0] ss:$20 sps:$4 sm:$0xff]  }
  0x2b   :  { %2017 = vmatpush3.bf16.msra.mxu1 %v2234_v30  ;;  %972 = vmatprep.mubr.bf16.mxu0 %v2237_v32  ;;  %v2321_v30 = vld [vmem:[%s3054_s0 + $0x198] ss:$20 sps:$4 sm:$0xff]  }
  0x2c   :  { %2018 = vmatprep.subr.bf16.mxu1 %v2235_v31  ;;  %1068 = vmatprep.mubr.bf16.mxu1 %v2239_v33  ;;  %v2322_v31 = vld [vmem:[%s3054_s0 + $0xd8] ss:$20 sps:$4 sm:$0xff]   ;;  %v2325_v33 = vld [vmem:[%s3054_s0 + $0x100] ss:$20 sps:$4 sm:$0xff]  }
  0x2d   :  { %2149 = vmatpush3.bf16.msra.mxu0 %v2276_v47  ;;  %v2323_v32 = vld [vmem:[%s3054_s0 + $0x1c4] ss:$20 sps:$4 sm:$0xff]  }
  0x2e   :  { %2150 = vmatprep.subr.bf16.mxu0 %v2295_v56  ;;  %v2342_v47 = vld [vmem:[%s3054_s0 + $0x218] ss:$20 sps:$4 sm:$0xff]  }
  0x2f   :  { %2019 = vmatpush3.bf16.msra.mxu1 %v2236_v34  ;;  %v2326_v34 = vld [vmem:[%s3054_s0 + $0x1c0] ss:$20 sps:$4 sm:$0xff]  }
  0x30   :  { %2020 = vmatprep.subr.bf16.mxu1 %v2243_v37  ;;  %v2330_v37 = vld [vmem:[%s3054_s0 + $0x150] ss:$20 sps:$4 sm:$0xff]  }
  0x31   :  { %2151 = vmatpush3.bf16.msra.mxu0 %v2295_v56 }
  0x32   :  { %973 = vmatmul.mubr.bf16.gmra.mrb[8].mxu0 %v2241_v36  ;;  %1069 = vmatmul.mubr.bf16.gmra.mrb[8].mxu1 %v2242_v38  ;;  %v2328_v36 = vld [vmem:[%s3054_s0 + $0x1ec] ss:$20 sps:$4 sm:$0xff]   ;;  %v2331_v38 = vld [vmem:[%s3054_s0 + $0x1e8] ss:$20 sps:$4 sm:$0xff]  }
  0x33   :  { %2021 = vmatpush3.bf16.msra.mxu1 %v2244_v39  ;;  %980 = vmatprep.mubr.bf16.mxu0 %v2247_v41  ;;  %v2332_v39 = vld [vmem:[%s3054_s0 + $0x178] ss:$20 sps:$4 sm:$0xff]   ;;  %v2335_v41 = vld [vmem:[%s3054_s0 + $0x1a0] ss:$20 sps:$4 sm:$0xff]  }
  0x34   :  { %2022 = vmatprep.subr.bf16.mxu1 %v2245_v40  ;;  %1076 = vmatprep.mubr.bf16.mxu1 %v2249_v42  ;;  %v2333_v40 = vld [vmem:[%s3054_s0 + $0x214] ss:$20 sps:$4 sm:$0xff]   ;;  %v2336_v42 = vld [vmem:[%s3054_s0 + $0x210] ss:$20 sps:$4 sm:$0xff]  }
  0x37   :  { %2023 = vmatpush3.bf16.msra.mxu1 %v2246_v43  ;;  %v2337_v43 = vld [vmem:[%s3054_s0 + $0x1c8] ss:$20 sps:$4 sm:$0xff]  }
  0x38   :  { %2024 = vmatprep.subr.bf16.mxu1 %v2253_v46  ;;  %v2341_v46 = vld [vmem:[%s3054_s0 + $0x238] ss:$20 sps:$4 sm:$0xff]  }
  0x3a   :  { %981 = vmatmul.mubr.bf16.gmra.mrb[12].mxu0 %v2251_v44  ;;  %1077 = vmatmul.mubr.bf16.gmra.mrb[12].mxu1 %v2252_v45  ;;  %v2338_v44 = vld [vmem:[%s3054_s0 + $0x23c] ss:$20 sps:$4 sm:$0xff]  }
  0x3b   :  { %2025 = vmatpush3.bf16.msra.mxu1 %v2254_v48  ;;  %988 = vmatprep.mubr.bf16.mxu0 %v2258_v50  ;;  %v2340_v45 = vld [vmem:[%s3054_s0 + $0x1f0] ss:$20 sps:$4 sm:$0xff]   ;;  %v2346_v50 = vld [vmem:[%s3054_s0 + $0x260] ss:$20 sps:$4 sm:$0xff]  }
  0x3c   :  { %2026 = vmatprep.subr.bf16.mxu1 %v2255_v49  ;;  %1117 = vmatprep.mubr.bf16.mxu1 %v2262_v51  ;;  %v2343_v48 = vld [vmem:[%s3054_s0 + $0x264] ss:$20 sps:$4 sm:$0xff]   ;;  %v2345_v49 = vld [vmem:[%s3054_s0 + $0x240] ss:$20 sps:$4 sm:$0xff]   ;;  %v2347_v51 = vld [vmem:[%s3054_s0 + $0x268] ss:$20 sps:$4 sm:$0xff]  }
  0x3f   :  { %2027 = vmatpush3.bf16.msra.mxu1 %v2257_v52  ;;  %v1703_v52 = vld [vmem:[%s3055_s2] ss:$0 sm:$0xff] }
  0x40   :  { %29 = vst.msk [vmem:[#allocation2 + $0x10] sm:$0xff] %vm26_vm0, %v1703_v52  ;;  %27 = vst.msk [vmem:[#allocation2] sm:$0xff] %vm26_vm0, %v1703_v52 }
  0x41   :  { %28 = vst.msk [vmem:[#allocation2 + $0x8] sm:$0xff] %vm26_vm0, %v1703_v52  ;;  %30 = vst.msk [vmem:[#allocation2 + $0x18] sm:$0xff] %vm26_vm0, %v1703_v52 }
  0x42   :  { %989 = vmatmul.mubr.bf16.gmra.mrb[16].mxu0 %v2263_v54  ;;  %1118 = vmatmul.mubr.bf16.vlgmr.msra.gmra.mrb[16].mxu1 %v2260_v53  ;;  %31 = vst.msk [vmem:[#allocation2 + $0x20] sm:$0xff] %vm26_vm0, %v1703_v52  ;;  %32 = vst.msk [vmem:[#allocation2 + $0x28] sm:$0xff] %vm26_vm0, %v1703_v52 }
  0x43   :  { %996 = vmatprep.mubr.bf16.mxu0 %v2264_v55  ;;  %1125 = vmatprep.mubr.bf16.mxu1 %v2266_v57  ;;  %33 = vst.msk [vmem:[#allocation2 + $0x30] sm:$0xff] %vm26_vm0, %v1703_v52  ;;  %34 = vst.msk [vmem:[#allocation2 + $0x38] sm:$0xff] %vm26_vm0, %v1703_v52 }
  0x44   :  { %35 = vst.msk [vmem:[#allocation2 + $0x40] sm:$0xff] %vm26_vm0, %v1703_v52  ;;  %36 = vst.msk [vmem:[#allocation2 + $0x48] sm:$0xff] %vm26_vm0, %v1703_v52 }
  0x45   :  { %37 = vst.msk [vmem:[#allocation2 + $0x50] sm:$0xff] %vm26_vm0, %v1703_v52  ;;  %38 = vst.msk [vmem:[#allocation2 + $0x58] sm:$0xff] %vm26_vm0, %v1703_v52 }
  0x46   :  { %39 = vst.msk [vmem:[#allocation2 + $0x60] sm:$0xff] %vm26_vm0, %v1703_v52  ;;  %40 = vst.msk [vmem:[#allocation2 + $0x68] sm:$0xff] %vm26_vm0, %v1703_v52 }
  0x47   :  { %41 = vst.msk [vmem:[#allocation2 + $0x70] sm:$0xff] %vm26_vm0, %v1703_v52  ;;  %42 = vst.msk [vmem:[#allocation2 + $0x78] sm:$0xff] %vm26_vm0, %v1703_v52 }
  0x48   :  { %43 = vst.msk [vmem:[#allocation2 + $0x80] sm:$0xff] %vm26_vm0, %v1703_v52  ;;  %44 = vst.msk [vmem:[#allocation2 + $0x88] sm:$0xff] %vm26_vm0, %v1703_v52 }
  0x49   :  { %45 = vst.msk [vmem:[#allocation2 + $0x90] sm:$0xff] %vm26_vm0, %v1703_v52  ;;  %46 = vst.msk [vmem:[#allocation2 + $0x98] sm:$0xff] %vm26_vm0, %v1703_v52 }
  0x4a   :  { %997 = vmatmul.mubr.bf16.gmra.mrb[20].mxu0 %v2268_v58  ;;  %1126 = vmatmul.mubr.bf16.gmra.mrb[20].mxu1 %v2269_v59  ;;  %47 = vst.msk [vmem:[#allocation2 + $0xa0] sm:$0xff] %vm26_vm0, %v1703_v52  ;;  %48 = vst.msk [vmem:[#allocation2 + $0xa8] sm:$0xff] %vm26_vm0, %v1703_v52 }
  0x4b   :  { %1004 = vmatprep.mubr.bf16.mxu0 %v2270_v60  ;;  %1133 = vmatprep.mubr.bf16.mxu1 %v2272_v61  ;;  %49 = vst.msk [vmem:[#allocation2 + $0xb0] sm:$0xff] %vm26_vm0, %v1703_v52  ;;  %50 = vst.msk [vmem:[#allocation2 + $0xb8] sm:$0xff] %vm26_vm0, %v1703_v52 }
  0x4c   :  { %51 = vst.msk [vmem:[#allocation2 + $0xc0] sm:$0xff] %vm26_vm0, %v1703_v52  ;;  %52 = vst.msk [vmem:[#allocation2 + $0xc8] sm:$0xff] %vm26_vm0, %v1703_v52 }
  0x4d   :  { %53 = vst.msk [vmem:[#allocation2 + $0xd0] sm:$0xff] %vm26_vm0, %v1703_v52  ;;  %54 = vst.msk [vmem:[#allocation2 + $0xd8] sm:$0xff] %vm26_vm0, %v1703_v52 }
  0x4e   :  { %55 = vst.msk [vmem:[#allocation2 + $0xe0] sm:$0xff] %vm26_vm0, %v1703_v52  ;;  %56 = vst.msk [vmem:[#allocation2 + $0xe8] sm:$0xff] %vm26_vm0, %v1703_v52 }
  0x4f   :  { %57 = vst.msk [vmem:[#allocation2 + $0xf0] sm:$0xff] %vm26_vm0, %v1703_v52  ;;  %58 = vst.msk [vmem:[#allocation2 + $0xf8] sm:$0xff] %vm26_vm0, %v1703_v52 }
  0x52   :  { %1005 = vmatmul.mubr.bf16.gmra.mrb[24].mxu0 %v2274_v62  ;;  %1134 = vmatmul.mubr.bf16.gmra.mrb[24].mxu1 %v2275_v63 }
  0x53   :  { %1012 = vmatprep.mubr.bf16.mxu0 %v2277_v0  ;;  %1141 = vmatprep.mubr.bf16.mxu1 %v2279_v1 }
  0x5a   :  { %1013 = vmatmul.mubr.bf16.gmra.mrb[28].mxu0 %v2281_v2  ;;  %1142 = vmatmul.mubr.bf16.gmra.mrb[28].mxu1 %v2282_v3 }
  0x5b   :  { %1020 = vmatprep.mubr.bf16.mxu0 %v2283_v4  ;;  %1149 = vmatprep.mubr.bf16.mxu1 %v2285_v5 }
  0x62   :  { %1021 = vmatmul.mubr.bf16.gmra.mrb[32].mxu0 %v2287_v6  ;;  %1150 = vmatmul.mubr.bf16.gmra.mrb[32].mxu1 %v2288_v7 }
  0x63   :  { %1028 = vmatprep.mubr.bf16.mxu0 %v2289_v8  ;;  %1157 = vmatprep.mubr.bf16.mxu1 %v2291_v9 }
  0x6a   :  { %1029 = vmatmul.mubr.bf16.gmra.mrb[36].mxu0 %v2293_v10  ;;  %1158 = vmatmul.mubr.bf16.gmra.mrb[36].mxu1 %v2294_v11 }
  0x6b   :  { %1036 = vmatprep.mubr.bf16.mxu0 %v2296_v12  ;;  %1165 = vmatprep.mubr.bf16.mxu1 %v2298_v13 }
  0x72   :  { %1037 = vmatmul.mubr.bf16.gmra.mrb[40].mxu0 %v2300_v14  ;;  %1166 = vmatmul.mubr.bf16.gmra.mrb[40].mxu1 %v2301_v15 }
  0x73   :  { %1044 = vmatprep.mubr.bf16.mxu0 %v2302_v16  ;;  %1173 = vmatprep.mubr.bf16.mxu1 %v2304_v17 }
  0x7a   :  { %1045 = vmatmul.mubr.bf16.gmra.mrb[44].mxu0 %v2306_v18  ;;  %1174 = vmatmul.mubr.bf16.gmra.mrb[44].mxu1 %v2307_v19 }
  0x7b   :  { %1181 = vmatprep.mubr.bf16.mxu1 %v2308_v20  ;;  %2152 = vmatprep.mubr.msk.bf16.mxu0 %vm26_vm0, %v2310_v21 }
  0x82   :  { %1182 = vmatmul.mubr.bf16.gmra.mrb[48].mxu1 %v2311_v22  ;;  %2153 = vmatmul.mubr.msk.bf16.vlgmr.msra.gmra.mrb[48].mxu0 %vm26_vm0, %v2312_v23 }
  0x83   :  { %1189 = vmatprep.mubr.bf16.mxu1 %v2313_v24  ;;  %2156 = vmatprep.mubr.msk.bf16.mxu0 %vm26_vm0, %v2315_v25 }
  0x8a   :  { %1190 = vmatmul.mubr.bf16.gmra.mrb[52].mxu1 %v2316_v26  ;;  %2157 = vmatmul.mubr.msk.bf16.gmra.mrb[52].mxu0 %vm26_vm0, %v2317_v27 }
  0x8b   :  { %1197 = vmatprep.mubr.bf16.mxu1 %v2318_v28  ;;  %2160 = vmatprep.mubr.msk.bf16.mxu0 %vm26_vm0, %v2320_v29 }
  0x92   :  { %1198 = vmatmul.mubr.bf16.gmra.mrb[56].mxu1 %v2321_v30  ;;  %2161 = vmatmul.mubr.msk.bf16.gmra.mrb[56].mxu0 %vm26_vm0, %v2322_v31 }
  0x93   :  { %1205 = vmatprep.mubr.bf16.mxu1 %v2323_v32  ;;  %2164 = vmatprep.mubr.msk.bf16.mxu0 %vm26_vm0, %v2325_v33 }
  0x9a   :  { %1206 = vmatmul.mubr.bf16.gmra.mrb[60].mxu1 %v2326_v34  ;;  %2165 = vmatmul.mubr.msk.bf16.gmra.mrb[60].mxu0 %vm26_vm0, %v2327_v35 }
  0x9b   :  { %1213 = vmatprep.mubr.bf16.mxu1 %v2328_v36  ;;  %2168 = vmatprep.mubr.msk.bf16.mxu0 %vm26_vm0, %v2330_v37 }
  0xa2   :  { %1214 = vmatmul.mubr.bf16.gmra.mrb[64].mxu1 %v2331_v38  ;;  %2169 = vmatmul.mubr.msk.bf16.gmra.mrb[64].mxu0 %vm26_vm0, %v2332_v39 }
  0xa3   :  { %1221 = vmatprep.mubr.bf16.mxu1 %v2333_v40  ;;  %2172 = vmatprep.mubr.msk.bf16.mxu0 %vm26_vm0, %v2335_v41 }
  0xaa   :  { %1222 = vmatmul.mubr.bf16.gmra.mrb[68].mxu1 %v2336_v42  ;;  %2173 = vmatmul.mubr.msk.bf16.gmra.mrb[68].mxu0 %vm26_vm0, %v2337_v43 }
  0xab   :  { %1229 = vmatprep.mubr.bf16.mxu1 %v2338_v44  ;;  %2176 = vmatprep.mubr.msk.bf16.mxu0 %vm26_vm0, %v2340_v45 }
  0xb2   :  { %1230 = vmatmul.mubr.bf16.gmra.mrb[72].mxu1 %v2341_v46  ;;  %2177 = vmatmul.mubr.msk.bf16.gmra.mrb[72].mxu0 %vm26_vm0, %v2342_v47 }
  0xb3   :  { %1237 = vmatprep.mubr.bf16.mxu1 %v2343_v48  ;;  %2180 = vmatprep.mubr.msk.bf16.mxu0 %vm26_vm0, %v2345_v49 }
  0xba   :  { %1238 = vmatmul.mubr.bf16.gmra.mrb[76].mxu1 %v2346_v50  ;;  %2181 = vmatmul.mubr.msk.bf16.gmra.mrb[76].mxu0 %vm26_vm0, %v2347_v51 }
  0xf5   :  { %v1988_v53 = vpop.f32.mrb[0].mxu1  ;;  %v1916_v54 = vpop.f32.mrb[0].mxu0 }
  0xf6   :  { %v1989_v55 = vpop.f32.mrb[1].mxu1  ;;  %v1917_v56 = vpop.f32.mrb[1].mxu0 }
  0xf7   :  { %v2767_v57 = vadd.f32 %v1989_v55, %v1988_v53  ;;  %v1991_v58 = vpop.f32.mrb[2].mxu1  ;;  %v1918_v59 = vadd.f32 %v1917_v56, %v1916_v54  ;;  %v1919_v60 = vpop.f32.mrb[2].mxu0 }
  0xf8   :  { %v1992_v61 = vpop.f32.mrb[3].mxu1  ;;  %v1920_v62 = vpop.f32.mrb[3].mxu0 }
  0xf9   :  { %v2769_v63 = vadd.f32 %v1992_v61, %v1991_v58  ;;  %v1921_v0 = vadd.f32 %v1920_v62, %v1919_v60 }
  0xfd   :  { %v1994_v1 = vpop.f32.mrb[4].mxu1  ;;  %v1922_v2 = vpop.f32.mrb[4].mxu0 }
  0xfe   :  { %v1995_v3 = vpop.f32.mrb[5].mxu1  ;;  %v1923_v4 = vpop.f32.mrb[5].mxu0 }
  0xff   :  { %v2771_v5 = vadd.f32 %v1995_v3, %v1994_v1  ;;  %v1997_v6 = vpop.f32.mrb[6].mxu1  ;;  %v1924_v7 = vadd.f32 %v1923_v4, %v1922_v2  ;;  %v1925_v8 = vpop.f32.mrb[6].mxu0 }
 0x100   :  { %v1998_v9 = vpop.f32.mrb[7].mxu1  ;;  %v1926_v10 = vpop.f32.mrb[7].mxu0 }
 0x101   :  { %v2773_v11 = vadd.f32 %v1998_v9, %v1997_v6  ;;  %v1927_v12 = vadd.f32 %v1926_v10, %v1925_v8 }
 0x105   :  { %v2000_v13 = vpop.f32.mrb[8].mxu1  ;;  %v1928_v14 = vpop.f32.mrb[8].mxu0 }
 0x106   :  { %v2001_v15 = vpop.f32.mrb[9].mxu1  ;;  %v1929_v16 = vpop.f32.mrb[9].mxu0 }
 0x107   :  { %v2775_v17 = vadd.f32 %v2001_v15, %v2000_v13  ;;  %v2003_v18 = vpop.f32.mrb[10].mxu1  ;;  %v1930_v19 = vadd.f32 %v1929_v16, %v1928_v14  ;;  %v1931_v20 = vpop.f32.mrb[10].mxu0 }
 0x108   :  { %v2004_v21 = vpop.f32.mrb[11].mxu1  ;;  %v1932_v22 = vpop.f32.mrb[11].mxu0 }
 0x109   :  { %v2777_v23 = vadd.f32 %v2004_v21, %v2003_v18  ;;  %v1933_v24 = vadd.f32 %v1932_v22, %v1931_v20 }
 0x10d   :  { %v2006_v25 = vpop.f32.mrb[12].mxu1  ;;  %v1934_v26 = vpop.f32.mrb[12].mxu0 }
 0x10e   :  { %v2007_v27 = vpop.f32.mrb[13].mxu1  ;;  %v1935_v28 = vpop.f32.mrb[13].mxu0 }
 0x10f   :  { %v2779_v29 = vadd.f32 %v2007_v27, %v2006_v25  ;;  %v2009_v30 = vpop.f32.mrb[14].mxu1  ;;  %v1936_v31 = vadd.f32 %v1935_v28, %v1934_v26  ;;  %v1937_v32 = vpop.f32.mrb[14].mxu0 }
 0x110   :  { %v2010_v33 = vpop.f32.mrb[15].mxu1  ;;  %v1938_v34 = vpop.f32.mrb[15].mxu0 }
 0x111   :  { %v2781_v35 = vadd.f32 %v2010_v33, %v2009_v30  ;;  %v1939_v36 = vadd.f32 %v1938_v34, %v1937_v32 }
 0x115   :  { %v2028_v37 = vpop.f32.mrb[16].mxu1  ;;  %v1940_v38 = vpop.f32.mrb[16].mxu0 }
 0x116   :  { %v2029_v39 = vpop.f32.mrb[17].mxu1  ;;  %v1941_v40 = vpop.f32.mrb[17].mxu0 }
 0x117   :  { %v2030_v41 = vadd.f32 %v2029_v39, %v2028_v37  ;;  %v2031_v42 = vpop.f32.mrb[18].mxu1  ;;  %v1942_v43 = vadd.f32 %v1941_v40, %v1940_v38  ;;  %v1943_v44 = vpop.f32.mrb[18].mxu0 }
 0x118   :  { %v2032_v45 = vpop.f32.mrb[19].mxu1  ;;  %v1944_v46 = vpop.f32.mrb[19].mxu0 }
 0x119   :  { %v2033_v47 = vadd.f32 %v2032_v45, %v2031_v42  ;;  %v1945_v48 = vadd.f32 %v1944_v46, %v1943_v44  ;;  %v2783_v49 = vadd.f32 %v2030_v41, %v1918_v59 }
 0x11b   :  { %v2785_v50 = vadd.f32 %v2033_v47, %v1921_v0 }
 0x11d   :  { %v2034_v51 = vpop.f32.mrb[20].mxu1  ;;  %v1946_v52 = vpop.f32.mrb[20].mxu0 }
 0x11e   :  { %v2035_v53 = vpop.f32.mrb[21].mxu1  ;;  %v1947_v54 = vpop.f32.mrb[21].mxu0 }
 0x11f   :  { %v2036_v55 = vadd.f32 %v2035_v53, %v2034_v51  ;;  %v2037_v56 = vpop.f32.mrb[22].mxu1  ;;  %v1948_v58 = vadd.f32 %v1947_v54, %v1946_v52  ;;  %v1949_v60 = vpop.f32.mrb[22].mxu0 }
 0x120   :  { %v2038_v61 = vpop.f32.mrb[23].mxu1  ;;  %v1950_v62 = vpop.f32.mrb[23].mxu0 }
 0x121   :  { %v2039_v1 = vadd.f32 %v2038_v61, %v2037_v56  ;;  %v1951_v2 = vadd.f32 %v1950_v62, %v1949_v60  ;;  %v2787_v3 = vadd.f32 %v2036_v55, %v1924_v7 }
 0x123   :  { %v2789_v4 = vadd.f32 %v2039_v1, %v1927_v12 }
 0x125   :  { %v2040_v59 = vpop.f32.mrb[24].mxu1  ;;  %v1952_v6 = vpop.f32.mrb[24].mxu0 }
 0x126   :  { %v2041_v0 = vpop.f32.mrb[25].mxu1  ;;  %v1953_v8 = vpop.f32.mrb[25].mxu0 }
 0x127   :  { %v2042_v9 = vadd.f32 %v2041_v0, %v2040_v59  ;;  %v2043_v10 = vpop.f32.mrb[26].mxu1  ;;  %v1954_v13 = vadd.f32 %v1953_v8, %v1952_v6  ;;  %v1955_v14 = vpop.f32.mrb[26].mxu0 }
 0x128   :  { %v2044_v15 = vpop.f32.mrb[27].mxu1  ;;  %v1956_v16 = vpop.f32.mrb[27].mxu0 }
 0x129   :  { %v2045_v18 = vadd.f32 %v2044_v15, %v2043_v10  ;;  %v1957_v20 = vadd.f32 %v1956_v16, %v1955_v14  ;;  %v2791_v21 = vadd.f32 %v2042_v9, %v1930_v19 }
 0x12b   :  { %v2793_v22 = vadd.f32 %v2045_v18, %v1933_v24 }
 0x12d   :  { %v2046_v7 = vpop.f32.mrb[28].mxu1  ;;  %v1958_v25 = vpop.f32.mrb[28].mxu0 }
 0x12e   :  { %v2047_v12 = vpop.f32.mrb[29].mxu1  ;;  %v1959_v26 = vpop.f32.mrb[29].mxu0 }
 0x12f   :  { %v2048_v27 = vadd.f32 %v2047_v12, %v2046_v7  ;;  %v2049_v28 = vpop.f32.mrb[30].mxu1  ;;  %v1960_v30 = vadd.f32 %v1959_v26, %v1958_v25  ;;  %v1961_v32 = vpop.f32.mrb[30].mxu0 }
 0x130   :  { %v2050_v33 = vpop.f32.mrb[31].mxu1  ;;  %v1962_v34 = vpop.f32.mrb[31].mxu0 }
 0x131   :  { %v2051_v37 = vadd.f32 %v2050_v33, %v2049_v28  ;;  %v1963_v38 = vadd.f32 %v1962_v34, %v1961_v32  ;;  %v2795_v39 = vadd.f32 %v2048_v27, %v1936_v31 }
 0x133   :  { %v2797_v40 = vadd.f32 %v2051_v37, %v1939_v36 }
 0x135   :  { %v2052_v19 = vpop.f32.mrb[32].mxu1  ;;  %v1964_v41 = vpop.f32.mrb[32].mxu0 }
 0x136   :  { %v2053_v24 = vpop.f32.mrb[33].mxu1  ;;  %v1965_v42 = vpop.f32.mrb[33].mxu0 }
 0x137   :  { %v2054_v44 = vadd.f32 %v2053_v24, %v2052_v19  ;;  %v2055_v45 = vpop.f32.mrb[34].mxu1  ;;  %v2799_v46 = vadd.f32 %v1965_v42, %v1964_v41  ;;  %v1967_v47 = vpop.f32.mrb[34].mxu0 }
 0x138   :  { %v2056_v51 = vpop.f32.mrb[35].mxu1  ;;  %v1968_v52 = vpop.f32.mrb[35].mxu0 }
 0x139   :  { %v2057_v53 = vadd.f32 %v2056_v51, %v2055_v45  ;;  %v2801_v54 = vadd.f32 %v1968_v52, %v1967_v47  ;;  %v2803_v55 = vadd.f32 %v2054_v44, %v1942_v43 }
 0x13b   :  { %v2805_v31 = vadd.f32 %v2057_v53, %v1945_v48 }
 0x13d   :  { %v2058_v36 = vpop.f32.mrb[36].mxu1  ;;  %v1970_v56 = vpop.f32.mrb[36].mxu0 }
 0x13e   :  { %v2059_v60 = vpop.f32.mrb[37].mxu1  ;;  %v1971_v61 = vpop.f32.mrb[37].mxu0 }
 0x13f   :  { %v2060_v62 = vadd.f32 %v2059_v60, %v2058_v36  ;;  %v2061_v1 = vpop.f32.mrb[38].mxu1  ;;  %v2807_v59 = vadd.f32 %v1971_v61, %v1970_v56  ;;  %v1973_v6 = vpop.f32.mrb[38].mxu0  ;;  %v61_v56 = vld [vmem:[#allocation2 + $0x10] sm:$0xff] }
 0x140   :  { %v2062_v0 = vpop.f32.mrb[39].mxu1  ;;  %v1974_v8 = vpop.f32.mrb[39].mxu0 }
 0x141   :  { %v2063_v9 = vadd.f32 %v2062_v0, %v2061_v1  ;;  %v2809_v10 = vadd.f32 %v1974_v8, %v1973_v6  ;;  %v2811_v14 = vadd.f32 %v2060_v62, %v1948_v58  ;;  %v59_v1 = vld [vmem:[#allocation2] sm:$0xff] }
 0x143   :  { %v2813_v43 = vadd.f32 %v2063_v9, %v1951_v2 }
 0x145   :  { %v2064_v48 = vpop.f32.mrb[40].mxu1  ;;  %v1976_v15 = vpop.f32.mrb[40].mxu0 }
 0x146   :  { %v2065_v16 = vpop.f32.mrb[41].mxu1  ;;  %v1977_v18 = vpop.f32.mrb[41].mxu0 }
 0x147   :  { %v2066_v7 = vadd.f32 %v2065_v16, %v2064_v48  ;;  %v2067_v25 = vpop.f32.mrb[42].mxu1  ;;  %v2815_v12 = vadd.f32 %v1977_v18, %v1976_v15  ;;  %v1979_v26 = vpop.f32.mrb[42].mxu0  ;;  %v62_v48 = vld [vmem:[#allocation2 + $0x18] sm:$0xff] }
 0x148   :  { %v2068_v27 = vpop.f32.mrb[43].mxu1  ;;  %v1980_v28 = vpop.f32.mrb[43].mxu0 }
 0x149   :  { %v2069_v32 = vadd.f32 %v2068_v27, %v2067_v25  ;;  %v2817_v33 = vadd.f32 %v1980_v28, %v1979_v26  ;;  %v2819_v34 = vadd.f32 %v2066_v7, %v1954_v13 }
 0x14b   :  { %v2821_v58 = vadd.f32 %v2069_v32, %v1957_v20 }
 0x14d   :  { %v2070_v2 = vpop.f32.mrb[44].mxu1  ;;  %v1982_v37 = vpop.f32.mrb[44].mxu0 }
 0x14e   :  { %v2071_v19 = vpop.f32.mrb[45].mxu1  ;;  %v1983_v41 = vpop.f32.mrb[45].mxu0 }
 0x14f   :  { %v2072_v24 = vadd.f32 %v2071_v19, %v2070_v2  ;;  %v2073_v42 = vpop.f32.mrb[46].mxu1  ;;  %v2823_v44 = vadd.f32 %v1983_v41, %v1982_v37  ;;  %v1985_v45 = vpop.f32.mrb[46].mxu0  ;;  %v65_v2 = vld [vmem:[#allocation2 + $0x30] sm:$0xff]  ;;  %v63_v19 = vld [vmem:[#allocation2 + $0x20] sm:$0xff] }
 0x150   :  { %v2074_v47 = vpop.f32.mrb[47].mxu1  ;;  %v1986_v51 = vpop.f32.mrb[47].mxu0 }
 0x151   :  { %v2075_v52 = vadd.f32 %v2074_v47, %v2073_v42  ;;  %v2825_v53 = vadd.f32 %v1986_v51, %v1985_v45  ;;  %v2827_v36 = vadd.f32 %v2072_v24, %v1960_v30  ;;  %v66_v47 = vld [vmem:[#allocation2 + $0x38] sm:$0xff] }
 0x153   :  { %v2829_v13 = vadd.f32 %v2075_v52, %v1963_v38  ;;  %v60_v38 = vld [vmem:[#allocation2 + $0x8] sm:$0xff] }
 0x155   :  { %v2076_v20 = vpop.f32.mrb[48].mxu1  ;;  %v2154_v60 = vpop.f32.mrb[48].mxu0 }
 0x156   :  { %v1289_v61 = vadd.f32 %v2154_v60, %v2787_v3  ;;  %v2077_v62 = vpop.f32.mrb[49].mxu1  ;;  %v1280_v6 = vpop.f32.mrb[49].mxu0 }
 0x157   :  { %v2078_v0 = vadd.f32 %v2077_v62, %v2076_v20  ;;  %v1281_v8 = vadd.f32 %v1280_v6, %v2783_v49  ;;  %v2079_v9 = vpop.f32.mrb[50].mxu1  ;;  %v2155_v15 = vpop.f32.mrb[50].mxu0 }
 0x158   :  { %v1409_v16 = vadd.f32 %v1289_v61, %v61_v56  ;;  %v1292_v30 = vadd.f32 %v2155_v15, %v2789_v4  ;;  %v2080_v18 = vpop.f32.mrb[51].mxu1  ;;  %v1283_v7 = vpop.f32.mrb[51].mxu0  ;;  %v64_v56 = vld [vmem:[#allocation2 + $0x28] sm:$0xff] }
 0x159   :  { %v1407_v25 = vadd.f32 %v1281_v8, %v59_v1  ;;  %v2081_v26 = vadd.f32 %v2080_v18, %v2079_v9  ;;  %v1284_v27 = vadd.f32 %v1283_v7, %v2785_v50  ;;  %v2836_v3 = vadd.f32 %v2078_v0, %v2799_v46  ;;  %v69_v7 = vld [vmem:[#allocation2 + $0x50] sm:$0xff] }
 0x15a   :  { %1441 = vst.msk [vmem:[#allocation2 + $0x10] sm:$0xff] %vm26_vm0, %v1409_v16  ;;  %v1410_v28 = vadd.f32 %v1292_v30, %v62_v48 }
 0x15b   :  { %1439 = vst.msk [vmem:[#allocation2] sm:$0xff] %vm26_vm0, %v1407_v25  ;;  %v1408_v49 = vadd.f32 %v1284_v27, %v60_v38  ;;  %v2841_v32 = vadd.f32 %v2081_v26, %v2801_v54 }
 0x15c   :  { %1442 = vst.msk [vmem:[#allocation2 + $0x18] sm:$0xff] %vm26_vm0, %v1410_v28  ;;  %v67_v28 = vld [vmem:[#allocation2 + $0x40] sm:$0xff] }
 0x15d   :  { %1440 = vst.msk [vmem:[#allocation2 + $0x8] sm:$0xff] %vm26_vm0, %v1408_v49  ;;  %v2082_v4 = vpop.f32.mrb[52].mxu1  ;;  %v2158_v37 = vpop.f32.mrb[52].mxu0 }
 0x15e   :  { %v1305_v50 = vadd.f32 %v2158_v37, %v2795_v39  ;;  %v2083_v46 = vpop.f32.mrb[53].mxu1  ;;  %v1296_v41 = vpop.f32.mrb[53].mxu0 }
 0x15f   :  { %v2084_v24 = vadd.f32 %v2083_v46, %v2082_v4  ;;  %v1297_v42 = vadd.f32 %v1296_v41, %v2791_v21  ;;  %v2085_v45 = vpop.f32.mrb[54].mxu1  ;;  %v2159_v51 = vpop.f32.mrb[54].mxu0  ;;  %v70_v46 = vld [vmem:[#allocation2 + $0x58] sm:$0xff] }
 0x160   :  { %v1413_v54 = vadd.f32 %v1305_v50, %v65_v2  ;;  %v1308_v52 = vadd.f32 %v2159_v51, %v2797_v40  ;;  %v2086_v20 = vpop.f32.mrb[55].mxu1  ;;  %v1299_v60 = vpop.f32.mrb[55].mxu0 }
 0x161   :  { %v1476_v61 = vld [vmem:[#allocation2 + $0x10] sm:$0xff]  ;;  %v1411_v62 = vadd.f32 %v1297_v42, %v63_v19  ;;  %v2087_v1 = vadd.f32 %v2086_v20, %v2085_v45  ;;  %v1300_v39 = vadd.f32 %v1299_v60, %v2793_v22  ;;  %v2850_v6 = vadd.f32 %v2084_v24, %v2807_v59  ;;  %v68_v42 = vld [vmem:[#allocation2 + $0x48] sm:$0xff] }
 0x162   :  { %v1508_v0 = vmax.f32 %v1476_v61, 0.0  ;;  %v1474_v8 = vld [vmem:[#allocation2] sm:$0xff]  ;;  %1445 = vst.msk [vmem:[#allocation2 + $0x30] sm:$0xff] %vm26_vm0, %v1413_v54  ;;  %v1414_v21 = vadd.f32 %v1308_v52, %v66_v47 }
 0x163   :  { %v1506_v9 = vmax.f32 %v1474_v8, 0.0  ;;  %v1477_v48 = vld [vmem:[#allocation2 + $0x18] sm:$0xff]  ;;  %1443 = vst.msk [vmem:[#allocation2 + $0x20] sm:$0xff] %vm26_vm0, %v1411_v62  ;;  %v1412_v40 = vadd.f32 %v1300_v39, %v64_v56  ;;  %v2855_v15 = vadd.f32 %v2087_v1, %v2809_v10 }
 0x164   :  { %v1870_v16 = vpack.c.bf16 %v1508_v0, %v1508_v0  ;;  %v1509_v30 = vmax.f32 %v1477_v48, 0.0  ;;  %v1475_v22 = vld [vmem:[#allocation2 + $0x8] sm:$0xff]  ;;  %1446 = vst.msk [vmem:[#allocation2 + $0x38] sm:$0xff] %vm26_vm0, %v1414_v21 }
 0x165   :  { %v1868_v59 = vpack.c.bf16 %v1506_v9, %v1506_v9  ;;  %v1507_v18 = vmax.f32 %v1475_v22, 0.0  ;;  %1444 = vst.msk [vmem:[#allocation2 + $0x28] sm:$0xff] %vm26_vm0, %v1412_v40  ;;  %v2088_v38 = vpop.f32.mrb[56].mxu1  ;;  %v2162_v25 = vpop.f32.mrb[56].mxu0  ;;  %v73_v9 = vld [vmem:[#allocation2 + $0x70] sm:$0xff] }
 0x166   :  { %1669 = vst.msk [vmem:[%s3056_s3 + $0x8] sm:$0xf] %vm1666_vm1, %v1870_v16  ;;  %v1871_v26 = vpack.c.bf16 %v1509_v30, %v1509_v30  ;;  %v1321_v10 = vadd.f32 %v2162_v25, %v2811_v14  ;;  %v2089_v27 = vpop.f32.mrb[57].mxu1  ;;  %v1312_v49 = vpop.f32.mrb[57].mxu0  ;;  %v71_v30 = vld [vmem:[#allocation2 + $0x60] sm:$0xff]  ;;  %v74_v25 = vld [vmem:[#allocation2 + $0x78] sm:$0xff] }
 0x167   :  { %1667 = vst.msk [vmem:[%s3056_s3] sm:$0xf] %vm1666_vm1, %v1868_v59  ;;  %v1869_v4 = vpack.c.bf16 %v1507_v18, %v1507_v18  ;;  %v2090_v2 = vadd.f32 %v2089_v27, %v2088_v38  ;;  %v1313_v37 = vadd.f32 %v1312_v49, %v2803_v55  ;;  %v2091_v50 = vpop.f32.mrb[58].mxu1  ;;  %v2163_v19 = vpop.f32.mrb[58].mxu0 }
 0x168   :  { %1670 = vst.msk [vmem:[%s3056_s3 + $0xc] sm:$0xf] %vm1666_vm1, %v1871_v26  ;;  %v1417_v14 = vadd.f32 %v1321_v10, %v69_v7  ;;  %v1324_v41 = vadd.f32 %v2163_v19, %v2813_v43  ;;  %v2092_v24 = vpop.f32.mrb[59].mxu1  ;;  %v1315_v45 = vpop.f32.mrb[59].mxu0 }
 0x169   :  { %1668 = vst.msk [vmem:[%s3056_s3 + $0x4] sm:$0xf] %vm1666_vm1, %v1869_v4  ;;  %v1480_v55 = vld [vmem:[#allocation2 + $0x30] sm:$0xff]  ;;  %v1415_v47 = vadd.f32 %v1313_v37, %v67_v28  ;;  %v2093_v51 = vadd.f32 %v2092_v24, %v2091_v50  ;;  %v1316_v54 = vadd.f32 %v1315_v45, %v2805_v31  ;;  %v2880_v52 = vadd.f32 %v2090_v2, %v2815_v12  ;;  %v72_v28 = vld [vmem:[#allocation2 + $0x68] sm:$0xff] }
 0x16a   :  { %v1512_v20 = vmax.f32 %v1480_v55, 0.0  ;;  %v1478_v56 = vld [vmem:[#allocation2 + $0x20] sm:$0xff]  ;;  %1449 = vst.msk [vmem:[#allocation2 + $0x50] sm:$0xff] %vm26_vm0, %v1417_v14  ;;  %v1418_v43 = vadd.f32 %v1324_v41, %v70_v46 }
 0x16b   :  { %v1510_v60 = vmax.f32 %v1478_v56, 0.0  ;;  %v1481_v61 = vld [vmem:[#allocation2 + $0x38] sm:$0xff]  ;;  %1447 = vst.msk [vmem:[#allocation2 + $0x40] sm:$0xff] %vm26_vm0, %v1415_v47  ;;  %v1416_v62 = vadd.f32 %v1316_v54, %v68_v42  ;;  %v2885_v1 = vadd.f32 %v2093_v51, %v2817_v33  ;;  %v77_v54 = vld [vmem:[#allocation2 + $0x90] sm:$0xff] }
 0x16c   :  { %v1874_v39 = vpack.c.bf16 %v1512_v20, %v1512_v20  ;;  %v1513_v0 = vmax.f32 %v1481_v61, 0.0  ;;  %v1479_v8 = vld [vmem:[#allocation2 + $0x28] sm:$0xff]  ;;  %1450 = vst.msk [vmem:[#allocation2 + $0x58] sm:$0xff] %vm26_vm0, %v1418_v43 }
 0x16d   :  { %v1872_v31 = vpack.c.bf16 %v1510_v60, %v1510_v60  ;;  %v1511_v12 = vmax.f32 %v1479_v8, 0.0  ;;  %1448 = vst.msk [vmem:[#allocation2 + $0x48] sm:$0xff] %vm26_vm0, %v1416_v62  ;;  %v2094_v21 = vpop.f32.mrb[60].mxu1  ;;  %v2166_v48 = vpop.f32.mrb[60].mxu0  ;;  %v75_v60 = vld [vmem:[#allocation2 + $0x80] sm:$0xff] }
 0x16e   :  { %1673 = vst.msk [vmem:[%s3056_s3 + $0x18] sm:$0xf] %vm1666_vm1, %v1874_v39  ;;  %v1875_v40 = vpack.c.bf16 %v1513_v0, %v1513_v0  ;;  %v1337_v33 = vadd.f32 %v2166_v48, %v2827_v36  ;;  %v2095_v16 = vpop.f32.mrb[61].mxu1  ;;  %v1328_v22 = vpop.f32.mrb[61].mxu0  ;;  %v76_v48 = vld [vmem:[#allocation2 + $0x88] sm:$0xff] }
 0x16f   :  { %1671 = vst.msk [vmem:[%s3056_s3 + $0x10] sm:$0xf] %vm1666_vm1, %v1872_v31  ;;  %v1873_v59 = vpack.c.bf16 %v1511_v12, %v1511_v12  ;;  %v2096_v18 = vadd.f32 %v2095_v16, %v2094_v21  ;;  %v1329_v38 = vadd.f32 %v1328_v22, %v2819_v34  ;;  %v2097_v7 = vpop.f32.mrb[62].mxu1  ;;  %v2167_v26 = vpop.f32.mrb[62].mxu0  ;;  %v78_v31 = vld [vmem:[#allocation2 + $0x98] sm:$0xff] }
 0x170   :  { %1674 = vst.msk [vmem:[%s3056_s3 + $0x1c] sm:$0xf] %vm1666_vm1, %v1875_v40  ;;  %v1421_v36 = vadd.f32 %v1337_v33, %v73_v9  ;;  %v1340_v10 = vadd.f32 %v2167_v26, %v2829_v13  ;;  %v2098_v27 = vpop.f32.mrb[63].mxu1  ;;  %v1331_v49 = vpop.f32.mrb[63].mxu0 }
 0x171   :  { %1672 = vst.msk [vmem:[%s3056_s3 + $0x14] sm:$0xf] %vm1666_vm1, %v1873_v59  ;;  %v1484_v34 = vld [vmem:[#allocation2 + $0x50] sm:$0xff]  ;;  %v1419_v4 = vadd.f32 %v1329_v38, %v71_v30  ;;  %v2099_v2 = vadd.f32 %v2098_v27, %v2097_v7  ;;  %v1332_v37 = vadd.f32 %v1331_v49, %v2821_v58  ;;  %v2910_v50 = vadd.f32 %v2096_v18, %v2823_v44 }
 0x172   :  { %v1516_v46 = vmax.f32 %v1484_v34, 0.0  ;;  %v1482_v19 = vld [vmem:[#allocation2 + $0x40] sm:$0xff]  ;;  %1453 = vst.msk [vmem:[#allocation2 + $0x70] sm:$0xff] %vm26_vm0, %v1421_v36  ;;  %v1422_v13 = vadd.f32 %v1340_v10, %v74_v25  ;;  %v81_v49 = vld [vmem:[#allocation2 + $0xb0] sm:$0xff] }
 0x173   :  { %v1514_v14 = vmax.f32 %v1482_v19, 0.0  ;;  %v1485_v41 = vld [vmem:[#allocation2 + $0x58] sm:$0xff]  ;;  %1451 = vst.msk [vmem:[#allocation2 + $0x60] sm:$0xff] %vm26_vm0, %v1419_v4  ;;  %v1420_v24 = vadd.f32 %v1332_v37, %v72_v28  ;;  %v2915_v42 = vadd.f32 %v2099_v2, %v2825_v53  ;;  %v79_v37 = vld [vmem:[#allocation2 + $0xa0] sm:$0xff] }
 0x174   :  { %v1878_v45 = vpack.c.bf16 %v1516_v46, %v1516_v46  ;;  %v1517_v55 = vmax.f32 %v1485_v41, 0.0  ;;  %v1483_v47 = vld [vmem:[#allocation2 + $0x48] sm:$0xff]  ;;  %1454 = vst.msk [vmem:[#allocation2 + $0x78] sm:$0xff] %vm26_vm0, %v1422_v13 }
 0x175   :  { %v1876_v58 = vpack.c.bf16 %v1514_v14, %v1514_v14  ;;  %v1515_v44 = vmax.f32 %v1483_v47, 0.0  ;;  %1452 = vst.msk [vmem:[#allocation2 + $0x68] sm:$0xff] %vm26_vm0, %v1420_v24  ;;  %v2100_v51 = vpop.f32.mrb[64].mxu1  ;;  %v2170_v20 = vpop.f32.mrb[64].mxu0  ;;  %v82_v24 = vld [vmem:[#allocation2 + $0xb8] sm:$0xff] }
 0x176   :  { %1677 = vst.msk [vmem:[%s3056_s3 + $0x28] sm:$0xf] %vm1666_vm1, %v1878_v45  ;;  %v1879_v56 = vpack.c.bf16 %v1517_v55, %v1517_v55  ;;  %v1353_v53 = vadd.f32 %v2170_v20, %v2850_v6  ;;  %v2101_v43 = vpop.f32.mrb[65].mxu1  ;;  %v1344_v61 = vpop.f32.mrb[65].mxu0 }
 0x177   :  { %1675 = vst.msk [vmem:[%s3056_s3 + $0x20] sm:$0xf] %vm1666_vm1, %v1876_v58  ;;  %v1877_v62 = vpack.c.bf16 %v1515_v44, %v1515_v44  ;;  %v2102_v39 = vadd.f32 %v2101_v43, %v2100_v51  ;;  %v1345_v0 = vadd.f32 %v1344_v61, %v2836_v3  ;;  %v2103_v8 = vpop.f32.mrb[66].mxu1  ;;  %v2171_v12 = vpop.f32.mrb[66].mxu0  ;;  %v80_v58 = vld [vmem:[#allocation2 + $0xa8] sm:$0xff] }
 0x178   :  { %1678 = vst.msk [vmem:[%s3056_s3 + $0x2c] sm:$0xf] %vm1666_vm1, %v1879_v56  ;;  %v1425_v6 = vadd.f32 %v1353_v53, %v77_v54  ;;  %v1356_v21 = vadd.f32 %v2171_v12, %v2855_v15  ;;  %v2104_v9 = vpop.f32.mrb[67].mxu1  ;;  %v1347_v40 = vpop.f32.mrb[67].mxu0 }
 0x179   :  { %1676 = vst.msk [vmem:[%s3056_s3 + $0x24] sm:$0xf] %vm1666_vm1, %v1877_v62  ;;  %v1488_v3 = vld [vmem:[#allocation2 + $0x70] sm:$0xff]  ;;  %v1423_v33 = vadd.f32 %v1345_v0, %v75_v60  ;;  %v2105_v16 = vadd.f32 %v2104_v9, %v2103_v8  ;;  %v1348_v30 = vadd.f32 %v1347_v40, %v2841_v32  ;;  %v2940_v22 = vadd.f32 %v2102_v39, %v2767_v57  ;;  %v83_v40 = vld [vmem:[#allocation2 + $0xc0] sm:$0xff] }
 0x17a   :  { %v1520_v59 = vmax.f32 %v1488_v3, 0.0  ;;  %v1486_v18 = vld [vmem:[#allocation2 + $0x60] sm:$0xff]  ;;  %1457 = vst.msk [vmem:[#allocation2 + $0x90] sm:$0xff] %vm26_vm0, %v1425_v6  ;;  %v1426_v15 = vadd.f32 %v1356_v21, %v78_v31  ;;  %v85_v6 = vld [vmem:[#allocation2 + $0xd0] sm:$0xff] }
 0x17b   :  { %v1518_v38 = vmax.f32 %v1486_v18, 0.0  ;;  %v1489_v7 = vld [vmem:[#allocation2 + $0x78] sm:$0xff]  ;;  %1455 = vst.msk [vmem:[#allocation2 + $0x80] sm:$0xff] %vm26_vm0, %v1423_v33  ;;  %v1424_v25 = vadd.f32 %v1348_v30, %v76_v48  ;;  %v2945_v26 = vadd.f32 %v2105_v16, %v2769_v63 }
 0x17c   :  { %v1882_v36 = vpack.c.bf16 %v1520_v59, %v1520_v59  ;;  %v1521_v10 = vmax.f32 %v1489_v7, 0.0  ;;  %v1487_v27 = vld [vmem:[#allocation2 + $0x68] sm:$0xff]  ;;  %1458 = vst.msk [vmem:[#allocation2 + $0x98] sm:$0xff] %vm26_vm0, %v1426_v15  ;;  %v86_v18 = vld [vmem:[#allocation2 + $0xd8] sm:$0xff] }
 0x17d   :  { %v1880_v57 = vpack.c.bf16 %v1518_v38, %v1518_v38  ;;  %v1519_v32 = vmax.f32 %v1487_v27, 0.0  ;;  %1456 = vst.msk [vmem:[#allocation2 + $0x88] sm:$0xff] %vm26_vm0, %v1424_v25  ;;  %v2106_v28 = vpop.f32.mrb[68].mxu1  ;;  %v2174_v34 = vpop.f32.mrb[68].mxu0 }
 0x17e   :  { %1681 = vst.msk [vmem:[%s3056_s3 + $0x38] sm:$0xf] %vm1666_vm1, %v1882_v36  ;;  %v1883_v4 = vpack.c.bf16 %v1521_v10, %v1521_v10  ;;  %v1369_v63 = vadd.f32 %v2174_v34, %v2910_v50  ;;  %v2107_v2 = vpop.f32.mrb[69].mxu1  ;;  %v1360_v46 = vpop.f32.mrb[69].mxu0  ;;  %v84_v36 = vld [vmem:[#allocation2 + $0xc8] sm:$0xff] }
 0x17f   :  { %1679 = vst.msk [vmem:[%s3056_s3 + $0x30] sm:$0xf] %vm1666_vm1, %v1880_v57  ;;  %v1881_v19 = vpack.c.bf16 %v1519_v32, %v1519_v32  ;;  %v2108_v13 = vadd.f32 %v2107_v2, %v2106_v28  ;;  %v1361_v14 = vadd.f32 %v1360_v46, %v2880_v52  ;;  %v2109_v41 = vpop.f32.mrb[70].mxu1  ;;  %v2175_v45 = vpop.f32.mrb[70].mxu0 }
 0x180   :  { %1682 = vst.msk [vmem:[%s3056_s3 + $0x3c] sm:$0xf] %vm1666_vm1, %v1883_v4  ;;  %v1429_v50 = vadd.f32 %v1369_v63, %v81_v49  ;;  %v1372_v55 = vadd.f32 %v2175_v45, %v2915_v42  ;;  %v2110_v47 = vpop.f32.mrb[71].mxu1  ;;  %v1363_v44 = vpop.f32.mrb[71].mxu0 }
 0x181   :  { %1680 = vst.msk [vmem:[%s3056_s3 + $0x34] sm:$0xf] %vm1666_vm1, %v1881_v19  ;;  %v1492_v52 = vld [vmem:[#allocation2 + $0x90] sm:$0xff]  ;;  %v1427_v51 = vadd.f32 %v1361_v14, %v79_v37  ;;  %v2111_v54 = vadd.f32 %v2110_v47, %v2109_v41  ;;  %v1364_v20 = vadd.f32 %v1363_v44, %v2885_v1  ;;  %v1224_v56 = vadd.f32 %v2108_v13, %v2771_v5 }
 0x182   :  { %v1524_v53 = vmax.f32 %v1492_v52, 0.0  ;;  %v1490_v43 = vld [vmem:[#allocation2 + $0x80] sm:$0xff]  ;;  %1461 = vst.msk [vmem:[#allocation2 + $0xb0] sm:$0xff] %vm26_vm0, %v1429_v50  ;;  %v1430_v42 = vadd.f32 %v1372_v55, %v82_v24 }
 0x183   :  { %v1522_v60 = vmax.f32 %v1490_v43, 0.0  ;;  %v1493_v61 = vld [vmem:[#allocation2 + $0x98] sm:$0xff]  ;;  %1459 = vst.msk [vmem:[#allocation2 + $0xa0] sm:$0xff] %vm26_vm0, %v1427_v51  ;;  %v1428_v62 = vadd.f32 %v1364_v20, %v80_v58  ;;  %v1227_v39 = vadd.f32 %v2111_v54, %v2773_v11  ;;  %v87_v55 = vld [vmem:[#allocation2 + $0xe0] sm:$0xff]  ;;  %v88_v20 = vld [vmem:[#allocation2 + $0xe8] sm:$0xff] }
 0x184   :  { %v1886_v0 = vpack.c.bf16 %v1524_v53, %v1524_v53  ;;  %v1525_v8 = vmax.f32 %v1493_v61, 0.0  ;;  %v1491_v31 = vld [vmem:[#allocation2 + $0x88] sm:$0xff]  ;;  %1462 = vst.msk [vmem:[#allocation2 + $0xb8] sm:$0xff] %vm26_vm0, %v1430_v42 }
 0x185   :  { %v1884_v1 = vpack.c.bf16 %v1522_v60, %v1522_v60  ;;  %v1523_v12 = vmax.f32 %v1491_v31, 0.0  ;;  %1460 = vst.msk [vmem:[#allocation2 + $0xa8] sm:$0xff] %vm26_vm0, %v1428_v62  ;;  %v2112_v5 = vpop.f32.mrb[72].mxu1  ;;  %v2178_v21 = vpop.f32.mrb[72].mxu0 }
 0x186   :  { %1685 = vst.msk [vmem:[%s3056_s3 + $0x48] sm:$0xf] %vm1666_vm1, %v1886_v0  ;;  %v1887_v9 = vpack.c.bf16 %v1525_v8, %v1525_v8  ;;  %v1385_v48 = vadd.f32 %v2178_v21, %v1224_v56  ;;  %v2113_v11 = vpop.f32.mrb[73].mxu1  ;;  %v1376_v3 = vpop.f32.mrb[73].mxu0  ;;  %v89_v0 = vld [vmem:[#allocation2 + $0xf0] sm:$0xff] }
 0x187   :  { %1683 = vst.msk [vmem:[%s3056_s3 + $0x40] sm:$0xf] %vm1666_vm1, %v1884_v1  ;;  %v1885_v33 = vpack.c.bf16 %v1523_v12, %v1523_v12  ;;  %v2114_v16 = vadd.f32 %v2113_v11, %v2112_v5  ;;  %v1377_v30 = vadd.f32 %v1376_v3, %v2940_v22  ;;  %v2115_v59 = vpop.f32.mrb[74].mxu1  ;;  %v2179_v15 = vpop.f32.mrb[74].mxu0 }
 0x188   :  { %1686 = vst.msk [vmem:[%s3056_s3 + $0x4c] sm:$0xf] %vm1666_vm1, %v1887_v9  ;;  %v1433_v38 = vadd.f32 %v1385_v48, %v85_v6  ;;  %v1388_v7 = vadd.f32 %v2179_v15, %v1227_v39  ;;  %v2116_v25 = vpop.f32.mrb[75].mxu1  ;;  %v1379_v10 = vpop.f32.mrb[75].mxu0  ;;  %v90_v48 = vld [vmem:[#allocation2 + $0xf8] sm:$0xff] }
 0x189   :  { %1684 = vst.msk [vmem:[%s3056_s3 + $0x44] sm:$0xf] %vm1666_vm1, %v1885_v33  ;;  %v1496_v27 = vld [vmem:[#allocation2 + $0xb0] sm:$0xff]  ;;  %v1431_v22 = vadd.f32 %v1377_v30, %v83_v40  ;;  %v2117_v57 = vadd.f32 %v2116_v25, %v2115_v59  ;;  %v1380_v32 = vadd.f32 %v1379_v10, %v2945_v26  ;;  %v1232_v28 = vadd.f32 %v2114_v16, %v2775_v17 }
 0x18a   :  { %v1528_v49 = vmax.f32 %v1496_v27, 0.0  ;;  %v1494_v34 = vld [vmem:[#allocation2 + $0xa0] sm:$0xff]  ;;  %1465 = vst.msk [vmem:[#allocation2 + $0xd0] sm:$0xff] %vm26_vm0, %v1433_v38  ;;  %v1434_v4 = vadd.f32 %v1388_v7, %v86_v18 }
 0x18b   :  { %v1526_v63 = vmax.f32 %v1494_v34, 0.0  ;;  %v1497_v2 = vld [vmem:[#allocation2 + $0xb8] sm:$0xff]  ;;  %1463 = vst.msk [vmem:[#allocation2 + $0xc0] sm:$0xff] %vm26_vm0, %v1431_v22  ;;  %v1432_v37 = vadd.f32 %v1380_v32, %v84_v36  ;;  %v1235_v46 = vadd.f32 %v2117_v57, %v2777_v23 }
 0x18c   :  { %v1890_v19 = vpack.c.bf16 %v1528_v49, %v1528_v49  ;;  %v1529_v13 = vmax.f32 %v1497_v2, 0.0  ;;  %v1495_v14 = vld [vmem:[#allocation2 + $0xa8] sm:$0xff]  ;;  %1466 = vst.msk [vmem:[#allocation2 + $0xd8] sm:$0xff] %vm26_vm0, %v1434_v4 }
 0x18d   :  { %v1888_v26 = vpack.c.bf16 %v1526_v63, %v1526_v63  ;;  %v1527_v41 = vmax.f32 %v1495_v14, 0.0  ;;  %1464 = vst.msk [vmem:[#allocation2 + $0xc8] sm:$0xff] %vm26_vm0, %v1432_v37  ;;  %v2118_v17 = vpop.f32.mrb[76].mxu1  ;;  %v2182_v24 = vpop.f32.mrb[76].mxu0 }
 0x18e   :  { %1689 = vst.msk [vmem:[%s3056_s3 + $0x58] sm:$0xf] %vm1666_vm1, %v1890_v19  ;;  %v1891_v45 = vpack.c.bf16 %v1529_v13, %v1529_v13  ;;  %v2119_v50 = vpop.f32.mrb[77].mxu1  ;;  %v1392_v23 = vpop.f32.mrb[77].mxu0 }
 0x18f   :  { %1687 = vst.msk [vmem:[%s3056_s3 + $0x50] sm:$0xf] %vm1666_vm1, %v1888_v26  ;;  %v1889_v47 = vpack.c.bf16 %v1527_v41, %v1527_v41  ;;  %v2120_v58 = vadd.f32 %v2119_v50, %v2118_v17  ;;  %v1393_v44 = vadd.f32 %v1392_v23, %v1232_v28  ;;  %v2121_v52 = vpop.f32.mrb[78].mxu1  ;;  %v2183_v51 = vpop.f32.mrb[78].mxu0 }
 0x190   :  { %1690 = vst.msk [vmem:[%s3056_s3 + $0x5c] sm:$0xf] %vm1666_vm1, %v1891_v45  ;;  %v2122_v54 = vpop.f32.mrb[79].mxu1  ;;  %v1395_v56 = vpop.f32.mrb[79].mxu0 }
 0x191   :  { %1688 = vst.msk [vmem:[%s3056_s3 + $0x54] sm:$0xf] %vm1666_vm1, %v1889_v47  ;;  %v1500_v53 = vld [vmem:[#allocation2 + $0xd0] sm:$0xff]  ;;  %v1240_v43 = vadd.f32 %v2120_v58, %v2779_v29  ;;  %v1435_v42 = vadd.f32 %v1393_v44, %v87_v55  ;;  %v2123_v60 = vadd.f32 %v2122_v54, %v2121_v52  ;;  %v1396_v61 = vadd.f32 %v1395_v56, %v1235_v46 }
 0x192   :  { %v1532_v62 = vmax.f32 %v1500_v53, 0.0  ;;  %v1498_v39 = vld [vmem:[#allocation2 + $0xc0] sm:$0xff] }
 0x193   :  { %v1530_v8 = vmax.f32 %v1498_v39, 0.0  ;;  %v1501_v31 = vld [vmem:[#allocation2 + $0xd8] sm:$0xff]  ;;  %v1401_v1 = vadd.f32 %v2182_v24, %v1240_v43  ;;  %1467 = vst.msk [vmem:[#allocation2 + $0xe0] sm:$0xff] %vm26_vm0, %v1435_v42  ;;  %v1243_v12 = vadd.f32 %v2123_v60, %v2781_v35  ;;  %v1436_v5 = vadd.f32 %v1396_v61, %v88_v20 }
 0x194   :  { %v1894_v6 = vpack.c.bf16 %v1532_v62, %v1532_v62  ;;  %v1533_v21 = vmax.f32 %v1501_v31, 0.0  ;;  %v1499_v9 = vld [vmem:[#allocation2 + $0xc8] sm:$0xff] }
 0x195   :  { %v1892_v11 = vpack.c.bf16 %v1530_v8, %v1530_v8  ;;  %v1531_v29 = vmax.f32 %v1499_v9, 0.0  ;;  %v1437_v40 = vadd.f32 %v1401_v1, %v89_v0  ;;  %v1404_v3 = vadd.f32 %v2183_v51, %v1243_v12  ;;  %1468 = vst.msk [vmem:[#allocation2 + $0xe8] sm:$0xff] %vm26_vm0, %v1436_v5 }
 0x196   :  { %1693 = vst.msk [vmem:[%s3056_s3 + $0x68] sm:$0xf] %vm1666_vm1, %v1894_v6  ;;  %v1895_v33 = vpack.c.bf16 %v1533_v21, %v1533_v21 }
 0x197   :  { %1691 = vst.msk [vmem:[%s3056_s3 + $0x60] sm:$0xf] %vm1666_vm1, %v1892_v11  ;;  %v1893_v35 = vpack.c.bf16 %v1531_v29, %v1531_v29  ;;  %v1438_v16 = vadd.f32 %v1404_v3, %v90_v48 }
 0x198   :  { %1469 = vst.msk [vmem:[#allocation2 + $0xf0] sm:$0xff] %vm26_vm0, %v1437_v40 }
 0x199   :  { %1694 = vst.msk [vmem:[%s3056_s3 + $0x6c] sm:$0xf] %vm1666_vm1, %v1895_v33  ;;  %1692 = vst.msk [vmem:[%s3056_s3 + $0x64] sm:$0xf] %vm1666_vm1, %v1893_v35 }
 0x19a   :  { %1470 = vst.msk [vmem:[#allocation2 + $0xf8] sm:$0xff] %vm26_vm0, %v1438_v16  ;;  %v1502_v30 = vld [vmem:[#allocation2 + $0xe0] sm:$0xff] }
 0x19b   :  { %v1534_v59 = vmax.f32 %v1502_v30, 0.0 }
 0x19c   :  { %v1503_v18 = vld [vmem:[#allocation2 + $0xe8] sm:$0xff] }
 0x19d   :  { %v1896_v15 = vpack.c.bf16 %v1534_v59, %v1534_v59  ;;  %v1535_v38 = vmax.f32 %v1503_v18, 0.0 }
 0x19f   :  { %v1504_v7 = vld [vmem:[#allocation2 + $0xf0] sm:$0xff]  ;;  %1695 = vst.msk [vmem:[%s3056_s3 + $0x70] sm:$0xf] %vm1666_vm1, %v1896_v15  ;;  %v1897_v36 = vpack.c.bf16 %v1535_v38, %v1535_v38 }
 0x1a0   :  { %v1536_v25 = vmax.f32 %v1504_v7, 0.0 }
 0x1a1   :  { %v1505_v10 = vld [vmem:[#allocation2 + $0xf8] sm:$0xff]  ;;  %1696 = vst.msk [vmem:[%s3056_s3 + $0x74] sm:$0xf] %vm1666_vm1, %v1897_v36 }
 0x1a2   :  { %v1898_v27 = vpack.c.bf16 %v1536_v25, %v1536_v25  ;;  %v1537_v22 = vmax.f32 %v1505_v10, 0.0 }
 0x1a4   :  { %1697 = vst.msk [vmem:[%s3056_s3 + $0x78] sm:$0xf] %vm1666_vm1, %v1898_v27  ;;  %v1899_v57 = vpack.c.bf16 %v1537_v22, %v1537_v22 }
 0x1a6   :  { %1698 = vst.msk [vmem:[%s3056_s3 + $0x7c] sm:$0xf] %vm1666_vm1, %v1899_v57 }

// kernel: forward.11
= control target key start
LH: loop header
LB: loop body
LE: loop exit
PB: predicated region body
PF: predicated region fallthrough
CT: control target
= control target key end

     0   :  { %vm26_vm0 = vcmask 523264   ;;  %vm704_vm1 = vcmask 519168   ;;  %s1221_s1 = inlined_call_operand.vmem [shape: bf16[64,64], index: 1, kind: input, shape index: {}]   ;;  %s1222_s0 = inlined_call_operand.vmem [shape: bf16[256,64], index: 0, kind: input, shape index: {}]   ;;  %s1223_s2 = inlined_call_operand.vmem [shape: f32[1,64], index: 2, kind: input, shape index: {}]   ;;  %s1224_s3 = inlined_call_operand.vmem [shape: bf16[256,64], index: 3, kind: output, shape index: {}]  }
   0x1   :  { %v910_v0 = vld [vmem:[%s1221_s1] sm:$0xff]   ;;  %v911_v1 = vld [vmem:[%s1221_s1 + $0x8] sm:$0xff]   ;;  %v912_v2 = vld [vmem:[%s1221_s1 + $0x10] sm:$0xff]  }
   0x2   :  { %862 = vmatprep.subr.bf16.mxu0 %v910_v0  ;;  %902 = vmatprep.subr.bf16.mxu1 %v910_v0  ;;  %v914_v3 = vld [vmem:[%s1222_s0] sm:$0xff]   ;;  %v913_v5 = vld [vmem:[%s1221_s1 + $0x18] sm:$0xff]   ;;  %v916_v6 = vld [vmem:[%s1222_s0 + $0x8] sm:$0xff]  }
   0x3   :  { %863 = vmatpush3.bf16.msra.mxu0 %v910_v0  ;;  %906 = vmatpush3.bf16.msra.mxu1 %v910_v0  ;;  %v915_v4 = vld [vmem:[%s1222_s0 + $0x40] sm:$0xff]   ;;  %v917_v7 = vld [vmem:[%s1222_s0 + $0x48] sm:$0xff]   ;;  %v918_v8 = vld [vmem:[%s1222_s0 + $0x10] sm:$0xff]  }
   0x4   :  { %864 = vmatprep.subr.bf16.mxu0 %v911_v1  ;;  %903 = vmatprep.subr.bf16.mxu1 %v911_v1  ;;  %v919_v9 = vld [vmem:[%s1222_s0 + $0x50] sm:$0xff]   ;;  %v741_v10 = vld [vmem:[%s1223_s2] ss:$0 sm:$0xff]  ;;  %v920_v11 = vld [vmem:[%s1222_s0 + $0x18] sm:$0xff]  }
   0x5   :  { %870 = vmatprep.mubr.msk.bf16.mxu0 %vm26_vm0, %v914_v3  ;;  %886 = vmatprep.mubr.msk.bf16.mxu1 %vm26_vm0, %v915_v4  ;;  %29 = vst.msk [vmem:[#allocation2 + $0x10] sm:$0xff] %vm26_vm0, %v741_v10  ;;  %27 = vst.msk [vmem:[#allocation2] sm:$0xff] %vm26_vm0, %v741_v10  ;;  %v921_v12 = vld [vmem:[%s1222_s0 + $0x58] sm:$0xff]   ;;  %v922_v13 = vld [vmem:[%s1222_s0 + $0x20] sm:$0xff]  }
   0x6   :  { %28 = vst.msk [vmem:[#allocation2 + $0x8] sm:$0xff] %vm26_vm0, %v741_v10  ;;  %30 = vst.msk [vmem:[#allocation2 + $0x18] sm:$0xff] %vm26_vm0, %v741_v10  ;;  %v923_v14 = vld [vmem:[%s1222_s0 + $0x60] sm:$0xff]   ;;  %v924_v15 = vld [vmem:[%s1222_s0 + $0x28] sm:$0xff]  }
   0x7   :  { %865 = vmatpush3.bf16.msra.mxu0 %v911_v1  ;;  %907 = vmatpush3.bf16.msra.mxu1 %v911_v1  ;;  %31 = vst.msk [vmem:[#allocation2 + $0x20] sm:$0xff] %vm26_vm0, %v741_v10  ;;  %32 = vst.msk [vmem:[#allocation2 + $0x28] sm:$0xff] %vm26_vm0, %v741_v10  ;;  %v925_v16 = vld [vmem:[%s1222_s0 + $0x68] sm:$0xff]   ;;  %v926_v17 = vld [vmem:[%s1222_s0 + $0x30] sm:$0xff]  }
   0x8   :  { %866 = vmatprep.subr.bf16.mxu0 %v912_v2  ;;  %904 = vmatprep.subr.bf16.mxu1 %v912_v2  ;;  %33 = vst.msk [vmem:[#allocation2 + $0x30] sm:$0xff] %vm26_vm0, %v741_v10  ;;  %34 = vst.msk [vmem:[#allocation2 + $0x38] sm:$0xff] %vm26_vm0, %v741_v10  ;;  %v927_v18 = vld [vmem:[%s1222_s0 + $0x70] sm:$0xff]   ;;  %v928_v19 = vld [vmem:[%s1222_s0 + $0x38] sm:$0xff]  }
   0x9   :  { %35 = vst.msk [vmem:[#allocation2 + $0x40] sm:$0xff] %vm26_vm0, %v741_v10  ;;  %36 = vst.msk [vmem:[#allocation2 + $0x48] sm:$0xff] %vm26_vm0, %v741_v10  ;;  %v929_v20 = vld [vmem:[%s1222_s0 + $0x78] sm:$0xff]  }
   0xa   :  { %37 = vst.msk [vmem:[#allocation2 + $0x50] sm:$0xff] %vm26_vm0, %v741_v10  ;;  %38 = vst.msk [vmem:[#allocation2 + $0x58] sm:$0xff] %vm26_vm0, %v741_v10 }
   0xb   :  { %867 = vmatpush3.bf16.msra.mxu0 %v912_v2  ;;  %908 = vmatpush3.bf16.msra.mxu1 %v912_v2  ;;  %39 = vst.msk [vmem:[#allocation2 + $0x60] sm:$0xff] %vm26_vm0, %v741_v10  ;;  %40 = vst.msk [vmem:[#allocation2 + $0x68] sm:$0xff] %vm26_vm0, %v741_v10 }
   0xc   :  { %868 = vmatprep.subr.bf16.mxu0 %v913_v5  ;;  %905 = vmatprep.subr.bf16.mxu1 %v913_v5  ;;  %41 = vst.msk [vmem:[#allocation2 + $0x70] sm:$0xff] %vm26_vm0, %v741_v10  ;;  %42 = vst.msk [vmem:[#allocation2 + $0x78] sm:$0xff] %vm26_vm0, %v741_v10  ;;  %v61_v21 = vld [vmem:[#allocation2 + $0x10] sm:$0xff]  ;;  %v59_v23 = vld [vmem:[#allocation2] sm:$0xff] }
   0xd   :  { %43 = vst.msk [vmem:[#allocation2 + $0x80] sm:$0xff] %vm26_vm0, %v741_v10  ;;  %44 = vst.msk [vmem:[#allocation2 + $0x88] sm:$0xff] %vm26_vm0, %v741_v10  ;;  %v62_v27 = vld [vmem:[#allocation2 + $0x18] sm:$0xff]  ;;  %v60_v33 = vld [vmem:[#allocation2 + $0x8] sm:$0xff] }
   0xe   :  { %45 = vst.msk [vmem:[#allocation2 + $0x90] sm:$0xff] %vm26_vm0, %v741_v10  ;;  %46 = vst.msk [vmem:[#allocation2 + $0x98] sm:$0xff] %vm26_vm0, %v741_v10  ;;  %v63_v47 = vld [vmem:[#allocation2 + $0x20] sm:$0xff]  ;;  %v64_v57 = vld [vmem:[#allocation2 + $0x28] sm:$0xff] }
   0xf   :  { %869 = vmatpush3.bf16.msra.mxu0 %v913_v5  ;;  %909 = vmatpush3.bf16.msra.mxu1 %v913_v5  ;;  %47 = vst.msk [vmem:[#allocation2 + $0xa0] sm:$0xff] %vm26_vm0, %v741_v10  ;;  %48 = vst.msk [vmem:[#allocation2 + $0xa8] sm:$0xff] %vm26_vm0, %v741_v10  ;;  %v65_v45 = vld [vmem:[#allocation2 + $0x30] sm:$0xff]  ;;  %v66_v51 = vld [vmem:[#allocation2 + $0x38] sm:$0xff] }
  0x10   :  { %49 = vst.msk [vmem:[#allocation2 + $0xb0] sm:$0xff] %vm26_vm0, %v741_v10  ;;  %50 = vst.msk [vmem:[#allocation2 + $0xb8] sm:$0xff] %vm26_vm0, %v741_v10 }
  0x11   :  { %51 = vst.msk [vmem:[#allocation2 + $0xc0] sm:$0xff] %vm26_vm0, %v741_v10  ;;  %52 = vst.msk [vmem:[#allocation2 + $0xc8] sm:$0xff] %vm26_vm0, %v741_v10 }
  0x12   :  { %871 = vmatmul.mubr.msk.bf16.vlgmr.msra.gmra.mrb[0].mxu0 %vm26_vm0, %v916_v6  ;;  %887 = vmatmul.mubr.msk.bf16.vlgmr.msra.gmra.mrb[0].mxu1 %vm26_vm0, %v917_v7  ;;  %53 = vst.msk [vmem:[#allocation2 + $0xd0] sm:$0xff] %vm26_vm0, %v741_v10  ;;  %54 = vst.msk [vmem:[#allocation2 + $0xd8] sm:$0xff] %vm26_vm0, %v741_v10 }
  0x13   :  { %874 = vmatprep.mubr.msk.bf16.mxu0 %vm26_vm0, %v918_v8  ;;  %890 = vmatprep.mubr.msk.bf16.mxu1 %vm26_vm0, %v919_v9  ;;  %55 = vst.msk [vmem:[#allocation2 + $0xe0] sm:$0xff] %vm26_vm0, %v741_v10  ;;  %56 = vst.msk [vmem:[#allocation2 + $0xe8] sm:$0xff] %vm26_vm0, %v741_v10 }
  0x14   :  { %57 = vst.msk [vmem:[#allocation2 + $0xf0] sm:$0xff] %vm26_vm0, %v741_v10  ;;  %58 = vst.msk [vmem:[#allocation2 + $0xf8] sm:$0xff] %vm26_vm0, %v741_v10  ;;  %v75_v24 = vld [vmem:[#allocation2 + $0x80] sm:$0xff]  ;;  %v76_v34 = vld [vmem:[#allocation2 + $0x88] sm:$0xff] }
  0x15   :  { %v77_v22 = vld [vmem:[#allocation2 + $0x90] sm:$0xff]  ;;  %v78_v28 = vld [vmem:[#allocation2 + $0x98] sm:$0xff] }
  0x16   :  { %v79_v48 = vld [vmem:[#allocation2 + $0xa0] sm:$0xff]  ;;  %v80_v58 = vld [vmem:[#allocation2 + $0xa8] sm:$0xff] }
  0x17   :  { %v81_v46 = vld [vmem:[#allocation2 + $0xb0] sm:$0xff]  ;;  %v82_v52 = vld [vmem:[#allocation2 + $0xb8] sm:$0xff] }
  0x1a   :  { %875 = vmatmul.mubr.msk.bf16.gmra.mrb[4].mxu0 %vm26_vm0, %v920_v11  ;;  %891 = vmatmul.mubr.msk.bf16.gmra.mrb[4].mxu1 %vm26_vm0, %v921_v12 }
  0x1b   :  { %878 = vmatprep.mubr.msk.bf16.mxu0 %vm26_vm0, %v922_v13  ;;  %894 = vmatprep.mubr.msk.bf16.mxu1 %vm26_vm0, %v923_v14 }
  0x22   :  { %879 = vmatmul.mubr.msk.bf16.gmra.mrb[8].mxu0 %vm26_vm0, %v924_v15  ;;  %895 = vmatmul.mubr.msk.bf16.gmra.mrb[8].mxu1 %vm26_vm0, %v925_v16 }
  0x23   :  { %882 = vmatprep.mubr.msk.bf16.mxu0 %vm26_vm0, %v926_v17  ;;  %898 = vmatprep.mubr.msk.bf16.mxu1 %vm26_vm0, %v927_v18 }
  0x2a   :  { %883 = vmatmul.mubr.msk.bf16.gmra.mrb[12].mxu0 %vm26_vm0, %v928_v19  ;;  %899 = vmatmul.mubr.msk.bf16.gmra.mrb[12].mxu1 %vm26_vm0, %v929_v20 }
  0xe5   :  { %v872_v25 = vpop.f32.mrb[0].mxu0  ;;  %v888_v26 = vpop.f32.mrb[0].mxu1 }
  0xe6   :  { %v447_v29 = vadd.f32 %v872_v25, %v61_v21  ;;  %v463_v30 = vadd.f32 %v888_v26, %v77_v22  ;;  %v318_v31 = vpop.f32.mrb[1].mxu0  ;;  %v382_v32 = vpop.f32.mrb[1].mxu1  ;;  %v69_v25 = vld [vmem:[#allocation2 + $0x50] sm:$0xff] }
  0xe7   :  { %v445_v35 = vadd.f32 %v318_v31, %v59_v23  ;;  %v461_v36 = vadd.f32 %v382_v32, %v75_v24  ;;  %v873_v37 = vpop.f32.mrb[2].mxu0  ;;  %v889_v38 = vpop.f32.mrb[2].mxu1  ;;  %v85_v26 = vld [vmem:[#allocation2 + $0xd0] sm:$0xff] }
  0xe8   :  { %479 = vst.msk [vmem:[#allocation2 + $0x10] sm:$0xff] %vm26_vm0, %v447_v29  ;;  %495 = vst.msk [vmem:[#allocation2 + $0x90] sm:$0xff] %vm26_vm0, %v463_v30  ;;  %v448_v39 = vadd.f32 %v873_v37, %v62_v27  ;;  %v464_v40 = vadd.f32 %v889_v38, %v78_v28  ;;  %v321_v41 = vpop.f32.mrb[3].mxu0  ;;  %v385_v42 = vpop.f32.mrb[3].mxu1  ;;  %v67_v29 = vld [vmem:[#allocation2 + $0x40] sm:$0xff] }
  0xe9   :  { %477 = vst.msk [vmem:[#allocation2] sm:$0xff] %vm26_vm0, %v445_v35  ;;  %493 = vst.msk [vmem:[#allocation2 + $0x80] sm:$0xff] %vm26_vm0, %v461_v36  ;;  %v446_v43 = vadd.f32 %v321_v41, %v60_v33  ;;  %v462_v44 = vadd.f32 %v385_v42, %v76_v34  ;;  %v83_v30 = vld [vmem:[#allocation2 + $0xc0] sm:$0xff]  ;;  %v70_v35 = vld [vmem:[#allocation2 + $0x58] sm:$0xff] }
  0xea   :  { %480 = vst.msk [vmem:[#allocation2 + $0x18] sm:$0xff] %vm26_vm0, %v448_v39  ;;  %496 = vst.msk [vmem:[#allocation2 + $0x98] sm:$0xff] %vm26_vm0, %v464_v40  ;;  %v86_v36 = vld [vmem:[#allocation2 + $0xd8] sm:$0xff]  ;;  %v68_v41 = vld [vmem:[#allocation2 + $0x48] sm:$0xff] }
  0xeb   :  { %478 = vst.msk [vmem:[#allocation2 + $0x8] sm:$0xff] %vm26_vm0, %v446_v43  ;;  %494 = vst.msk [vmem:[#allocation2 + $0x88] sm:$0xff] %vm26_vm0, %v462_v44  ;;  %v84_v42 = vld [vmem:[#allocation2 + $0xc8] sm:$0xff] }
  0xed   :  { %v876_v49 = vpop.f32.mrb[4].mxu0  ;;  %v892_v50 = vpop.f32.mrb[4].mxu1 }
  0xee   :  { %v451_v53 = vadd.f32 %v876_v49, %v65_v45  ;;  %v467_v54 = vadd.f32 %v892_v50, %v81_v46  ;;  %v334_v55 = vpop.f32.mrb[5].mxu0  ;;  %v398_v56 = vpop.f32.mrb[5].mxu1 }
  0xef   :  { %v514_v59 = vld [vmem:[#allocation2 + $0x10] sm:$0xff]  ;;  %v449_v61 = vadd.f32 %v334_v55, %v63_v47  ;;  %v465_v62 = vadd.f32 %v398_v56, %v79_v48  ;;  %v877_v63 = vpop.f32.mrb[6].mxu0  ;;  %v893_v0 = vpop.f32.mrb[6].mxu1 }
  0xf0   :  { %v530_v60 = vld [vmem:[#allocation2 + $0x90] sm:$0xff]  ;;  %v546_v1 = vmax.f32 %v514_v59, 0.0  ;;  %v512_v3 = vld [vmem:[#allocation2] sm:$0xff]  ;;  %483 = vst.msk [vmem:[#allocation2 + $0x30] sm:$0xff] %vm26_vm0, %v451_v53  ;;  %499 = vst.msk [vmem:[#allocation2 + $0xb0] sm:$0xff] %vm26_vm0, %v467_v54  ;;  %v452_v5 = vadd.f32 %v877_v63, %v66_v51  ;;  %v468_v6 = vadd.f32 %v893_v0, %v82_v52  ;;  %v337_v7 = vpop.f32.mrb[7].mxu0 }
  0xf1   :  { %v562_v2 = vmax.f32 %v530_v60, 0.0  ;;  %v528_v4 = vld [vmem:[#allocation2 + $0x80] sm:$0xff]  ;;  %v401_v8 = vpop.f32.mrb[7].mxu1  ;;  %v544_v9 = vmax.f32 %v512_v3, 0.0  ;;  %v515_v11 = vld [vmem:[#allocation2 + $0x18] sm:$0xff]  ;;  %481 = vst.msk [vmem:[#allocation2 + $0x20] sm:$0xff] %vm26_vm0, %v449_v61  ;;  %v450_v13 = vadd.f32 %v337_v7, %v64_v57 }
  0xf2   :  { %v560_v10 = vmax.f32 %v528_v4, 0.0  ;;  %v531_v12 = vld [vmem:[#allocation2 + $0x98] sm:$0xff]  ;;  %497 = vst.msk [vmem:[#allocation2 + $0xa0] sm:$0xff] %vm26_vm0, %v465_v62  ;;  %v466_v14 = vadd.f32 %v401_v8, %v80_v58  ;;  %v812_v15 = vpack.c.bf16 %v546_v1, %v546_v1  ;;  %v547_v17 = vmax.f32 %v515_v11, 0.0  ;;  %v513_v19 = vld [vmem:[#allocation2 + $0x8] sm:$0xff]  ;;  %484 = vst.msk [vmem:[#allocation2 + $0x38] sm:$0xff] %vm26_vm0, %v452_v5 }
  0xf3   :  { %v828_v16 = vpack.c.bf16 %v562_v2, %v562_v2  ;;  %v563_v18 = vmax.f32 %v531_v12, 0.0  ;;  %v529_v20 = vld [vmem:[#allocation2 + $0x88] sm:$0xff]  ;;  %500 = vst.msk [vmem:[#allocation2 + $0xb8] sm:$0xff] %vm26_vm0, %v468_v6  ;;  %v810_v21 = vpack.c.bf16 %v544_v9, %v544_v9  ;;  %v545_v23 = vmax.f32 %v513_v19, 0.0  ;;  %482 = vst.msk [vmem:[#allocation2 + $0x28] sm:$0xff] %vm26_vm0, %v450_v13  ;;  %v73_v9 = vld [vmem:[#allocation2 + $0x70] sm:$0xff] }
  0xf4   :  { %v826_v22 = vpack.c.bf16 %v560_v10, %v560_v10  ;;  %v561_v24 = vmax.f32 %v529_v20, 0.0  ;;  %498 = vst.msk [vmem:[#allocation2 + $0xa8] sm:$0xff] %vm26_vm0, %v466_v14  ;;  %v813_v27 = vpack.c.bf16 %v547_v17, %v547_v17  ;;  %v89_v10 = vld [vmem:[#allocation2 + $0xf0] sm:$0xff]  ;;  %v71_v13 = vld [vmem:[#allocation2 + $0x60] sm:$0xff]  ;;  %v74_v19 = vld [vmem:[#allocation2 + $0x78] sm:$0xff] }
  0xf5   :  { %707 = vst.msk [vmem:[%s1224_s3 + $0x8] sm:$0xf] %vm704_vm1, %v812_v15  ;;  %723 = vst.msk [vmem:[%s1224_s3 + $0x48] sm:$0xf] %vm704_vm1, %v828_v16  ;;  %v829_v28 = vpack.c.bf16 %v563_v18, %v563_v18  ;;  %v811_v31 = vpack.c.bf16 %v545_v23, %v545_v23  ;;  %v880_v33 = vpop.f32.mrb[8].mxu0  ;;  %v896_v34 = vpop.f32.mrb[8].mxu1 }
  0xf6   :  { %705 = vst.msk [vmem:[%s1224_s3] sm:$0xf] %vm704_vm1, %v810_v21  ;;  %721 = vst.msk [vmem:[%s1224_s3 + $0x40] sm:$0xf] %vm704_vm1, %v826_v22  ;;  %v827_v32 = vpack.c.bf16 %v561_v24, %v561_v24  ;;  %v455_v37 = vadd.f32 %v880_v33, %v69_v25  ;;  %v471_v38 = vadd.f32 %v896_v34, %v85_v26  ;;  %v350_v39 = vpop.f32.mrb[9].mxu0  ;;  %v414_v40 = vpop.f32.mrb[9].mxu1 }
  0xf7   :  { %708 = vst.msk [vmem:[%s1224_s3 + $0xc] sm:$0xf] %vm704_vm1, %v813_v27  ;;  %724 = vst.msk [vmem:[%s1224_s3 + $0x4c] sm:$0xf] %vm704_vm1, %v829_v28  ;;  %v518_v43 = vld [vmem:[#allocation2 + $0x30] sm:$0xff]  ;;  %v453_v45 = vadd.f32 %v350_v39, %v67_v29  ;;  %v469_v46 = vadd.f32 %v414_v40, %v83_v30  ;;  %v881_v47 = vpop.f32.mrb[10].mxu0 }
  0xf8   :  { %706 = vst.msk [vmem:[%s1224_s3 + $0x4] sm:$0xf] %vm704_vm1, %v811_v31  ;;  %722 = vst.msk [vmem:[%s1224_s3 + $0x44] sm:$0xf] %vm704_vm1, %v827_v32  ;;  %v534_v44 = vld [vmem:[#allocation2 + $0xb0] sm:$0xff]  ;;  %v897_v48 = vpop.f32.mrb[10].mxu1  ;;  %v456_v53 = vadd.f32 %v881_v47, %v70_v35 }
  0xf9   :  { %v550_v49 = vmax.f32 %v518_v43, 0.0  ;;  %v566_v50 = vmax.f32 %v534_v44, 0.0  ;;  %v516_v51 = vld [vmem:[#allocation2 + $0x20] sm:$0xff]  ;;  %487 = vst.msk [vmem:[#allocation2 + $0x50] sm:$0xff] %vm26_vm0, %v455_v37  ;;  %503 = vst.msk [vmem:[#allocation2 + $0xd0] sm:$0xff] %vm26_vm0, %v471_v38  ;;  %v472_v54 = vadd.f32 %v897_v48, %v86_v36  ;;  %v353_v55 = vpop.f32.mrb[11].mxu0 }
  0xfa   :  { %v532_v52 = vld [vmem:[#allocation2 + $0xa0] sm:$0xff]  ;;  %v417_v56 = vpop.f32.mrb[11].mxu1  ;;  %v548_v57 = vmax.f32 %v516_v51, 0.0  ;;  %v519_v59 = vld [vmem:[#allocation2 + $0x38] sm:$0xff]  ;;  %485 = vst.msk [vmem:[#allocation2 + $0x40] sm:$0xff] %vm26_vm0, %v453_v45  ;;  %501 = vst.msk [vmem:[#allocation2 + $0xc0] sm:$0xff] %vm26_vm0, %v469_v46  ;;  %v454_v61 = vadd.f32 %v353_v55, %v68_v41 }
  0xfb   :  { %v564_v58 = vmax.f32 %v532_v52, 0.0  ;;  %v535_v60 = vld [vmem:[#allocation2 + $0xb8] sm:$0xff]  ;;  %v470_v62 = vadd.f32 %v417_v56, %v84_v42  ;;  %v816_v63 = vpack.c.bf16 %v550_v49, %v550_v49  ;;  %v832_v0 = vpack.c.bf16 %v566_v50, %v566_v50  ;;  %v517_v3 = vld [vmem:[#allocation2 + $0x28] sm:$0xff]  ;;  %488 = vst.msk [vmem:[#allocation2 + $0x58] sm:$0xff] %vm26_vm0, %v456_v53  ;;  %504 = vst.msk [vmem:[#allocation2 + $0xd8] sm:$0xff] %vm26_vm0, %v472_v54 }
  0xfc   :  { %v551_v1 = vmax.f32 %v519_v59, 0.0  ;;  %v567_v2 = vmax.f32 %v535_v60, 0.0  ;;  %v533_v4 = vld [vmem:[#allocation2 + $0xa8] sm:$0xff]  ;;  %v814_v5 = vpack.c.bf16 %v548_v57, %v548_v57  ;;  %v549_v7 = vmax.f32 %v517_v3, 0.0  ;;  %486 = vst.msk [vmem:[#allocation2 + $0x48] sm:$0xff] %vm26_vm0, %v454_v61  ;;  %v87_v14 = vld [vmem:[#allocation2 + $0xe0] sm:$0xff] }
  0xfd   :  { %v830_v6 = vpack.c.bf16 %v564_v58, %v564_v58  ;;  %v565_v8 = vmax.f32 %v533_v4, 0.0  ;;  %502 = vst.msk [vmem:[#allocation2 + $0xc8] sm:$0xff] %vm26_vm0, %v470_v62  ;;  %v884_v17 = vpop.f32.mrb[12].mxu0  ;;  %v900_v18 = vpop.f32.mrb[12].mxu1  ;;  %v90_v20 = vld [vmem:[#allocation2 + $0xf8] sm:$0xff]  ;;  %v72_v25 = vld [vmem:[#allocation2 + $0x68] sm:$0xff] }
  0xfe   :  { %711 = vst.msk [vmem:[%s1224_s3 + $0x18] sm:$0xf] %vm704_vm1, %v816_v63  ;;  %727 = vst.msk [vmem:[%s1224_s3 + $0x58] sm:$0xf] %vm704_vm1, %v832_v0  ;;  %v817_v11 = vpack.c.bf16 %v551_v1, %v551_v1  ;;  %v833_v12 = vpack.c.bf16 %v567_v2, %v567_v2  ;;  %v815_v15 = vpack.c.bf16 %v549_v7, %v549_v7  ;;  %v366_v23 = vpop.f32.mrb[13].mxu0  ;;  %v430_v24 = vpop.f32.mrb[13].mxu1 }
  0xff   :  { %709 = vst.msk [vmem:[%s1224_s3 + $0x10] sm:$0xf] %vm704_vm1, %v814_v5  ;;  %725 = vst.msk [vmem:[%s1224_s3 + $0x50] sm:$0xf] %vm704_vm1, %v830_v6  ;;  %v831_v16 = vpack.c.bf16 %v565_v8, %v565_v8  ;;  %v459_v21 = vadd.f32 %v884_v17, %v73_v9  ;;  %v475_v22 = vadd.f32 %v900_v18, %v89_v10  ;;  %v88_v26 = vld [vmem:[#allocation2 + $0xe8] sm:$0xff]  ;;  %v885_v31 = vpop.f32.mrb[14].mxu0 }
 0x100   :  { %712 = vst.msk [vmem:[%s1224_s3 + $0x1c] sm:$0xf] %vm704_vm1, %v817_v11  ;;  %728 = vst.msk [vmem:[%s1224_s3 + $0x5c] sm:$0xf] %vm704_vm1, %v833_v12  ;;  %v522_v27 = vld [vmem:[#allocation2 + $0x50] sm:$0xff]  ;;  %v457_v29 = vadd.f32 %v366_v23, %v71_v13  ;;  %v473_v30 = vadd.f32 %v430_v24, %v87_v14  ;;  %v901_v32 = vpop.f32.mrb[14].mxu1  ;;  %v460_v37 = vadd.f32 %v885_v31, %v74_v19 }
 0x101   :  { %710 = vst.msk [vmem:[%s1224_s3 + $0x14] sm:$0xf] %vm704_vm1, %v815_v15  ;;  %726 = vst.msk [vmem:[%s1224_s3 + $0x54] sm:$0xf] %vm704_vm1, %v831_v16  ;;  %v538_v28 = vld [vmem:[#allocation2 + $0xd0] sm:$0xff]  ;;  %v554_v33 = vmax.f32 %v522_v27, 0.0  ;;  %v476_v38 = vadd.f32 %v901_v32, %v90_v20 }
 0x102   :  { %v570_v34 = vmax.f32 %v538_v28, 0.0  ;;  %v520_v35 = vld [vmem:[#allocation2 + $0x40] sm:$0xff]  ;;  %491 = vst.msk [vmem:[#allocation2 + $0x70] sm:$0xff] %vm26_vm0, %v459_v21  ;;  %507 = vst.msk [vmem:[#allocation2 + $0xf0] sm:$0xff] %vm26_vm0, %v475_v22  ;;  %v369_v39 = vpop.f32.mrb[15].mxu0  ;;  %v433_v40 = vpop.f32.mrb[15].mxu1 }
 0x103   :  { %v536_v36 = vld [vmem:[#allocation2 + $0xc0] sm:$0xff]  ;;  %v552_v41 = vmax.f32 %v520_v35, 0.0  ;;  %v523_v43 = vld [vmem:[#allocation2 + $0x58] sm:$0xff]  ;;  %489 = vst.msk [vmem:[#allocation2 + $0x60] sm:$0xff] %vm26_vm0, %v457_v29  ;;  %505 = vst.msk [vmem:[#allocation2 + $0xe0] sm:$0xff] %vm26_vm0, %v473_v30  ;;  %v458_v45 = vadd.f32 %v369_v39, %v72_v25  ;;  %v474_v46 = vadd.f32 %v433_v40, %v88_v26  ;;  %v820_v47 = vpack.c.bf16 %v554_v33, %v554_v33 }
 0x104   :  { %v568_v42 = vmax.f32 %v536_v36, 0.0  ;;  %v539_v44 = vld [vmem:[#allocation2 + $0xd8] sm:$0xff]  ;;  %v836_v48 = vpack.c.bf16 %v570_v34, %v570_v34  ;;  %v555_v49 = vmax.f32 %v523_v43, 0.0  ;;  %v521_v51 = vld [vmem:[#allocation2 + $0x48] sm:$0xff]  ;;  %492 = vst.msk [vmem:[#allocation2 + $0x78] sm:$0xff] %vm26_vm0, %v460_v37  ;;  %508 = vst.msk [vmem:[#allocation2 + $0xf8] sm:$0xff] %vm26_vm0, %v476_v38 }
 0x105   :  { %v571_v50 = vmax.f32 %v539_v44, 0.0  ;;  %v537_v52 = vld [vmem:[#allocation2 + $0xc8] sm:$0xff]  ;;  %v818_v53 = vpack.c.bf16 %v552_v41, %v552_v41  ;;  %v553_v55 = vmax.f32 %v521_v51, 0.0  ;;  %490 = vst.msk [vmem:[#allocation2 + $0x68] sm:$0xff] %vm26_vm0, %v458_v45  ;;  %506 = vst.msk [vmem:[#allocation2 + $0xe8] sm:$0xff] %vm26_vm0, %v474_v46 }
 0x106   :  { %v834_v54 = vpack.c.bf16 %v568_v42, %v568_v42  ;;  %v569_v56 = vmax.f32 %v537_v52, 0.0  ;;  %715 = vst.msk [vmem:[%s1224_s3 + $0x28] sm:$0xf] %vm704_vm1, %v820_v47  ;;  %731 = vst.msk [vmem:[%s1224_s3 + $0x68] sm:$0xf] %vm704_vm1, %v836_v48  ;;  %v821_v57 = vpack.c.bf16 %v555_v49, %v555_v49 }
 0x107   :  { %v837_v58 = vpack.c.bf16 %v571_v50, %v571_v50  ;;  %713 = vst.msk [vmem:[%s1224_s3 + $0x20] sm:$0xf] %vm704_vm1, %v818_v53  ;;  %v819_v59 = vpack.c.bf16 %v553_v55, %v553_v55 }
 0x108   :  { %729 = vst.msk [vmem:[%s1224_s3 + $0x60] sm:$0xf] %vm704_vm1, %v834_v54  ;;  %v835_v60 = vpack.c.bf16 %v569_v56, %v569_v56  ;;  %716 = vst.msk [vmem:[%s1224_s3 + $0x2c] sm:$0xf] %vm704_vm1, %v821_v57 }
 0x109   :  { %732 = vst.msk [vmem:[%s1224_s3 + $0x6c] sm:$0xf] %vm704_vm1, %v837_v58  ;;  %714 = vst.msk [vmem:[%s1224_s3 + $0x24] sm:$0xf] %vm704_vm1, %v819_v59  ;;  %v526_v61 = vld [vmem:[#allocation2 + $0x70] sm:$0xff] }
 0x10a   :  { %730 = vst.msk [vmem:[%s1224_s3 + $0x64] sm:$0xf] %vm704_vm1, %v835_v60  ;;  %v542_v62 = vld [vmem:[#allocation2 + $0xf0] sm:$0xff]  ;;  %v558_v63 = vmax.f32 %v526_v61, 0.0  ;;  %v524_v1 = vld [vmem:[#allocation2 + $0x60] sm:$0xff] }
 0x10b   :  { %v574_v0 = vmax.f32 %v542_v62, 0.0  ;;  %v540_v2 = vld [vmem:[#allocation2 + $0xe0] sm:$0xff]  ;;  %v556_v3 = vmax.f32 %v524_v1, 0.0  ;;  %v527_v5 = vld [vmem:[#allocation2 + $0x78] sm:$0xff] }
 0x10c   :  { %v572_v4 = vmax.f32 %v540_v2, 0.0  ;;  %v543_v6 = vld [vmem:[#allocation2 + $0xf8] sm:$0xff]  ;;  %v824_v7 = vpack.c.bf16 %v558_v63, %v558_v63  ;;  %v559_v9 = vmax.f32 %v527_v5, 0.0  ;;  %v525_v11 = vld [vmem:[#allocation2 + $0x68] sm:$0xff] }
 0x10d   :  { %v840_v8 = vpack.c.bf16 %v574_v0, %v574_v0  ;;  %v575_v10 = vmax.f32 %v543_v6, 0.0  ;;  %v541_v12 = vld [vmem:[#allocation2 + $0xe8] sm:$0xff]  ;;  %v822_v13 = vpack.c.bf16 %v556_v3, %v556_v3  ;;  %v557_v15 = vmax.f32 %v525_v11, 0.0 }
 0x10e   :  { %v838_v14 = vpack.c.bf16 %v572_v4, %v572_v4  ;;  %v573_v16 = vmax.f32 %v541_v12, 0.0  ;;  %719 = vst.msk [vmem:[%s1224_s3 + $0x38] sm:$0xf] %vm704_vm1, %v824_v7  ;;  %v825_v17 = vpack.c.bf16 %v559_v9, %v559_v9 }
 0x10f   :  { %735 = vst.msk [vmem:[%s1224_s3 + $0x78] sm:$0xf] %vm704_vm1, %v840_v8  ;;  %v841_v18 = vpack.c.bf16 %v575_v10, %v575_v10  ;;  %717 = vst.msk [vmem:[%s1224_s3 + $0x30] sm:$0xf] %vm704_vm1, %v822_v13  ;;  %v823_v19 = vpack.c.bf16 %v557_v15, %v557_v15 }
 0x110   :  { %733 = vst.msk [vmem:[%s1224_s3 + $0x70] sm:$0xf] %vm704_vm1, %v838_v14  ;;  %v839_v20 = vpack.c.bf16 %v573_v16, %v573_v16  ;;  %720 = vst.msk [vmem:[%s1224_s3 + $0x3c] sm:$0xf] %vm704_vm1, %v825_v17 }
 0x111   :  { %736 = vst.msk [vmem:[%s1224_s3 + $0x7c] sm:$0xf] %vm704_vm1, %v841_v18  ;;  %718 = vst.msk [vmem:[%s1224_s3 + $0x34] sm:$0xf] %vm704_vm1, %v823_v19 }
 0x112   :  { %734 = vst.msk [vmem:[%s1224_s3 + $0x74] sm:$0xf] %vm704_vm1, %v839_v20 }

// kernel: forward.15
= control target key start
LH: loop header
LB: loop body
LE: loop exit
PB: predicated region body
PF: predicated region fallthrough
CT: control target
= control target key end

     0   :  { %vm184_vm0 = vcmask 523264   ;;  %s2968_s4 = inlined_call_operand.vmem [shape: bf16[64,128], index: 4, kind: input, shape index: {}]   ;;  %s2969_s6 = inlined_call_operand.vmem [shape: bf16[64,128], index: 6, kind: input, shape index: {}]   ;;  %s2970_s0 = inlined_call_operand.vmem [shape: bf16[256,64], index: 0, kind: input, shape index: {}]   ;;  %s2971_s2 = inlined_call_operand.vmem [shape: bf16[256,64], index: 2, kind: input, shape index: {}]   ;;  %s2972_s5 = inlined_call_operand.vmem [shape: bf16[64,128], index: 5, kind: input, shape index: {}]   ;;  %s2973_s7 = inlined_call_operand.vmem [shape: bf16[64,128], index: 7, kind: input, shape index: {}]   ;;  %s2974_s1 = inlined_call_operand.vmem [shape: bf16[256,64], index: 1, kind: input, shape index: {}]   ;;  %s2975_s3 = inlined_call_operand.vmem [shape: bf16[256,64], index: 3, kind: input, shape index: {}]   ;;  %s2976_s8 = inlined_call_operand.vmem [shape: f32[1,128], index: 8, kind: input, shape index: {}]   ;;  %s2977_s9 = inlined_call_operand.vmem [shape: bf16[256,128], index: 9, kind: output, shape index: {}]  }
   0x1   :  { %v2449_v0 = vld [vmem:[%s2968_s4] sm:$0xff]   ;;  %v2451_v2 = vld [vmem:[%s2968_s4 + $0x8] sm:$0xff]   ;;  %v2453_v4 = vld [vmem:[%s2968_s4 + $0x10] sm:$0xff]  }
   0x2   :  { %v2450_v1 = vld [vmem:[%s2969_s6] sm:$0xff]   ;;  %2161 = vmatprep.subr.bf16.mxu1 %v2449_v0  ;;  %v2452_v3 = vld [vmem:[%s2969_s6 + $0x8] sm:$0xff]   ;;  %v2454_v5 = vld [vmem:[%s2969_s6 + $0x10] sm:$0xff]  }
   0x3   :  { %2241 = vmatprep.subr.bf16.mxu0 %v2450_v1  ;;  %2162 = vmatpush3.bf16.msra.mxu1 %v2449_v0  ;;  %v2455_v6 = vld [vmem:[%s2968_s4 + $0x18] sm:$0xff]   ;;  %v2457_v8 = vld [vmem:[%s2970_s0] sm:$0xff]   ;;  %v2459_v12 = vld [vmem:[%s2970_s0 + $0x8] sm:$0xff]  }
   0x4   :  { %2242 = vmatpush3.bf16.msra.mxu0 %v2450_v1  ;;  %2163 = vmatprep.subr.bf16.mxu1 %v2451_v2  ;;  %v2456_v7 = vld [vmem:[%s2969_s6 + $0x18] sm:$0xff]   ;;  %v2458_v9 = vld [vmem:[%s2971_s2] sm:$0xff]   ;;  %v2461_v13 = vld [vmem:[%s2971_s2 + $0x8] sm:$0xff]  }
   0x5   :  { %2243 = vmatprep.subr.bf16.mxu0 %v2452_v3  ;;  %2169 = vmatprep.mubr.msk.bf16.mxu1 %vm184_vm0, %v2457_v8  ;;  %v2460_v10 = vld [vmem:[%s2972_s5] sm:$0xff]   ;;  %v2463_v14 = vld [vmem:[%s2970_s0 + $0x10] sm:$0xff]   ;;  %v2465_v16 = vld [vmem:[%s2970_s0 + $0x18] sm:$0xff]  }
   0x6   :  { %2249 = vmatprep.mubr.msk.bf16.mxu0 %vm184_vm0, %v2458_v9  ;;  %v2462_v11 = vld [vmem:[%s2973_s7] sm:$0xff]   ;;  %v2464_v15 = vld [vmem:[%s2971_s2 + $0x10] sm:$0xff]   ;;  %v2466_v17 = vld [vmem:[%s2971_s2 + $0x18] sm:$0xff]  }
   0x7   :  { %2164 = vmatpush3.bf16.msra.mxu1 %v2451_v2  ;;  %v2470_v18 = vld [vmem:[%s2972_s5 + $0x8] sm:$0xff]   ;;  %v2467_v19 = vld [vmem:[%s2970_s0 + $0x20] sm:$0xff]   ;;  %v2473_v24 = vld [vmem:[%s2970_s0 + $0x30] sm:$0xff]  }
   0x8   :  { %2244 = vmatpush3.bf16.msra.mxu0 %v2452_v3  ;;  %2165 = vmatprep.subr.bf16.mxu1 %v2453_v4  ;;  %v2472_v20 = vld [vmem:[%s2973_s7 + $0x8] sm:$0xff]   ;;  %v2468_v21 = vld [vmem:[%s2971_s2 + $0x20] sm:$0xff]   ;;  %v2480_v25 = vld [vmem:[%s2972_s5 + $0x10] sm:$0xff]  }
   0x9   :  { %2245 = vmatprep.subr.bf16.mxu0 %v2454_v5  ;;  %v2469_v22 = vld [vmem:[%s2970_s0 + $0x28] sm:$0xff]   ;;  %v2474_v26 = vld [vmem:[%s2971_s2 + $0x30] sm:$0xff]   ;;  %v2475_v28 = vld [vmem:[%s2970_s0 + $0x38] sm:$0xff]  }
   0xa   :  { %v2471_v23 = vld [vmem:[%s2971_s2 + $0x28] sm:$0xff]   ;;  %v2482_v27 = vld [vmem:[%s2973_s7 + $0x10] sm:$0xff]   ;;  %v2476_v29 = vld [vmem:[%s2971_s2 + $0x38] sm:$0xff]  }
   0xb   :  { %2166 = vmatpush3.bf16.msra.mxu1 %v2453_v4  ;;  %v2477_v30 = vld [vmem:[%s2970_s0 + $0x40] sm:$0xff]   ;;  %v2490_v32 = vld [vmem:[%s2972_s5 + $0x18] sm:$0xff]   ;;  %v2479_v34 = vld [vmem:[%s2970_s0 + $0x48] sm:$0xff]  }
   0xc   :  { %2246 = vmatpush3.bf16.msra.mxu0 %v2454_v5  ;;  %2167 = vmatprep.subr.bf16.mxu1 %v2455_v6  ;;  %v2478_v31 = vld [vmem:[%s2971_s2 + $0x40] sm:$0xff]   ;;  %v2492_v33 = vld [vmem:[%s2973_s7 + $0x18] sm:$0xff]   ;;  %v2481_v35 = vld [vmem:[%s2971_s2 + $0x48] sm:$0xff]  }
   0xd   :  { %2247 = vmatprep.subr.bf16.mxu0 %v2456_v7  ;;  %v2483_v36 = vld [vmem:[%s2970_s0 + $0x50] sm:$0xff]   ;;  %v2485_v38 = vld [vmem:[%s2970_s0 + $0x58] sm:$0xff]   ;;  %v2487_v40 = vld [vmem:[%s2970_s0 + $0x60] sm:$0xff]  }
   0xe   :  { %v2484_v37 = vld [vmem:[%s2971_s2 + $0x50] sm:$0xff]   ;;  %v2486_v39 = vld [vmem:[%s2971_s2 + $0x58] sm:$0xff]   ;;  %v2488_v41 = vld [vmem:[%s2971_s2 + $0x60] sm:$0xff]  }
   0xf   :  { %2168 = vmatpush3.bf16.msra.mxu1 %v2455_v6  ;;  %v2489_v42 = vld [vmem:[%s2970_s0 + $0x68] sm:$0xff]   ;;  %v2493_v44 = vld [vmem:[%s2970_s0 + $0x70] sm:$0xff]   ;;  %v2495_v46 = vld [vmem:[%s2970_s0 + $0x78] sm:$0xff]  }
  0x10   :  { %2248 = vmatpush3.bf16.msra.mxu0 %v2456_v7  ;;  %2201 = vmatprep.subr.bf16.mxu1 %v2460_v10  ;;  %v2491_v43 = vld [vmem:[%s2971_s2 + $0x68] sm:$0xff]   ;;  %v2494_v45 = vld [vmem:[%s2971_s2 + $0x70] sm:$0xff]   ;;  %v2496_v47 = vld [vmem:[%s2971_s2 + $0x78] sm:$0xff]  }
  0x11   :  { %2281 = vmatprep.subr.bf16.mxu0 %v2462_v11  ;;  %v2497_v48 = vld [vmem:[%s2974_s1] sm:$0xff]   ;;  %v2499_v50 = vld [vmem:[%s2974_s1 + $0x8] sm:$0xff]   ;;  %v2501_v52 = vld [vmem:[%s2974_s1 + $0x10] sm:$0xff]  }
  0x12   :  { %2170 = vmatmul.mubr.msk.bf16.vlgmr.msra.gmra.mrb[0].mxu1 %vm184_vm0, %v2459_v12  ;;  %v2498_v49 = vld [vmem:[%s2975_s3] sm:$0xff]   ;;  %v2500_v51 = vld [vmem:[%s2975_s3 + $0x8] sm:$0xff]   ;;  %v2502_v53 = vld [vmem:[%s2975_s3 + $0x10] sm:$0xff]  }
  0x13   :  { %2250 = vmatmul.mubr.msk.bf16.vlgmr.msra.gmra.mrb[0].mxu0 %vm184_vm0, %v2461_v13  ;;  %2202 = vmatpush3.bf16.msra.mxu1 %v2460_v10  ;;  %v2503_v54 = vld [vmem:[%s2974_s1 + $0x18] sm:$0xff]   ;;  %v2505_v56 = vld [vmem:[%s2974_s1 + $0x20] sm:$0xff]   ;;  %v2507_v58 = vld [vmem:[%s2974_s1 + $0x28] sm:$0xff]  }
  0x14   :  { %2282 = vmatpush3.bf16.msra.mxu0 %v2462_v11  ;;  %2173 = vmatprep.mubr.msk.bf16.mxu1 %vm184_vm0, %v2463_v14  ;;  %v2504_v55 = vld [vmem:[%s2975_s3 + $0x18] sm:$0xff]   ;;  %v2506_v57 = vld [vmem:[%s2975_s3 + $0x20] sm:$0xff]   ;;  %v2508_v59 = vld [vmem:[%s2975_s3 + $0x28] sm:$0xff]  }
  0x15   :  { %2253 = vmatprep.mubr.msk.bf16.mxu0 %vm184_vm0, %v2464_v15  ;;  %2203 = vmatprep.subr.bf16.mxu1 %v2470_v18  ;;  %v2509_v60 = vld [vmem:[%s2974_s1 + $0x30] sm:$0xff]   ;;  %v2511_v62 = vld [vmem:[%s2974_s1 + $0x38] sm:$0xff]   ;;  %v2513_v0 = vld [vmem:[%s2974_s1 + $0x40] sm:$0xff]  }
  0x16   :  { %2283 = vmatprep.subr.bf16.mxu0 %v2472_v20  ;;  %v2510_v61 = vld [vmem:[%s2975_s3 + $0x30] sm:$0xff]   ;;  %v2512_v63 = vld [vmem:[%s2975_s3 + $0x38] sm:$0xff]   ;;  %v2514_v1 = vld [vmem:[%s2975_s3 + $0x40] sm:$0xff]  }
  0x17   :  { %2204 = vmatpush3.bf16.msra.mxu1 %v2470_v18  ;;  %v2515_v2 = vld [vmem:[%s2974_s1 + $0x48] sm:$0xff]   ;;  %v2517_v4 = vld [vmem:[%s2974_s1 + $0x50] sm:$0xff]   ;;  %v2519_v6 = vld [vmem:[%s2974_s1 + $0x58] sm:$0xff]  }
  0x18   :  { %2284 = vmatpush3.bf16.msra.mxu0 %v2472_v20  ;;  %2205 = vmatprep.subr.bf16.mxu1 %v2480_v25  ;;  %v2516_v3 = vld [vmem:[%s2975_s3 + $0x48] sm:$0xff]   ;;  %v2518_v5 = vld [vmem:[%s2975_s3 + $0x50] sm:$0xff]   ;;  %v2520_v7 = vld [vmem:[%s2975_s3 + $0x58] sm:$0xff]  }
  0x19   :  { %2285 = vmatprep.subr.bf16.mxu0 %v2482_v27  ;;  %v2521_v8 = vld [vmem:[%s2974_s1 + $0x60] sm:$0xff]   ;;  %v2523_v10 = vld [vmem:[%s2974_s1 + $0x68] sm:$0xff]   ;;  %v2525_v12 = vld [vmem:[%s2974_s1 + $0x70] sm:$0xff]  }
  0x1a   :  { %2174 = vmatmul.mubr.msk.bf16.gmra.mrb[4].mxu1 %vm184_vm0, %v2465_v16  ;;  %v2522_v9 = vld [vmem:[%s2975_s3 + $0x60] sm:$0xff]   ;;  %v2524_v11 = vld [vmem:[%s2975_s3 + $0x68] sm:$0xff]   ;;  %v2526_v13 = vld [vmem:[%s2975_s3 + $0x70] sm:$0xff]  }
  0x1b   :  { %2254 = vmatmul.mubr.msk.bf16.gmra.mrb[4].mxu0 %vm184_vm0, %v2466_v17  ;;  %2177 = vmatprep.mubr.msk.bf16.mxu1 %vm184_vm0, %v2467_v19  ;;  %v2527_v14 = vld [vmem:[%s2974_s1 + $0x78] sm:$0xff]   ;;  %v2886_v16 = vld [vmem:[%s2976_s8] ss:$0 sm:$0xff] }
  0x1c   :  { %2257 = vmatprep.mubr.msk.bf16.mxu0 %vm184_vm0, %v2468_v21  ;;  %2206 = vmatpush3.bf16.msra.mxu1 %v2480_v25  ;;  %v2528_v15 = vld [vmem:[%s2975_s3 + $0x78] sm:$0xff]  }
  0x1d   :  { %2286 = vmatpush3.bf16.msra.mxu0 %v2482_v27  ;;  %2207 = vmatprep.subr.bf16.mxu1 %v2490_v32 }
  0x1e   :  { %2287 = vmatprep.subr.bf16.mxu0 %v2492_v33 }
  0x20   :  { %2208 = vmatpush3.bf16.msra.mxu1 %v2490_v32 }
  0x21   :  { %2288 = vmatpush3.bf16.msra.mxu0 %v2492_v33 }
  0x22   :  { %2178 = vmatmul.mubr.msk.bf16.gmra.mrb[8].mxu1 %vm184_vm0, %v2469_v22 }
  0x23   :  { %2258 = vmatmul.mubr.msk.bf16.gmra.mrb[8].mxu0 %vm184_vm0, %v2471_v23  ;;  %2181 = vmatprep.mubr.msk.bf16.mxu1 %vm184_vm0, %v2473_v24 }
  0x24   :  { %2261 = vmatprep.mubr.msk.bf16.mxu0 %vm184_vm0, %v2474_v26 }
  0x2a   :  { %2182 = vmatmul.mubr.msk.bf16.gmra.mrb[12].mxu1 %vm184_vm0, %v2475_v28 }
  0x2b   :  { %2262 = vmatmul.mubr.msk.bf16.gmra.mrb[12].mxu0 %vm184_vm0, %v2476_v29  ;;  %2185 = vmatprep.mubr.msk.bf16.mxu1 %vm184_vm0, %v2477_v30 }
  0x2c   :  { %2265 = vmatprep.mubr.msk.bf16.mxu0 %vm184_vm0, %v2478_v31 }
  0x32   :  { %2186 = vmatmul.mubr.msk.bf16.gmra.mrb[16].mxu1 %vm184_vm0, %v2479_v34 }
  0x33   :  { %2266 = vmatmul.mubr.msk.bf16.gmra.mrb[16].mxu0 %vm184_vm0, %v2481_v35  ;;  %2189 = vmatprep.mubr.msk.bf16.mxu1 %vm184_vm0, %v2483_v36 }
  0x34   :  { %2269 = vmatprep.mubr.msk.bf16.mxu0 %vm184_vm0, %v2484_v37 }
  0x3a   :  { %2190 = vmatmul.mubr.msk.bf16.gmra.mrb[20].mxu1 %vm184_vm0, %v2485_v38 }
  0x3b   :  { %2270 = vmatmul.mubr.msk.bf16.gmra.mrb[20].mxu0 %vm184_vm0, %v2486_v39  ;;  %2193 = vmatprep.mubr.msk.bf16.mxu1 %vm184_vm0, %v2487_v40 }
  0x3c   :  { %2273 = vmatprep.mubr.msk.bf16.mxu0 %vm184_vm0, %v2488_v41 }
  0x42   :  { %2194 = vmatmul.mubr.msk.bf16.gmra.mrb[24].mxu1 %vm184_vm0, %v2489_v42 }
  0x43   :  { %2274 = vmatmul.mubr.msk.bf16.gmra.mrb[24].mxu0 %vm184_vm0, %v2491_v43  ;;  %2197 = vmatprep.mubr.msk.bf16.mxu1 %vm184_vm0, %v2493_v44 }
  0x44   :  { %2277 = vmatprep.mubr.msk.bf16.mxu0 %vm184_vm0, %v2494_v45 }
  0x4a   :  { %2198 = vmatmul.mubr.msk.bf16.gmra.mrb[28].mxu1 %vm184_vm0, %v2495_v46 }
  0x4b   :  { %2278 = vmatmul.mubr.msk.bf16.gmra.mrb[28].mxu0 %vm184_vm0, %v2496_v47  ;;  %2209 = vmatprep.mubr.msk.bf16.mxu1 %vm184_vm0, %v2497_v48 }
  0x4c   :  { %2289 = vmatprep.mubr.msk.bf16.mxu0 %vm184_vm0, %v2498_v49 }
  0x52   :  { %2210 = vmatmul.mubr.msk.bf16.vlgmr.msra.gmra.mrb[0].mxu1 %vm184_vm0, %v2499_v50 }
  0x53   :  { %2290 = vmatmul.mubr.msk.bf16.vlgmr.msra.gmra.mrb[0].mxu0 %vm184_vm0, %v2500_v51  ;;  %2213 = vmatprep.mubr.msk.bf16.mxu1 %vm184_vm0, %v2501_v52 }
  0x54   :  { %2293 = vmatprep.mubr.msk.bf16.mxu0 %vm184_vm0, %v2502_v53 }
  0x5a   :  { %2214 = vmatmul.mubr.msk.bf16.gmra.mrb[4].mxu1 %vm184_vm0, %v2503_v54 }
  0x5b   :  { %2294 = vmatmul.mubr.msk.bf16.gmra.mrb[4].mxu0 %vm184_vm0, %v2504_v55  ;;  %2217 = vmatprep.mubr.msk.bf16.mxu1 %vm184_vm0, %v2505_v56 }
  0x5c   :  { %2297 = vmatprep.mubr.msk.bf16.mxu0 %vm184_vm0, %v2506_v57 }
  0x62   :  { %2218 = vmatmul.mubr.msk.bf16.gmra.mrb[8].mxu1 %vm184_vm0, %v2507_v58 }
  0x63   :  { %2298 = vmatmul.mubr.msk.bf16.gmra.mrb[8].mxu0 %vm184_vm0, %v2508_v59  ;;  %2221 = vmatprep.mubr.msk.bf16.mxu1 %vm184_vm0, %v2509_v60 }
  0x64   :  { %2301 = vmatprep.mubr.msk.bf16.mxu0 %vm184_vm0, %v2510_v61 }
  0x6a   :  { %2222 = vmatmul.mubr.msk.bf16.gmra.mrb[12].mxu1 %vm184_vm0, %v2511_v62 }
  0x6b   :  { %2302 = vmatmul.mubr.msk.bf16.gmra.mrb[12].mxu0 %vm184_vm0, %v2512_v63  ;;  %2225 = vmatprep.mubr.msk.bf16.mxu1 %vm184_vm0, %v2513_v0 }
  0x6c   :  { %2305 = vmatprep.mubr.msk.bf16.mxu0 %vm184_vm0, %v2514_v1 }
  0x72   :  { %2226 = vmatmul.mubr.msk.bf16.gmra.mrb[16].mxu1 %vm184_vm0, %v2515_v2 }
  0x73   :  { %2306 = vmatmul.mubr.msk.bf16.gmra.mrb[16].mxu0 %vm184_vm0, %v2516_v3  ;;  %2229 = vmatprep.mubr.msk.bf16.mxu1 %vm184_vm0, %v2517_v4 }
  0x74   :  { %2309 = vmatprep.mubr.msk.bf16.mxu0 %vm184_vm0, %v2518_v5 }
  0x7a   :  { %2230 = vmatmul.mubr.msk.bf16.gmra.mrb[20].mxu1 %vm184_vm0, %v2519_v6 }
  0x7b   :  { %2310 = vmatmul.mubr.msk.bf16.gmra.mrb[20].mxu0 %vm184_vm0, %v2520_v7  ;;  %2233 = vmatprep.mubr.msk.bf16.mxu1 %vm184_vm0, %v2521_v8 }
  0x7c   :  { %2313 = vmatprep.mubr.msk.bf16.mxu0 %vm184_vm0, %v2522_v9 }
  0x82   :  { %2234 = vmatmul.mubr.msk.bf16.gmra.mrb[24].mxu1 %vm184_vm0, %v2523_v10 }
  0x83   :  { %2314 = vmatmul.mubr.msk.bf16.gmra.mrb[24].mxu0 %vm184_vm0, %v2524_v11  ;;  %2237 = vmatprep.mubr.msk.bf16.mxu1 %vm184_vm0, %v2525_v12 }
  0x84   :  { %2317 = vmatprep.mubr.msk.bf16.mxu0 %vm184_vm0, %v2526_v13 }
  0x8a   :  { %2238 = vmatmul.mubr.msk.bf16.gmra.mrb[28].mxu1 %vm184_vm0, %v2527_v14 }
  0x8b   :  { %2318 = vmatmul.mubr.msk.bf16.gmra.mrb[28].mxu0 %vm184_vm0, %v2528_v15 }
 0x125   :  { %v2211_v17 = vpop.f32.mrb[0].mxu1 }
 0x126   :  { %v2321_v18 = vadd.f32 %v2211_v17, %v2886_v16  ;;  %v2291_v19 = vpop.f32.mrb[0].mxu0  ;;  %v652_v20 = vpop.f32.mrb[1].mxu1 }
 0x127   :  { %v2323_v21 = vadd.f32 %v2886_v16, %v652_v20  ;;  %v1422_v22 = vpop.f32.mrb[1].mxu0  ;;  %v2212_v23 = vpop.f32.mrb[2].mxu1 }
 0x128   :  { %v2322_v24 = vadd.f32 %v2321_v18, %v2291_v19  ;;  %v2325_v25 = vadd.f32 %v2212_v23, %v2886_v16  ;;  %v2292_v26 = vpop.f32.mrb[2].mxu0  ;;  %v655_v27 = vpop.f32.mrb[3].mxu1 }
 0x129   :  { %v2324_v28 = vadd.f32 %v2323_v21, %v1422_v22  ;;  %v2327_v29 = vadd.f32 %v2886_v16, %v655_v27  ;;  %v1425_v30 = vpop.f32.mrb[3].mxu0 }
 0x12a   :  { %v2326_v31 = vadd.f32 %v2325_v25, %v2292_v26  ;;  %v1583_v33 = vmax.f32 %v2322_v24, 0.0 }
 0x12b   :  { %v2328_v32 = vadd.f32 %v2327_v29, %v1425_v30  ;;  %v1581_v35 = vmax.f32 %v2324_v28, 0.0 }
 0x12c   :  { %v1584_v34 = vmax.f32 %v2326_v31, 0.0 }
 0x12d   :  { %v1582_v36 = vmax.f32 %v2328_v32, 0.0  ;;  %v2215_v37 = vpop.f32.mrb[4].mxu1 }
 0x12e   :  { %v1994_v38 = vpack.c.bf16 %v1584_v34, %v1583_v33  ;;  %v2329_v39 = vadd.f32 %v2215_v37, %v2886_v16  ;;  %v2295_v40 = vpop.f32.mrb[4].mxu0  ;;  %v668_v41 = vpop.f32.mrb[5].mxu1 }
 0x12f   :  { %v1989_v42 = vpack.c.bf16 %v1582_v36, %v1581_v35  ;;  %v2331_v43 = vadd.f32 %v2886_v16, %v668_v41  ;;  %v1438_v44 = vpop.f32.mrb[5].mxu0  ;;  %v2216_v45 = vpop.f32.mrb[6].mxu1 }
 0x130   :  { %2066 = vst [vmem:[%s2977_s9 + $0x8] sm:$0xff] %v1994_v38   ;;  %v2330_v46 = vadd.f32 %v2329_v39, %v2295_v40  ;;  %v2333_v47 = vadd.f32 %v2216_v45, %v2886_v16  ;;  %v2296_v48 = vpop.f32.mrb[6].mxu0  ;;  %v671_v49 = vpop.f32.mrb[7].mxu1 }
 0x131   :  { %1990 = vst [vmem:[%s2977_s9] sm:$0xff] %v1989_v42   ;;  %v2332_v50 = vadd.f32 %v2331_v43, %v1438_v44  ;;  %v2335_v51 = vadd.f32 %v2886_v16, %v671_v49  ;;  %v1441_v52 = vpop.f32.mrb[7].mxu0 }
 0x132   :  { %v2334_v53 = vadd.f32 %v2333_v47, %v2296_v48  ;;  %v1587_v55 = vmax.f32 %v2330_v46, 0.0 }
 0x133   :  { %v2336_v54 = vadd.f32 %v2335_v51, %v1441_v52  ;;  %v1585_v57 = vmax.f32 %v2332_v50, 0.0 }
 0x134   :  { %v1588_v56 = vmax.f32 %v2334_v53, 0.0 }
 0x135   :  { %v1586_v58 = vmax.f32 %v2336_v54, 0.0  ;;  %v2219_v59 = vpop.f32.mrb[8].mxu1 }
 0x136   :  { %v2004_v60 = vpack.c.bf16 %v1588_v56, %v1587_v55  ;;  %v2337_v61 = vadd.f32 %v2219_v59, %v2886_v16  ;;  %v2299_v62 = vpop.f32.mrb[8].mxu0  ;;  %v684_v63 = vpop.f32.mrb[9].mxu1 }
 0x137   :  { %v1999_v0 = vpack.c.bf16 %v1586_v58, %v1585_v57  ;;  %v2339_v1 = vadd.f32 %v2886_v16, %v684_v63  ;;  %v1454_v2 = vpop.f32.mrb[9].mxu0  ;;  %v2220_v3 = vpop.f32.mrb[10].mxu1 }
 0x138   :  { %2068 = vst [vmem:[%s2977_s9 + $0x18] sm:$0xff] %v2004_v60   ;;  %v2338_v4 = vadd.f32 %v2337_v61, %v2299_v62  ;;  %v2341_v5 = vadd.f32 %v2220_v3, %v2886_v16  ;;  %v2300_v6 = vpop.f32.mrb[10].mxu0  ;;  %v687_v7 = vpop.f32.mrb[11].mxu1 }
 0x139   :  { %2067 = vst [vmem:[%s2977_s9 + $0x10] sm:$0xff] %v1999_v0   ;;  %v2340_v8 = vadd.f32 %v2339_v1, %v1454_v2  ;;  %v2343_v9 = vadd.f32 %v2886_v16, %v687_v7  ;;  %v1457_v10 = vpop.f32.mrb[11].mxu0 }
 0x13a   :  { %v2342_v11 = vadd.f32 %v2341_v5, %v2300_v6  ;;  %v1591_v13 = vmax.f32 %v2338_v4, 0.0 }
 0x13b   :  { %v2344_v12 = vadd.f32 %v2343_v9, %v1457_v10  ;;  %v1589_v15 = vmax.f32 %v2340_v8, 0.0 }
 0x13c   :  { %v1592_v14 = vmax.f32 %v2342_v11, 0.0 }
 0x13d   :  { %v1590_v17 = vmax.f32 %v2344_v12, 0.0  ;;  %v2223_v18 = vpop.f32.mrb[12].mxu1 }
 0x13e   :  { %v2014_v19 = vpack.c.bf16 %v1592_v14, %v1591_v13  ;;  %v2345_v20 = vadd.f32 %v2223_v18, %v2886_v16  ;;  %v2303_v21 = vpop.f32.mrb[12].mxu0  ;;  %v700_v22 = vpop.f32.mrb[13].mxu1 }
 0x13f   :  { %v2009_v23 = vpack.c.bf16 %v1590_v17, %v1589_v15  ;;  %v2347_v24 = vadd.f32 %v2886_v16, %v700_v22  ;;  %v1470_v25 = vpop.f32.mrb[13].mxu0  ;;  %v2224_v26 = vpop.f32.mrb[14].mxu1 }
 0x140   :  { %2070 = vst [vmem:[%s2977_s9 + $0x28] sm:$0xff] %v2014_v19   ;;  %v2346_v27 = vadd.f32 %v2345_v20, %v2303_v21  ;;  %v2349_v28 = vadd.f32 %v2224_v26, %v2886_v16  ;;  %v2304_v29 = vpop.f32.mrb[14].mxu0  ;;  %v703_v30 = vpop.f32.mrb[15].mxu1 }
 0x141   :  { %2069 = vst [vmem:[%s2977_s9 + $0x20] sm:$0xff] %v2009_v23   ;;  %v2348_v31 = vadd.f32 %v2347_v24, %v1470_v25  ;;  %v2351_v32 = vadd.f32 %v2886_v16, %v703_v30  ;;  %v1473_v33 = vpop.f32.mrb[15].mxu0 }
 0x142   :  { %v2350_v34 = vadd.f32 %v2349_v28, %v2304_v29  ;;  %v1595_v36 = vmax.f32 %v2346_v27, 0.0 }
 0x143   :  { %v2352_v35 = vadd.f32 %v2351_v32, %v1473_v33  ;;  %v1593_v38 = vmax.f32 %v2348_v31, 0.0 }
 0x144   :  { %v1596_v37 = vmax.f32 %v2350_v34, 0.0 }
 0x145   :  { %v1594_v39 = vmax.f32 %v2352_v35, 0.0  ;;  %v2227_v40 = vpop.f32.mrb[16].mxu1 }
 0x146   :  { %v2024_v41 = vpack.c.bf16 %v1596_v37, %v1595_v36  ;;  %v2353_v42 = vadd.f32 %v2227_v40, %v2886_v16  ;;  %v2307_v43 = vpop.f32.mrb[16].mxu0  ;;  %v716_v44 = vpop.f32.mrb[17].mxu1 }
 0x147   :  { %v2019_v45 = vpack.c.bf16 %v1594_v39, %v1593_v38  ;;  %v2355_v46 = vadd.f32 %v2886_v16, %v716_v44  ;;  %v1486_v47 = vpop.f32.mrb[17].mxu0  ;;  %v2228_v48 = vpop.f32.mrb[18].mxu1 }
 0x148   :  { %2072 = vst [vmem:[%s2977_s9 + $0x38] sm:$0xff] %v2024_v41   ;;  %v2354_v49 = vadd.f32 %v2353_v42, %v2307_v43  ;;  %v2357_v50 = vadd.f32 %v2228_v48, %v2886_v16  ;;  %v2308_v51 = vpop.f32.mrb[18].mxu0  ;;  %v719_v52 = vpop.f32.mrb[19].mxu1 }
 0x149   :  { %2071 = vst [vmem:[%s2977_s9 + $0x30] sm:$0xff] %v2019_v45   ;;  %v2356_v53 = vadd.f32 %v2355_v46, %v1486_v47  ;;  %v2359_v54 = vadd.f32 %v2886_v16, %v719_v52  ;;  %v1489_v55 = vpop.f32.mrb[19].mxu0 }
 0x14a   :  { %v2358_v56 = vadd.f32 %v2357_v50, %v2308_v51  ;;  %v1599_v58 = vmax.f32 %v2354_v49, 0.0 }
 0x14b   :  { %v2360_v57 = vadd.f32 %v2359_v54, %v1489_v55  ;;  %v1597_v60 = vmax.f32 %v2356_v53, 0.0 }
 0x14c   :  { %v1600_v59 = vmax.f32 %v2358_v56, 0.0 }
 0x14d   :  { %v1598_v61 = vmax.f32 %v2360_v57, 0.0  ;;  %v2231_v62 = vpop.f32.mrb[20].mxu1 }
 0x14e   :  { %v2034_v63 = vpack.c.bf16 %v1600_v59, %v1599_v58  ;;  %v2361_v0 = vadd.f32 %v2231_v62, %v2886_v16  ;;  %v2311_v1 = vpop.f32.mrb[20].mxu0  ;;  %v732_v2 = vpop.f32.mrb[21].mxu1 }
 0x14f   :  { %v2029_v3 = vpack.c.bf16 %v1598_v61, %v1597_v60  ;;  %v2363_v4 = vadd.f32 %v2886_v16, %v732_v2  ;;  %v1502_v5 = vpop.f32.mrb[21].mxu0  ;;  %v2232_v6 = vpop.f32.mrb[22].mxu1 }
 0x150   :  { %2074 = vst [vmem:[%s2977_s9 + $0x48] sm:$0xff] %v2034_v63   ;;  %v2362_v7 = vadd.f32 %v2361_v0, %v2311_v1  ;;  %v2365_v8 = vadd.f32 %v2232_v6, %v2886_v16  ;;  %v2312_v9 = vpop.f32.mrb[22].mxu0  ;;  %v735_v10 = vpop.f32.mrb[23].mxu1 }
 0x151   :  { %2073 = vst [vmem:[%s2977_s9 + $0x40] sm:$0xff] %v2029_v3   ;;  %v2364_v11 = vadd.f32 %v2363_v4, %v1502_v5  ;;  %v2367_v12 = vadd.f32 %v2886_v16, %v735_v10  ;;  %v1505_v13 = vpop.f32.mrb[23].mxu0 }
 0x152   :  { %v2366_v14 = vadd.f32 %v2365_v8, %v2312_v9  ;;  %v1603_v17 = vmax.f32 %v2362_v7, 0.0 }
 0x153   :  { %v2368_v15 = vadd.f32 %v2367_v12, %v1505_v13  ;;  %v1601_v19 = vmax.f32 %v2364_v11, 0.0 }
 0x154   :  { %v1604_v18 = vmax.f32 %v2366_v14, 0.0 }
 0x155   :  { %v1602_v20 = vmax.f32 %v2368_v15, 0.0  ;;  %v2235_v21 = vpop.f32.mrb[24].mxu1 }
 0x156   :  { %v2044_v22 = vpack.c.bf16 %v1604_v18, %v1603_v17  ;;  %v2369_v23 = vadd.f32 %v2235_v21, %v2886_v16  ;;  %v2315_v24 = vpop.f32.mrb[24].mxu0  ;;  %v748_v25 = vpop.f32.mrb[25].mxu1 }
 0x157   :  { %v2039_v26 = vpack.c.bf16 %v1602_v20, %v1601_v19  ;;  %v2371_v27 = vadd.f32 %v2886_v16, %v748_v25  ;;  %v1518_v28 = vpop.f32.mrb[25].mxu0  ;;  %v2236_v29 = vpop.f32.mrb[26].mxu1 }
 0x158   :  { %2076 = vst [vmem:[%s2977_s9 + $0x58] sm:$0xff] %v2044_v22   ;;  %v2370_v30 = vadd.f32 %v2369_v23, %v2315_v24  ;;  %v2373_v31 = vadd.f32 %v2236_v29, %v2886_v16  ;;  %v2316_v32 = vpop.f32.mrb[26].mxu0  ;;  %v751_v33 = vpop.f32.mrb[27].mxu1 }
 0x159   :  { %2075 = vst [vmem:[%s2977_s9 + $0x50] sm:$0xff] %v2039_v26   ;;  %v2372_v34 = vadd.f32 %v2371_v27, %v1518_v28  ;;  %v2375_v35 = vadd.f32 %v2886_v16, %v751_v33  ;;  %v1521_v36 = vpop.f32.mrb[27].mxu0 }
 0x15a   :  { %v2374_v37 = vadd.f32 %v2373_v31, %v2316_v32  ;;  %v1607_v39 = vmax.f32 %v2370_v30, 0.0 }
 0x15b   :  { %v2376_v38 = vadd.f32 %v2375_v35, %v1521_v36  ;;  %v1605_v41 = vmax.f32 %v2372_v34, 0.0 }
 0x15c   :  { %v1608_v40 = vmax.f32 %v2374_v37, 0.0 }
 0x15d   :  { %v1606_v42 = vmax.f32 %v2376_v38, 0.0  ;;  %v2239_v43 = vpop.f32.mrb[28].mxu1 }
 0x15e   :  { %v2054_v44 = vpack.c.bf16 %v1608_v40, %v1607_v39  ;;  %v2377_v45 = vadd.f32 %v2239_v43, %v2886_v16  ;;  %v2319_v46 = vpop.f32.mrb[28].mxu0  ;;  %v764_v47 = vpop.f32.mrb[29].mxu1 }
 0x15f   :  { %v2049_v48 = vpack.c.bf16 %v1606_v42, %v1605_v41  ;;  %v2379_v49 = vadd.f32 %v2886_v16, %v764_v47  ;;  %v1534_v50 = vpop.f32.mrb[29].mxu0  ;;  %v2240_v51 = vpop.f32.mrb[30].mxu1 }
 0x160   :  { %2078 = vst [vmem:[%s2977_s9 + $0x68] sm:$0xff] %v2054_v44   ;;  %v2378_v52 = vadd.f32 %v2377_v45, %v2319_v46  ;;  %v2381_v53 = vadd.f32 %v2240_v51, %v2886_v16  ;;  %v2320_v54 = vpop.f32.mrb[30].mxu0  ;;  %v767_v55 = vpop.f32.mrb[31].mxu1 }
 0x161   :  { %2077 = vst [vmem:[%s2977_s9 + $0x60] sm:$0xff] %v2049_v48   ;;  %v2380_v56 = vadd.f32 %v2379_v49, %v1534_v50  ;;  %v2383_v57 = vadd.f32 %v2886_v16, %v767_v55  ;;  %v1537_v58 = vpop.f32.mrb[31].mxu0 }
 0x162   :  { %v2382_v59 = vadd.f32 %v2381_v53, %v2320_v54  ;;  %v1611_v61 = vmax.f32 %v2378_v52, 0.0 }
 0x163   :  { %v2384_v60 = vadd.f32 %v2383_v57, %v1537_v58  ;;  %v1609_v63 = vmax.f32 %v2380_v56, 0.0 }
 0x164   :  { %v1612_v62 = vmax.f32 %v2382_v59, 0.0 }
 0x165   :  { %v1610_v0 = vmax.f32 %v2384_v60, 0.0 }
 0x166   :  { %v2064_v1 = vpack.c.bf16 %v1612_v62, %v1611_v61 }
 0x167   :  { %v2059_v2 = vpack.c.bf16 %v1610_v0, %v1609_v63 }
 0x168   :  { %2080 = vst [vmem:[%s2977_s9 + $0x78] sm:$0xff] %v2064_v1  }
 0x169   :  { %2079 = vst [vmem:[%s2977_s9 + $0x70] sm:$0xff] %v2059_v2  }

// kernel: forward.16
= control target key start
LH: loop header
LB: loop body
LE: loop exit
PB: predicated region body
PF: predicated region fallthrough
CT: control target
= control target key end

     0   :  { %vm26_vm0 = vcmask 64512   ;;  %vm672_vm1 = vcmask 60416   ;;  %s1197_s1 = inlined_call_operand.vmem [shape: bf16[128,8], index: 1, kind: input, shape index: {}]   ;;  %s1198_s0 = inlined_call_operand.vmem [shape: bf16[256,128], index: 0, kind: input, shape index: {}]   ;;  %s1199_s2 = inlined_call_operand.vmem [shape: f32[1,8], index: 2, kind: input, shape index: {}]   ;;  %s1200_s3 = inlined_call_operand.vmem [shape: bf16[256,8], index: 3, kind: output, shape index: {}]  }
   0x1   :  { %v886_v0 = vld [vmem:[%s1197_s1] sm:$0xff]   ;;  %v887_v1 = vld [vmem:[%s1197_s1 + $0x8] sm:$0xff]   ;;  %v888_v2 = vld [vmem:[%s1197_s1 + $0x10] sm:$0xff]  }
   0x2   :  { %822 = vmatprep.subr.bf16.mxu0 %v886_v0  ;;  %870 = vmatprep.subr.bf16.mxu1 %v886_v0  ;;  %v889_v3 = vld [vmem:[%s1197_s1 + $0x18] sm:$0xff]   ;;  %v894_v4 = vld [vmem:[%s1198_s0] sm:$0xff]   ;;  %v891_v7 = vld [vmem:[%s1197_s1 + $0x28] sm:$0xff]  }
   0x3   :  { %823 = vmatpush3.bf16.msra.mxu0 %v886_v0  ;;  %878 = vmatpush3.bf16.msra.mxu1 %v886_v0  ;;  %v895_v5 = vld [vmem:[%s1198_s0 + $0x40] sm:$0xff]   ;;  %v892_v8 = vld [vmem:[%s1197_s1 + $0x30] sm:$0xff]   ;;  %v893_v9 = vld [vmem:[%s1197_s1 + $0x38] sm:$0xff]  }
   0x4   :  { %824 = vmatprep.subr.bf16.mxu0 %v887_v1  ;;  %871 = vmatprep.subr.bf16.mxu1 %v887_v1  ;;  %v890_v6 = vld [vmem:[%s1197_s1 + $0x20] sm:$0xff]   ;;  %v896_v11 = vld [vmem:[%s1198_s0 + $0x8] sm:$0xff]   ;;  %v898_v13 = vld [vmem:[%s1198_s0 + $0x10] sm:$0xff]  }
   0x5   :  { %838 = vmatprep.mubr.bf16.mxu0 %v894_v4  ;;  %854 = vmatprep.mubr.bf16.mxu1 %v895_v5  ;;  %v709_v10 = vld [vmem:[%s1199_s2] ss:$0 sm:$0xff]  ;;  %v897_v12 = vld [vmem:[%s1198_s0 + $0x48] sm:$0xff]   ;;  %v899_v14 = vld [vmem:[%s1198_s0 + $0x50] sm:$0xff]  }
   0x6   :  { %29 = vst.msk [vmem:[#allocation2 + $0x10] sm:$0xff] %vm26_vm0, %v709_v10  ;;  %27 = vst.msk [vmem:[#allocation2] sm:$0xff] %vm26_vm0, %v709_v10  ;;  %v900_v15 = vld [vmem:[%s1198_s0 + $0x18] sm:$0xff]   ;;  %v902_v17 = vld [vmem:[%s1198_s0 + $0x20] sm:$0xff]  }
   0x7   :  { %825 = vmatpush3.bf16.msra.mxu0 %v887_v1  ;;  %879 = vmatpush3.bf16.msra.mxu1 %v887_v1  ;;  %28 = vst.msk [vmem:[#allocation2 + $0x8] sm:$0xff] %vm26_vm0, %v709_v10  ;;  %30 = vst.msk [vmem:[#allocation2 + $0x18] sm:$0xff] %vm26_vm0, %v709_v10  ;;  %v901_v16 = vld [vmem:[%s1198_s0 + $0x58] sm:$0xff]   ;;  %v903_v18 = vld [vmem:[%s1198_s0 + $0x60] sm:$0xff]  }
   0x8   :  { %826 = vmatprep.subr.bf16.mxu0 %v888_v2  ;;  %872 = vmatprep.subr.bf16.mxu1 %v888_v2  ;;  %31 = vst.msk [vmem:[#allocation2 + $0x20] sm:$0xff] %vm26_vm0, %v709_v10  ;;  %32 = vst.msk [vmem:[#allocation2 + $0x28] sm:$0xff] %vm26_vm0, %v709_v10  ;;  %v904_v19 = vld [vmem:[%s1198_s0 + $0x28] sm:$0xff]   ;;  %v906_v21 = vld [vmem:[%s1198_s0 + $0x30] sm:$0xff]  }
   0x9   :  { %33 = vst.msk [vmem:[#allocation2 + $0x30] sm:$0xff] %vm26_vm0, %v709_v10  ;;  %34 = vst.msk [vmem:[#allocation2 + $0x38] sm:$0xff] %vm26_vm0, %v709_v10  ;;  %v905_v20 = vld [vmem:[%s1198_s0 + $0x68] sm:$0xff]   ;;  %v907_v22 = vld [vmem:[%s1198_s0 + $0x70] sm:$0xff]  }
   0xa   :  { %35 = vst.msk [vmem:[#allocation2 + $0x40] sm:$0xff] %vm26_vm0, %v709_v10  ;;  %36 = vst.msk [vmem:[#allocation2 + $0x48] sm:$0xff] %vm26_vm0, %v709_v10  ;;  %v908_v23 = vld [vmem:[%s1198_s0 + $0x38] sm:$0xff]  }
   0xb   :  { %827 = vmatpush3.bf16.msra.mxu0 %v888_v2  ;;  %880 = vmatpush3.bf16.msra.mxu1 %v888_v2  ;;  %37 = vst.msk [vmem:[#allocation2 + $0x50] sm:$0xff] %vm26_vm0, %v709_v10  ;;  %38 = vst.msk [vmem:[#allocation2 + $0x58] sm:$0xff] %vm26_vm0, %v709_v10  ;;  %v909_v24 = vld [vmem:[%s1198_s0 + $0x78] sm:$0xff]  }
   0xc   :  { %828 = vmatprep.subr.bf16.mxu0 %v889_v3  ;;  %873 = vmatprep.subr.bf16.mxu1 %v889_v3  ;;  %39 = vst.msk [vmem:[#allocation2 + $0x60] sm:$0xff] %vm26_vm0, %v709_v10  ;;  %40 = vst.msk [vmem:[#allocation2 + $0x68] sm:$0xff] %vm26_vm0, %v709_v10 }
   0xd   :  { %41 = vst.msk [vmem:[#allocation2 + $0x70] sm:$0xff] %vm26_vm0, %v709_v10  ;;  %42 = vst.msk [vmem:[#allocation2 + $0x78] sm:$0xff] %vm26_vm0, %v709_v10  ;;  %v61_v25 = vld [vmem:[#allocation2 + $0x10] sm:$0xff]  ;;  %v59_v27 = vld [vmem:[#allocation2] sm:$0xff] }
   0xe   :  { %43 = vst.msk [vmem:[#allocation2 + $0x80] sm:$0xff] %vm26_vm0, %v709_v10  ;;  %44 = vst.msk [vmem:[#allocation2 + $0x88] sm:$0xff] %vm26_vm0, %v709_v10  ;;  %v62_v31 = vld [vmem:[#allocation2 + $0x18] sm:$0xff]  ;;  %v60_v37 = vld [vmem:[#allocation2 + $0x8] sm:$0xff] }
   0xf   :  { %829 = vmatpush3.bf16.msra.mxu0 %v889_v3  ;;  %881 = vmatpush3.bf16.msra.mxu1 %v889_v3  ;;  %45 = vst.msk [vmem:[#allocation2 + $0x90] sm:$0xff] %vm26_vm0, %v709_v10  ;;  %46 = vst.msk [vmem:[#allocation2 + $0x98] sm:$0xff] %vm26_vm0, %v709_v10  ;;  %v63_v51 = vld [vmem:[#allocation2 + $0x20] sm:$0xff]  ;;  %v64_v61 = vld [vmem:[#allocation2 + $0x28] sm:$0xff] }
  0x10   :  { %830 = vmatprep.subr.bf16.mxu0 %v890_v6  ;;  %874 = vmatprep.subr.bf16.mxu1 %v890_v6  ;;  %47 = vst.msk [vmem:[#allocation2 + $0xa0] sm:$0xff] %vm26_vm0, %v709_v10  ;;  %48 = vst.msk [vmem:[#allocation2 + $0xa8] sm:$0xff] %vm26_vm0, %v709_v10  ;;  %v65_v49 = vld [vmem:[#allocation2 + $0x30] sm:$0xff]  ;;  %v66_v55 = vld [vmem:[#allocation2 + $0x38] sm:$0xff] }
  0x11   :  { %49 = vst.msk [vmem:[#allocation2 + $0xb0] sm:$0xff] %vm26_vm0, %v709_v10  ;;  %50 = vst.msk [vmem:[#allocation2 + $0xb8] sm:$0xff] %vm26_vm0, %v709_v10 }
  0x12   :  { %51 = vst.msk [vmem:[#allocation2 + $0xc0] sm:$0xff] %vm26_vm0, %v709_v10  ;;  %52 = vst.msk [vmem:[#allocation2 + $0xc8] sm:$0xff] %vm26_vm0, %v709_v10 }
  0x13   :  { %831 = vmatpush3.bf16.msra.mxu0 %v890_v6  ;;  %882 = vmatpush3.bf16.msra.mxu1 %v890_v6  ;;  %53 = vst.msk [vmem:[#allocation2 + $0xd0] sm:$0xff] %vm26_vm0, %v709_v10  ;;  %54 = vst.msk [vmem:[#allocation2 + $0xd8] sm:$0xff] %vm26_vm0, %v709_v10 }
  0x14   :  { %832 = vmatprep.subr.bf16.mxu0 %v891_v7  ;;  %875 = vmatprep.subr.bf16.mxu1 %v891_v7  ;;  %55 = vst.msk [vmem:[#allocation2 + $0xe0] sm:$0xff] %vm26_vm0, %v709_v10  ;;  %56 = vst.msk [vmem:[#allocation2 + $0xe8] sm:$0xff] %vm26_vm0, %v709_v10 }
  0x15   :  { %57 = vst.msk [vmem:[#allocation2 + $0xf0] sm:$0xff] %vm26_vm0, %v709_v10  ;;  %58 = vst.msk [vmem:[#allocation2 + $0xf8] sm:$0xff] %vm26_vm0, %v709_v10  ;;  %v75_v28 = vld [vmem:[#allocation2 + $0x80] sm:$0xff]  ;;  %v76_v38 = vld [vmem:[#allocation2 + $0x88] sm:$0xff] }
  0x16   :  { %v77_v26 = vld [vmem:[#allocation2 + $0x90] sm:$0xff]  ;;  %v78_v32 = vld [vmem:[#allocation2 + $0x98] sm:$0xff] }
  0x17   :  { %833 = vmatpush3.bf16.msra.mxu0 %v891_v7  ;;  %883 = vmatpush3.bf16.msra.mxu1 %v891_v7  ;;  %v79_v52 = vld [vmem:[#allocation2 + $0xa0] sm:$0xff]  ;;  %v80_v62 = vld [vmem:[#allocation2 + $0xa8] sm:$0xff] }
  0x18   :  { %834 = vmatprep.subr.bf16.mxu0 %v892_v8  ;;  %876 = vmatprep.subr.bf16.mxu1 %v892_v8  ;;  %v81_v50 = vld [vmem:[#allocation2 + $0xb0] sm:$0xff]  ;;  %v82_v56 = vld [vmem:[#allocation2 + $0xb8] sm:$0xff] }
  0x1b   :  { %835 = vmatpush3.bf16.msra.mxu0 %v892_v8  ;;  %884 = vmatpush3.bf16.msra.mxu1 %v892_v8 }
  0x1c   :  { %836 = vmatprep.subr.bf16.mxu0 %v893_v9  ;;  %877 = vmatprep.subr.bf16.mxu1 %v893_v9 }
  0x1f   :  { %837 = vmatpush3.bf16.msra.mxu0 %v893_v9  ;;  %885 = vmatpush3.bf16.msra.mxu1 %v893_v9 }
  0x22   :  { %839 = vmatmul.mubr.bf16.vlgmr.msra.gmra.mrb[0].mxu0 %v896_v11  ;;  %855 = vmatmul.mubr.bf16.vlgmr.msra.gmra.mrb[0].mxu1 %v897_v12 }
  0x23   :  { %842 = vmatprep.mubr.bf16.mxu0 %v898_v13  ;;  %858 = vmatprep.mubr.bf16.mxu1 %v899_v14 }
  0x2a   :  { %843 = vmatmul.mubr.bf16.gmra.mrb[4].mxu0 %v900_v15  ;;  %859 = vmatmul.mubr.bf16.gmra.mrb[4].mxu1 %v901_v16 }
  0x2b   :  { %846 = vmatprep.mubr.bf16.mxu0 %v902_v17  ;;  %862 = vmatprep.mubr.bf16.mxu1 %v903_v18 }
  0x32   :  { %847 = vmatmul.mubr.bf16.gmra.mrb[8].mxu0 %v904_v19  ;;  %863 = vmatmul.mubr.bf16.gmra.mrb[8].mxu1 %v905_v20 }
  0x33   :  { %850 = vmatprep.mubr.bf16.mxu0 %v906_v21  ;;  %866 = vmatprep.mubr.bf16.mxu1 %v907_v22 }
  0x3a   :  { %851 = vmatmul.mubr.bf16.gmra.mrb[12].mxu0 %v908_v23  ;;  %867 = vmatmul.mubr.bf16.gmra.mrb[12].mxu1 %v909_v24 }
  0xf5   :  { %v840_v29 = vpop.f32.mrb[0].mxu0  ;;  %v856_v30 = vpop.f32.mrb[0].mxu1 }
  0xf6   :  { %v446_v33 = vadd.f32 %v840_v29, %v61_v25  ;;  %v462_v34 = vadd.f32 %v856_v30, %v77_v26  ;;  %v317_v35 = vpop.f32.mrb[1].mxu0  ;;  %v381_v36 = vpop.f32.mrb[1].mxu1  ;;  %v69_v25 = vld [vmem:[#allocation2 + $0x50] sm:$0xff] }
  0xf7   :  { %v444_v39 = vadd.f32 %v317_v35, %v59_v27  ;;  %v460_v40 = vadd.f32 %v381_v36, %v75_v28  ;;  %v841_v41 = vpop.f32.mrb[2].mxu0  ;;  %v857_v42 = vpop.f32.mrb[2].mxu1  ;;  %v85_v26 = vld [vmem:[#allocation2 + $0xd0] sm:$0xff]  ;;  %v67_v27 = vld [vmem:[#allocation2 + $0x40] sm:$0xff] }
  0xf8   :  { %479 = vst.msk [vmem:[#allocation2 + $0x10] sm:$0xff] %vm26_vm0, %v446_v33  ;;  %495 = vst.msk [vmem:[#allocation2 + $0x90] sm:$0xff] %vm26_vm0, %v462_v34  ;;  %v447_v43 = vadd.f32 %v841_v41, %v62_v31  ;;  %v463_v44 = vadd.f32 %v857_v42, %v78_v32  ;;  %v320_v45 = vpop.f32.mrb[3].mxu0  ;;  %v384_v46 = vpop.f32.mrb[3].mxu1  ;;  %v83_v28 = vld [vmem:[#allocation2 + $0xc0] sm:$0xff]  ;;  %v70_v31 = vld [vmem:[#allocation2 + $0x58] sm:$0xff] }
  0xf9   :  { %477 = vst.msk [vmem:[#allocation2] sm:$0xff] %vm26_vm0, %v444_v39  ;;  %493 = vst.msk [vmem:[#allocation2 + $0x80] sm:$0xff] %vm26_vm0, %v460_v40  ;;  %v445_v47 = vadd.f32 %v320_v45, %v60_v37  ;;  %v461_v48 = vadd.f32 %v384_v46, %v76_v38  ;;  %v86_v32 = vld [vmem:[#allocation2 + $0xd8] sm:$0xff]  ;;  %v68_v37 = vld [vmem:[#allocation2 + $0x48] sm:$0xff] }
  0xfa   :  { %480 = vst.msk [vmem:[#allocation2 + $0x18] sm:$0xff] %vm26_vm0, %v447_v43  ;;  %496 = vst.msk [vmem:[#allocation2 + $0x98] sm:$0xff] %vm26_vm0, %v463_v44  ;;  %v84_v38 = vld [vmem:[#allocation2 + $0xc8] sm:$0xff] }
  0xfb   :  { %478 = vst.msk [vmem:[#allocation2 + $0x8] sm:$0xff] %vm26_vm0, %v445_v47  ;;  %494 = vst.msk [vmem:[#allocation2 + $0x88] sm:$0xff] %vm26_vm0, %v461_v48 }
  0xfd   :  { %v844_v53 = vpop.f32.mrb[4].mxu0  ;;  %v860_v54 = vpop.f32.mrb[4].mxu1 }
  0xfe   :  { %v450_v57 = vadd.f32 %v844_v53, %v65_v49  ;;  %v466_v58 = vadd.f32 %v860_v54, %v81_v50  ;;  %v333_v59 = vpop.f32.mrb[5].mxu0  ;;  %v397_v60 = vpop.f32.mrb[5].mxu1 }
  0xff   :  { %v514_v63 = vld [vmem:[#allocation2 + $0x10] sm:$0xff]  ;;  %v448_v1 = vadd.f32 %v333_v59, %v63_v51  ;;  %v464_v2 = vadd.f32 %v397_v60, %v79_v52  ;;  %v845_v3 = vpop.f32.mrb[6].mxu0  ;;  %v861_v4 = vpop.f32.mrb[6].mxu1 }
 0x100   :  { %v530_v0 = vld [vmem:[#allocation2 + $0x90] sm:$0xff]  ;;  %v768_v5 = vpack.c.bf16 %v514_v63, %v514_v63  ;;  %v512_v7 = vld [vmem:[#allocation2] sm:$0xff]  ;;  %483 = vst.msk [vmem:[#allocation2 + $0x30] sm:$0xff] %vm26_vm0, %v450_v57  ;;  %499 = vst.msk [vmem:[#allocation2 + $0xb0] sm:$0xff] %vm26_vm0, %v466_v58  ;;  %v451_v9 = vadd.f32 %v845_v3, %v66_v55  ;;  %v467_v10 = vadd.f32 %v861_v4, %v82_v56  ;;  %v336_v11 = vpop.f32.mrb[7].mxu0  ;;  %v400_v12 = vpop.f32.mrb[7].mxu1 }
 0x101   :  { %v784_v6 = vpack.c.bf16 %v530_v0, %v530_v0  ;;  %v528_v8 = vld [vmem:[#allocation2 + $0x80] sm:$0xff]  ;;  %v766_v13 = vpack.c.bf16 %v512_v7, %v512_v7  ;;  %v515_v15 = vld [vmem:[#allocation2 + $0x18] sm:$0xff]  ;;  %481 = vst.msk [vmem:[#allocation2 + $0x20] sm:$0xff] %vm26_vm0, %v448_v1  ;;  %497 = vst.msk [vmem:[#allocation2 + $0xa0] sm:$0xff] %vm26_vm0, %v464_v2  ;;  %v449_v17 = vadd.f32 %v336_v11, %v64_v61 }
 0x102   :  { %v782_v14 = vpack.c.bf16 %v528_v8, %v528_v8  ;;  %v531_v16 = vld [vmem:[#allocation2 + $0x98] sm:$0xff]  ;;  %v465_v18 = vadd.f32 %v400_v12, %v80_v62  ;;  %675 = vst.msk [vmem:[%s1200_s3 + $0x8] sm:$0xf] %vm672_vm1, %v768_v5  ;;  %v769_v19 = vpack.c.bf16 %v515_v15, %v515_v15  ;;  %v513_v21 = vld [vmem:[#allocation2 + $0x8] sm:$0xff]  ;;  %v73_v1 = vld [vmem:[#allocation2 + $0x70] sm:$0xff] }
 0x103   :  { %691 = vst.msk [vmem:[%s1200_s3 + $0x48] sm:$0xf] %vm672_vm1, %v784_v6  ;;  %v785_v20 = vpack.c.bf16 %v531_v16, %v531_v16  ;;  %v529_v22 = vld [vmem:[#allocation2 + $0x88] sm:$0xff]  ;;  %673 = vst.msk [vmem:[%s1200_s3] sm:$0xf] %vm672_vm1, %v766_v13  ;;  %v767_v23 = vpack.c.bf16 %v513_v21, %v513_v21  ;;  %v89_v2 = vld [vmem:[#allocation2 + $0xf0] sm:$0xff] }
 0x104   :  { %484 = vst.msk [vmem:[#allocation2 + $0x38] sm:$0xff] %vm26_vm0, %v451_v9  ;;  %500 = vst.msk [vmem:[#allocation2 + $0xb8] sm:$0xff] %vm26_vm0, %v467_v10  ;;  %v783_v24 = vpack.c.bf16 %v529_v22, %v529_v22  ;;  %v71_v3 = vld [vmem:[#allocation2 + $0x60] sm:$0xff]  ;;  %v74_v7 = vld [vmem:[#allocation2 + $0x78] sm:$0xff] }
 0x105   :  { %689 = vst.msk [vmem:[%s1200_s3 + $0x40] sm:$0xf] %vm672_vm1, %v782_v14  ;;  %676 = vst.msk [vmem:[%s1200_s3 + $0xc] sm:$0xf] %vm672_vm1, %v769_v19  ;;  %v848_v29 = vpop.f32.mrb[8].mxu0  ;;  %v864_v30 = vpop.f32.mrb[8].mxu1 }
 0x106   :  { %482 = vst.msk [vmem:[#allocation2 + $0x28] sm:$0xff] %vm26_vm0, %v449_v17  ;;  %498 = vst.msk [vmem:[#allocation2 + $0xa8] sm:$0xff] %vm26_vm0, %v465_v18  ;;  %v454_v33 = vadd.f32 %v848_v29, %v69_v25  ;;  %v470_v34 = vadd.f32 %v864_v30, %v85_v26  ;;  %v349_v35 = vpop.f32.mrb[9].mxu0  ;;  %v413_v36 = vpop.f32.mrb[9].mxu1  ;;  %v87_v4 = vld [vmem:[#allocation2 + $0xe0] sm:$0xff]  ;;  %v90_v8 = vld [vmem:[#allocation2 + $0xf8] sm:$0xff] }
 0x107   :  { %692 = vst.msk [vmem:[%s1200_s3 + $0x4c] sm:$0xf] %vm672_vm1, %v785_v20  ;;  %674 = vst.msk [vmem:[%s1200_s3 + $0x4] sm:$0xf] %vm672_vm1, %v767_v23  ;;  %v518_v39 = vld [vmem:[#allocation2 + $0x30] sm:$0xff]  ;;  %v452_v41 = vadd.f32 %v349_v35, %v67_v27  ;;  %v468_v42 = vadd.f32 %v413_v36, %v83_v28  ;;  %v849_v43 = vpop.f32.mrb[10].mxu0 }
 0x108   :  { %690 = vst.msk [vmem:[%s1200_s3 + $0x44] sm:$0xf] %vm672_vm1, %v783_v24  ;;  %v534_v40 = vld [vmem:[#allocation2 + $0xb0] sm:$0xff]  ;;  %v865_v44 = vpop.f32.mrb[10].mxu1  ;;  %v772_v45 = vpack.c.bf16 %v518_v39, %v518_v39  ;;  %v516_v47 = vld [vmem:[#allocation2 + $0x20] sm:$0xff]  ;;  %v455_v49 = vadd.f32 %v849_v43, %v70_v31  ;;  %v352_v51 = vpop.f32.mrb[11].mxu0 }
 0x109   :  { %v788_v46 = vpack.c.bf16 %v534_v40, %v534_v40  ;;  %v532_v48 = vld [vmem:[#allocation2 + $0xa0] sm:$0xff]  ;;  %487 = vst.msk [vmem:[#allocation2 + $0x50] sm:$0xff] %vm26_vm0, %v454_v33  ;;  %503 = vst.msk [vmem:[#allocation2 + $0xd0] sm:$0xff] %vm26_vm0, %v470_v34  ;;  %v471_v50 = vadd.f32 %v865_v44, %v86_v32  ;;  %v416_v52 = vpop.f32.mrb[11].mxu1  ;;  %v770_v53 = vpack.c.bf16 %v516_v47, %v516_v47  ;;  %v72_v13 = vld [vmem:[#allocation2 + $0x68] sm:$0xff] }
 0x10a   :  { %v786_v54 = vpack.c.bf16 %v532_v48, %v532_v48  ;;  %485 = vst.msk [vmem:[#allocation2 + $0x40] sm:$0xff] %vm26_vm0, %v452_v41  ;;  %501 = vst.msk [vmem:[#allocation2 + $0xc0] sm:$0xff] %vm26_vm0, %v468_v42  ;;  %v453_v57 = vadd.f32 %v352_v51, %v68_v37  ;;  %v469_v58 = vadd.f32 %v416_v52, %v84_v38  ;;  %v88_v14 = vld [vmem:[#allocation2 + $0xe8] sm:$0xff] }
 0x10b   :  { %v519_v55 = vld [vmem:[#allocation2 + $0x38] sm:$0xff]  ;;  %679 = vst.msk [vmem:[%s1200_s3 + $0x18] sm:$0xf] %vm672_vm1, %v772_v45  ;;  %695 = vst.msk [vmem:[%s1200_s3 + $0x58] sm:$0xf] %vm672_vm1, %v788_v46 }
 0x10c   :  { %v535_v56 = vld [vmem:[#allocation2 + $0xb8] sm:$0xff]  ;;  %v773_v59 = vpack.c.bf16 %v519_v55, %v519_v55  ;;  %488 = vst.msk [vmem:[#allocation2 + $0x58] sm:$0xff] %vm26_vm0, %v455_v49  ;;  %504 = vst.msk [vmem:[#allocation2 + $0xd8] sm:$0xff] %vm26_vm0, %v471_v50 }
 0x10d   :  { %v789_v60 = vpack.c.bf16 %v535_v56, %v535_v56  ;;  %v517_v61 = vld [vmem:[#allocation2 + $0x28] sm:$0xff]  ;;  %677 = vst.msk [vmem:[%s1200_s3 + $0x10] sm:$0xf] %vm672_vm1, %v770_v53  ;;  %693 = vst.msk [vmem:[%s1200_s3 + $0x50] sm:$0xf] %vm672_vm1, %v786_v54  ;;  %v852_v5 = vpop.f32.mrb[12].mxu0 }
 0x10e   :  { %v533_v62 = vld [vmem:[#allocation2 + $0xa8] sm:$0xff]  ;;  %v771_v63 = vpack.c.bf16 %v517_v61, %v517_v61  ;;  %486 = vst.msk [vmem:[#allocation2 + $0x48] sm:$0xff] %vm26_vm0, %v453_v57  ;;  %502 = vst.msk [vmem:[#allocation2 + $0xc8] sm:$0xff] %vm26_vm0, %v469_v58  ;;  %v868_v6 = vpop.f32.mrb[12].mxu1  ;;  %v458_v9 = vadd.f32 %v852_v5, %v73_v1  ;;  %v365_v11 = vpop.f32.mrb[13].mxu0 }
 0x10f   :  { %v787_v0 = vpack.c.bf16 %v533_v62, %v533_v62  ;;  %680 = vst.msk [vmem:[%s1200_s3 + $0x1c] sm:$0xf] %vm672_vm1, %v773_v59  ;;  %696 = vst.msk [vmem:[%s1200_s3 + $0x5c] sm:$0xf] %vm672_vm1, %v789_v60  ;;  %v474_v10 = vadd.f32 %v868_v6, %v89_v2  ;;  %v429_v12 = vpop.f32.mrb[13].mxu1  ;;  %v456_v17 = vadd.f32 %v365_v11, %v71_v3  ;;  %v853_v19 = vpop.f32.mrb[14].mxu0 }
 0x110   :  { %678 = vst.msk [vmem:[%s1200_s3 + $0x14] sm:$0xf] %vm672_vm1, %v771_v63  ;;  %v522_v15 = vld [vmem:[#allocation2 + $0x50] sm:$0xff]  ;;  %v472_v18 = vadd.f32 %v429_v12, %v87_v4  ;;  %v869_v20 = vpop.f32.mrb[14].mxu1  ;;  %v459_v25 = vadd.f32 %v853_v19, %v74_v7  ;;  %v368_v27 = vpop.f32.mrb[15].mxu0 }
 0x111   :  { %694 = vst.msk [vmem:[%s1200_s3 + $0x54] sm:$0xf] %vm672_vm1, %v787_v0  ;;  %v538_v16 = vld [vmem:[#allocation2 + $0xd0] sm:$0xff]  ;;  %v776_v21 = vpack.c.bf16 %v522_v15, %v522_v15  ;;  %v520_v23 = vld [vmem:[#allocation2 + $0x40] sm:$0xff]  ;;  %v475_v26 = vadd.f32 %v869_v20, %v90_v8  ;;  %v432_v28 = vpop.f32.mrb[15].mxu1  ;;  %v457_v33 = vadd.f32 %v368_v27, %v72_v13 }
 0x112   :  { %v792_v22 = vpack.c.bf16 %v538_v16, %v538_v16  ;;  %v536_v24 = vld [vmem:[#allocation2 + $0xc0] sm:$0xff]  ;;  %491 = vst.msk [vmem:[#allocation2 + $0x70] sm:$0xff] %vm26_vm0, %v458_v9  ;;  %507 = vst.msk [vmem:[#allocation2 + $0xf0] sm:$0xff] %vm26_vm0, %v474_v10  ;;  %v774_v29 = vpack.c.bf16 %v520_v23, %v520_v23  ;;  %v473_v34 = vadd.f32 %v432_v28, %v88_v14 }
 0x113   :  { %v790_v30 = vpack.c.bf16 %v536_v24, %v536_v24  ;;  %v523_v31 = vld [vmem:[#allocation2 + $0x58] sm:$0xff]  ;;  %489 = vst.msk [vmem:[#allocation2 + $0x60] sm:$0xff] %vm26_vm0, %v456_v17  ;;  %505 = vst.msk [vmem:[#allocation2 + $0xe0] sm:$0xff] %vm26_vm0, %v472_v18 }
 0x114   :  { %v539_v32 = vld [vmem:[#allocation2 + $0xd8] sm:$0xff]  ;;  %683 = vst.msk [vmem:[%s1200_s3 + $0x28] sm:$0xf] %vm672_vm1, %v776_v21  ;;  %699 = vst.msk [vmem:[%s1200_s3 + $0x68] sm:$0xf] %vm672_vm1, %v792_v22  ;;  %v777_v35 = vpack.c.bf16 %v523_v31, %v523_v31 }
 0x115   :  { %v793_v36 = vpack.c.bf16 %v539_v32, %v539_v32  ;;  %v521_v37 = vld [vmem:[#allocation2 + $0x48] sm:$0xff]  ;;  %492 = vst.msk [vmem:[#allocation2 + $0x78] sm:$0xff] %vm26_vm0, %v459_v25  ;;  %508 = vst.msk [vmem:[#allocation2 + $0xf8] sm:$0xff] %vm26_vm0, %v475_v26 }
 0x116   :  { %v537_v38 = vld [vmem:[#allocation2 + $0xc8] sm:$0xff]  ;;  %681 = vst.msk [vmem:[%s1200_s3 + $0x20] sm:$0xf] %vm672_vm1, %v774_v29  ;;  %697 = vst.msk [vmem:[%s1200_s3 + $0x60] sm:$0xf] %vm672_vm1, %v790_v30  ;;  %v775_v39 = vpack.c.bf16 %v521_v37, %v521_v37 }
 0x117   :  { %v791_v40 = vpack.c.bf16 %v537_v38, %v537_v38  ;;  %490 = vst.msk [vmem:[#allocation2 + $0x68] sm:$0xff] %vm26_vm0, %v457_v33  ;;  %506 = vst.msk [vmem:[#allocation2 + $0xe8] sm:$0xff] %vm26_vm0, %v473_v34 }
 0x118   :  { %684 = vst.msk [vmem:[%s1200_s3 + $0x2c] sm:$0xf] %vm672_vm1, %v777_v35  ;;  %700 = vst.msk [vmem:[%s1200_s3 + $0x6c] sm:$0xf] %vm672_vm1, %v793_v36 }
 0x119   :  { %682 = vst.msk [vmem:[%s1200_s3 + $0x24] sm:$0xf] %vm672_vm1, %v775_v39  ;;  %698 = vst.msk [vmem:[%s1200_s3 + $0x64] sm:$0xf] %vm672_vm1, %v791_v40  ;;  %v526_v41 = vld [vmem:[#allocation2 + $0x70] sm:$0xff] }
 0x11a   :  { %v542_v42 = vld [vmem:[#allocation2 + $0xf0] sm:$0xff]  ;;  %v780_v43 = vpack.c.bf16 %v526_v41, %v526_v41  ;;  %v524_v45 = vld [vmem:[#allocation2 + $0x60] sm:$0xff] }
 0x11b   :  { %v796_v44 = vpack.c.bf16 %v542_v42, %v542_v42  ;;  %v540_v46 = vld [vmem:[#allocation2 + $0xe0] sm:$0xff]  ;;  %v778_v47 = vpack.c.bf16 %v524_v45, %v524_v45 }
 0x11c   :  { %v794_v48 = vpack.c.bf16 %v540_v46, %v540_v46  ;;  %v527_v49 = vld [vmem:[#allocation2 + $0x78] sm:$0xff]  ;;  %687 = vst.msk [vmem:[%s1200_s3 + $0x38] sm:$0xf] %vm672_vm1, %v780_v43 }
 0x11d   :  { %v543_v50 = vld [vmem:[#allocation2 + $0xf8] sm:$0xff]  ;;  %703 = vst.msk [vmem:[%s1200_s3 + $0x78] sm:$0xf] %vm672_vm1, %v796_v44  ;;  %v781_v51 = vpack.c.bf16 %v527_v49, %v527_v49  ;;  %685 = vst.msk [vmem:[%s1200_s3 + $0x30] sm:$0xf] %vm672_vm1, %v778_v47 }
 0x11e   :  { %v797_v52 = vpack.c.bf16 %v543_v50, %v543_v50  ;;  %v525_v53 = vld [vmem:[#allocation2 + $0x68] sm:$0xff]  ;;  %701 = vst.msk [vmem:[%s1200_s3 + $0x70] sm:$0xf] %vm672_vm1, %v794_v48 }
 0x11f   :  { %v541_v54 = vld [vmem:[#allocation2 + $0xe8] sm:$0xff]  ;;  %v779_v55 = vpack.c.bf16 %v525_v53, %v525_v53  ;;  %688 = vst.msk [vmem:[%s1200_s3 + $0x3c] sm:$0xf] %vm672_vm1, %v781_v51 }
 0x120   :  { %v795_v56 = vpack.c.bf16 %v541_v54, %v541_v54  ;;  %704 = vst.msk [vmem:[%s1200_s3 + $0x7c] sm:$0xf] %vm672_vm1, %v797_v52 }
 0x121   :  { %686 = vst.msk [vmem:[%s1200_s3 + $0x34] sm:$0xf] %vm672_vm1, %v779_v55 }
 0x122   :  { %702 = vst.msk [vmem:[%s1200_s3 + $0x74] sm:$0xf] %vm672_vm1, %v795_v56 }

// kernel: forward.17
= control target key start
LH: loop header
LB: loop body
LE: loop exit
PB: predicated region body
PF: predicated region fallthrough
CT: control target
= control target key end

     0   :  { %vm20_vm0 = vcmask 64512   ;;  %vm102_vm1 = vcmask 130048   ;;  %vm184_vm2 = vcmask 261120   ;;  %s3419_s0 = inlined_call_operand.vmem [shape: bf16[16,8,16], index: 0, kind: input, shape index: {}]   ;;  %s3420_s1 = inlined_call_operand.vmem [shape: f32[16,8], index: 1, kind: input, shape index: {}]   ;;  %s3421_s2 = inlined_call_operand.vmem [shape: f32[16,32], index: 2, kind: input, shape index: {}]   ;;  %s3422_s3 = inlined_call_operand.vmem [shape: f32[16,16,32], index: 3, kind: output, shape index: {}]  }
   0x1   :  { %v18_v0 = vld [vmem:[%s3419_s0] sm:$0xf]  ;;  %v2625_v3 = vld [vmem:[%s3419_s0 + $0x4] sm:$0xff]   ;;  %v2639_v8 = vld [vmem:[%s3419_s0 + $0xc] sm:$0xff]  }
   0x2   :  { %v3124_v1 = vld [vmem:[%s3420_s1] sm:$0xff]  ;;  %v19_v2 = vunpack.c.l.bf16 %v18_v0  ;;  %v3134_v4 = vld [vmem:[%s3420_s1 + $0x8] sm:$0xff]  ;;  %v189_v5 = vunpack.c.l.bf16 %v2625_v3  ;;  %v351_v6 = vunpack.c.h.bf16 %v2625_v3  ;;  %v513_v11 = vunpack.c.l.bf16 %v2639_v8  ;;  %v2653_v13 = vld [vmem:[%s3419_s0 + $0x14] sm:$0xff]  }
   0x3   :  { %2844 = vmatprep.mubr.msk.f32.mxu0 %vm20_vm0, %v3124_v1  ;;  %v16_v7 = vld [vmem:[%s3421_s2] sm:$0xff]  ;;  %v17_v9 = vld [vmem:[%s3421_s2 + $0x8] sm:$0xff]  ;;  %v675_v12 = vunpack.c.h.bf16 %v2639_v8  ;;  %v837_v14 = vunpack.c.l.bf16 %v2653_v13  ;;  %v999_v15 = vunpack.c.h.bf16 %v2653_v13  ;;  %v2709_v25 = vld [vmem:[%s3419_s0 + $0x34] sm:$0xff]  }
   0x4   :  { %2842 = vmatprep.subr.mxu0 %v19_v2  ;;  %v3147_v10 = vpack.c.bf16 %v17_v9, %v16_v7  ;;  %v2667_v16 = vld [vmem:[%s3419_s0 + $0x1c] sm:$0xff]   ;;  %v2681_v19 = vld [vmem:[%s3419_s0 + $0x24] sm:$0xff]   ;;  %v2695_v22 = vld [vmem:[%s3419_s0 + $0x2c] sm:$0xff]   ;;  %v2133_v26 = vunpack.c.l.bf16 %v2709_v25  ;;  %v2295_v27 = vunpack.c.h.bf16 %v2709_v25 }
   0x5   :  { %2843 = vmatpush3.msra.mxu0 %v19_v2  ;;  %v1161_v17 = vunpack.c.l.bf16 %v2667_v16  ;;  %v1323_v18 = vunpack.c.h.bf16 %v2667_v16  ;;  %v1485_v20 = vunpack.c.l.bf16 %v2681_v19  ;;  %v1647_v21 = vunpack.c.h.bf16 %v2681_v19  ;;  %v2723_v28 = vld [vmem:[%s3419_s0 + $0x3c] sm:$0xf] }
   0x6   :  { %2845 = vmatmul.mubr.msk.f32.vlgmr.msra.gmra.mrb[0].mxu0 %vm20_vm0, %v3134_v4  ;;  %2854 = vmatprep.subr.mxu0 %v189_v5  ;;  %v1809_v23 = vunpack.c.l.bf16 %v2695_v22  ;;  %v1971_v24 = vunpack.c.h.bf16 %v2695_v22  ;;  %v2457_v29 = vunpack.c.l.bf16 %v2723_v28 }
   0x7   :  { %2855 = vmatpush3.msra.mxu0 %v189_v5  ;;  %2856 = vmatprep.mubr.msk.f32.mxu0 %vm20_vm0, %v3124_v1 }
   0x8   :  { %2866 = vmatprep.subr.mxu0 %v351_v6  ;;  %3035 = vmatprep.subr.bf16.mxu1 %v3147_v10 }
   0x9   :  { %3037 = vmatpush3.bf16.msra.mxu1 %v3147_v10 }
   0xa   :  { %2857 = vmatmul.mubr.msk.f32.vlgmr.msra.gmra.mrb[2].mxu0 %vm20_vm0, %v3134_v4  ;;  %3039 = vmatprep.subr.bf16.mxu1 %v3147_v10 }
   0xb   :  { %2867 = vmatpush3.msra.mxu0 %v351_v6  ;;  %2868 = vmatprep.mubr.msk.f32.mxu0 %vm20_vm0, %v3124_v1 }
   0xc   :  { %2878 = vmatprep.subr.mxu0 %v513_v11 }
   0xe   :  { %2869 = vmatmul.mubr.msk.f32.vlgmr.msra.gmra.mrb[4].mxu0 %vm20_vm0, %v3134_v4 }
   0xf   :  { %2879 = vmatpush3.msra.mxu0 %v513_v11  ;;  %2880 = vmatprep.mubr.msk.f32.mxu0 %vm20_vm0, %v3124_v1 }
  0x10   :  { %2890 = vmatprep.subr.mxu0 %v675_v12 }
  0x12   :  { %2881 = vmatmul.mubr.msk.f32.vlgmr.msra.gmra.mrb[6].mxu0 %vm20_vm0, %v3134_v4 }
  0x13   :  { %2891 = vmatpush3.msra.mxu0 %v675_v12  ;;  %2892 = vmatprep.mubr.msk.f32.mxu0 %vm20_vm0, %v3124_v1 }
  0x14   :  { %2902 = vmatprep.subr.mxu0 %v837_v14 }
  0x16   :  { %2893 = vmatmul.mubr.msk.f32.vlgmr.msra.gmra.mrb[8].mxu0 %vm20_vm0, %v3134_v4 }
  0x17   :  { %2903 = vmatpush3.msra.mxu0 %v837_v14  ;;  %2904 = vmatprep.mubr.msk.f32.mxu0 %vm20_vm0, %v3124_v1 }
  0x18   :  { %2914 = vmatprep.subr.mxu0 %v999_v15 }
  0x1a   :  { %2905 = vmatmul.mubr.msk.f32.vlgmr.msra.gmra.mrb[10].mxu0 %vm20_vm0, %v3134_v4 }
  0x1b   :  { %2915 = vmatpush3.msra.mxu0 %v999_v15  ;;  %2916 = vmatprep.mubr.msk.f32.mxu0 %vm20_vm0, %v3124_v1 }
  0x1c   :  { %2926 = vmatprep.subr.mxu0 %v1161_v17 }
  0x1e   :  { %2917 = vmatmul.mubr.msk.f32.vlgmr.msra.gmra.mrb[12].mxu0 %vm20_vm0, %v3134_v4 }
  0x1f   :  { %2927 = vmatpush3.msra.mxu0 %v1161_v17  ;;  %2928 = vmatprep.mubr.msk.f32.mxu0 %vm20_vm0, %v3124_v1 }
  0x20   :  { %2938 = vmatprep.subr.mxu0 %v1323_v18 }
  0x22   :  { %2929 = vmatmul.mubr.msk.f32.vlgmr.msra.gmra.mrb[14].mxu0 %vm20_vm0, %v3134_v4 }
  0x23   :  { %2939 = vmatpush3.msra.mxu0 %v1323_v18  ;;  %2940 = vmatprep.mubr.msk.f32.mxu0 %vm20_vm0, %v3124_v1 }
  0x24   :  { %2950 = vmatprep.subr.mxu0 %v1485_v20 }
  0x26   :  { %2941 = vmatmul.mubr.msk.f32.vlgmr.msra.gmra.mrb[16].mxu0 %vm20_vm0, %v3134_v4 }
  0x27   :  { %2951 = vmatpush3.msra.mxu0 %v1485_v20  ;;  %2952 = vmatprep.mubr.msk.f32.mxu0 %vm20_vm0, %v3124_v1 }
  0x28   :  { %2962 = vmatprep.subr.mxu0 %v1647_v21 }
  0x2a   :  { %2953 = vmatmul.mubr.msk.f32.vlgmr.msra.gmra.mrb[18].mxu0 %vm20_vm0, %v3134_v4 }
  0x2b   :  { %2963 = vmatpush3.msra.mxu0 %v1647_v21  ;;  %2964 = vmatprep.mubr.msk.f32.mxu0 %vm20_vm0, %v3124_v1 }
  0x2c   :  { %2974 = vmatprep.subr.mxu0 %v1809_v23 }
  0x2e   :  { %2965 = vmatmul.mubr.msk.f32.vlgmr.msra.gmra.mrb[20].mxu0 %vm20_vm0, %v3134_v4 }
  0x2f   :  { %2975 = vmatpush3.msra.mxu0 %v1809_v23  ;;  %2976 = vmatprep.mubr.msk.f32.mxu0 %vm20_vm0, %v3124_v1 }
  0x30   :  { %2986 = vmatprep.subr.mxu0 %v1971_v24 }
  0x32   :  { %2977 = vmatmul.mubr.msk.f32.vlgmr.msra.gmra.mrb[22].mxu0 %vm20_vm0, %v3134_v4 }
  0x33   :  { %2987 = vmatpush3.msra.mxu0 %v1971_v24  ;;  %2988 = vmatprep.mubr.msk.f32.mxu0 %vm20_vm0, %v3124_v1 }
  0x34   :  { %2998 = vmatprep.subr.mxu0 %v2133_v26 }
  0x36   :  { %2989 = vmatmul.mubr.msk.f32.vlgmr.msra.gmra.mrb[24].mxu0 %vm20_vm0, %v3134_v4 }
  0x37   :  { %2999 = vmatpush3.msra.mxu0 %v2133_v26  ;;  %3000 = vmatprep.mubr.msk.f32.mxu0 %vm20_vm0, %v3124_v1 }
  0x38   :  { %3010 = vmatprep.subr.mxu0 %v2295_v27 }
  0x3a   :  { %3001 = vmatmul.mubr.msk.f32.vlgmr.msra.gmra.mrb[26].mxu0 %vm20_vm0, %v3134_v4 }
  0x3b   :  { %3011 = vmatpush3.msra.mxu0 %v2295_v27  ;;  %3012 = vmatprep.mubr.msk.f32.mxu0 %vm20_vm0, %v3124_v1 }
  0x3c   :  { %3022 = vmatprep.subr.mxu0 %v2457_v29 }
  0x3e   :  { %3013 = vmatmul.mubr.msk.f32.vlgmr.msra.gmra.mrb[28].mxu0 %vm20_vm0, %v3134_v4 }
  0x3f   :  { %3023 = vmatpush3.msra.mxu0 %v2457_v29  ;;  %3024 = vmatprep.mubr.msk.f32.mxu0 %vm20_vm0, %v3124_v1 }
  0x42   :  { %3025 = vmatmul.mubr.msk.f32.vlgmr.msra.gmra.mrb[30].mxu0 %vm20_vm0, %v3134_v4 }
  0xd9   :  { %v2846_v30 = vpop.f32.mrb[0].mxu0 }
  0xda   :  { %v93_v31 = vpop.f32.mrb[1].mxu0 }
  0xdb   :  { %2851 = vmatprep.mubr.msk.f32.mxu1 %vm102_vm1, %v93_v31 }
  0xdc   :  { %2852 = vmatmul.mubr.msk.f32.vlgmr.msra.gmra.mrb[0].mxu1 %vm102_vm1, %v2846_v30 }
  0xdd   :  { %v2858_v32 = vpop.f32.mrb[2].mxu0  ;;  %3041 = vmatpush3.bf16.msra.mxu1 %v3147_v10 }
  0xde   :  { %v256_v33 = vpop.f32.mrb[3].mxu0  ;;  %3043 = vmatprep.subr.bf16.mxu1 %v3147_v10 }
  0xdf   :  { %2863 = vmatprep.mubr.msk.f32.mxu1 %vm102_vm1, %v256_v33 }
  0xe0   :  { %2864 = vmatmul.mubr.msk.f32.vlgmr.msra.gmra.mrb[2].mxu1 %vm102_vm1, %v2858_v32 }
  0xe1   :  { %v2870_v34 = vpop.f32.mrb[4].mxu0  ;;  %3045 = vmatpush3.bf16.msra.mxu1 %v3147_v10 }
  0xe2   :  { %v418_v35 = vpop.f32.mrb[5].mxu0  ;;  %3047 = vmatprep.subr.bf16.mxu1 %v3147_v10 }
  0xe3   :  { %2875 = vmatprep.mubr.msk.f32.mxu1 %vm102_vm1, %v418_v35 }
  0xe4   :  { %2876 = vmatmul.mubr.msk.f32.vlgmr.msra.gmra.mrb[4].mxu1 %vm102_vm1, %v2870_v34 }
  0xe5   :  { %v2882_v36 = vpop.f32.mrb[6].mxu0  ;;  %3049 = vmatpush3.bf16.msra.mxu1 %v3147_v10 }
  0xe6   :  { %v580_v37 = vpop.f32.mrb[7].mxu0  ;;  %3051 = vmatprep.subr.bf16.mxu1 %v3147_v10 }
  0xe7   :  { %2887 = vmatprep.mubr.msk.f32.mxu1 %vm102_vm1, %v580_v37 }
  0xe8   :  { %2888 = vmatmul.mubr.msk.f32.vlgmr.msra.gmra.mrb[6].mxu1 %vm102_vm1, %v2882_v36 }
  0xe9   :  { %v2894_v38 = vpop.f32.mrb[8].mxu0  ;;  %3053 = vmatpush3.bf16.msra.mxu1 %v3147_v10 }
  0xea   :  { %v742_v39 = vpop.f32.mrb[9].mxu0  ;;  %3055 = vmatprep.subr.bf16.mxu1 %v3147_v10 }
  0xeb   :  { %2899 = vmatprep.mubr.msk.f32.mxu1 %vm102_vm1, %v742_v39 }
  0xec   :  { %2900 = vmatmul.mubr.msk.f32.vlgmr.msra.gmra.mrb[8].mxu1 %vm102_vm1, %v2894_v38 }
  0xed   :  { %v2906_v40 = vpop.f32.mrb[10].mxu0  ;;  %3057 = vmatpush3.bf16.msra.mxu1 %v3147_v10 }
  0xee   :  { %v904_v41 = vpop.f32.mrb[11].mxu0  ;;  %3059 = vmatprep.subr.bf16.mxu1 %v3147_v10 }
  0xef   :  { %2911 = vmatprep.mubr.msk.f32.mxu1 %vm102_vm1, %v904_v41 }
  0xf0   :  { %2912 = vmatmul.mubr.msk.f32.vlgmr.msra.gmra.mrb[10].mxu1 %vm102_vm1, %v2906_v40 }
  0xf1   :  { %v2918_v42 = vpop.f32.mrb[12].mxu0  ;;  %3061 = vmatpush3.bf16.msra.mxu1 %v3147_v10 }
  0xf2   :  { %v1066_v43 = vpop.f32.mrb[13].mxu0  ;;  %3063 = vmatprep.subr.bf16.mxu1 %v3147_v10 }
  0xf3   :  { %2923 = vmatprep.mubr.msk.f32.mxu1 %vm102_vm1, %v1066_v43 }
  0xf4   :  { %2924 = vmatmul.mubr.msk.f32.vlgmr.msra.gmra.mrb[12].mxu1 %vm102_vm1, %v2918_v42 }
  0xf5   :  { %v2930_v44 = vpop.f32.mrb[14].mxu0  ;;  %3065 = vmatpush3.bf16.msra.mxu1 %v3147_v10 }
  0xf6   :  { %v1228_v45 = vpop.f32.mrb[15].mxu0  ;;  %3067 = vmatprep.subr.bf16.mxu1 %v3147_v10 }
  0xf7   :  { %2935 = vmatprep.mubr.msk.f32.mxu1 %vm102_vm1, %v1228_v45 }
  0xf8   :  { %2936 = vmatmul.mubr.msk.f32.vlgmr.msra.gmra.mrb[14].mxu1 %vm102_vm1, %v2930_v44 }
  0xf9   :  { %v2942_v46 = vpop.f32.mrb[16].mxu0  ;;  %3069 = vmatpush3.bf16.msra.mxu1 %v3147_v10 }
  0xfa   :  { %v1390_v47 = vpop.f32.mrb[17].mxu0  ;;  %3071 = vmatprep.subr.bf16.mxu1 %v3147_v10 }
  0xfb   :  { %2947 = vmatprep.mubr.msk.f32.mxu1 %vm102_vm1, %v1390_v47 }
  0xfc   :  { %2948 = vmatmul.mubr.msk.f32.vlgmr.msra.gmra.mrb[16].mxu1 %vm102_vm1, %v2942_v46 }
  0xfd   :  { %v2954_v48 = vpop.f32.mrb[18].mxu0  ;;  %3073 = vmatpush3.bf16.msra.mxu1 %v3147_v10 }
  0xfe   :  { %v1552_v49 = vpop.f32.mrb[19].mxu0  ;;  %3075 = vmatprep.subr.bf16.mxu1 %v3147_v10 }
  0xff   :  { %2959 = vmatprep.mubr.msk.f32.mxu1 %vm102_vm1, %v1552_v49 }
 0x100   :  { %2960 = vmatmul.mubr.msk.f32.vlgmr.msra.gmra.mrb[18].mxu1 %vm102_vm1, %v2954_v48 }
 0x101   :  { %v2966_v50 = vpop.f32.mrb[20].mxu0  ;;  %3077 = vmatpush3.bf16.msra.mxu1 %v3147_v10 }
 0x102   :  { %v1714_v51 = vpop.f32.mrb[21].mxu0  ;;  %3079 = vmatprep.subr.bf16.mxu1 %v3147_v10 }
 0x103   :  { %2971 = vmatprep.mubr.msk.f32.mxu1 %vm102_vm1, %v1714_v51 }
 0x104   :  { %2972 = vmatmul.mubr.msk.f32.vlgmr.msra.gmra.mrb[20].mxu1 %vm102_vm1, %v2966_v50 }
 0x105   :  { %v2978_v52 = vpop.f32.mrb[22].mxu0  ;;  %3081 = vmatpush3.bf16.msra.mxu1 %v3147_v10 }
 0x106   :  { %v1876_v53 = vpop.f32.mrb[23].mxu0  ;;  %3083 = vmatprep.subr.bf16.mxu1 %v3147_v10 }
 0x107   :  { %2983 = vmatprep.mubr.msk.f32.mxu1 %vm102_vm1, %v1876_v53 }
 0x108   :  { %2984 = vmatmul.mubr.msk.f32.vlgmr.msra.gmra.mrb[22].mxu1 %vm102_vm1, %v2978_v52 }
 0x109   :  { %v2990_v54 = vpop.f32.mrb[24].mxu0  ;;  %3085 = vmatpush3.bf16.msra.mxu1 %v3147_v10 }
 0x10a   :  { %v2038_v55 = vpop.f32.mrb[25].mxu0  ;;  %3087 = vmatprep.subr.bf16.mxu1 %v3147_v10 }
 0x10b   :  { %2995 = vmatprep.mubr.msk.f32.mxu1 %vm102_vm1, %v2038_v55 }
 0x10c   :  { %2996 = vmatmul.mubr.msk.f32.vlgmr.msra.gmra.mrb[24].mxu1 %vm102_vm1, %v2990_v54 }
 0x10d   :  { %v3002_v56 = vpop.f32.mrb[26].mxu0  ;;  %3089 = vmatpush3.bf16.msra.mxu1 %v3147_v10 }
 0x10e   :  { %v2200_v57 = vpop.f32.mrb[27].mxu0  ;;  %3091 = vmatprep.subr.bf16.mxu1 %v3147_v10 }
 0x10f   :  { %3007 = vmatprep.mubr.msk.f32.mxu1 %vm102_vm1, %v2200_v57 }
 0x110   :  { %3008 = vmatmul.mubr.msk.f32.vlgmr.msra.gmra.mrb[26].mxu1 %vm102_vm1, %v3002_v56 }
 0x111   :  { %v3014_v58 = vpop.f32.mrb[28].mxu0  ;;  %3093 = vmatpush3.bf16.msra.mxu1 %v3147_v10 }
 0x112   :  { %v2362_v59 = vpop.f32.mrb[29].mxu0  ;;  %3095 = vmatprep.subr.bf16.mxu1 %v3147_v10 }
 0x113   :  { %3019 = vmatprep.mubr.msk.f32.mxu1 %vm102_vm1, %v2362_v59 }
 0x114   :  { %3020 = vmatmul.mubr.msk.f32.vlgmr.msra.gmra.mrb[28].mxu1 %vm102_vm1, %v3014_v58 }
 0x115   :  { %v3026_v60 = vpop.f32.mrb[30].mxu0  ;;  %3097 = vmatpush3.bf16.msra.mxu1 %v3147_v10 }
 0x116   :  { %v2524_v61 = vpop.f32.mrb[31].mxu0 }
 0x117   :  { %3031 = vmatprep.mubr.msk.f32.mxu1 %vm102_vm1, %v2524_v61 }
 0x118   :  { %3032 = vmatmul.mubr.msk.f32.vlgmr.msra.gmra.mrb[30].mxu1 %vm102_vm1, %v3026_v60 }
 0x1af   :  { %v2853_v62 = vpop.f32.mrb[0].mxu1 }
 0x1b0   :  { %186 = vst.msk [vmem:[%s3422_s3 + $0x8] sm:$0xff] %vm184_vm2, %v2853_v62  ;;  %v175_v63 = vpop.f32.mrb[1].mxu1 }
 0x1b1   :  { %185 = vst.msk [vmem:[%s3422_s3] sm:$0xff] %vm184_vm2, %v175_v63 }
 0x1b3   :  { %v2865_v0 = vpop.f32.mrb[2].mxu1 }
 0x1b4   :  { %2631 = vst.msk [vmem:[%s3422_s3 + $0x18] sm:$0xff] %vm184_vm2, %v2865_v0  ;;  %v337_v1 = vpop.f32.mrb[3].mxu1 }
 0x1b5   :  { %2630 = vst.msk [vmem:[%s3422_s3 + $0x10] sm:$0xff] %vm184_vm2, %v337_v1 }
 0x1b7   :  { %v2877_v2 = vpop.f32.mrb[4].mxu1 }
 0x1b8   :  { %2638 = vst.msk [vmem:[%s3422_s3 + $0x28] sm:$0xff] %vm184_vm2, %v2877_v2  ;;  %v499_v3 = vpop.f32.mrb[5].mxu1 }
 0x1b9   :  { %2637 = vst.msk [vmem:[%s3422_s3 + $0x20] sm:$0xff] %vm184_vm2, %v499_v3 }
 0x1bb   :  { %v2889_v4 = vpop.f32.mrb[6].mxu1 }
 0x1bc   :  { %2645 = vst.msk [vmem:[%s3422_s3 + $0x38] sm:$0xff] %vm184_vm2, %v2889_v4  ;;  %v661_v5 = vpop.f32.mrb[7].mxu1 }
 0x1bd   :  { %2644 = vst.msk [vmem:[%s3422_s3 + $0x30] sm:$0xff] %vm184_vm2, %v661_v5 }
 0x1bf   :  { %v2901_v6 = vpop.f32.mrb[8].mxu1 }
 0x1c0   :  { %2652 = vst.msk [vmem:[%s3422_s3 + $0x48] sm:$0xff] %vm184_vm2, %v2901_v6  ;;  %v823_v7 = vpop.f32.mrb[9].mxu1 }
 0x1c1   :  { %2651 = vst.msk [vmem:[%s3422_s3 + $0x40] sm:$0xff] %vm184_vm2, %v823_v7 }
 0x1c3   :  { %v2913_v8 = vpop.f32.mrb[10].mxu1 }
 0x1c4   :  { %2659 = vst.msk [vmem:[%s3422_s3 + $0x58] sm:$0xff] %vm184_vm2, %v2913_v8  ;;  %v985_v9 = vpop.f32.mrb[11].mxu1 }
 0x1c5   :  { %2658 = vst.msk [vmem:[%s3422_s3 + $0x50] sm:$0xff] %vm184_vm2, %v985_v9 }
 0x1c7   :  { %v2925_v10 = vpop.f32.mrb[12].mxu1 }
 0x1c8   :  { %2666 = vst.msk [vmem:[%s3422_s3 + $0x68] sm:$0xff] %vm184_vm2, %v2925_v10  ;;  %v1147_v11 = vpop.f32.mrb[13].mxu1 }
 0x1c9   :  { %2665 = vst.msk [vmem:[%s3422_s3 + $0x60] sm:$0xff] %vm184_vm2, %v1147_v11 }
 0x1cb   :  { %v2937_v12 = vpop.f32.mrb[14].mxu1 }
 0x1cc   :  { %2673 = vst.msk [vmem:[%s3422_s3 + $0x78] sm:$0xff] %vm184_vm2, %v2937_v12  ;;  %v1309_v13 = vpop.f32.mrb[15].mxu1 }
 0x1cd   :  { %2672 = vst.msk [vmem:[%s3422_s3 + $0x70] sm:$0xff] %vm184_vm2, %v1309_v13 }
 0x1cf   :  { %v2949_v14 = vpop.f32.mrb[16].mxu1 }
 0x1d0   :  { %2680 = vst.msk [vmem:[%s3422_s3 + $0x88] sm:$0xff] %vm184_vm2, %v2949_v14  ;;  %v1471_v15 = vpop.f32.mrb[17].mxu1 }
 0x1d1   :  { %2679 = vst.msk [vmem:[%s3422_s3 + $0x80] sm:$0xff] %vm184_vm2, %v1471_v15 }
 0x1d3   :  { %v2961_v16 = vpop.f32.mrb[18].mxu1 }
 0x1d4   :  { %2687 = vst.msk [vmem:[%s3422_s3 + $0x98] sm:$0xff] %vm184_vm2, %v2961_v16  ;;  %v1633_v17 = vpop.f32.mrb[19].mxu1 }
 0x1d5   :  { %2686 = vst.msk [vmem:[%s3422_s3 + $0x90] sm:$0xff] %vm184_vm2, %v1633_v17 }
 0x1d7   :  { %v2973_v18 = vpop.f32.mrb[20].mxu1 }
 0x1d8   :  { %2694 = vst.msk [vmem:[%s3422_s3 + $0xa8] sm:$0xff] %vm184_vm2, %v2973_v18  ;;  %v1795_v19 = vpop.f32.mrb[21].mxu1 }
 0x1d9   :  { %2693 = vst.msk [vmem:[%s3422_s3 + $0xa0] sm:$0xff] %vm184_vm2, %v1795_v19 }
 0x1db   :  { %v2985_v20 = vpop.f32.mrb[22].mxu1 }
 0x1dc   :  { %2701 = vst.msk [vmem:[%s3422_s3 + $0xb8] sm:$0xff] %vm184_vm2, %v2985_v20  ;;  %v1957_v21 = vpop.f32.mrb[23].mxu1 }
 0x1dd   :  { %2700 = vst.msk [vmem:[%s3422_s3 + $0xb0] sm:$0xff] %vm184_vm2, %v1957_v21 }
 0x1df   :  { %v2997_v22 = vpop.f32.mrb[24].mxu1 }
 0x1e0   :  { %2708 = vst.msk [vmem:[%s3422_s3 + $0xc8] sm:$0xff] %vm184_vm2, %v2997_v22  ;;  %v2119_v23 = vpop.f32.mrb[25].mxu1 }
 0x1e1   :  { %2707 = vst.msk [vmem:[%s3422_s3 + $0xc0] sm:$0xff] %vm184_vm2, %v2119_v23 }
 0x1e3   :  { %v3009_v24 = vpop.f32.mrb[26].mxu1 }
 0x1e4   :  { %2715 = vst.msk [vmem:[%s3422_s3 + $0xd8] sm:$0xff] %vm184_vm2, %v3009_v24  ;;  %v2281_v25 = vpop.f32.mrb[27].mxu1 }
 0x1e5   :  { %2714 = vst.msk [vmem:[%s3422_s3 + $0xd0] sm:$0xff] %vm184_vm2, %v2281_v25 }
 0x1e7   :  { %v3021_v26 = vpop.f32.mrb[28].mxu1 }
 0x1e8   :  { %2722 = vst.msk [vmem:[%s3422_s3 + $0xe8] sm:$0xff] %vm184_vm2, %v3021_v26  ;;  %v2443_v27 = vpop.f32.mrb[29].mxu1 }
 0x1e9   :  { %2721 = vst.msk [vmem:[%s3422_s3 + $0xe0] sm:$0xff] %vm184_vm2, %v2443_v27 }
 0x1eb   :  { %v3033_v28 = vpop.f32.mrb[30].mxu1 }
 0x1ec   :  { %2729 = vst.msk [vmem:[%s3422_s3 + $0xf8] sm:$0xff] %vm184_vm2, %v3033_v28  ;;  %v2605_v29 = vpop.f32.mrb[31].mxu1 }
 0x1ed   :  { %2728 = vst.msk [vmem:[%s3422_s3 + $0xf0] sm:$0xff] %vm184_vm2, %v2605_v29 }

</bundles_post_ra>
